<compile_context>
chip_gen: v6e
topology: v6e:2x2x1
jax: 0.10.0
libtpu: 0.0.40
codegen_flags: <defaults>
</compile_context>

<pallas_src>
import functools

import jax
import jax.numpy as jnp
from jax.experimental import pallas as pl
from jax.experimental.pallas import tpu as pltpu

CP = 128  # padded channel width (lane-dense everywhere)


def _round_up(x, m):
    return (x + m - 1) // m * m


def _prefer_big_k():
    """Tap-concatenated big-K dots pay on 256-wide MXUs (v6e/v7x); v5e and
    older have 128-wide MXUs where per-tap K=128 already matches the HW."""
    try:
        kind = jax.devices()[0].device_kind.lower()
    except Exception:
        return False
    return not any(v in kind for v in ("v2", "v3", "v4", "v5"))


# ----------------------------- fused conv kernel -----------------------------

def _make_conv_kernel(*, kh, kw, pad, W, Wp, M_in, M_out, OW, base,
                      emit_feature, big_k):
    n_taps = kh * kw

    def kernel(x_ref, w_ref, b_ref, sc_ref, sh_ref, *rest):
        pos = 0
        o_ref = None
        if emit_feature:
            o_ref = rest[pos]
            pos += 1
        sum_ref, ssq_ref = rest[pos], rest[pos + 1]
        scratch = rest[pos + 2:]

        if n_taps == 1:
            # conv1: input is already im2col-packed (27 real K lanes) and has
            # no preceding BN affine -> single MXU matmul straight off the
            # bf16 input block.
            acc = jnp.dot(x_ref[0], w_ref[0],
                          preferred_element_type=jnp.float32)
        else:
            xa_ref = scratch[0]
            # Previous layer's BatchNorm affine folded in, with a width-column
            # validity mask so the shift never leaks into padded columns.
            col = jax.lax.broadcasted_iota(jnp.int32, (M_in, 1), 0) % Wp
            xa = x_ref[0].astype(jnp.float32) * sc_ref[...] + sh_ref[...]
            if base > 0:           # spatial-padding halo (pad == 1 layer)
                xa_ref[0:base, :] = jnp.zeros((base, CP), jnp.float32)
            tail = xa_ref.shape[0] - base - M_in
            if tail > 0:           # slack so shifted windows never read OOB
                xa_ref[base + M_in:, :] = jnp.zeros((tail, CP), jnp.float32)
            xa_ref[base:base + M_in, :] = jnp.where(col < W, xa, 0.0)

            if big_k:
                # v6e/v7x: build a bf16 im2col slab and do ONE K=taps*128 dot
                # (accumulation stays inside the MXU, no per-tap VPU adds).
                slab_ref = scratch[1]
                for t in range(n_taps):
                    ki, kj = divmod(t, kw)
                    off = base + (ki - pad) * Wp + (kj - pad)  # static, >= 0
                    slab_ref[:, t * CP:(t + 1) * CP] = (
                        xa_ref[pl.ds(off, M_out), :].astype(jnp.bfloat16))
                acc = jnp.dot(slab_ref[...], w_ref[...],
                              preferred_element_type=jnp.float32)
            else:
                # v5e: per-tap K=128 matmuls (matches the 4x128^2 MXU).
                acc = jnp.zeros((M_out, CP), jnp.float32)
                for t in range(n_taps):
                    ki, kj = divmod(t, kw)
                    off = base + (ki - pad) * Wp + (kj - pad)
                    win = xa_ref[pl.ds(off, M_out), :].astype(jnp.bfloat16)
                    acc = acc + jnp.dot(win, w_ref[t],
                                        preferred_element_type=jnp.float32)

        acc = acc + b_ref[...]
        # Zero the width-padding columns before output / statistics.
        orow = jax.lax.broadcasted_iota(jnp.int32, (M_out, 1), 0)
        acc = jnp.where((orow % Wp) < OW, acc, 0.0)

        if emit_feature:
            o_ref[0] = acc.astype(o_ref.dtype)      # bf16, halo-free
        sum_ref[0] = jnp.sum(acc, axis=0, keepdims=True)
        ssq_ref[0] = jnp.sum(acc * acc, axis=0, keepdims=True)

    return kernel


def conv_bn_layer(x_flat, w, bias, scale, shift, *, kh, kw, pad, H, W, Wp,
                  emit_feature, big_k):
    """x_flat: (N, H*Wp, CP) bf16 feature map in flat width-padded layout."""
    N, M_in, _ = x_flat.shape
    assert M_in == H * Wp
    assert pad == 0 or W < Wp  # padding=1 needs >=1 zero column on the right
    OH = H + 2 * pad - kh + 1
    OW = W + 2 * pad - kw + 1
    M_out = OH * Wp
    n_taps = kh * kw
    use_big_k = bool(big_k) and n_taps > 1
    base = 0 if pad == 0 else Wp + 8            # head halo (multiple of 8)
    tail = 8 if pad == 0 else Wp + 8            # read slack / tail halo

    kernel = _make_conv_kernel(kh=kh, kw=kw, pad=pad, W=W, Wp=Wp, M_in=M_in,
                               M_out=M_out, OW=OW, base=base,
                               emit_feature=emit_feature, big_k=use_big_k)

    if use_big_k:
        w_arg = w.reshape(n_taps * CP, CP)
        w_spec = pl.BlockSpec((n_taps * CP, CP), lambda n: (0, 0))
    else:
        w_arg = w
        w_spec = pl.BlockSpec((n_taps, CP, CP), lambda n: (0, 0, 0))

    out_shape, out_specs = [], []
    if emit_feature:
        out_shape.append(jax.ShapeDtypeStruct((N, M_out, CP), jnp.bfloat16))
        out_specs.append(pl.BlockSpec((1, M_out, CP), lambda n: (n, 0, 0)))
    out_shape += [jax.ShapeDtypeStruct((N, 1, CP), jnp.float32)] * 2
    out_specs += [pl.BlockSpec((1, 1, CP), lambda n: (n, 0, 0)),
                  pl.BlockSpec((1, 1, CP), lambda n: (n, 0, 0))]

    scratch_shapes = []
    if n_taps > 1:
        scratch_shapes.append(
            pltpu.VMEM((base + M_in + tail, CP), jnp.float32))
        if use_big_k:
            scratch_shapes.append(
                pltpu.VMEM((M_out, n_taps * CP), jnp.bfloat16))

    outs = pl.pallas_call(
        kernel,
        out_shape=tuple(out_shape),
        grid=(N,),
        in_specs=[
            pl.BlockSpec((1, M_in, CP), lambda n: (n, 0, 0)),  # activations
            w_spec,                                            # weights (bf16)
            pl.BlockSpec((1, CP), lambda n: (0, 0)),           # bias
            pl.BlockSpec((1, CP), lambda n: (0, 0)),           # folded BN scale
            pl.BlockSpec((1, CP), lambda n: (0, 0)),           # folded BN shift
        ],
        out_specs=tuple(out_specs),
        scratch_shapes=scratch_shapes,
        compiler_params=pltpu.CompilerParams(
            dimension_semantics=("parallel",),
            vmem_limit_bytes=48 * 1024 * 1024),
    )(x_flat, w_arg, bias, scale, shift)

    if emit_feature:
        feat, s, q = outs
    else:
        feat = None
        s, q = outs
    return feat, s[:, 0, :], q[:, 0, :], OH, OW


# ----------------------------- JAX glue (tiny) -----------------------------

def bn_affine(sums, ssqs, gamma_p, beta_p, count, extra=0.0, n_real=64,
              eps=1e-5):
    """Per-channel scale/shift from batch statistics (biased variance)."""
    # TODO(synk): var = E[x^2]-E[x]^2 in f32 cancels badly when mean^2 >> var
    # (very large H*W); center or Kahan-accumulate if that regime matters.
    tot = jnp.sum(sums, axis=0)
    totq = jnp.sum(ssqs, axis=0)
    mean = tot / count
    var = jnp.maximum(totq / count - mean * mean, 0.0)
    scale = gamma_p * jax.lax.rsqrt(var + eps)
    shift = beta_p - mean * scale
    if extra:  # fold torch.add(x, 0.1) into the shift of the real channels
        shift = shift + extra * (jnp.arange(CP) < n_real).astype(jnp.float32)
    return scale.reshape(1, CP), shift.reshape(1, CP)


def init_params(key):
    ks = jax.random.split(key, 7)

    def prep_w(w):  # (Cout, Cin, kh, kw) -> (kh*kw, CP, CP) bf16
        cout, cin, kh, kw = w.shape
        w = jnp.transpose(w, (2, 3, 1, 0)).reshape(kh * kw, cin, cout)
        return jnp.pad(w, ((0, 0), (0, CP - cin), (0, CP - cout))
                       ).astype(jnp.bfloat16)

    def prep_b(b, cout):
        return jnp.zeros((1, CP), jnp.float32).at[0, :cout].set(b)

    def prep_v(v):
        return jnp.pad(v.astype(jnp.float32), (0, CP - v.shape[0]))

    p = {}
    # conv2d_1(3, 64, 3, bias=False): packed as an equivalent 1x1 conv over
    # 27 = 9 taps x 3 channels (matches the im2col packing of the input).
    w1 = jax.random.normal(ks[0], (64, 3, 3, 3), jnp.float32) * 0.10
    w1_eq = jnp.transpose(w1, (0, 2, 3, 1)).reshape(64, 27, 1, 1)
    p["w1"] = prep_w(w1_eq)
    p["g1"], p["be1"] = prep_v(jnp.ones(64)), prep_v(jnp.zeros(64))

    w2 = jax.random.normal(ks[1], (64, 64, 3, 3), jnp.float32) * 0.05
    c2 = jax.random.normal(ks[2], (64,), jnp.float32) * 0.05
    p["w2"], p["c2"] = prep_w(w2), prep_b(c2, 64)
    p["g2"], p["be2"] = prep_v(jnp.ones(64)), prep_v(jnp.zeros(64))

    w3 = jax.random.normal(ks[3], (32, 64, 2, 2), jnp.float32) * 0.05
    c3 = jax.random.normal(ks[4], (32,), jnp.float32) * 0.05
    p["w3"], p["c3"] = prep_w(w3), prep_b(c3, 32)
    p["g3"], p["be3"] = prep_v(jnp.ones(32)), prep_v(jnp.zeros(32))

    # TODO(synk): original __init__ declares Conv2d(288, 64, 3, padding=1) but
    # conv2d_3 only produces 32 channels, so the PyTorch module cannot run as
    # written; the weight is built with 32 input channels to keep it runnable.
    w4 = jax.random.normal(ks[5], (64, 32, 3, 3), jnp.float32) * 0.05
    c4 = jax.random.normal(ks[6], (64,), jnp.float32) * 0.05
    p["w4"], p["c4"] = prep_w(w4), prep_b(c4, 64)
    p["g4"], p["be4"] = prep_v(jnp.ones(64)), prep_v(jnp.zeros(64))
    return p


def model_forward(params, x_nchw, big_k=None):
    if big_k is None:
        big_k = _prefer_big_k()
    N, cin, H, W = x_nchw.shape
    assert cin == 3
    OH1, OW1 = H - 2, W - 2                    # conv1 output spatial size
    Wp = _round_up(max(OW1, 8), 16)

    # Layout prep + conv1 im2col packing: NCHW -> (N, OH1*Wp, 128) bf16 where
    # the 128 lanes hold 9 taps x 3 channels = 27 real values (rest zero).
    x = x_nchw.astype(jnp.float32)
    patches = [x[:, :, ki:ki + OH1, kj:kj + OW1]
               for ki in range(3) for kj in range(3)]
    xp = jnp.concatenate(patches, axis=1)                 # (N, 27, OH1, OW1)
    xp = jnp.transpose(xp, (0, 2, 3, 1))                  # (N, OH1, OW1, 27)
    xp = jnp.pad(xp, ((0, 0), (0, 0), (0, Wp - OW1), (0, CP - 27)))
    xp = xp.reshape(N, OH1 * Wp, CP).astype(jnp.bfloat16)

    one = jnp.ones((1, CP), jnp.float32)
    zero = jnp.zeros((1, CP), jnp.float32)

    # TODO(synk): for tiny inputs the whole batch fits VMEM; fusing all four
    # layers + BN reductions into one pallas_call would drop 3 HBM round trips.

    # conv2d_1 (no bias), single K=128 matmul -> BN1 stats
    feat, s, q, H1, W1 = conv_bn_layer(xp, params["w1"], zero, one, zero,
                                       kh=1, kw=1, pad=0, H=OH1, W=OW1, Wp=Wp,
                                       emit_feature=True, big_k=big_k)
    scale, shift = bn_affine(s, q, params["g1"], params["be1"], N * H1 * W1)

    # conv2d_2 (+ folded BN1) -> BN2 stats;  torch.add(x, 0.1) folded in shift
    # TODO(synk): torch.nn.BatchNorm1d rejects 4D input; same per-channel math.
    feat, s, q, H2, W2 = conv_bn_layer(feat, params["w2"], params["c2"],
                                       scale, shift, kh=3, kw=3, pad=0,
                                       H=H1, W=W1, Wp=Wp,
                                       emit_feature=True, big_k=big_k)
    scale, shift = bn_affine(s, q, params["g2"], params["be2"], N * H2 * W2,
                             extra=0.1, n_real=64)

    # conv2d_3 (+ folded BN2 & +0.1) -> BN3 stats
    feat, s, q, H3, W3 = conv_bn_layer(feat, params["w3"], params["c3"],
                                       scale, shift, kh=2, kw=2, pad=0,
                                       H=H2, W=W2, Wp=Wp,
                                       emit_feature=True, big_k=big_k)
    scale, shift = bn_affine(s, q, params["g3"], params["be3"], N * H3 * W3)

    # conv2d_4 (padding=1, + folded BN3) -> only per-sample channel sums needed
    _, s, q, H4, W4 = conv_bn_layer(feat, params["w4"], params["c4"],
                                    scale, shift, kh=3, kw=3, pad=1,
                                    H=H3, W=W3, Wp=Wp,
                                    emit_feature=False, big_k=big_k)
    scale4, shift4 = bn_affine(s, q, params["g4"], params["be4"], N * H4 * W4)

    # BN4 + AdaptiveAvgPool2d((1,1)) + flatten, directly from per-sample sums:
    # mean_hw(BN4(y)) = scale4 * mean_hw(y) + shift4 (conv4 map never hits HBM).
    pooled = (s / float(H4 * W4)) * scale4 + shift4       # (N, CP)
    return pooled[:, :64]


if __name__ == "__main__":
    key = jax.random.PRNGKey(0)
    pkey, xkey = jax.random.split(key)
    params = init_params(pkey)
    # Small NCHW input consistent with the module (original was 1x3x224x224).
    x = jax.random.normal(xkey, (2, 3, 16, 16), jnp.float32)
    fwd = jax.jit(functools.partial(model_forward, params))
    out = jax.block_until_ready(fwd(x))
    assert out.shape == (2, 64) and out.dtype == jnp.float32
    print("KERNEL_OK")
</pallas_src>

<mosaic_0001>
module attributes {stable_mosaic.version = 11 : i64} {
  func.func @kernel(%arg0: i32, %arg1: memref<1x224x128xbf16, #tpu.memory_space<vmem>>, %arg2: memref<1152x128xbf16, #tpu.memory_space<vmem>>, %arg3: memref<1x128xf32, #tpu.memory_space<vmem>>, %arg4: memref<1x128xf32, #tpu.memory_space<vmem>>, %arg5: memref<1x128xf32, #tpu.memory_space<vmem>>, %arg6: memref<1x192x128xbf16, #tpu.memory_space<vmem>>, %arg7: memref<1x1x128xf32, #tpu.memory_space<vmem>>, %arg8: memref<1x1x128xf32, #tpu.memory_space<vmem>>, %arg9: memref<232x128xf32, #tpu.memory_space<vmem>>, %arg10: memref<192x1152xbf16, #tpu.memory_space<vmem>>) attributes {dimension_semantics = [#tpu.dimension_semantics<parallel>], iteration_bounds = array<i64: 2>, scalar_prefetch = 0 : i64, scratch_operands = 2 : i64, tpu.core_type = #tpu.core_type<tc>, window_params = [{transform_indices = @transform_0, window_bounds = array<i64: 1, 224, 128>}, {pipeline_mode = #tpu.pipeline_mode<synchronous>, transform_indices = @transform_1, window_bounds = array<i64: 1152, 128>}, {pipeline_mode = #tpu.pipeline_mode<synchronous>, transform_indices = @transform_2, window_bounds = array<i64: 1, 128>}, {pipeline_mode = #tpu.pipeline_mode<synchronous>, transform_indices = @transform_3, window_bounds = array<i64: 1, 128>}, {pipeline_mode = #tpu.pipeline_mode<synchronous>, transform_indices = @transform_4, window_bounds = array<i64: 1, 128>}, {transform_indices = @transform_5, window_bounds = array<i64: 1, 192, 128>}, {transform_indices = @transform_6, window_bounds = array<i64: 1, 1, 128>}, {transform_indices = @transform_7, window_bounds = array<i64: 1, 1, 128>}]} {
    %0 = tpu.iota {dimensions = array<i32: 0>} : vector<224x1xi32>
    %c16_i32 = arith.constant 16 : i32
    %c0_i32 = arith.constant 0 : i32
    %1 = arith.cmpi eq, %c16_i32, %c0_i32 : i32
    %c1_i32 = arith.constant 1 : i32
    %2 = arith.select %1, %c1_i32, %c16_i32 : i32
    %3 = vector.broadcast %2 : i32 to vector<224x1xi32>
    %4 = arith.remsi %0, %3 : vector<224x1xi32>
    %c0_i32_0 = arith.constant 0 : i32
    %5 = vector.broadcast %c0_i32_0 : i32 to vector<224x1xi32>
    %6 = arith.cmpi ne, %4, %5 : vector<224x1xi32>
    %c0_i32_1 = arith.constant 0 : i32
    %7 = vector.broadcast %c0_i32_1 : i32 to vector<224x1xi32>
    %8 = arith.cmpi slt, %4, %7 : vector<224x1xi32>
    %c0_i32_2 = arith.constant 0 : i32
    %9 = arith.cmpi slt, %2, %c0_i32_2 : i32
    %10 = vector.broadcast %9 : i1 to vector<224x1xi1>
    %11 = vector.broadcast %10 : vector<224x1xi1> to vector<224x1xi1>
    %12 = arith.xori %8, %11 : vector<224x1xi1>
    %13 = arith.andi %12, %6 : vector<224x1xi1>
    %14 = vector.broadcast %2 : i32 to vector<224x1xi32>
    %15 = arith.addi %4, %14 : vector<224x1xi32>
    %16 = arith.select %13, %15, %4 : vector<224x1xi1>, vector<224x1xi32>
    %c0 = arith.constant 0 : index
    %c0_3 = arith.constant 0 : index
    %c0_4 = arith.constant 0 : index
    %17 = vector.load %arg1[%c0, %c0_3, %c0_4] : memref<1x224x128xbf16, #tpu.memory_space<vmem>>, vector<1x224x128xbf16>
    %18 = vector.shape_cast %17 : vector<1x224x128xbf16> to vector<224x128xbf16>
    %19 = arith.extf %18 : vector<224x128xbf16> to vector<224x128xf32>
    %c0_5 = arith.constant 0 : index
    %c0_6 = arith.constant 0 : index
    %20 = vector.load %arg4[%c0_5, %c0_6] : memref<1x128xf32, #tpu.memory_space<vmem>>, vector<1x128xf32>
    %21 = vector.broadcast %20 : vector<1x128xf32> to vector<224x128xf32>
    %22 = arith.mulf %19, %21 : vector<224x128xf32>
    %c0_7 = arith.constant 0 : index
    %c0_8 = arith.constant 0 : index
    %23 = vector.load %arg5[%c0_7, %c0_8] : memref<1x128xf32, #tpu.memory_space<vmem>>, vector<1x128xf32>
    %24 = vector.broadcast %23 : vector<1x128xf32> to vector<224x128xf32>
    %25 = arith.addf %22, %24 : vector<224x128xf32>
    %cst = arith.constant 0.000000e+00 : f32
    %26 = vector.broadcast %cst : f32 to vector<8x128xf32>
    %c224 = arith.constant 224 : index
    %c0_9 = arith.constant 0 : index
    %27 = vector.load %arg9[%c224, %c0_9] : memref<232x128xf32, #tpu.memory_space<vmem>>, vector<8x128xf32>
    tpu.vector_store %arg9[%c224, %c0_9], %26 {strides = array<i32>} : memref<232x128xf32, #tpu.memory_space<vmem>>, vector<8x128xf32>,
    %c14_i32 = arith.constant 14 : i32
    %28 = vector.broadcast %c14_i32 : i32 to vector<224x1xi32>
    %29 = arith.cmpi slt, %16, %28 : vector<224x1xi32>
    %cst_10 = arith.constant 0.000000e+00 : f32
    %30 = vector.shape_cast %29 : vector<224x1xi1> to vector<224x1xi1>
    %31 = vector.broadcast %30 : vector<224x1xi1> to vector<224x128xi1>
    %32 = vector.broadcast %cst_10 : f32 to vector<224x128xf32>
    %33 = arith.select %31, %25, %32 : vector<224x128xi1>, vector<224x128xf32>
    %c0_11 = arith.constant 0 : index
    %c0_12 = arith.constant 0 : index
    %34 = vector.load %arg9[%c0_11, %c0_12] : memref<232x128xf32, #tpu.memory_space<vmem>>, vector<224x128xf32>
    tpu.vector_store %arg9[%c0_11, %c0_12], %33 {strides = array<i32>} : memref<232x128xf32, #tpu.memory_space<vmem>>, vector<224x128xf32>,
    %c0_13 = arith.constant 0 : index
    %c0_14 = arith.constant 0 : index
    %35 = vector.load %arg9[%c0_13, %c0_14] : memref<232x128xf32, #tpu.memory_space<vmem>>, vector<192x128xf32>
    %36 = arith.truncf %35 : vector<192x128xf32> to vector<192x128xbf16>
    %c0_15 = arith.constant 0 : index
    %c0_16 = arith.constant 0 : index
    %37 = vector.load %arg10[%c0_15, %c0_16] : memref<192x1152xbf16, #tpu.memory_space<vmem>>, vector<192x128xbf16>
    tpu.vector_store %arg10[%c0_15, %c0_16], %36 {strides = array<i32>} : memref<192x1152xbf16, #tpu.memory_space<vmem>>, vector<192x128xbf16>,
    %c1 = arith.constant 1 : index
    %c0_17 = arith.constant 0 : index
    %38 = vector.load %arg9[%c1, %c0_17] : memref<232x128xf32, #tpu.memory_space<vmem>>, vector<192x128xf32>
    %39 = arith.truncf %38 : vector<192x128xf32> to vector<192x128xbf16>
    %c0_18 = arith.constant 0 : index
    %c128 = arith.constant 128 : index
    %40 = vector.load %arg10[%c0_18, %c128] : memref<192x1152xbf16, #tpu.memory_space<vmem>>, vector<192x128xbf16>
    tpu.vector_store %arg10[%c0_18, %c128], %39 {strides = array<i32>} : memref<192x1152xbf16, #tpu.memory_space<vmem>>, vector<192x128xbf16>,
    %c2 = arith.constant 2 : index
    %c0_19 = arith.constant 0 : index
    %41 = vector.load %arg9[%c2, %c0_19] : memref<232x128xf32, #tpu.memory_space<vmem>>, vector<192x128xf32>
    %42 = arith.truncf %41 : vector<192x128xf32> to vector<192x128xbf16>
    %c0_20 = arith.constant 0 : index
    %c256 = arith.constant 256 : index
    %43 = vector.load %arg10[%c0_20, %c256] : memref<192x1152xbf16, #tpu.memory_space<vmem>>, vector<192x128xbf16>
    tpu.vector_store %arg10[%c0_20, %c256], %42 {strides = array<i32>} : memref<192x1152xbf16, #tpu.memory_space<vmem>>, vector<192x128xbf16>,
    %c16 = arith.constant 16 : index
    %c0_21 = arith.constant 0 : index
    %44 = vector.load %arg9[%c16, %c0_21] : memref<232x128xf32, #tpu.memory_space<vmem>>, vector<192x128xf32>
    %45 = arith.truncf %44 : vector<192x128xf32> to vector<192x128xbf16>
    %c0_22 = arith.constant 0 : index
    %c384 = arith.constant 384 : index
    %46 = vector.load %arg10[%c0_22, %c384] : memref<192x1152xbf16, #tpu.memory_space<vmem>>, vector<192x128xbf16>
    tpu.vector_store %arg10[%c0_22, %c384], %45 {strides = array<i32>} : memref<192x1152xbf16, #tpu.memory_space<vmem>>, vector<192x128xbf16>,
    %c17 = arith.constant 17 : index
    %c0_23 = arith.constant 0 : index
    %47 = vector.load %arg9[%c17, %c0_23] : memref<232x128xf32, #tpu.memory_space<vmem>>, vector<192x128xf32>
    %48 = arith.truncf %47 : vector<192x128xf32> to vector<192x128xbf16>
    %c0_24 = arith.constant 0 : index
    %c512 = arith.constant 512 : index
    %49 = vector.load %arg10[%c0_24, %c512] : memref<192x1152xbf16, #tpu.memory_space<vmem>>, vector<192x128xbf16>
    tpu.vector_store %arg10[%c0_24, %c512], %48 {strides = array<i32>} : memref<192x1152xbf16, #tpu.memory_space<vmem>>, vector<192x128xbf16>,
    %c18 = arith.constant 18 : index
    %c0_25 = arith.constant 0 : index
    %50 = vector.load %arg9[%c18, %c0_25] : memref<232x128xf32, #tpu.memory_space<vmem>>, vector<192x128xf32>
    %51 = arith.truncf %50 : vector<192x128xf32> to vector<192x128xbf16>
    %c0_26 = arith.constant 0 : index
    %c640 = arith.constant 640 : index
    %52 = vector.load %arg10[%c0_26, %c640] : memref<192x1152xbf16, #tpu.memory_space<vmem>>, vector<192x128xbf16>
    tpu.vector_store %arg10[%c0_26, %c640], %51 {strides = array<i32>} : memref<192x1152xbf16, #tpu.memory_space<vmem>>, vector<192x128xbf16>,
    %c32 = arith.constant 32 : index
    %c0_27 = arith.constant 0 : index
    %53 = vector.load %arg9[%c32, %c0_27] : memref<232x128xf32, #tpu.memory_space<vmem>>, vector<192x128xf32>
    %54 = arith.truncf %53 : vector<192x128xf32> to vector<192x128xbf16>
    %c0_28 = arith.constant 0 : index
    %c768 = arith.constant 768 : index
    %55 = vector.load %arg10[%c0_28, %c768] : memref<192x1152xbf16, #tpu.memory_space<vmem>>, vector<192x128xbf16>
    tpu.vector_store %arg10[%c0_28, %c768], %54 {strides = array<i32>} : memref<192x1152xbf16, #tpu.memory_space<vmem>>, vector<192x128xbf16>,
    %c33 = arith.constant 33 : index
    %c0_29 = arith.constant 0 : index
    %56 = vector.load %arg9[%c33, %c0_29] : memref<232x128xf32, #tpu.memory_space<vmem>>, vector<192x128xf32>
    %57 = arith.truncf %56 : vector<192x128xf32> to vector<192x128xbf16>
    %c0_30 = arith.constant 0 : index
    %c896 = arith.constant 896 : index
    %58 = vector.load %arg10[%c0_30, %c896] : memref<192x1152xbf16, #tpu.memory_space<vmem>>, vector<192x128xbf16>
    tpu.vector_store %arg10[%c0_30, %c896], %57 {strides = array<i32>} : memref<192x1152xbf16, #tpu.memory_space<vmem>>, vector<192x128xbf16>,
    %c34 = arith.constant 34 : index
    %c0_31 = arith.constant 0 : index
    %59 = vector.load %arg9[%c34, %c0_31] : memref<232x128xf32, #tpu.memory_space<vmem>>, vector<192x128xf32>
    %60 = arith.truncf %59 : vector<192x128xf32> to vector<192x128xbf16>
    %c0_32 = arith.constant 0 : index
    %c1024 = arith.constant 1024 : index
    %61 = vector.load %arg10[%c0_32, %c1024] : memref<192x1152xbf16, #tpu.memory_space<vmem>>, vector<192x128xbf16>
    tpu.vector_store %arg10[%c0_32, %c1024], %60 {strides = array<i32>} : memref<192x1152xbf16, #tpu.memory_space<vmem>>, vector<192x128xbf16>,
    %c0_33 = arith.constant 0 : index
    %c0_34 = arith.constant 0 : index
    %62 = vector.load %arg10[%c0_33, %c0_34] : memref<192x1152xbf16, #tpu.memory_space<vmem>>, vector<192x1152xbf16>
    %c0_35 = arith.constant 0 : index
    %c0_36 = arith.constant 0 : index
    %63 = vector.load %arg2[%c0_35, %c0_36] : memref<1152x128xbf16, #tpu.memory_space<vmem>>, vector<1152x128xbf16>
    %cst_37 = arith.constant dense<0.000000e+00> : vector<192x128xf32>
    %64 = tpu.matmul %62, %63, %cst_37 {dimension_numbers = #tpu.dot_dimension_numbers<[1], [0], [0], [1], [0, 0, 1, 1], [], []>} : vector<192x1152xbf16>, vector<1152x128xbf16>, vector<192x128xf32> -> vector<192x128xf32>
    %c0_38 = arith.constant 0 : index
    %c0_39 = arith.constant 0 : index
    %65 = vector.load %arg3[%c0_38, %c0_39] : memref<1x128xf32, #tpu.memory_space<vmem>>, vector<1x128xf32>
    %66 = vector.broadcast %65 : vector<1x128xf32> to vector<192x128xf32>
    %67 = arith.addf %64, %66 : vector<192x128xf32>
    %68 = tpu.iota {dimensions = array<i32: 0>} : vector<192x1xi32>
    %c16_i32_40 = arith.constant 16 : i32
    %c0_i32_41 = arith.constant 0 : i32
    %69 = arith.cmpi eq, %c16_i32_40, %c0_i32_41 : i32
    %c1_i32_42 = arith.constant 1 : i32
    %70 = arith.select %69, %c1_i32_42, %c16_i32_40 : i32
    %71 = vector.broadcast %70 : i32 to vector<192x1xi32>
    %72 = arith.remsi %68, %71 : vector<192x1xi32>
    %c0_i32_43 = arith.constant 0 : i32
    %73 = vector.broadcast %c0_i32_43 : i32 to vector<192x1xi32>
    %74 = arith.cmpi ne, %72, %73 : vector<192x1xi32>
    %c0_i32_44 = arith.constant 0 : i32
    %75 = vector.broadcast %c0_i32_44 : i32 to vector<192x1xi32>
    %76 = arith.cmpi slt, %72, %75 : vector<192x1xi32>
    %c0_i32_45 = arith.constant 0 : i32
    %77 = arith.cmpi slt, %70, %c0_i32_45 : i32
    %78 = vector.broadcast %77 : i1 to vector<192x1xi1>
    %79 = vector.broadcast %78 : vector<192x1xi1> to vector<192x1xi1>
    %80 = arith.xori %76, %79 : vector<192x1xi1>
    %81 = arith.andi %80, %74 : vector<192x1xi1>
    %82 = vector.broadcast %70 : i32 to vector<192x1xi32>
    %83 = arith.addi %72, %82 : vector<192x1xi32>
    %84 = arith.select %81, %83, %72 : vector<192x1xi1>, vector<192x1xi32>
    %c12_i32 = arith.constant 12 : i32
    %85 = vector.broadcast %c12_i32 : i32 to vector<192x1xi32>
    %86 = arith.cmpi slt, %84, %85 : vector<192x1xi32>
    %cst_46 = arith.constant 0.000000e+00 : f32
    %87 = vector.shape_cast %86 : vector<192x1xi1> to vector<192x1xi1>
    %88 = vector.broadcast %87 : vector<192x1xi1> to vector<192x128xi1>
    %89 = vector.broadcast %cst_46 : f32 to vector<192x128xf32>
    %90 = arith.select %88, %67, %89 : vector<192x128xi1>, vector<192x128xf32>
    %91 = arith.truncf %90 : vector<192x128xf32> to vector<192x128xbf16>
    %c0_47 = arith.constant 0 : index
    %c0_48 = arith.constant 0 : index
    %c0_49 = arith.constant 0 : index
    %92 = vector.load %arg6[%c0_47, %c0_48, %c0_49] : memref<1x192x128xbf16, #tpu.memory_space<vmem>>, vector<1x192x128xbf16>
    %93 = vector.shape_cast %92 : vector<1x192x128xbf16> to vector<192x128xbf16>
    %94 = vector.shape_cast %91 : vector<192x128xbf16> to vector<1x192x128xbf16>
    tpu.vector_store %arg6[%c0_47, %c0_48, %c0_49], %94 {strides = array<i32>} : memref<1x192x128xbf16, #tpu.memory_space<vmem>>, vector<1x192x128xbf16>,
    %cst_50 = arith.constant dense<0.000000e+00> : vector<128xf32>
    %95 = vector.multi_reduction <add>, %90, %cst_50 [0] : vector<192x128xf32> to vector<128xf32>
    %96 = vector.shape_cast %95 : vector<128xf32> to vector<1x128xf32>
    %c0_51 = arith.constant 0 : index
    %c0_52 = arith.constant 0 : index
    %c0_53 = arith.constant 0 : index
    %97 = vector.load %arg7[%c0_51, %c0_52, %c0_53] : memref<1x1x128xf32, #tpu.memory_space<vmem>>, vector<1x1x128xf32>
    %98 = vector.shape_cast %97 : vector<1x1x128xf32> to vector<1x128xf32>
    %99 = vector.shape_cast %96 : vector<1x128xf32> to vector<1x1x128xf32>
    tpu.vector_store %arg7[%c0_51, %c0_52, %c0_53], %99 {strides = array<i32>} : memref<1x1x128xf32, #tpu.memory_space<vmem>>, vector<1x1x128xf32>,
    %100 = arith.mulf %90, %90 : vector<192x128xf32>
    %cst_54 = arith.constant dense<0.000000e+00> : vector<128xf32>
    %101 = vector.multi_reduction <add>, %100, %cst_54 [0] : vector<192x128xf32> to vector<128xf32>
    %102 = vector.shape_cast %101 : vector<128xf32> to vector<1x128xf32>
    %c0_55 = arith.constant 0 : index
    %c0_56 = arith.constant 0 : index
    %c0_57 = arith.constant 0 : index
    %103 = vector.load %arg8[%c0_55, %c0_56, %c0_57] : memref<1x1x128xf32, #tpu.memory_space<vmem>>, vector<1x1x128xf32>
    %104 = vector.shape_cast %103 : vector<1x1x128xf32> to vector<1x128xf32>
    %105 = vector.shape_cast %102 : vector<1x128xf32> to vector<1x1x128xf32>
    tpu.vector_store %arg8[%c0_55, %c0_56, %c0_57], %105 {strides = array<i32>} : memref<1x1x128xf32, #tpu.memory_space<vmem>>, vector<1x1x128xf32>,
    return
  }
  func.func @transform_0(%arg0: i32) -> (i32, i32, i32) {
    %c0_i32 = arith.constant 0 : i32
    %c0_i32_0 = arith.constant 0 : i32
    %c0_i32_1 = arith.constant 0 : i32
    return %arg0, %c0_i32, %c0_i32_0 : i32, i32, i32
  }
  func.func @transform_1(%arg0: i32) -> (i32, i32) {
    %c0_i32 = arith.constant 0 : i32
    %c0_i32_0 = arith.constant 0 : i32
    %c0_i32_1 = arith.constant 0 : i32
    return %c0_i32, %c0_i32_0 : i32, i32
  }
  func.func @transform_2(%arg0: i32) -> (i32, i32) {
    %c0_i32 = arith.constant 0 : i32
    %c0_i32_0 = arith.constant 0 : i32
    %c0_i32_1 = arith.constant 0 : i32
    return %c0_i32, %c0_i32_0 : i32, i32
  }
  func.func @transform_3(%arg0: i32) -> (i32, i32) {
    %c0_i32 = arith.constant 0 : i32
    %c0_i32_0 = arith.constant 0 : i32
    %c0_i32_1 = arith.constant 0 : i32
    return %c0_i32, %c0_i32_0 : i32, i32
  }
  func.func @transform_4(%arg0: i32) -> (i32, i32) {
    %c0_i32 = arith.constant 0 : i32
    %c0_i32_0 = arith.constant 0 : i32
    %c0_i32_1 = arith.constant 0 : i32
    return %c0_i32, %c0_i32_0 : i32, i32
  }
  func.func @transform_5(%arg0: i32) -> (i32, i32, i32) {
    %c0_i32 = arith.constant 0 : i32
    %c0_i32_0 = arith.constant 0 : i32
    %c0_i32_1 = arith.constant 0 : i32
    return %arg0, %c0_i32, %c0_i32_0 : i32, i32, i32
  }
  func.func @transform_6(%arg0: i32) -> (i32, i32, i32) {
    %c0_i32 = arith.constant 0 : i32
    %c0_i32_0 = arith.constant 0 : i32
    %c0_i32_1 = arith.constant 0 : i32
    return %arg0, %c0_i32, %c0_i32_0 : i32, i32, i32
  }
  func.func @transform_7(%arg0: i32) -> (i32, i32, i32) {
    %c0_i32 = arith.constant 0 : i32
    %c0_i32_0 = arith.constant 0 : i32
    %c0_i32_1 = arith.constant 0 : i32
    return %arg0, %c0_i32, %c0_i32_0 : i32, i32, i32
  }
}

module attributes {stable_mosaic.version = 11 : i64} {
  func.func @kernel(%arg0: i32, %arg1: memref<1x224x128xbf16, #tpu.memory_space<vmem>>, %arg2: memref<1x128x128xbf16, #tpu.memory_space<vmem>>, %arg3: memref<1x128xf32, #tpu.memory_space<vmem>>, %arg4: memref<1x128xf32, #tpu.memory_space<vmem>>, %arg5: memref<1x128xf32, #tpu.memory_space<vmem>>, %arg6: memref<1x224x128xbf16, #tpu.memory_space<vmem>>, %arg7: memref<1x1x128xf32, #tpu.memory_space<vmem>>, %arg8: memref<1x1x128xf32, #tpu.memory_space<vmem>>) attributes {dimension_semantics = [#tpu.dimension_semantics<parallel>], iteration_bounds = array<i64: 2>, scalar_prefetch = 0 : i64, scratch_operands = 0 : i64, tpu.core_type = #tpu.core_type<tc>, window_params = [{transform_indices = @transform_0, window_bounds = array<i64: 1, 224, 128>}, {pipeline_mode = #tpu.pipeline_mode<synchronous>, transform_indices = @transform_1, window_bounds = array<i64: 1, 128, 128>}, {pipeline_mode = #tpu.pipeline_mode<synchronous>, transform_indices = @transform_2, window_bounds = array<i64: 1, 128>}, {pipeline_mode = #tpu.pipeline_mode<synchronous>, transform_indices = @transform_3, window_bounds = array<i64: 1, 128>}, {pipeline_mode = #tpu.pipeline_mode<synchronous>, transform_indices = @transform_4, window_bounds = array<i64: 1, 128>}, {transform_indices = @transform_5, window_bounds = array<i64: 1, 224, 128>}, {transform_indices = @transform_6, window_bounds = array<i64: 1, 1, 128>}, {transform_indices = @transform_7, window_bounds = array<i64: 1, 1, 128>}]} {
    %c0 = arith.constant 0 : index
    %c0_0 = arith.constant 0 : index
    %c0_1 = arith.constant 0 : index
    %0 = vector.load %arg1[%c0, %c0_0, %c0_1] : memref<1x224x128xbf16, #tpu.memory_space<vmem>>, vector<1x224x128xbf16>
    %1 = vector.shape_cast %0 : vector<1x224x128xbf16> to vector<224x128xbf16>
    %c0_2 = arith.constant 0 : index
    %c0_3 = arith.constant 0 : index
    %c0_4 = arith.constant 0 : index
    %2 = vector.load %arg2[%c0_2, %c0_3, %c0_4] : memref<1x128x128xbf16, #tpu.memory_space<vmem>>, vector<1x128x128xbf16>
    %3 = vector.shape_cast %2 : vector<1x128x128xbf16> to vector<128x128xbf16>
    %cst = arith.constant dense<0.000000e+00> : vector<224x128xf32>
    %4 = tpu.matmul %1, %3, %cst {dimension_numbers = #tpu.dot_dimension_numbers<[1], [0], [0], [1], [0, 0, 1, 1], [], []>} : vector<224x128xbf16>, vector<128x128xbf16>, vector<224x128xf32> -> vector<224x128xf32>
    %c0_5 = arith.constant 0 : index
    %c0_6 = arith.constant 0 : index
    %5 = vector.load %arg3[%c0_5, %c0_6] : memref<1x128xf32, #tpu.memory_space<vmem>>, vector<1x128xf32>
    %6 = vector.broadcast %5 : vector<1x128xf32> to vector<224x128xf32>
    %7 = arith.addf %4, %6 : vector<224x128xf32>
    %8 = tpu.iota {dimensions = array<i32: 0>} : vector<224x1xi32>
    %c16_i32 = arith.constant 16 : i32
    %c0_i32 = arith.constant 0 : i32
    %9 = arith.cmpi eq, %c16_i32, %c0_i32 : i32
    %c1_i32 = arith.constant 1 : i32
    %10 = arith.select %9, %c1_i32, %c16_i32 : i32
    %11 = vector.broadcast %10 : i32 to vector<224x1xi32>
    %12 = arith.remsi %8, %11 : vector<224x1xi32>
    %c0_i32_7 = arith.constant 0 : i32
    %13 = vector.broadcast %c0_i32_7 : i32 to vector<224x1xi32>
    %14 = arith.cmpi ne, %12, %13 : vector<224x1xi32>
    %c0_i32_8 = arith.constant 0 : i32
    %15 = vector.broadcast %c0_i32_8 : i32 to vector<224x1xi32>
    %16 = arith.cmpi slt, %12, %15 : vector<224x1xi32>
    %c0_i32_9 = arith.constant 0 : i32
    %17 = arith.cmpi slt, %10, %c0_i32_9 : i32
    %18 = vector.broadcast %17 : i1 to vector<224x1xi1>
    %19 = vector.broadcast %18 : vector<224x1xi1> to vector<224x1xi1>
    %20 = arith.xori %16, %19 : vector<224x1xi1>
    %21 = arith.andi %20, %14 : vector<224x1xi1>
    %22 = vector.broadcast %10 : i32 to vector<224x1xi32>
    %23 = arith.addi %12, %22 : vector<224x1xi32>
    %24 = arith.select %21, %23, %12 : vector<224x1xi1>, vector<224x1xi32>
    %c14_i32 = arith.constant 14 : i32
    %25 = vector.broadcast %c14_i32 : i32 to vector<224x1xi32>
    %26 = arith.cmpi slt, %24, %25 : vector<224x1xi32>
    %cst_10 = arith.constant 0.000000e+00 : f32
    %27 = vector.shape_cast %26 : vector<224x1xi1> to vector<224x1xi1>
    %28 = vector.broadcast %27 : vector<224x1xi1> to vector<224x128xi1>
    %29 = vector.broadcast %cst_10 : f32 to vector<224x128xf32>
    %30 = arith.select %28, %7, %29 : vector<224x128xi1>, vector<224x128xf32>
    %31 = arith.truncf %30 : vector<224x128xf32> to vector<224x128xbf16>
    %c0_11 = arith.constant 0 : index
    %c0_12 = arith.constant 0 : index
    %c0_13 = arith.constant 0 : index
    %32 = vector.load %arg6[%c0_11, %c0_12, %c0_13] : memref<1x224x128xbf16, #tpu.memory_space<vmem>>, vector<1x224x128xbf16>
    %33 = vector.shape_cast %32 : vector<1x224x128xbf16> to vector<224x128xbf16>
    %34 = vector.shape_cast %31 : vector<224x128xbf16> to vector<1x224x128xbf16>
    tpu.vector_store %arg6[%c0_11, %c0_12, %c0_13], %34 {strides = array<i32>} : memref<1x224x128xbf16, #tpu.memory_space<vmem>>, vector<1x224x128xbf16>,
    %cst_14 = arith.constant dense<0.000000e+00> : vector<128xf32>
    %35 = vector.multi_reduction <add>, %30, %cst_14 [0] : vector<224x128xf32> to vector<128xf32>
    %36 = vector.shape_cast %35 : vector<128xf32> to vector<1x128xf32>
    %c0_15 = arith.constant 0 : index
    %c0_16 = arith.constant 0 : index
    %c0_17 = arith.constant 0 : index
    %37 = vector.load %arg7[%c0_15, %c0_16, %c0_17] : memref<1x1x128xf32, #tpu.memory_space<vmem>>, vector<1x1x128xf32>
    %38 = vector.shape_cast %37 : vector<1x1x128xf32> to vector<1x128xf32>
    %39 = vector.shape_cast %36 : vector<1x128xf32> to vector<1x1x128xf32>
    tpu.vector_store %arg7[%c0_15, %c0_16, %c0_17], %39 {strides = array<i32>} : memref<1x1x128xf32, #tpu.memory_space<vmem>>, vector<1x1x128xf32>,
    %40 = arith.mulf %30, %30 : vector<224x128xf32>
    %cst_18 = arith.constant dense<0.000000e+00> : vector<128xf32>
    %41 = vector.multi_reduction <add>, %40, %cst_18 [0] : vector<224x128xf32> to vector<128xf32>
    %42 = vector.shape_cast %41 : vector<128xf32> to vector<1x128xf32>
    %c0_19 = arith.constant 0 : index
    %c0_20 = arith.constant 0 : index
    %c0_21 = arith.constant 0 : index
    %43 = vector.load %arg8[%c0_19, %c0_20, %c0_21] : memref<1x1x128xf32, #tpu.memory_space<vmem>>, vector<1x1x128xf32>
    %44 = vector.shape_cast %43 : vector<1x1x128xf32> to vector<1x128xf32>
    %45 = vector.shape_cast %42 : vector<1x128xf32> to vector<1x1x128xf32>
    tpu.vector_store %arg8[%c0_19, %c0_20, %c0_21], %45 {strides = array<i32>} : memref<1x1x128xf32, #tpu.memory_space<vmem>>, vector<1x1x128xf32>,
    return
  }
  func.func @transform_0(%arg0: i32) -> (i32, i32, i32) {
    %c0_i32 = arith.constant 0 : i32
    %c0_i32_0 = arith.constant 0 : i32
    %c0_i32_1 = arith.constant 0 : i32
    return %arg0, %c0_i32, %c0_i32_0 : i32, i32, i32
  }
  func.func @transform_1(%arg0: i32) -> (i32, i32, i32) {
    %c0_i32 = arith.constant 0 : i32
    %c0_i32_0 = arith.constant 0 : i32
    %c0_i32_1 = arith.constant 0 : i32
    %c0_i32_2 = arith.constant 0 : i32
    return %c0_i32, %c0_i32_0, %c0_i32_1 : i32, i32, i32
  }
  func.func @transform_2(%arg0: i32) -> (i32, i32) {
    %c0_i32 = arith.constant 0 : i32
    %c0_i32_0 = arith.constant 0 : i32
    %c0_i32_1 = arith.constant 0 : i32
    return %c0_i32, %c0_i32_0 : i32, i32
  }
  func.func @transform_3(%arg0: i32) -> (i32, i32) {
    %c0_i32 = arith.constant 0 : i32
    %c0_i32_0 = arith.constant 0 : i32
    %c0_i32_1 = arith.constant 0 : i32
    return %c0_i32, %c0_i32_0 : i32, i32
  }
  func.func @transform_4(%arg0: i32) -> (i32, i32) {
    %c0_i32 = arith.constant 0 : i32
    %c0_i32_0 = arith.constant 0 : i32
    %c0_i32_1 = arith.constant 0 : i32
    return %c0_i32, %c0_i32_0 : i32, i32
  }
  func.func @transform_5(%arg0: i32) -> (i32, i32, i32) {
    %c0_i32 = arith.constant 0 : i32
    %c0_i32_0 = arith.constant 0 : i32
    %c0_i32_1 = arith.constant 0 : i32
    return %arg0, %c0_i32, %c0_i32_0 : i32, i32, i32
  }
  func.func @transform_6(%arg0: i32) -> (i32, i32, i32) {
    %c0_i32 = arith.constant 0 : i32
    %c0_i32_0 = arith.constant 0 : i32
    %c0_i32_1 = arith.constant 0 : i32
    return %arg0, %c0_i32, %c0_i32_0 : i32, i32, i32
  }
  func.func @transform_7(%arg0: i32) -> (i32, i32, i32) {
    %c0_i32 = arith.constant 0 : i32
    %c0_i32_0 = arith.constant 0 : i32
    %c0_i32_1 = arith.constant 0 : i32
    return %arg0, %c0_i32, %c0_i32_0 : i32, i32, i32
  }
}

module attributes {stable_mosaic.version = 11 : i64} {
  func.func @kernel(%arg0: i32, %arg1: memref<1x192x128xbf16, #tpu.memory_space<vmem>>, %arg2: memref<512x128xbf16, #tpu.memory_space<vmem>>, %arg3: memref<1x128xf32, #tpu.memory_space<vmem>>, %arg4: memref<1x128xf32, #tpu.memory_space<vmem>>, %arg5: memref<1x128xf32, #tpu.memory_space<vmem>>, %arg6: memref<1x176x128xbf16, #tpu.memory_space<vmem>>, %arg7: memref<1x1x128xf32, #tpu.memory_space<vmem>>, %arg8: memref<1x1x128xf32, #tpu.memory_space<vmem>>, %arg9: memref<200x128xf32, #tpu.memory_space<vmem>>, %arg10: memref<176x512xbf16, #tpu.memory_space<vmem>>) attributes {dimension_semantics = [#tpu.dimension_semantics<parallel>], iteration_bounds = array<i64: 2>, scalar_prefetch = 0 : i64, scratch_operands = 2 : i64, tpu.core_type = #tpu.core_type<tc>, window_params = [{transform_indices = @transform_0, window_bounds = array<i64: 1, 192, 128>}, {pipeline_mode = #tpu.pipeline_mode<synchronous>, transform_indices = @transform_1, window_bounds = array<i64: 512, 128>}, {pipeline_mode = #tpu.pipeline_mode<synchronous>, transform_indices = @transform_2, window_bounds = array<i64: 1, 128>}, {pipeline_mode = #tpu.pipeline_mode<synchronous>, transform_indices = @transform_3, window_bounds = array<i64: 1, 128>}, {pipeline_mode = #tpu.pipeline_mode<synchronous>, transform_indices = @transform_4, window_bounds = array<i64: 1, 128>}, {transform_indices = @transform_5, window_bounds = array<i64: 1, 176, 128>}, {transform_indices = @transform_6, window_bounds = array<i64: 1, 1, 128>}, {transform_indices = @transform_7, window_bounds = array<i64: 1, 1, 128>}]} {
    %0 = tpu.iota {dimensions = array<i32: 0>} : vector<192x1xi32>
    %c16_i32 = arith.constant 16 : i32
    %c0_i32 = arith.constant 0 : i32
    %1 = arith.cmpi eq, %c16_i32, %c0_i32 : i32
    %c1_i32 = arith.constant 1 : i32
    %2 = arith.select %1, %c1_i32, %c16_i32 : i32
    %3 = vector.broadcast %2 : i32 to vector<192x1xi32>
    %4 = arith.remsi %0, %3 : vector<192x1xi32>
    %c0_i32_0 = arith.constant 0 : i32
    %5 = vector.broadcast %c0_i32_0 : i32 to vector<192x1xi32>
    %6 = arith.cmpi ne, %4, %5 : vector<192x1xi32>
    %c0_i32_1 = arith.constant 0 : i32
    %7 = vector.broadcast %c0_i32_1 : i32 to vector<192x1xi32>
    %8 = arith.cmpi slt, %4, %7 : vector<192x1xi32>
    %c0_i32_2 = arith.constant 0 : i32
    %9 = arith.cmpi slt, %2, %c0_i32_2 : i32
    %10 = vector.broadcast %9 : i1 to vector<192x1xi1>
    %11 = vector.broadcast %10 : vector<192x1xi1> to vector<192x1xi1>
    %12 = arith.xori %8, %11 : vector<192x1xi1>
    %13 = arith.andi %12, %6 : vector<192x1xi1>
    %14 = vector.broadcast %2 : i32 to vector<192x1xi32>
    %15 = arith.addi %4, %14 : vector<192x1xi32>
    %16 = arith.select %13, %15, %4 : vector<192x1xi1>, vector<192x1xi32>
    %c0 = arith.constant 0 : index
    %c0_3 = arith.constant 0 : index
    %c0_4 = arith.constant 0 : index
    %17 = vector.load %arg1[%c0, %c0_3, %c0_4] : memref<1x192x128xbf16, #tpu.memory_space<vmem>>, vector<1x192x128xbf16>
    %18 = vector.shape_cast %17 : vector<1x192x128xbf16> to vector<192x128xbf16>
    %19 = arith.extf %18 : vector<192x128xbf16> to vector<192x128xf32>
    %c0_5 = arith.constant 0 : index
    %c0_6 = arith.constant 0 : index
    %20 = vector.load %arg4[%c0_5, %c0_6] : memref<1x128xf32, #tpu.memory_space<vmem>>, vector<1x128xf32>
    %21 = vector.broadcast %20 : vector<1x128xf32> to vector<192x128xf32>
    %22 = arith.mulf %19, %21 : vector<192x128xf32>
    %c0_7 = arith.constant 0 : index
    %c0_8 = arith.constant 0 : index
    %23 = vector.load %arg5[%c0_7, %c0_8] : memref<1x128xf32, #tpu.memory_space<vmem>>, vector<1x128xf32>
    %24 = vector.broadcast %23 : vector<1x128xf32> to vector<192x128xf32>
    %25 = arith.addf %22, %24 : vector<192x128xf32>
    %cst = arith.constant 0.000000e+00 : f32
    %26 = vector.broadcast %cst : f32 to vector<8x128xf32>
    %c192 = arith.constant 192 : index
    %c0_9 = arith.constant 0 : index
    %27 = vector.load %arg9[%c192, %c0_9] : memref<200x128xf32, #tpu.memory_space<vmem>>, vector<8x128xf32>
    tpu.vector_store %arg9[%c192, %c0_9], %26 {strides = array<i32>} : memref<200x128xf32, #tpu.memory_space<vmem>>, vector<8x128xf32>,
    %c12_i32 = arith.constant 12 : i32
    %28 = vector.broadcast %c12_i32 : i32 to vector<192x1xi32>
    %29 = arith.cmpi slt, %16, %28 : vector<192x1xi32>
    %cst_10 = arith.constant 0.000000e+00 : f32
    %30 = vector.shape_cast %29 : vector<192x1xi1> to vector<192x1xi1>
    %31 = vector.broadcast %30 : vector<192x1xi1> to vector<192x128xi1>
    %32 = vector.broadcast %cst_10 : f32 to vector<192x128xf32>
    %33 = arith.select %31, %25, %32 : vector<192x128xi1>, vector<192x128xf32>
    %c0_11 = arith.constant 0 : index
    %c0_12 = arith.constant 0 : index
    %34 = vector.load %arg9[%c0_11, %c0_12] : memref<200x128xf32, #tpu.memory_space<vmem>>, vector<192x128xf32>
    tpu.vector_store %arg9[%c0_11, %c0_12], %33 {strides = array<i32>} : memref<200x128xf32, #tpu.memory_space<vmem>>, vector<192x128xf32>,
    %c0_13 = arith.constant 0 : index
    %c0_14 = arith.constant 0 : index
    %35 = vector.load %arg9[%c0_13, %c0_14] : memref<200x128xf32, #tpu.memory_space<vmem>>, vector<176x128xf32>
    %36 = arith.truncf %35 : vector<176x128xf32> to vector<176x128xbf16>
    %c0_15 = arith.constant 0 : index
    %c0_16 = arith.constant 0 : index
    %37 = vector.load %arg10[%c0_15, %c0_16] : memref<176x512xbf16, #tpu.memory_space<vmem>>, vector<176x128xbf16>
    tpu.vector_store %arg10[%c0_15, %c0_16], %36 {strides = array<i32>} : memref<176x512xbf16, #tpu.memory_space<vmem>>, vector<176x128xbf16>,
    %c1 = arith.constant 1 : index
    %c0_17 = arith.constant 0 : index
    %38 = vector.load %arg9[%c1, %c0_17] : memref<200x128xf32, #tpu.memory_space<vmem>>, vector<176x128xf32>
    %39 = arith.truncf %38 : vector<176x128xf32> to vector<176x128xbf16>
    %c0_18 = arith.constant 0 : index
    %c128 = arith.constant 128 : index
    %40 = vector.load %arg10[%c0_18, %c128] : memref<176x512xbf16, #tpu.memory_space<vmem>>, vector<176x128xbf16>
    tpu.vector_store %arg10[%c0_18, %c128], %39 {strides = array<i32>} : memref<176x512xbf16, #tpu.memory_space<vmem>>, vector<176x128xbf16>,
    %c16 = arith.constant 16 : index
    %c0_19 = arith.constant 0 : index
    %41 = vector.load %arg9[%c16, %c0_19] : memref<200x128xf32, #tpu.memory_space<vmem>>, vector<176x128xf32>
    %42 = arith.truncf %41 : vector<176x128xf32> to vector<176x128xbf16>
    %c0_20 = arith.constant 0 : index
    %c256 = arith.constant 256 : index
    %43 = vector.load %arg10[%c0_20, %c256] : memref<176x512xbf16, #tpu.memory_space<vmem>>, vector<176x128xbf16>
    tpu.vector_store %arg10[%c0_20, %c256], %42 {strides = array<i32>} : memref<176x512xbf16, #tpu.memory_space<vmem>>, vector<176x128xbf16>,
    %c17 = arith.constant 17 : index
    %c0_21 = arith.constant 0 : index
    %44 = vector.load %arg9[%c17, %c0_21] : memref<200x128xf32, #tpu.memory_space<vmem>>, vector<176x128xf32>
    %45 = arith.truncf %44 : vector<176x128xf32> to vector<176x128xbf16>
    %c0_22 = arith.constant 0 : index
    %c384 = arith.constant 384 : index
    %46 = vector.load %arg10[%c0_22, %c384] : memref<176x512xbf16, #tpu.memory_space<vmem>>, vector<176x128xbf16>
    tpu.vector_store %arg10[%c0_22, %c384], %45 {strides = array<i32>} : memref<176x512xbf16, #tpu.memory_space<vmem>>, vector<176x128xbf16>,
    %c0_23 = arith.constant 0 : index
    %c0_24 = arith.constant 0 : index
    %47 = vector.load %arg10[%c0_23, %c0_24] : memref<176x512xbf16, #tpu.memory_space<vmem>>, vector<176x512xbf16>
    %c0_25 = arith.constant 0 : index
    %c0_26 = arith.constant 0 : index
    %48 = vector.load %arg2[%c0_25, %c0_26] : memref<512x128xbf16, #tpu.memory_space<vmem>>, vector<512x128xbf16>
    %cst_27 = arith.constant dense<0.000000e+00> : vector<176x128xf32>
    %49 = tpu.matmul %47, %48, %cst_27 {dimension_numbers = #tpu.dot_dimension_numbers<[1], [0], [0], [1], [0, 0, 1, 1], [], []>} : vector<176x512xbf16>, vector<512x128xbf16>, vector<176x128xf32> -> vector<176x128xf32>
    %c0_28 = arith.constant 0 : index
    %c0_29 = arith.constant 0 : index
    %50 = vector.load %arg3[%c0_28, %c0_29] : memref<1x128xf32, #tpu.memory_space<vmem>>, vector<1x128xf32>
    %51 = vector.broadcast %50 : vector<1x128xf32> to vector<176x128xf32>
    %52 = arith.addf %49, %51 : vector<176x128xf32>
    %53 = tpu.iota {dimensions = array<i32: 0>} : vector<176x1xi32>
    %c16_i32_30 = arith.constant 16 : i32
    %c0_i32_31 = arith.constant 0 : i32
    %54 = arith.cmpi eq, %c16_i32_30, %c0_i32_31 : i32
    %c1_i32_32 = arith.constant 1 : i32
    %55 = arith.select %54, %c1_i32_32, %c16_i32_30 : i32
    %56 = vector.broadcast %55 : i32 to vector<176x1xi32>
    %57 = arith.remsi %53, %56 : vector<176x1xi32>
    %c0_i32_33 = arith.constant 0 : i32
    %58 = vector.broadcast %c0_i32_33 : i32 to vector<176x1xi32>
    %59 = arith.cmpi ne, %57, %58 : vector<176x1xi32>
    %c0_i32_34 = arith.constant 0 : i32
    %60 = vector.broadcast %c0_i32_34 : i32 to vector<176x1xi32>
    %61 = arith.cmpi slt, %57, %60 : vector<176x1xi32>
    %c0_i32_35 = arith.constant 0 : i32
    %62 = arith.cmpi slt, %55, %c0_i32_35 : i32
    %63 = vector.broadcast %62 : i1 to vector<176x1xi1>
    %64 = vector.broadcast %63 : vector<176x1xi1> to vector<176x1xi1>
    %65 = arith.xori %61, %64 : vector<176x1xi1>
    %66 = arith.andi %65, %59 : vector<176x1xi1>
    %67 = vector.broadcast %55 : i32 to vector<176x1xi32>
    %68 = arith.addi %57, %67 : vector<176x1xi32>
    %69 = arith.select %66, %68, %57 : vector<176x1xi1>, vector<176x1xi32>
    %c11_i32 = arith.constant 11 : i32
    %70 = vector.broadcast %c11_i32 : i32 to vector<176x1xi32>
    %71 = arith.cmpi slt, %69, %70 : vector<176x1xi32>
    %cst_36 = arith.constant 0.000000e+00 : f32
    %72 = vector.shape_cast %71 : vector<176x1xi1> to vector<176x1xi1>
    %73 = vector.broadcast %72 : vector<176x1xi1> to vector<176x128xi1>
    %74 = vector.broadcast %cst_36 : f32 to vector<176x128xf32>
    %75 = arith.select %73, %52, %74 : vector<176x128xi1>, vector<176x128xf32>
    %76 = arith.truncf %75 : vector<176x128xf32> to vector<176x128xbf16>
    %c0_37 = arith.constant 0 : index
    %c0_38 = arith.constant 0 : index
    %c0_39 = arith.constant 0 : index
    %77 = vector.load %arg6[%c0_37, %c0_38, %c0_39] : memref<1x176x128xbf16, #tpu.memory_space<vmem>>, vector<1x176x128xbf16>
    %78 = vector.shape_cast %77 : vector<1x176x128xbf16> to vector<176x128xbf16>
    %79 = vector.shape_cast %76 : vector<176x128xbf16> to vector<1x176x128xbf16>
    tpu.vector_store %arg6[%c0_37, %c0_38, %c0_39], %79 {strides = array<i32>} : memref<1x176x128xbf16, #tpu.memory_space<vmem>>, vector<1x176x128xbf16>,
    %cst_40 = arith.constant dense<0.000000e+00> : vector<128xf32>
    %80 = vector.multi_reduction <add>, %75, %cst_40 [0] : vector<176x128xf32> to vector<128xf32>
    %81 = vector.shape_cast %80 : vector<128xf32> to vector<1x128xf32>
    %c0_41 = arith.constant 0 : index
    %c0_42 = arith.constant 0 : index
    %c0_43 = arith.constant 0 : index
    %82 = vector.load %arg7[%c0_41, %c0_42, %c0_43] : memref<1x1x128xf32, #tpu.memory_space<vmem>>, vector<1x1x128xf32>
    %83 = vector.shape_cast %82 : vector<1x1x128xf32> to vector<1x128xf32>
    %84 = vector.shape_cast %81 : vector<1x128xf32> to vector<1x1x128xf32>
    tpu.vector_store %arg7[%c0_41, %c0_42, %c0_43], %84 {strides = array<i32>} : memref<1x1x128xf32, #tpu.memory_space<vmem>>, vector<1x1x128xf32>,
    %85 = arith.mulf %75, %75 : vector<176x128xf32>
    %cst_44 = arith.constant dense<0.000000e+00> : vector<128xf32>
    %86 = vector.multi_reduction <add>, %85, %cst_44 [0] : vector<176x128xf32> to vector<128xf32>
    %87 = vector.shape_cast %86 : vector<128xf32> to vector<1x128xf32>
    %c0_45 = arith.constant 0 : index
    %c0_46 = arith.constant 0 : index
    %c0_47 = arith.constant 0 : index
    %88 = vector.load %arg8[%c0_45, %c0_46, %c0_47] : memref<1x1x128xf32, #tpu.memory_space<vmem>>, vector<1x1x128xf32>
    %89 = vector.shape_cast %88 : vector<1x1x128xf32> to vector<1x128xf32>
    %90 = vector.shape_cast %87 : vector<1x128xf32> to vector<1x1x128xf32>
    tpu.vector_store %arg8[%c0_45, %c0_46, %c0_47], %90 {strides = array<i32>} : memref<1x1x128xf32, #tpu.memory_space<vmem>>, vector<1x1x128xf32>,
    return
  }
  func.func @transform_0(%arg0: i32) -> (i32, i32, i32) {
    %c0_i32 = arith.constant 0 : i32
    %c0_i32_0 = arith.constant 0 : i32
    %c0_i32_1 = arith.constant 0 : i32
    return %arg0, %c0_i32, %c0_i32_0 : i32, i32, i32
  }
  func.func @transform_1(%arg0: i32) -> (i32, i32) {
    %c0_i32 = arith.constant 0 : i32
    %c0_i32_0 = arith.constant 0 : i32
    %c0_i32_1 = arith.constant 0 : i32
    return %c0_i32, %c0_i32_0 : i32, i32
  }
  func.func @transform_2(%arg0: i32) -> (i32, i32) {
    %c0_i32 = arith.constant 0 : i32
    %c0_i32_0 = arith.constant 0 : i32
    %c0_i32_1 = arith.constant 0 : i32
    return %c0_i32, %c0_i32_0 : i32, i32
  }
  func.func @transform_3(%arg0: i32) -> (i32, i32) {
    %c0_i32 = arith.constant 0 : i32
    %c0_i32_0 = arith.constant 0 : i32
    %c0_i32_1 = arith.constant 0 : i32
    return %c0_i32, %c0_i32_0 : i32, i32
  }
  func.func @transform_4(%arg0: i32) -> (i32, i32) {
    %c0_i32 = arith.constant 0 : i32
    %c0_i32_0 = arith.constant 0 : i32
    %c0_i32_1 = arith.constant 0 : i32
    return %c0_i32, %c0_i32_0 : i32, i32
  }
  func.func @transform_5(%arg0: i32) -> (i32, i32, i32) {
    %c0_i32 = arith.constant 0 : i32
    %c0_i32_0 = arith.constant 0 : i32
    %c0_i32_1 = arith.constant 0 : i32
    return %arg0, %c0_i32, %c0_i32_0 : i32, i32, i32
  }
  func.func @transform_6(%arg0: i32) -> (i32, i32, i32) {
    %c0_i32 = arith.constant 0 : i32
    %c0_i32_0 = arith.constant 0 : i32
    %c0_i32_1 = arith.constant 0 : i32
    return %arg0, %c0_i32, %c0_i32_0 : i32, i32, i32
  }
  func.func @transform_7(%arg0: i32) -> (i32, i32, i32) {
    %c0_i32 = arith.constant 0 : i32
    %c0_i32_0 = arith.constant 0 : i32
    %c0_i32_1 = arith.constant 0 : i32
    return %arg0, %c0_i32, %c0_i32_0 : i32, i32, i32
  }
}

module attributes {stable_mosaic.version = 11 : i64} {
  func.func @kernel(%arg0: i32, %arg1: memref<1x176x128xbf16, #tpu.memory_space<vmem>>, %arg2: memref<1152x128xbf16, #tpu.memory_space<vmem>>, %arg3: memref<1x128xf32, #tpu.memory_space<vmem>>, %arg4: memref<1x128xf32, #tpu.memory_space<vmem>>, %arg5: memref<1x128xf32, #tpu.memory_space<vmem>>, %arg6: memref<1x1x128xf32, #tpu.memory_space<vmem>>, %arg7: memref<1x1x128xf32, #tpu.memory_space<vmem>>, %arg8: memref<224x128xf32, #tpu.memory_space<vmem>>, %arg9: memref<176x1152xbf16, #tpu.memory_space<vmem>>) attributes {dimension_semantics = [#tpu.dimension_semantics<parallel>], iteration_bounds = array<i64: 2>, scalar_prefetch = 0 : i64, scratch_operands = 2 : i64, tpu.core_type = #tpu.core_type<tc>, window_params = [{transform_indices = @transform_0, window_bounds = array<i64: 1, 176, 128>}, {pipeline_mode = #tpu.pipeline_mode<synchronous>, transform_indices = @transform_1, window_bounds = array<i64: 1152, 128>}, {pipeline_mode = #tpu.pipeline_mode<synchronous>, transform_indices = @transform_2, window_bounds = array<i64: 1, 128>}, {pipeline_mode = #tpu.pipeline_mode<synchronous>, transform_indices = @transform_3, window_bounds = array<i64: 1, 128>}, {pipeline_mode = #tpu.pipeline_mode<synchronous>, transform_indices = @transform_4, window_bounds = array<i64: 1, 128>}, {transform_indices = @transform_5, window_bounds = array<i64: 1, 1, 128>}, {transform_indices = @transform_6, window_bounds = array<i64: 1, 1, 128>}]} {
    %0 = tpu.iota {dimensions = array<i32: 0>} : vector<176x1xi32>
    %c16_i32 = arith.constant 16 : i32
    %c0_i32 = arith.constant 0 : i32
    %1 = arith.cmpi eq, %c16_i32, %c0_i32 : i32
    %c1_i32 = arith.constant 1 : i32
    %2 = arith.select %1, %c1_i32, %c16_i32 : i32
    %3 = vector.broadcast %2 : i32 to vector<176x1xi32>
    %4 = arith.remsi %0, %3 : vector<176x1xi32>
    %c0_i32_0 = arith.constant 0 : i32
    %5 = vector.broadcast %c0_i32_0 : i32 to vector<176x1xi32>
    %6 = arith.cmpi ne, %4, %5 : vector<176x1xi32>
    %c0_i32_1 = arith.constant 0 : i32
    %7 = vector.broadcast %c0_i32_1 : i32 to vector<176x1xi32>
    %8 = arith.cmpi slt, %4, %7 : vector<176x1xi32>
    %c0_i32_2 = arith.constant 0 : i32
    %9 = arith.cmpi slt, %2, %c0_i32_2 : i32
    %10 = vector.broadcast %9 : i1 to vector<176x1xi1>
    %11 = vector.broadcast %10 : vector<176x1xi1> to vector<176x1xi1>
    %12 = arith.xori %8, %11 : vector<176x1xi1>
    %13 = arith.andi %12, %6 : vector<176x1xi1>
    %14 = vector.broadcast %2 : i32 to vector<176x1xi32>
    %15 = arith.addi %4, %14 : vector<176x1xi32>
    %16 = arith.select %13, %15, %4 : vector<176x1xi1>, vector<176x1xi32>
    %c0 = arith.constant 0 : index
    %c0_3 = arith.constant 0 : index
    %c0_4 = arith.constant 0 : index
    %17 = vector.load %arg1[%c0, %c0_3, %c0_4] : memref<1x176x128xbf16, #tpu.memory_space<vmem>>, vector<1x176x128xbf16>
    %18 = vector.shape_cast %17 : vector<1x176x128xbf16> to vector<176x128xbf16>
    %19 = arith.extf %18 : vector<176x128xbf16> to vector<176x128xf32>
    %c0_5 = arith.constant 0 : index
    %c0_6 = arith.constant 0 : index
    %20 = vector.load %arg4[%c0_5, %c0_6] : memref<1x128xf32, #tpu.memory_space<vmem>>, vector<1x128xf32>
    %21 = vector.broadcast %20 : vector<1x128xf32> to vector<176x128xf32>
    %22 = arith.mulf %19, %21 : vector<176x128xf32>
    %c0_7 = arith.constant 0 : index
    %c0_8 = arith.constant 0 : index
    %23 = vector.load %arg5[%c0_7, %c0_8] : memref<1x128xf32, #tpu.memory_space<vmem>>, vector<1x128xf32>
    %24 = vector.broadcast %23 : vector<1x128xf32> to vector<176x128xf32>
    %25 = arith.addf %22, %24 : vector<176x128xf32>
    %cst = arith.constant 0.000000e+00 : f32
    %26 = vector.broadcast %cst : f32 to vector<24x128xf32>
    %c0_9 = arith.constant 0 : index
    %c0_10 = arith.constant 0 : index
    %27 = vector.load %arg8[%c0_9, %c0_10] : memref<224x128xf32, #tpu.memory_space<vmem>>, vector<24x128xf32>
    tpu.vector_store %arg8[%c0_9, %c0_10], %26 {strides = array<i32>} : memref<224x128xf32, #tpu.memory_space<vmem>>, vector<24x128xf32>,
    %cst_11 = arith.constant 0.000000e+00 : f32
    %28 = vector.broadcast %cst_11 : f32 to vector<24x128xf32>
    %c200 = arith.constant 200 : index
    %c0_12 = arith.constant 0 : index
    %29 = vector.load %arg8[%c200, %c0_12] : memref<224x128xf32, #tpu.memory_space<vmem>>, vector<24x128xf32>
    tpu.vector_store %arg8[%c200, %c0_12], %28 {strides = array<i32>} : memref<224x128xf32, #tpu.memory_space<vmem>>, vector<24x128xf32>,
    %c11_i32 = arith.constant 11 : i32
    %30 = vector.broadcast %c11_i32 : i32 to vector<176x1xi32>
    %31 = arith.cmpi slt, %16, %30 : vector<176x1xi32>
    %cst_13 = arith.constant 0.000000e+00 : f32
    %32 = vector.shape_cast %31 : vector<176x1xi1> to vector<176x1xi1>
    %33 = vector.broadcast %32 : vector<176x1xi1> to vector<176x128xi1>
    %34 = vector.broadcast %cst_13 : f32 to vector<176x128xf32>
    %35 = arith.select %33, %25, %34 : vector<176x128xi1>, vector<176x128xf32>
    %c24 = arith.constant 24 : index
    %c0_14 = arith.constant 0 : index
    %36 = vector.load %arg8[%c24, %c0_14] : memref<224x128xf32, #tpu.memory_space<vmem>>, vector<176x128xf32>
    tpu.vector_store %arg8[%c24, %c0_14], %35 {strides = array<i32>} : memref<224x128xf32, #tpu.memory_space<vmem>>, vector<176x128xf32>,
    %c7 = arith.constant 7 : index
    %c0_15 = arith.constant 0 : index
    %37 = vector.load %arg8[%c7, %c0_15] : memref<224x128xf32, #tpu.memory_space<vmem>>, vector<176x128xf32>
    %38 = arith.truncf %37 : vector<176x128xf32> to vector<176x128xbf16>
    %c0_16 = arith.constant 0 : index
    %c0_17 = arith.constant 0 : index
    %39 = vector.load %arg9[%c0_16, %c0_17] : memref<176x1152xbf16, #tpu.memory_space<vmem>>, vector<176x128xbf16>
    tpu.vector_store %arg9[%c0_16, %c0_17], %38 {strides = array<i32>} : memref<176x1152xbf16, #tpu.memory_space<vmem>>, vector<176x128xbf16>,
    %c8 = arith.constant 8 : index
    %c0_18 = arith.constant 0 : index
    %40 = vector.load %arg8[%c8, %c0_18] : memref<224x128xf32, #tpu.memory_space<vmem>>, vector<176x128xf32>
    %41 = arith.truncf %40 : vector<176x128xf32> to vector<176x128xbf16>
    %c0_19 = arith.constant 0 : index
    %c128 = arith.constant 128 : index
    %42 = vector.load %arg9[%c0_19, %c128] : memref<176x1152xbf16, #tpu.memory_space<vmem>>, vector<176x128xbf16>
    tpu.vector_store %arg9[%c0_19, %c128], %41 {strides = array<i32>} : memref<176x1152xbf16, #tpu.memory_space<vmem>>, vector<176x128xbf16>,
    %c9 = arith.constant 9 : index
    %c0_20 = arith.constant 0 : index
    %43 = vector.load %arg8[%c9, %c0_20] : memref<224x128xf32, #tpu.memory_space<vmem>>, vector<176x128xf32>
    %44 = arith.truncf %43 : vector<176x128xf32> to vector<176x128xbf16>
    %c0_21 = arith.constant 0 : index
    %c256 = arith.constant 256 : index
    %45 = vector.load %arg9[%c0_21, %c256] : memref<176x1152xbf16, #tpu.memory_space<vmem>>, vector<176x128xbf16>
    tpu.vector_store %arg9[%c0_21, %c256], %44 {strides = array<i32>} : memref<176x1152xbf16, #tpu.memory_space<vmem>>, vector<176x128xbf16>,
    %c23 = arith.constant 23 : index
    %c0_22 = arith.constant 0 : index
    %46 = vector.load %arg8[%c23, %c0_22] : memref<224x128xf32, #tpu.memory_space<vmem>>, vector<176x128xf32>
    %47 = arith.truncf %46 : vector<176x128xf32> to vector<176x128xbf16>
    %c0_23 = arith.constant 0 : index
    %c384 = arith.constant 384 : index
    %48 = vector.load %arg9[%c0_23, %c384] : memref<176x1152xbf16, #tpu.memory_space<vmem>>, vector<176x128xbf16>
    tpu.vector_store %arg9[%c0_23, %c384], %47 {strides = array<i32>} : memref<176x1152xbf16, #tpu.memory_space<vmem>>, vector<176x128xbf16>,
    %c24_24 = arith.constant 24 : index
    %c0_25 = arith.constant 0 : index
    %49 = vector.load %arg8[%c24_24, %c0_25] : memref<224x128xf32, #tpu.memory_space<vmem>>, vector<176x128xf32>
    %50 = arith.truncf %49 : vector<176x128xf32> to vector<176x128xbf16>
    %c0_26 = arith.constant 0 : index
    %c512 = arith.constant 512 : index
    %51 = vector.load %arg9[%c0_26, %c512] : memref<176x1152xbf16, #tpu.memory_space<vmem>>, vector<176x128xbf16>
    tpu.vector_store %arg9[%c0_26, %c512], %50 {strides = array<i32>} : memref<176x1152xbf16, #tpu.memory_space<vmem>>, vector<176x128xbf16>,
    %c25 = arith.constant 25 : index
    %c0_27 = arith.constant 0 : index
    %52 = vector.load %arg8[%c25, %c0_27] : memref<224x128xf32, #tpu.memory_space<vmem>>, vector<176x128xf32>
    %53 = arith.truncf %52 : vector<176x128xf32> to vector<176x128xbf16>
    %c0_28 = arith.constant 0 : index
    %c640 = arith.constant 640 : index
    %54 = vector.load %arg9[%c0_28, %c640] : memref<176x1152xbf16, #tpu.memory_space<vmem>>, vector<176x128xbf16>
    tpu.vector_store %arg9[%c0_28, %c640], %53 {strides = array<i32>} : memref<176x1152xbf16, #tpu.memory_space<vmem>>, vector<176x128xbf16>,
    %c39 = arith.constant 39 : index
    %c0_29 = arith.constant 0 : index
    %55 = vector.load %arg8[%c39, %c0_29] : memref<224x128xf32, #tpu.memory_space<vmem>>, vector<176x128xf32>
    %56 = arith.truncf %55 : vector<176x128xf32> to vector<176x128xbf16>
    %c0_30 = arith.constant 0 : index
    %c768 = arith.constant 768 : index
    %57 = vector.load %arg9[%c0_30, %c768] : memref<176x1152xbf16, #tpu.memory_space<vmem>>, vector<176x128xbf16>
    tpu.vector_store %arg9[%c0_30, %c768], %56 {strides = array<i32>} : memref<176x1152xbf16, #tpu.memory_space<vmem>>, vector<176x128xbf16>,
    %c40 = arith.constant 40 : index
    %c0_31 = arith.constant 0 : index
    %58 = vector.load %arg8[%c40, %c0_31] : memref<224x128xf32, #tpu.memory_space<vmem>>, vector<176x128xf32>
    %59 = arith.truncf %58 : vector<176x128xf32> to vector<176x128xbf16>
    %c0_32 = arith.constant 0 : index
    %c896 = arith.constant 896 : index
    %60 = vector.load %arg9[%c0_32, %c896] : memref<176x1152xbf16, #tpu.memory_space<vmem>>, vector<176x128xbf16>
    tpu.vector_store %arg9[%c0_32, %c896], %59 {strides = array<i32>} : memref<176x1152xbf16, #tpu.memory_space<vmem>>, vector<176x128xbf16>,
    %c41 = arith.constant 41 : index
    %c0_33 = arith.constant 0 : index
    %61 = vector.load %arg8[%c41, %c0_33] : memref<224x128xf32, #tpu.memory_space<vmem>>, vector<176x128xf32>
    %62 = arith.truncf %61 : vector<176x128xf32> to vector<176x128xbf16>
    %c0_34 = arith.constant 0 : index
    %c1024 = arith.constant 1024 : index
    %63 = vector.load %arg9[%c0_34, %c1024] : memref<176x1152xbf16, #tpu.memory_space<vmem>>, vector<176x128xbf16>
    tpu.vector_store %arg9[%c0_34, %c1024], %62 {strides = array<i32>} : memref<176x1152xbf16, #tpu.memory_space<vmem>>, vector<176x128xbf16>,
    %c0_35 = arith.constant 0 : index
    %c0_36 = arith.constant 0 : index
    %64 = vector.load %arg9[%c0_35, %c0_36] : memref<176x1152xbf16, #tpu.memory_space<vmem>>, vector<176x1152xbf16>
    %c0_37 = arith.constant 0 : index
    %c0_38 = arith.constant 0 : index
    %65 = vector.load %arg2[%c0_37, %c0_38] : memref<1152x128xbf16, #tpu.memory_space<vmem>>, vector<1152x128xbf16>
    %cst_39 = arith.constant dense<0.000000e+00> : vector<176x128xf32>
    %66 = tpu.matmul %64, %65, %cst_39 {dimension_numbers = #tpu.dot_dimension_numbers<[1], [0], [0], [1], [0, 0, 1, 1], [], []>} : vector<176x1152xbf16>, vector<1152x128xbf16>, vector<176x128xf32> -> vector<176x128xf32>
    %c0_40 = arith.constant 0 : index
    %c0_41 = arith.constant 0 : index
    %67 = vector.load %arg3[%c0_40, %c0_41] : memref<1x128xf32, #tpu.memory_space<vmem>>, vector<1x128xf32>
    %68 = vector.broadcast %67 : vector<1x128xf32> to vector<176x128xf32>
    %69 = arith.addf %66, %68 : vector<176x128xf32>
    %70 = tpu.iota {dimensions = array<i32: 0>} : vector<176x1xi32>
    %c16_i32_42 = arith.constant 16 : i32
    %c0_i32_43 = arith.constant 0 : i32
    %71 = arith.cmpi eq, %c16_i32_42, %c0_i32_43 : i32
    %c1_i32_44 = arith.constant 1 : i32
    %72 = arith.select %71, %c1_i32_44, %c16_i32_42 : i32
    %73 = vector.broadcast %72 : i32 to vector<176x1xi32>
    %74 = arith.remsi %70, %73 : vector<176x1xi32>
    %c0_i32_45 = arith.constant 0 : i32
    %75 = vector.broadcast %c0_i32_45 : i32 to vector<176x1xi32>
    %76 = arith.cmpi ne, %74, %75 : vector<176x1xi32>
    %c0_i32_46 = arith.constant 0 : i32
    %77 = vector.broadcast %c0_i32_46 : i32 to vector<176x1xi32>
    %78 = arith.cmpi slt, %74, %77 : vector<176x1xi32>
    %c0_i32_47 = arith.constant 0 : i32
    %79 = arith.cmpi slt, %72, %c0_i32_47 : i32
    %80 = vector.broadcast %79 : i1 to vector<176x1xi1>
    %81 = vector.broadcast %80 : vector<176x1xi1> to vector<176x1xi1>
    %82 = arith.xori %78, %81 : vector<176x1xi1>
    %83 = arith.andi %82, %76 : vector<176x1xi1>
    %84 = vector.broadcast %72 : i32 to vector<176x1xi32>
    %85 = arith.addi %74, %84 : vector<176x1xi32>
    %86 = arith.select %83, %85, %74 : vector<176x1xi1>, vector<176x1xi32>
    %c11_i32_48 = arith.constant 11 : i32
    %87 = vector.broadcast %c11_i32_48 : i32 to vector<176x1xi32>
    %88 = arith.cmpi slt, %86, %87 : vector<176x1xi32>
    %cst_49 = arith.constant 0.000000e+00 : f32
    %89 = vector.shape_cast %88 : vector<176x1xi1> to vector<176x1xi1>
    %90 = vector.broadcast %89 : vector<176x1xi1> to vector<176x128xi1>
    %91 = vector.broadcast %cst_49 : f32 to vector<176x128xf32>
    %92 = arith.select %90, %69, %91 : vector<176x128xi1>, vector<176x128xf32>
    %cst_50 = arith.constant dense<0.000000e+00> : vector<128xf32>
    %93 = vector.multi_reduction <add>, %92, %cst_50 [0] : vector<176x128xf32> to vector<128xf32>
    %94 = vector.shape_cast %93 : vector<128xf32> to vector<1x128xf32>
    %c0_51 = arith.constant 0 : index
    %c0_52 = arith.constant 0 : index
    %c0_53 = arith.constant 0 : index
    %95 = vector.load %arg6[%c0_51, %c0_52, %c0_53] : memref<1x1x128xf32, #tpu.memory_space<vmem>>, vector<1x1x128xf32>
    %96 = vector.shape_cast %95 : vector<1x1x128xf32> to vector<1x128xf32>
    %97 = vector.shape_cast %94 : vector<1x128xf32> to vector<1x1x128xf32>
    tpu.vector_store %arg6[%c0_51, %c0_52, %c0_53], %97 {strides = array<i32>} : memref<1x1x128xf32, #tpu.memory_space<vmem>>, vector<1x1x128xf32>,
    %98 = arith.mulf %92, %92 : vector<176x128xf32>
    %cst_54 = arith.constant dense<0.000000e+00> : vector<128xf32>
    %99 = vector.multi_reduction <add>, %98, %cst_54 [0] : vector<176x128xf32> to vector<128xf32>
    %100 = vector.shape_cast %99 : vector<128xf32> to vector<1x128xf32>
    %c0_55 = arith.constant 0 : index
    %c0_56 = arith.constant 0 : index
    %c0_57 = arith.constant 0 : index
    %101 = vector.load %arg7[%c0_55, %c0_56, %c0_57] : memref<1x1x128xf32, #tpu.memory_space<vmem>>, vector<1x1x128xf32>
    %102 = vector.shape_cast %101 : vector<1x1x128xf32> to vector<1x128xf32>
    %103 = vector.shape_cast %100 : vector<1x128xf32> to vector<1x1x128xf32>
    tpu.vector_store %arg7[%c0_55, %c0_56, %c0_57], %103 {strides = array<i32>} : memref<1x1x128xf32, #tpu.memory_space<vmem>>, vector<1x1x128xf32>,
    return
  }
  func.func @transform_0(%arg0: i32) -> (i32, i32, i32) {
    %c0_i32 = arith.constant 0 : i32
    %c0_i32_0 = arith.constant 0 : i32
    %c0_i32_1 = arith.constant 0 : i32
    return %arg0, %c0_i32, %c0_i32_0 : i32, i32, i32
  }
  func.func @transform_1(%arg0: i32) -> (i32, i32) {
    %c0_i32 = arith.constant 0 : i32
    %c0_i32_0 = arith.constant 0 : i32
    %c0_i32_1 = arith.constant 0 : i32
    return %c0_i32, %c0_i32_0 : i32, i32
  }
  func.func @transform_2(%arg0: i32) -> (i32, i32) {
    %c0_i32 = arith.constant 0 : i32
    %c0_i32_0 = arith.constant 0 : i32
    %c0_i32_1 = arith.constant 0 : i32
    return %c0_i32, %c0_i32_0 : i32, i32
  }
  func.func @transform_3(%arg0: i32) -> (i32, i32) {
    %c0_i32 = arith.constant 0 : i32
    %c0_i32_0 = arith.constant 0 : i32
    %c0_i32_1 = arith.constant 0 : i32
    return %c0_i32, %c0_i32_0 : i32, i32
  }
  func.func @transform_4(%arg0: i32) -> (i32, i32) {
    %c0_i32 = arith.constant 0 : i32
    %c0_i32_0 = arith.constant 0 : i32
    %c0_i32_1 = arith.constant 0 : i32
    return %c0_i32, %c0_i32_0 : i32, i32
  }
  func.func @transform_5(%arg0: i32) -> (i32, i32, i32) {
    %c0_i32 = arith.constant 0 : i32
    %c0_i32_0 = arith.constant 0 : i32
    %c0_i32_1 = arith.constant 0 : i32
    return %arg0, %c0_i32, %c0_i32_0 : i32, i32, i32
  }
  func.func @transform_6(%arg0: i32) -> (i32, i32, i32) {
    %c0_i32 = arith.constant 0 : i32
    %c0_i32_0 = arith.constant 0 : i32
    %c0_i32_1 = arith.constant 0 : i32
    return %arg0, %c0_i32, %c0_i32_0 : i32, i32, i32
  }
}

</mosaic_0001>

<bundles_post_ra>
// kernel: model_forward.4
= control target key start
LH: loop header
LB: loop body
LE: loop exit
PB: predicated region body
PF: predicated region fallthrough
CT: control target
= control target key end

     0   :  { %s1775_s24 = smov 0   ;;  %s2068_s0 = inlined_call_operand.vmem [shape: bf16[2,224,128], index: 0, kind: input, shape index: {}]   ;;  %s2069_s1 = inlined_call_operand.vmem [shape: bf16[1,128,128], index: 1, kind: input, shape index: {}]   ;;  %s2070_s2 = inlined_call_operand.vmem [shape: f32[1,128], index: 2, kind: input, shape index: {}, may-alias: {2,4}]   ;;  %s2071_s3 = inlined_call_operand.vmem [shape: f32[1,128], index: 3, kind: input, shape index: {}]   ;;  %s2072_s4 = inlined_call_operand.vmem [shape: f32[1,128], index: 4, kind: input, shape index: {}, may-alias: {2,4}]   ;;  %s2073_s5 = inlined_call_operand.vmem [shape: bf16[2,224,128], index: 5, kind: output, shape index: {0}]   ;;  %s2074_s6 = inlined_call_operand.vmem [shape: f32[2,1,128], index: 6, kind: output, shape index: {1}]   ;;  %s2075_s7 = inlined_call_operand.vmem [shape: f32[2,1,128], index: 7, kind: output, shape index: {2}]  }
   0x1 LB: > { %s1443_s3 = sadd.s32 4294967295, %s1733_s24   ;;  %p1447_p0 = scmp.ge.s32.totalorder %s1733_s24, 1  ;;  %s1733_s24 = sphi %s1775_s24, %s18_s24  }
   0x2   : > { %p242_p1 = scmp.lt.s32.totalorder %s1733_s24, 3 }
   0x4   : > { %p243_p2 = pnand %p1447_p0, %p242_p1 }
   0x5   : > { %p280_p3 = scmp.lt.s32.totalorder (!%p243_p2), %s1443_s3, 1 }
   0x6   : > { %246 = sbr.rel (%p243_p2) target bundleno = 315 (0x13b), region = 40 }
   0xb   : > { %v1705_v0 = vld [vmem:[%s2069_s1 + $0x38] sm:$0xff]   ;;  %v1706_v1 = vld [vmem:[%s2069_s1 + $0x30] sm:$0xff]   ;;  %s2103_s3 = smov (!%p280_p3, %s1443_s3), 1  ;;  %v1707_v2 = vld [vmem:[%s2069_s1 + $0x28] sm:$0xff]   ;;  %v625_v22 = vlaneseq }
   0xc   : > { %1636 = vmatprep.subr.bf16.mxu0 %v1705_v0  ;;  %1680 = vmatprep.subr.bf16.mxu1 %v1705_v0  ;;  %s1696_s30 = smul.u32 112, %s2103_s3  ;;  %v1708_v3 = vld [vmem:[%s2069_s1 + $0x20] sm:$0xff]   ;;  %v1709_v5 = vld [vmem:[%s2069_s1 + $0x18] sm:$0xff]   ;;  %v1710_v6 = vld [vmem:[%s2069_s1 + $0x10] sm:$0xff]   ;;  %s292_s28 = scalar_lea.vmem %s2074_s6, %s2103_s3 }
   0xd   : > { %1637 = vmatpush3.bf16.msra.mxu0 %v1705_v0  ;;  %1688 = vmatpush3.bf16.msra.mxu1 %v1705_v0  ;;  %v1711_v8 = vld [vmem:[%s2069_s1 + $0x8] sm:$0xff]   ;;  %v1712_v9 = vld [vmem:[%s2069_s1] sm:$0xff]   ;;  %v1831_v23 = vshrl.u32 %v625_v22, 7  ;;  %s295_s8 = scalar_lea.vmem %s2075_s7, %s2103_s3 }
   0xe   : > { %1638 = vmatprep.subr.bf16.mxu0 %v1706_v1  ;;  %1681 = vmatprep.subr.bf16.mxu1 %v1706_v1  ;;  %s1800_s10 = scalar_lea.vmem %s2068_s0, %s1696_s30  ;;  %v1844_v42 = vld [vmem:[%s2070_s2] ss:$0 sm:$0xff]  ;;  %s1890_s25 = scalar_lea.vmem %s2073_s5, %s1696_s30 }
   0xf   : > { %v1713_v4 = vld [vmem:[%s1800_s10] sm:$0xff]   ;;  %v1714_v10 = vld [vmem:[%s1800_s10 + $0x8] sm:$0xff]   ;;  %v1715_v12 = vld [vmem:[%s1800_s10 + $0x10] sm:$0xff]   ;;  %v629_v24 = vadd.s32 24, %v1831_v23  ;;  %v627_v25 = vadd.s32 8, %v1831_v23  ;;  %v633_v26 = vadd.s32 56, %v1831_v23 }
  0x10   : > { %1652 = vmatprep.mubr.bf16.mxu0 %v1713_v4  ;;  %v1721_v7 = vld [vmem:[%s1800_s10 + $0x40] sm:$0xff]   ;;  %v1722_v11 = vld [vmem:[%s1800_s10 + $0x48] sm:$0xff]   ;;  %v1723_v13 = vld [vmem:[%s1800_s10 + $0x50] sm:$0xff]   ;;  %v645_v27 = vadd.s32 152, %v1831_v23  ;;  %v643_v28 = vadd.s32 136, %v1831_v23  ;;  %v631_v29 = vadd.s32 40, %v1831_v23 }
  0x11   : > { %1639 = vmatpush3.bf16.msra.mxu0 %v1706_v1  ;;  %1689 = vmatpush3.bf16.msra.mxu1 %v1706_v1  ;;  %v1716_v14 = vld [vmem:[%s1800_s10 + $0x18] sm:$0xff]   ;;  %v1717_v16 = vld [vmem:[%s1800_s10 + $0x20] sm:$0xff]   ;;  %v1718_v18 = vld [vmem:[%s1800_s10 + $0x28] sm:$0xff]   ;;  %v679_v30 = vand.u32 15, %v629_v24  ;;  %v665_v31 = vand.u32 15, %v627_v25  ;;  %v707_v33 = vand.u32 15, %v633_v26 }
  0x12   : > { %1640 = vmatprep.subr.bf16.mxu0 %v1707_v2  ;;  %1682 = vmatprep.subr.bf16.mxu1 %v1707_v2  ;;  %v1724_v15 = vld [vmem:[%s1800_s10 + $0x58] sm:$0xff]   ;;  %v1725_v17 = vld [vmem:[%s1800_s10 + $0x60] sm:$0xff]   ;;  %v1726_v19 = vld [vmem:[%s1800_s10 + $0x68] sm:$0xff]   ;;  %v791_v35 = vand.u32 15, %v645_v27  ;;  %v777_v36 = vand.u32 15, %v643_v28  ;;  %v649_v37 = vadd.s32 184, %v1831_v23 }
  0x13   : > { %1668 = vmatprep.mubr.bf16.mxu1 %v1721_v7  ;;  %v1719_v20 = vld [vmem:[%s1800_s10 + $0x30] sm:$0xff]   ;;  %v1720_v21 = vld [vmem:[%s1800_s10 + $0x38] sm:$0xff]   ;;  %v693_v39 = vand.u32 15, %v631_v29  ;;  %v647_v41 = vadd.s32 168, %v1831_v23  ;;  %vm1846_vm0 = vcmp.lt.s32.totalorder %v679_v30, 14  ;;  %vm1850_vm1 = vcmp.lt.s32.totalorder %v665_v31, 14 }
  0x14   : > { %v637_v45 = vadd.s32 88, %v1831_v23  ;;  %vm1855_vm2 = vcmp.lt.s32.totalorder %v707_v33, 14  ;;  %v635_v48 = vadd.s32 72, %v1831_v23  ;;  %vm1863_vm3 = vcmp.lt.s32.totalorder %v791_v35, 14 }
  0x15   : > { %1641 = vmatpush3.bf16.msra.mxu0 %v1707_v2  ;;  %1690 = vmatpush3.bf16.msra.mxu1 %v1707_v2  ;;  %vm1867_vm4 = vcmp.lt.s32.totalorder %v777_v36, 14  ;;  %v819_v56 = vand.u32 15, %v649_v37  ;;  %vm1875_vm5 = vcmp.lt.s32.totalorder %v693_v39, 14  ;;  %v805_v62 = vand.u32 15, %v647_v41 }
  0x16   : > { %1642 = vmatprep.subr.bf16.mxu0 %v1708_v3  ;;  %1683 = vmatprep.subr.bf16.mxu1 %v1708_v3  ;;  %v1883_v63 = vadd.s32 216, %v1831_v23  ;;  %v721_v7 = vand.u32 15, %v635_v48  ;;  %v651_v24 = vadd.s32 200, %v1831_v23 }
  0x17   : > { %vm1915_vm6 = vcmp.lt.s32.totalorder %v819_v56, 14  ;;  %vm1919_vm7 = vcmp.lt.s32.totalorder %v805_v62, 14 }
  0x18   : > { %v847_v22 = vand.u32 15, %v1883_v63  ;;  %vm1938_vm9 = vcmp.lt.s32.totalorder %v721_v7, 14 }
  0x19   : > { %1643 = vmatpush3.bf16.msra.mxu0 %v1708_v3  ;;  %1691 = vmatpush3.bf16.msra.mxu1 %v1708_v3 }
  0x1a   : > { %1644 = vmatprep.subr.bf16.mxu0 %v1709_v5  ;;  %1684 = vmatprep.subr.bf16.mxu1 %v1709_v5  ;;  %vm1966_vm10 = vcmp.lt.s32.totalorder %v847_v22, 14 }
  0x1d   : > { %1645 = vmatpush3.bf16.msra.mxu0 %v1709_v5  ;;  %1692 = vmatpush3.bf16.msra.mxu1 %v1709_v5 }
  0x1e   : > { %1646 = vmatprep.subr.bf16.mxu0 %v1710_v6  ;;  %1685 = vmatprep.subr.bf16.mxu1 %v1710_v6 }
  0x21   : > { %1647 = vmatpush3.bf16.msra.mxu0 %v1710_v6  ;;  %1693 = vmatpush3.bf16.msra.mxu1 %v1710_v6  ;;  %v735_v6 = vand.u32 15, %v637_v45 }
  0x22   : > { %1648 = vmatprep.subr.bf16.mxu0 %v1711_v8  ;;  %1686 = vmatprep.subr.bf16.mxu1 %v1711_v8 }
  0x23   : > { %vm1927_vm8 = vcmp.lt.s32.totalorder %v735_v6, 14 }
  0x25   : > { %1649 = vmatpush3.bf16.msra.mxu0 %v1711_v8  ;;  %1694 = vmatpush3.bf16.msra.mxu1 %v1711_v8 }
  0x26   : > { %1650 = vmatprep.subr.bf16.mxu0 %v1712_v9  ;;  %1687 = vmatprep.subr.bf16.mxu1 %v1712_v9 }
  0x29   : > { %1651 = vmatpush3.bf16.msra.mxu0 %v1712_v9  ;;  %1695 = vmatpush3.bf16.msra.mxu1 %v1712_v9 }
  0x2c   : > { %1653 = vmatmul.mubr.bf16.vlgmr.msra.gmra.mxu0 %v1714_v10  ;;  %1669 = vmatmul.mubr.bf16.vlgmr.msra.gmra.mxu1 %v1722_v11 }
  0x2d   : > { %1656 = vmatprep.mubr.bf16.mxu0 %v1715_v12  ;;  %1672 = vmatprep.mubr.bf16.mxu1 %v1723_v13  ;;  %v1905_v12 = vadd.s32 120, %v1831_v23 }
  0x2f   : > { %v763_v56 = vand.u32 15, %v1905_v12 }
  0x31   : > { %vm2002_vm12 = vcmp.lt.s32.totalorder %v763_v56, 14 }
  0x34   : > { %1657 = vmatmul.mubr.bf16.gmra.mxu0 %v1716_v14  ;;  %1673 = vmatmul.mubr.bf16.gmra.mxu1 %v1724_v15 }
  0x35   : > { %1660 = vmatprep.mubr.bf16.mxu0 %v1717_v16  ;;  %1676 = vmatprep.mubr.bf16.mxu1 %v1725_v17 }
  0x3c   : > { %1661 = vmatmul.mubr.bf16.gmra.mxu0 %v1718_v18  ;;  %1677 = vmatmul.mubr.bf16.gmra.mxu1 %v1726_v19 }
  0x3d   : > { %1664 = vmatprep.mubr.bf16.mxu0 %v1719_v20 }
  0x44   : > { %1665 = vmatmul.mubr.bf16.gmra.mxu0 %v1720_v21 }
  0xec   : > { %v1654_v32 = vpop.f32.mrf.mxu0  ;;  %v1670_v34 = vpop.f32.mrf.mxu1 }
  0xed   : > { %v1861_v49 = vadd.f32 %v1670_v34, %v1844_v42  ;;  %v523_v57 = vadd.f32 %v1654_v32, %v1844_v42 }
  0xee   : > { %v514_v38 = vpop.f32.mrf.mxu0  ;;  %v578_v40 = vpop.f32.mrf.mxu1 }
  0xef   : > { %v515_v53 = vadd.f32 %v1844_v42, %v514_v38  ;;  %v1880_v60 = vadd.f32 %v1844_v42, %v578_v40  ;;  %v1278_v25 = vmul.f32 %v523_v57, %v523_v57 }
  0xf0   : > { %v1655_v46 = vpop.f32.mrf.mxu0  ;;  %v1671_v50 = vpop.f32.mrf.mxu1 }
  0xf1   : > { %v526_v54 = vadd.f32 %v1655_v46, %v1844_v42  ;;  %v590_v55 = vadd.f32 %v1671_v50, %v1844_v42  ;;  %v1276_v10 = vmul.f32 %v515_v53, %v515_v53 }
  0xf2   : > { %v517_v58 = vpop.f32.mrf.mxu0  ;;  %v581_v61 = vpop.f32.mrf.mxu1 }
  0xf3   : > { %v1077_v0 = vsel %vm1846_vm0, %v526_v54, 0.0  ;;  %v518_v1 = vadd.f32 %v1844_v42, %v517_v58  ;;  %v1897_v2 = vsel %vm1863_vm3, %v590_v55, 0.0  ;;  %v582_v3 = vadd.f32 %v1844_v42, %v581_v61 }
  0xf4   : > { %v1539_v4 = vpack.c.bf16 %v1077_v0, %v523_v57  ;;  %v1658_v5 = vpop.f32.mrf.mxu0  ;;  %v1579_v8 = vpack.c.bf16 %v1897_v2, %v1861_v49  ;;  %v1674_v9 = vpop.f32.mrf.mxu1  ;;  %v1279_v32 = vmul.f32 %v1077_v0, %v1077_v0  ;;  %v833_v58 = vand.u32 15, %v651_v24 }
  0xf5   : > { %v1075_v11 = vsel %vm1850_vm1, %v518_v1, 0.0  ;;  %v1909_v13 = vsel %vm1867_vm4, %v582_v3, 0.0  ;;  %v1934_v34 = vadd.f32 %v1674_v9, %v1844_v42  ;;  %v539_v37 = vadd.f32 %v1658_v5, %v1844_v42 }
  0xf6   : > { %1601 = vst [vmem:[%s1890_s25 + $0x8] sm:$0xff] %v1539_v4   ;;  %v1534_v14 = vpack.c.bf16 %v1075_v11, %v515_v53  ;;  %v1242_v15 = vadd.f32 %v1075_v11, %v515_v53  ;;  %v1277_v16 = vmul.f32 %v1075_v11, %v1075_v11  ;;  %v530_v17 = vpop.f32.mrf.mxu0  ;;  %1609 = vst [vmem:[%s1890_s25 + $0x48] sm:$0xff] %v1579_v8   ;;  %v594_v19 = vpop.f32.mrf.mxu1  ;;  %v639_v5 = vadd.s32 104, %v1831_v23 }
  0xf7   : > { %v1574_v18 = vpack.c.bf16 %v1909_v13, %v1880_v60  ;;  %v531_v28 = vadd.f32 %v1844_v42, %v530_v17  ;;  %v1943_v41 = vadd.f32 %v1844_v42, %v594_v19  ;;  %v1282_v7 = vmul.f32 %v539_v37, %v539_v37 }
  0xf8   : > { %1535 = vst [vmem:[%s1890_s25] sm:$0xff] %v1534_v14   ;;  %v1243_v26 = vadd.f32 %v1242_v15, %v523_v57  ;;  %v1304_v27 = vadd.f32 %v1277_v16, %v1276_v10  ;;  %v1659_v29 = vpop.f32.mrf.mxu0  ;;  %v1675_v31 = vpop.f32.mrf.mxu1  ;;  %vm1975_vm11 = vcmp.lt.s32.totalorder %v833_v58, 14 }
  0xf9   : > { %1608 = vst [vmem:[%s1890_s25 + $0x40] sm:$0xff] %v1574_v18   ;;  %v542_v33 = vadd.f32 %v1659_v29, %v1844_v42  ;;  %v606_v35 = vadd.f32 %v1675_v31, %v1844_v42  ;;  %v1280_v51 = vmul.f32 %v531_v28, %v531_v28 }
  0xfa   : > { %v1305_v36 = vadd.f32 %v1304_v27, %v1278_v25  ;;  %v1244_v38 = vadd.f32 %v1243_v26, %v1077_v0  ;;  %v533_v39 = vpop.f32.mrf.mxu0  ;;  %v597_v43 = vpop.f32.mrf.mxu1 }
  0xfb   : > { %v1081_v44 = vsel %vm1855_vm2, %v542_v33, 0.0  ;;  %v534_v45 = vadd.f32 %v1844_v42, %v533_v39  ;;  %v1950_v46 = vsel %vm1915_vm6, %v606_v35, 0.0  ;;  %v598_v48 = vadd.f32 %v1844_v42, %v597_v43 }
  0xfc   : > { %v1245_v50 = vadd.f32 %v1244_v38, %v531_v28  ;;  %v1306_v52 = vadd.f32 %v1305_v36, %v1279_v32  ;;  %v1549_v53 = vpack.c.bf16 %v1081_v44, %v539_v37  ;;  %v1662_v54 = vpop.f32.mrf.mxu0  ;;  %v1678_v55 = vpop.f32.mrf.mxu1  ;;  %v1589_v57 = vpack.c.bf16 %v1950_v46, %v1934_v34 }
  0xfd   : > { %v1079_v47 = vsel %vm1875_vm5, %v534_v45, 0.0  ;;  %v1964_v59 = vsel %vm1919_vm7, %v598_v48, 0.0  ;;  %v1283_v23 = vmul.f32 %v1081_v44, %v1081_v44  ;;  %v555_v14 = vadd.f32 %v1662_v54, %v1844_v42 }
  0xfe   : > { %v1307_v61 = vadd.f32 %v1306_v52, %v1280_v51  ;;  %1603 = vst [vmem:[%s1890_s25 + $0x18] sm:$0xff] %v1549_v53   ;;  %v1544_v62 = vpack.c.bf16 %v1079_v47, %v531_v28  ;;  %v1246_v63 = vadd.f32 %v1245_v50, %v1079_v47  ;;  %v1281_v0 = vmul.f32 %v1079_v47, %v1079_v47  ;;  %v546_v1 = vpop.f32.mrf.mxu0  ;;  %v610_v3 = vpop.f32.mrf.mxu1 }
  0xff   : > { %v547_v4 = vadd.f32 %v1844_v42, %v546_v1  ;;  %1611 = vst [vmem:[%s1890_s25 + $0x58] sm:$0xff] %v1589_v57   ;;  %v1584_v11 = vpack.c.bf16 %v1964_v59, %v1943_v41  ;;  %v1981_v20 = vadd.f32 %v1678_v55, %v1844_v42  ;;  %v1989_v33 = vadd.f32 %v1844_v42, %v610_v3 }
 0x100   : > { %1602 = vst [vmem:[%s1890_s25 + $0x10] sm:$0xff] %v1544_v62   ;;  %v1247_v8 = vadd.f32 %v1246_v63, %v539_v37  ;;  %v1308_v9 = vadd.f32 %v1307_v61, %v1281_v0  ;;  %v1663_v10 = vpop.f32.mrf.mxu0  ;;  %v1679_v12 = vpop.f32.mrf.mxu1  ;;  %v749_v36 = vand.u32 15, %v639_v5  ;;  %v1286_v48 = vmul.f32 %v555_v14, %v555_v14 }
 0x101   : > { %v558_v15 = vadd.f32 %v1663_v10, %v1844_v42  ;;  %1610 = vst [vmem:[%s1890_s25 + $0x50] sm:$0xff] %v1584_v11   ;;  %v622_v21 = vadd.f32 %v1679_v12, %v1844_v42  ;;  %v1284_v24 = vmul.f32 %v547_v4, %v547_v4 }
 0x102   : > { %v1309_v17 = vadd.f32 %v1308_v9, %v1282_v7  ;;  %v1248_v18 = vadd.f32 %v1247_v8, %v1081_v44  ;;  %v549_v19 = vpop.f32.mrf.mxu0  ;;  %v613_v22 = vpop.f32.mrf.mxu1  ;;  %vm1003_vm13 = vcmp.lt.s32.totalorder %v749_v36, 14  ;;  %v1297_v36 = vmul.f32 %v1964_v59, %v1964_v59 }
 0x103   : > { %v1085_v25 = vsel %vm1927_vm8, %v558_v15, 0.0  ;;  %v550_v26 = vadd.f32 %v1844_v42, %v549_v19  ;;  %v614_v27 = vadd.f32 %v1844_v42, %v613_v22  ;;  %v1995_v30 = vsel %vm1966_vm10, %v622_v21, 0.0 }
 0x104   : > { %v1249_v28 = vadd.f32 %v1248_v18, %v547_v4  ;;  %v1310_v29 = vadd.f32 %v1309_v17, %v1283_v23  ;;  %v1559_v31 = vpack.c.bf16 %v1085_v25, %v555_v14  ;;  %v1666_v32 = vpop.f32.mrf.mxu0  ;;  %v1599_v50 = vpack.c.bf16 %v1995_v30, %v1981_v20 }
 0x105   : > { %v1083_v35 = vsel %vm1938_vm9, %v550_v26, 0.0  ;;  %v1999_v37 = vsel %vm1975_vm11, %v614_v27, 0.0  ;;  %v1287_v56 = vmul.f32 %v1085_v25, %v1085_v25  ;;  %v571_v58 = vadd.f32 %v1666_v32, %v1844_v42 }
 0x106   : > { %v1311_v38 = vadd.f32 %v1310_v29, %v1284_v24  ;;  %1605 = vst [vmem:[%s1890_s25 + $0x28] sm:$0xff] %v1559_v31   ;;  %v1554_v39 = vpack.c.bf16 %v1083_v35, %v547_v4  ;;  %v1250_v43 = vadd.f32 %v1249_v28, %v1083_v35  ;;  %v1285_v44 = vmul.f32 %v1083_v35, %v1083_v35  ;;  %v562_v45 = vpop.f32.mrf.mxu0 }
 0x107   : > { %v563_v53 = vadd.f32 %v1844_v42, %v562_v45  ;;  %v1594_v55 = vpack.c.bf16 %v1999_v37, %v1989_v33  ;;  %1613 = vst [vmem:[%s1890_s25 + $0x68] sm:$0xff] %v1599_v50   ;;  %v1290_v11 = vmul.f32 %v571_v58, %v571_v58  ;;  %v1293_v21 = vmul.f32 %v1909_v13, %v1909_v13 }
 0x108   : > { %1604 = vst [vmem:[%s1890_s25 + $0x20] sm:$0xff] %v1554_v39   ;;  %v1251_v51 = vadd.f32 %v1250_v43, %v555_v14  ;;  %v1312_v52 = vadd.f32 %v1311_v38, %v1285_v44  ;;  %v1667_v54 = vpop.f32.mrf.mxu0  ;;  %v1294_v24 = vmul.f32 %v1861_v49, %v1861_v49  ;;  %v1295_v27 = vmul.f32 %v1897_v2, %v1897_v2 }
 0x109   : > { %v574_v47 = vadd.f32 %v1667_v54, %v1844_v42  ;;  %1612 = vst [vmem:[%s1890_s25 + $0x60] sm:$0xff] %v1594_v55   ;;  %v1288_v3 = vmul.f32 %v563_v53, %v563_v53  ;;  %v1296_v31 = vmul.f32 %v1943_v41, %v1943_v41  ;;  %v1300_v45 = vmul.f32 %v1989_v33, %v1989_v33 }
 0x10a   : > { %v1313_v57 = vadd.f32 %v1312_v52, %v1286_v48  ;;  %v1252_v61 = vadd.f32 %v1251_v51, %v1085_v25  ;;  %v565_v62 = vpop.f32.mrf.mxu0  ;;  %v1301_v50 = vmul.f32 %v1999_v37, %v1999_v37 }
 0x10b   : > { %v1089_v63 = vsel %vm2002_vm12, %v574_v47, 0.0  ;;  %v566_v0 = vadd.f32 %v1844_v42, %v565_v62  ;;  %v1292_v42 = vmul.f32 %v1880_v60, %v1880_v60 }
 0x10c   : > { %v1253_v1 = vadd.f32 %v1252_v61, %v563_v53  ;;  %v1314_v4 = vadd.f32 %v1313_v57, %v1287_v56  ;;  %v1569_v5 = vpack.c.bf16 %v1089_v63, %v571_v58  ;;  %v1291_v14 = vmul.f32 %v1089_v63, %v1089_v63 }
 0x10d   : > { %v1087_v6 = vsel %vm1003_vm13, %v566_v0, 0.0 }
 0x10e   : > { %v1315_v7 = vadd.f32 %v1314_v4, %v1288_v3  ;;  %1607 = vst [vmem:[%s1890_s25 + $0x38] sm:$0xff] %v1569_v5   ;;  %v1564_v8 = vpack.c.bf16 %v1087_v6, %v563_v53  ;;  %v1254_v9 = vadd.f32 %v1253_v1, %v1087_v6  ;;  %v1289_v10 = vmul.f32 %v1087_v6, %v1087_v6 }
 0x110   : > { %1606 = vst [vmem:[%s1890_s25 + $0x30] sm:$0xff] %v1564_v8   ;;  %v1255_v12 = vadd.f32 %v1254_v9, %v571_v58  ;;  %v1316_v23 = vadd.f32 %v1315_v7, %v1289_v10 }
 0x112   : > { %v1317_v15 = vadd.f32 %v1316_v23, %v1290_v11  ;;  %v1256_v16 = vadd.f32 %v1255_v12, %v1089_v63 }
 0x114   : > { %v1257_v17 = vadd.f32 %v1256_v16, %v1880_v60  ;;  %v1318_v18 = vadd.f32 %v1317_v15, %v1291_v14 }
 0x116   : > { %v1258_v19 = vadd.f32 %v1257_v17, %v1909_v13  ;;  %v1319_v22 = vadd.f32 %v1318_v18, %v1292_v42 }
 0x118   : > { %v1259_v25 = vadd.f32 %v1258_v19, %v1861_v49  ;;  %v1320_v26 = vadd.f32 %v1319_v22, %v1293_v21  ;;  %v1298_v49 = vmul.f32 %v1934_v34, %v1934_v34 }
 0x11a   : > { %v1321_v28 = vadd.f32 %v1320_v26, %v1294_v24  ;;  %v1260_v29 = vadd.f32 %v1259_v25, %v1897_v2  ;;  %v1299_v2 = vmul.f32 %v1950_v46, %v1950_v46 }
 0x11c   : > { %v1261_v60 = vadd.f32 %v1260_v29, %v1943_v41  ;;  %v1322_v32 = vadd.f32 %v1321_v28, %v1295_v27 }
 0x11e   : > { %v1323_v13 = vadd.f32 %v1322_v32, %v1296_v31  ;;  %v1262_v35 = vadd.f32 %v1261_v60, %v1964_v59 }
 0x120   : > { %v1263_v38 = vadd.f32 %v1262_v35, %v1934_v34  ;;  %v1324_v39 = vadd.f32 %v1323_v13, %v1297_v36  ;;  %v1302_v34 = vmul.f32 %v1981_v20, %v1981_v20 }
 0x122   : > { %v1325_v43 = vadd.f32 %v1324_v39, %v1298_v49  ;;  %v1264_v44 = vadd.f32 %v1263_v38, %v1950_v46  ;;  %v1303_v46 = vmul.f32 %v1995_v30, %v1995_v30 }
 0x124   : > { %v1265_v41 = vadd.f32 %v1264_v44, %v1989_v33  ;;  %v1326_v48 = vadd.f32 %v1325_v43, %v1299_v2 }
 0x126   : > { %v1327_v40 = vadd.f32 %v1326_v48, %v1300_v45  ;;  %v1266_v59 = vadd.f32 %v1265_v41, %v1999_v37 }
 0x128   : > { %v1267_v51 = vadd.f32 %v1266_v59, %v1981_v20  ;;  %v1328_v52 = vadd.f32 %v1327_v40, %v1301_v50 }
 0x12a   : > { %v1268_v33 = vadd.f32 %v1267_v51, %v1995_v30  ;;  %v1329_v53 = vadd.f32 %v1328_v52, %v1302_v34 }
 0x12c   : > { %v1269_v54 = vrot.slane %v1268_v33, 4  ;;  %v1330_v55 = vadd.f32 %v1329_v53, %v1303_v46 }
 0x12e   : > { %v1270_v47 = vadd.f32 %v1269_v54, %v1268_v33  ;;  %v1331_v56 = vrot.slane %v1330_v55, 4 }
 0x130   : > { %v1271_v57 = vrot.slane %v1270_v47, 2  ;;  %v1332_v37 = vadd.f32 %v1331_v56, %v1330_v55 }
 0x132   : > { %v1272_v58 = vadd.f32 %v1271_v57, %v1270_v47  ;;  %v1333_v61 = vrot.slane %v1332_v37, 2 }
 0x134   : > { %v1273_v62 = vrot.slane %v1272_v58, 1  ;;  %v1334_v63 = vadd.f32 %v1333_v61, %v1332_v37 }
 0x136   : > { %v1274_v20 = vadd.f32 %v1273_v62, %v1272_v58  ;;  %v1335_v0 = vrot.slane %v1334_v63, 1 }
 0x138   : > { %1275 = vst [vmem:[%s292_s28] sm:$0x1] %v1274_v20  ;;  %v1336_v30 = vadd.f32 %v1335_v0, %v1334_v63 }
 0x13a   : > { %1337 = vst [vmem:[%s295_s8] sm:$0x1] %v1336_v30 }
 0x13b PF: > { %s18_s24 = sadd.s32 1, %s1733_s24  }
 0x13c   : > { %p15_p4 = scmp.ge.s32.totalorder %s18_s24, 4  }
 0x13e   :  { %17 = sbr.rel (!%p15_p4) target bundleno = 1 (0x1), region = 94 }

// kernel: model_forward.6
= control target key start
LH: loop header
LB: loop body
LE: loop exit
PB: predicated region body
PF: predicated region fallthrough
CT: control target
= control target key end

     0   :  { %s3273_s24 = smov 0   ;;  %s3689_s0 = inlined_call_operand.vmem [shape: bf16[2,192,128], index: 0, kind: input, shape index: {}]   ;;  %s3690_s1 = inlined_call_operand.vmem [shape: bf16[512,128], index: 1, kind: input, shape index: {}]   ;;  %s3691_s2 = inlined_call_operand.vmem [shape: f32[1,128], index: 2, kind: input, shape index: {}]   ;;  %s3692_s3 = inlined_call_operand.vmem [shape: f32[1,128], index: 3, kind: input, shape index: {}]   ;;  %s3693_s4 = inlined_call_operand.vmem [shape: f32[1,128], index: 4, kind: input, shape index: {}]   ;;  %s3694_s5 = inlined_call_operand.vmem [shape: bf16[2,176,128], index: 5, kind: output, shape index: {0}]   ;;  %s3695_s6 = inlined_call_operand.vmem [shape: f32[2,1,128], index: 6, kind: output, shape index: {1}]   ;;  %s3696_s7 = inlined_call_operand.vmem [shape: f32[2,1,128], index: 7, kind: output, shape index: {2}]  }
   0x1 LB: > { %s2519_s25 = sadd.s32 4294967295, %s3230_s24   ;;  %p2523_p0 = scmp.ge.s32.totalorder %s3230_s24, 1  ;;  %s3230_s24 = sphi %s3273_s24, %s18_s24  }
   0x2   : > { %p242_p1 = scmp.lt.s32.totalorder %s3230_s24, 3 }
   0x4   : > { %p243_p2 = pnand %p2523_p0, %p242_p1 }
   0x5   : > { %p280_p3 = scmp.lt.s32.totalorder (!%p243_p2), %s2519_s25, 1 }
   0x6   : > { %246 = sbr.rel (%p243_p2) target bundleno = 363 (0x16b), region = 40 }
   0xb   : > { %v3126_v0 = vld [vmem:[%s3690_s1 + $0x78] sm:$0xff]   ;;  %v3232_v3 = vmov 0.0   ;;  %v3130_v5 = vld [vmem:[%s3690_s1 + $0x70] sm:$0xff]   ;;  %v297_v7 = vlaneseq  ;;  %v3134_v10 = vld [vmem:[%s3690_s1 + $0x68] sm:$0xff]   ;;  %s3720_s25 = smov (!%p280_p3, %s2519_s25), 1 }
   0xc   : > { %v3127_v1 = vld [vmem:[%s3690_s1 + $0xf8] sm:$0xff]   ;;  %2951 = vmatprep.subr.bf16.mxu0 %v3126_v0  ;;  %720 = vst [vmem:[#allocation2 + $0xc0] sm:$0xff] %v3232_v3  ;;  %v3131_v6 = vld [vmem:[%s3690_s1 + $0xf0] sm:$0xff]   ;;  %v3135_v11 = vld [vmem:[%s3690_s1 + $0xe8] sm:$0xff]   ;;  %s3115_s8 = smul.u32 96, %s3720_s25  ;;  %s292_s21 = scalar_lea.vmem %s3695_s6, %s3720_s25 }
   0xd   : > { %v3128_v2 = vld [vmem:[%s3690_s1 + $0x38] sm:$0xff]   ;;  %3033 = vmatprep.subr.bf16.mxu1 %v3127_v1  ;;  %v3132_v8 = vld [vmem:[%s3690_s1 + $0x30] sm:$0xff]   ;;  %v3313_v12 = vshrl.u32 %v297_v7, 7  ;;  %v3136_v13 = vld [vmem:[%s3690_s1 + $0x28] sm:$0xff]   ;;  %s3116_s15 = smul.u32 88, %s3720_s25  ;;  %s295_s26 = scalar_lea.vmem %s3696_s7, %s3720_s25 }
   0xe   : > { %v3129_v4 = vld [vmem:[%s3690_s1 + $0xb8] sm:$0xff]   ;;  %2952 = vmatpush3.bf16.msra.mxu0 %v3128_v2  ;;  %v3133_v9 = vld [vmem:[%s3690_s1 + $0xb0] sm:$0xff]   ;;  %v3137_v14 = vld [vmem:[%s3690_s1 + $0xa8] sm:$0xff]   ;;  %s3425_s27 = scalar_lea.vmem %s3689_s0, %s3115_s8 }
   0xf   : > { %3034 = vmatpush3.bf16.msra.mxu1 %v3129_v4  ;;  %2953 = vmatprep.subr.bf16.mxu0 %v3130_v5  ;;  %v3138_v15 = vld [vmem:[%s3690_s1 + $0x60] sm:$0xff]   ;;  %v3329_v17 = vadd.s32 8, %v3313_v12  ;;  %v3335_v19 = vadd.s32 24, %v3313_v12  ;;  %v3341_v21 = vadd.s32 40, %v3313_v12  ;;  %v3142_v22 = vld [vmem:[%s3690_s1 + $0x58] sm:$0xff]   ;;  %v3347_v23 = vadd.s32 56, %v3313_v12  ;;  %s3625_s18 = scalar_lea.vmem %s3694_s5, %s3116_s15 }
  0x10   : > { %3035 = vmatprep.subr.bf16.mxu1 %v3131_v6  ;;  %v3139_v16 = vld [vmem:[%s3690_s1 + $0xe0] sm:$0xff]   ;;  %v3143_v24 = vld [vmem:[%s3690_s1 + $0xd8] sm:$0xff]   ;;  %v3146_v30 = vld [vmem:[%s3690_s1 + $0x50] sm:$0xff]   ;;  %v3369_v33 = vadd.s32 72, %v3313_v12  ;;  %v3375_v35 = vadd.s32 88, %v3313_v12  ;;  %v3381_v37 = vadd.s32 104, %v3313_v12 }
  0x11   : > { %v3140_v18 = vld [vmem:[%s3690_s1 + $0x20] sm:$0xff]   ;;  %v333_v25 = vand.u32 15, %v3329_v17  ;;  %v3144_v26 = vld [vmem:[%s3690_s1 + $0x18] sm:$0xff]   ;;  %v347_v27 = vand.u32 15, %v3335_v19  ;;  %v361_v29 = vand.u32 15, %v3341_v21  ;;  %v375_v31 = vand.u32 15, %v3347_v23 }
  0x12   : > { %2954 = vmatpush3.bf16.msra.mxu0 %v3132_v8  ;;  %v3141_v20 = vld [vmem:[%s3690_s1 + $0xa0] sm:$0xff]   ;;  %v3145_v28 = vld [vmem:[%s3690_s1 + $0x98] sm:$0xff]   ;;  %v3147_v32 = vld [vmem:[%s3690_s1 + $0xd0] sm:$0xff]   ;;  %v3387_v39 = vadd.s32 120, %v3313_v12  ;;  %v389_v41 = vand.u32 15, %v3369_v33  ;;  %v403_v43 = vand.u32 15, %v3375_v35 }
  0x13   : > { %3036 = vmatpush3.bf16.msra.mxu1 %v3133_v9  ;;  %2955 = vmatprep.subr.bf16.mxu0 %v3134_v10  ;;  %v3148_v34 = vld [vmem:[%s3690_s1 + $0x10] sm:$0xff]   ;;  %v3150_v38 = vld [vmem:[%s3690_s1 + $0x48] sm:$0xff]   ;;  %v417_v45 = vand.u32 15, %v3381_v37  ;;  %v3154_v46 = vld [vmem:[%s3690_s1 + $0x40] sm:$0xff]   ;;  %vm3406_vm0 = vcmp.lt.s32.totalorder %v333_v25, 12  ;;  %vm3412_vm1 = vcmp.lt.s32.totalorder %v347_v27, 12 }
  0x14   : > { %3037 = vmatprep.subr.bf16.mxu1 %v3135_v11  ;;  %v3149_v36 = vld [vmem:[%s3690_s1 + $0x90] sm:$0xff]   ;;  %v3151_v40 = vld [vmem:[%s3690_s1 + $0xc8] sm:$0xff]   ;;  %v431_v49 = vand.u32 15, %v3387_v39  ;;  %v3155_v50 = vld [vmem:[%s3690_s1 + $0xc0] sm:$0xff]   ;;  %vm3429_vm2 = vcmp.lt.s32.totalorder %v361_v29, 12  ;;  %v3434_v52 = vadd.s32 136, %v3313_v12 }
  0x15   : > { %v3152_v42 = vld [vmem:[%s3690_s1 + $0x8] sm:$0xff]   ;;  %v3156_v53 = vld [vmem:[%s3690_s1] sm:$0xff]   ;;  %v3440_v54 = vadd.s32 152, %v3313_v12  ;;  %vm3455_vm3 = vcmp.lt.s32.totalorder %v375_v31, 12  ;;  %v3461_v62 = vadd.s32 168, %v3313_v12  ;;  %v2931_v3 = vld [vmem:[%s3425_s27 + $0x10] sm:$0xff]  }
  0x16   : > { %2956 = vmatpush3.bf16.msra.mxu0 %v3136_v13  ;;  %v3153_v44 = vld [vmem:[%s3690_s1 + $0x88] sm:$0xff]   ;;  %v3157_v55 = vld [vmem:[%s3690_s1 + $0x80] sm:$0xff]   ;;  %v445_v56 = vand.u32 15, %v3434_v52  ;;  %v2932_v4 = vld [vmem:[%s3425_s27 + $0x18] sm:$0xff]   ;;  %v2837_v6 = vunpack.c.l.bf16 %v2931_v3  ;;  %v2838_v7 = vunpack.c.h.bf16 %v2931_v3  ;;  %vm3487_vm4 = vcmp.lt.s32.totalorder %v389_v41, 12 }
  0x17   : > { %3038 = vmatpush3.bf16.msra.mxu1 %v3137_v14  ;;  %2957 = vmatprep.subr.bf16.mxu0 %v3138_v15  ;;  %v2828_v57 = vld [vmem:[%s3425_s27] sm:$0xff]   ;;  %v2930_v58 = vld [vmem:[%s3425_s27 + $0x8] sm:$0xff]   ;;  %v459_v61 = vand.u32 15, %v3440_v54  ;;  %v2841_v8 = vunpack.c.l.bf16 %v2932_v4  ;;  %v2842_v9 = vunpack.c.h.bf16 %v2932_v4  ;;  %vm3503_vm5 = vcmp.lt.s32.totalorder %v403_v43, 12 }
  0x18   : > { %3039 = vmatprep.subr.bf16.mxu1 %v3139_v16  ;;  %v3451_v59 = vld [vmem:[%s3692_s3] ss:$0 sm:$0xff]  ;;  %v2829_v63 = vunpack.c.l.bf16 %v2828_v57  ;;  %v2830_v0 = vunpack.c.h.bf16 %v2828_v57  ;;  %v2833_v1 = vunpack.c.l.bf16 %v2930_v58  ;;  %v2834_v2 = vunpack.c.h.bf16 %v2930_v58 }
  0x19   : > { %v3468_v5 = vld [vmem:[%s3693_s4] ss:$0 sm:$0xff]  ;;  %v669_v16 = vmul.f32 %v2837_v6, %v3451_v59  ;;  %vm3509_vm6 = vcmp.lt.s32.totalorder %v417_v45, 12  ;;  %vm3533_vm7 = vcmp.lt.s32.totalorder %v431_v49, 12  ;;  %vm3568_vm8 = vcmp.lt.s32.totalorder %v445_v56, 12 }
  0x1a   : > { %2958 = vmatpush3.bf16.msra.mxu0 %v3140_v18  ;;  %v3471_v10 = vld [vmem:[%s3425_s27 + $0x20] sm:$0xff]   ;;  %v665_v11 = vmul.f32 %v2829_v63, %v3451_v59  ;;  %v666_v13 = vmul.f32 %v2830_v0, %v3451_v59  ;;  %v667_v14 = vmul.f32 %v2833_v1, %v3451_v59  ;;  %v668_v15 = vmul.f32 %v2834_v2, %v3451_v59  ;;  %v3516_v1 = vld [vmem:[%s3425_s27 + $0x38] sm:$0xff]  }
  0x1b   : > { %3040 = vmatpush3.bf16.msra.mxu1 %v3141_v20  ;;  %2959 = vmatprep.subr.bf16.mxu0 %v3142_v22  ;;  %v670_v18 = vmul.f32 %v2838_v7, %v3451_v59  ;;  %v671_v20 = vmul.f32 %v2841_v8, %v3451_v59  ;;  %v2845_v22 = vunpack.c.l.bf16 %v3471_v10  ;;  %v2846_v51 = vunpack.c.h.bf16 %v3471_v10 }
  0x1c   : > { %3041 = vmatprep.subr.bf16.mxu1 %v3143_v24  ;;  %v696_v24 = vadd.f32 %v3468_v5, %v665_v11  ;;  %vm3580_vm9 = vcmp.lt.s32.totalorder %v459_v61, 12  ;;  %vm2139_vm12 = vcmp.lt.s32.totalorder %v333_v25, 11  ;;  %vm2141_vm13 = vcmp.lt.s32.totalorder %v347_v27, 11 }
  0x1d   : > { %v673_v3 = vmul.f32 %v2845_v22, %v3451_v59  ;;  %v674_v10 = vmul.f32 %v2846_v51, %v3451_v59  ;;  %v3529_v22 = vld [vmem:[%s3425_s27 + $0x40] sm:$0xff]   ;;  %vm2143_vm14 = vcmp.lt.s32.totalorder %v361_v29, 11  ;;  %vm2145_vm15 = vcmp.lt.s32.totalorder %v375_v31, 11 }
  0x1e   : > { %2960 = vmatpush3.bf16.msra.mxu0 %v3144_v26  ;;  %v697_v26 = vadd.f32 %v3468_v5, %v666_v13  ;;  %817 = vst [vmem:[#allocation2] sm:$0xff] %v696_v24 }
  0x1f   : > { %3042 = vmatpush3.bf16.msra.mxu1 %v3145_v28  ;;  %2961 = vmatprep.subr.bf16.mxu0 %v3146_v30  ;;  %v698_v28 = vadd.f32 %v3468_v5, %v667_v14  ;;  %v699_v30 = vadd.f32 %v3468_v5, %v668_v15  ;;  %v704_v11 = vadd.f32 %v3468_v5, %v673_v3  ;;  %v2857_v15 = vunpack.c.l.bf16 %v3516_v1 }
  0x20   : > { %3043 = vmatprep.subr.bf16.mxu1 %v3147_v32 }
  0x21   : > { %819 = vst [vmem:[#allocation2 + $0x10] sm:$0xff] %v698_v28  ;;  %825 = vst [vmem:[#allocation2 + $0x40] sm:$0xff] %v704_v11 }
  0x22   : > { %2962 = vmatpush3.bf16.msra.mxu0 %v3148_v34  ;;  %v700_v34 = vadd.f32 %v3468_v5, %v669_v16 }
  0x23   : > { %3044 = vmatpush3.bf16.msra.mxu1 %v3149_v36  ;;  %2963 = vmatprep.subr.bf16.mxu0 %v3150_v38  ;;  %v701_v36 = vadd.f32 %v3468_v5, %v670_v18  ;;  %v702_v38 = vadd.f32 %v3468_v5, %v671_v20 }
  0x24   : > { %3045 = vmatprep.subr.bf16.mxu1 %v3151_v40  ;;  %v672_v40 = vmul.f32 %v2842_v9, %v3451_v59  ;;  %821 = vst [vmem:[#allocation2 + $0x20] sm:$0xff] %v700_v34  ;;  %v2763_v0 = vpack.c.bf16 %v700_v34, %v700_v34  ;;  %v705_v34 = vadd.f32 %v3468_v5, %v674_v10 }
  0x25   : > { %v798_v63 = vsel %vm3429_vm2, %v701_v36, 0.0  ;;  %823 = vst [vmem:[#allocation2 + $0x30] sm:$0xff] %v702_v38  ;;  %v2765_v6 = vpack.c.bf16 %v702_v38, %v702_v38  ;;  %vm2151_vm2 = vcmp.lt.s32.totalorder %v417_v45, 11 }
  0x26   : > { %2964 = vmatpush3.bf16.msra.mxu0 %v3152_v42  ;;  %v794_v42 = vsel %vm3406_vm0, %v697_v26, 0.0  ;;  %822 = vst [vmem:[#allocation2 + $0x28] sm:$0xff] %v798_v63  ;;  %v2764_v2 = vpack.c.bf16 %v798_v63, %v798_v63  ;;  %v703_v4 = vadd.f32 %v3468_v5, %v672_v40  ;;  %1217 = vst [vmem:[#allocation3 + $0x28] sm:$0xf] %v2763_v0  ;;  %v2858_v40 = vunpack.c.h.bf16 %v3516_v1 }
  0x27   : > { %3046 = vmatpush3.bf16.msra.mxu1 %v3153_v44  ;;  %2965 = vmatprep.subr.bf16.mxu0 %v3154_v46  ;;  %v2717_v44 = vpack.c.bf16 %v696_v24, %v696_v24  ;;  %v796_v46 = vsel %vm3412_vm1, %v699_v30, 0.0  ;;  %818 = vst [vmem:[#allocation2 + $0x8] sm:$0xff] %v794_v42  ;;  %v2718_v58 = vpack.c.bf16 %v794_v42, %v794_v42  ;;  %955 = vst [vmem:[#allocation3 + $0x40] sm:$0xf] %v2763_v0 }
  0x28   : > { %3047 = vmatprep.subr.bf16.mxu1 %v3155_v50  ;;  %v2761_v50 = vpack.c.bf16 %v698_v28, %v698_v28  ;;  %820 = vst [vmem:[#allocation2 + $0x18] sm:$0xff] %v796_v46  ;;  %v2762_v48 = vpack.c.bf16 %v796_v46, %v796_v46  ;;  %1218 = vst [vmem:[#allocation3 + $0x38] sm:$0xf] %v2764_v2  ;;  %v800_v13 = vsel %vm3455_vm3, %v703_v4, 0.0  ;;  %v802_v4 = vsel %vm3487_vm4, %v705_v34, 0.0 }
  0x29   : > { %951 = vst [vmem:[#allocation3] sm:$0xf] %v2717_v44  ;;  %952 = vst [vmem:[#allocation3 + $0x10] sm:$0xf] %v2718_v58  ;;  %v2766_v16 = vpack.c.bf16 %v800_v13, %v800_v13  ;;  %v2767_v24 = vpack.c.bf16 %v704_v11, %v704_v11  ;;  %v679_v30 = vmul.f32 %v2857_v15, %v3451_v59  ;;  %v2861_v58 = vunpack.c.l.bf16 %v3529_v22 }
  0x2a   : > { %2966 = vmatpush3.bf16.msra.mxu0 %v3156_v53  ;;  %v2934_v53 = vld [vmem:[%s3425_s27 + $0x28] sm:$0xff]   ;;  %1215 = vst [vmem:[#allocation3 + $0x8] sm:$0xf] %v2761_v50  ;;  %953 = vst [vmem:[#allocation3 + $0x20] sm:$0xf] %v2761_v50  ;;  %v680_v10 = vmul.f32 %v2858_v40, %v3451_v59  ;;  %vm2147_vm0 = vcmp.lt.s32.totalorder %v389_v41, 11 }
  0x2b   : > { %3048 = vmatpush3.bf16.msra.mxu1 %v3157_v55  ;;  %v2935_v55 = vld [vmem:[%s3425_s27 + $0x30] sm:$0xff]   ;;  %1216 = vst [vmem:[#allocation3 + $0x18] sm:$0xf] %v2762_v48  ;;  %954 = vst [vmem:[#allocation3 + $0x30] sm:$0xf] %v2762_v48  ;;  %v2849_v7 = vunpack.c.l.bf16 %v2934_v53  ;;  %v2850_v8 = vunpack.c.h.bf16 %v2934_v53  ;;  %v681_v47 = vmul.f32 %v2861_v58, %v3451_v59  ;;  %v473_v58 = vand.u32 15, %v3461_v62 }
  0x2c   : > { %v2853_v9 = vunpack.c.l.bf16 %v2935_v55  ;;  %956 = vst [vmem:[#allocation3 + $0x50] sm:$0xf] %v2764_v2  ;;  %1219 = vst [vmem:[#allocation3 + $0x48] sm:$0xf] %v2765_v6  ;;  %v2854_v14 = vunpack.c.h.bf16 %v2935_v55  ;;  %v710_v55 = vadd.f32 %v3468_v5, %v679_v30  ;;  %vm2149_vm1 = vcmp.lt.s32.totalorder %v403_v43, 11 }
  0x2d   : > { %957 = vst [vmem:[#allocation3 + $0x60] sm:$0xf] %v2765_v6  ;;  %824 = vst [vmem:[#allocation2 + $0x38] sm:$0xff] %v800_v13  ;;  %v675_v18 = vmul.f32 %v2849_v7, %v3451_v59  ;;  %v676_v20 = vmul.f32 %v2850_v8, %v3451_v59  ;;  %v1239_v3 = vld [vmem:[#allocation2 + $0x21] sm:$0xff]  ;;  %v1240_v1 = vld [vmem:[#allocation2 + $0x29] sm:$0xff]  ;;  %v2768_v8 = vpack.c.bf16 %v802_v4, %v802_v4  ;;  %vm3598_vm10 = vcmp.lt.s32.totalorder %v473_v58, 12 }
  0x2e   : > { %v677_v26 = vmul.f32 %v2853_v9, %v3451_v59  ;;  %v678_v28 = vmul.f32 %v2854_v14, %v3451_v59  ;;  %1220 = vst [vmem:[#allocation3 + $0x58] sm:$0xf] %v2766_v16  ;;  %958 = vst [vmem:[#allocation3 + $0x70] sm:$0xf] %v2766_v16  ;;  %v973_v42 = vld [vmem:[#allocation2 + $0x1] sm:$0xff]  ;;  %v974_v44 = vld [vmem:[#allocation2 + $0x9] sm:$0xff]  ;;  %v2785_v51 = vpack.c.bf16 %v1239_v3, %v1239_v3 }
  0x2f   : > { %v706_v36 = vadd.f32 %v3468_v5, %v675_v18  ;;  %v707_v38 = vadd.f32 %v3468_v5, %v676_v20  ;;  %v1237_v46 = vld [vmem:[#allocation2 + $0x11] sm:$0xff]  ;;  %1221 = vst [vmem:[#allocation3 + $0x68] sm:$0xf] %v2767_v24  ;;  %959 = vst [vmem:[#allocation3 + $0x80] sm:$0xf] %v2767_v24  ;;  %v2739_v48 = vpack.c.bf16 %v973_v42, %v973_v42  ;;  %v1238_v0 = vld [vmem:[#allocation2 + $0x19] sm:$0xff] }
  0x30   : > { %v708_v50 = vadd.f32 %v3468_v5, %v677_v26  ;;  %v709_v53 = vadd.f32 %v3468_v5, %v678_v28  ;;  %v2740_v63 = vpack.c.bf16 %v974_v44, %v974_v44  ;;  %v2783_v2 = vpack.c.bf16 %v1237_v46, %v1237_v46  ;;  %826 = vst [vmem:[#allocation2 + $0x48] sm:$0xff] %v802_v4  ;;  %v3551_v9 = vld [vmem:[%s3425_s27 + $0x48] sm:$0xff]   ;;  %v3560_v18 = vld [vmem:[%s3425_s27 + $0x50] sm:$0xff]  }
  0x31   : > { %827 = vst [vmem:[#allocation2 + $0x50] sm:$0xff] %v706_v36  ;;  %v2784_v6 = vpack.c.bf16 %v1238_v0, %v1238_v0  ;;  %v2786_v7 = vpack.c.bf16 %v1240_v1, %v1240_v1  ;;  %831 = vst [vmem:[#allocation2 + $0x70] sm:$0xff] %v710_v55  ;;  %v804_v11 = vsel %vm3503_vm5, %v707_v38, 0.0  ;;  %v2769_v13 = vpack.c.bf16 %v706_v36, %v706_v36  ;;  %v3158_v4 = vld [vmem:[#allocation3] ss:$16 sps:$4 sm:$0xff]  }
  0x32   : > { %829 = vst [vmem:[#allocation2 + $0x60] sm:$0xff] %v708_v50  ;;  %1083 = vst [vmem:[#allocation3 + $0x4] sm:$0xf] %v2739_v48  ;;  %v806_v32 = vsel %vm3509_vm6, %v709_v53, 0.0  ;;  %v2771_v14 = vpack.c.bf16 %v708_v50, %v708_v50  ;;  %v2770_v16 = vpack.c.bf16 %v804_v11, %v804_v11  ;;  %v2773_v26 = vpack.c.bf16 %v710_v55, %v710_v55  ;;  %v2940_v48 = vld [vmem:[%s3425_s27 + $0x58] sm:$0xff]  }
  0x33   : > { %1084 = vst [vmem:[#allocation3 + $0x14] sm:$0xf] %v2740_v63  ;;  %1347 = vst [vmem:[#allocation3 + $0xc] sm:$0xf] %v2783_v2  ;;  %v2772_v57 = vpack.c.bf16 %v806_v32, %v806_v32  ;;  %v2862_v28 = vunpack.c.h.bf16 %v3529_v22  ;;  %v2865_v30 = vunpack.c.l.bf16 %v3551_v9  ;;  %v711_v36 = vadd.f32 %v3468_v5, %v680_v10 }
  0x34   : > { %1085 = vst [vmem:[#allocation3 + $0x24] sm:$0xf] %v2783_v2  ;;  %1348 = vst [vmem:[#allocation3 + $0x1c] sm:$0xf] %v2784_v6  ;;  %v1241_v15 = vld [vmem:[#allocation2 + $0x31] sm:$0xff]  ;;  %v1242_v20 = vld [vmem:[#allocation2 + $0x39] sm:$0xff]  ;;  %v712_v38 = vadd.f32 %v3468_v5, %v681_v47  ;;  %v2866_v44 = vunpack.c.h.bf16 %v3551_v9  ;;  %v2869_v46 = vunpack.c.l.bf16 %v3560_v18 }
  0x35   : > { %1086 = vst [vmem:[#allocation3 + $0x34] sm:$0xf] %v2784_v6  ;;  %1349 = vst [vmem:[#allocation3 + $0x2c] sm:$0xf] %v2785_v51  ;;  %v2787_v24 = vpack.c.bf16 %v1241_v15, %v1241_v15  ;;  %v2788_v34 = vpack.c.bf16 %v1242_v20, %v1242_v20  ;;  %v682_v22 = vmul.f32 %v2862_v28, %v3451_v59  ;;  %v808_v50 = vsel %vm3533_vm7, %v711_v36, 0.0 }
  0x36   : > { %1350 = vst [vmem:[#allocation3 + $0x3c] sm:$0xf] %v2786_v7  ;;  %1087 = vst [vmem:[#allocation3 + $0x44] sm:$0xf] %v2785_v51  ;;  %v683_v42 = vmul.f32 %v2865_v30, %v3451_v59  ;;  %v2775_v53 = vpack.c.bf16 %v712_v38, %v712_v38  ;;  %v2774_v2 = vpack.c.bf16 %v808_v50, %v808_v50  ;;  %v3161_v15 = vld [vmem:[#allocation3 + $0x8] ss:$16 sps:$4 sm:$0xff]   ;;  %v2874_v30 = vunpack.c.h.bf16 %v2940_v48 }
  0x37   : > { %1088 = vst [vmem:[#allocation3 + $0x54] sm:$0xf] %v2786_v7  ;;  %1222 = vst [vmem:[#allocation3 + $0x78] sm:$0xf] %v2768_v8  ;;  %v1243_v63 = vld [vmem:[#allocation2 + $0x41] sm:$0xff]  ;;  %v713_v3 = vadd.f32 %v3468_v5, %v682_v22  ;;  %v684_v1 = vmul.f32 %v2866_v44, %v3451_v59  ;;  %v685_v7 = vmul.f32 %v2869_v46, %v3451_v59  ;;  %v321_v28 = vadd.s32 184, %v3313_v12 }
  0x38   : > { %960 = vst [vmem:[#allocation3 + $0x90] sm:$0xf] %v2768_v8  ;;  %828 = vst [vmem:[#allocation2 + $0x58] sm:$0xff] %v804_v11  ;;  %v1244_v0 = vld [vmem:[#allocation2 + $0x49] sm:$0xff]  ;;  %v714_v60 = vadd.f32 %v3468_v5, %v683_v42  ;;  %v2789_v6 = vpack.c.bf16 %v1243_v63, %v1243_v63  ;;  %v2870_v8 = vunpack.c.h.bf16 %v3560_v18  ;;  %v688_v44 = vmul.f32 %v2874_v30, %v3451_v59 }
  0x39   : > { %830 = vst [vmem:[#allocation2 + $0x68] sm:$0xff] %v806_v32  ;;  %1223 = vst [vmem:[#allocation3 + $0x88] sm:$0xf] %v2769_v13  ;;  %v2790_v51 = vpack.c.bf16 %v1244_v0, %v1244_v0  ;;  %v810_v11 = vsel %vm3568_vm8, %v713_v3, 0.0  ;;  %v716_v10 = vadd.f32 %v3468_v5, %v685_v7  ;;  %v487_v42 = vand.u32 15, %v321_v28 }
  0x3a   : > { %961 = vst [vmem:[#allocation3 + $0xa0] sm:$0xf] %v2769_v13  ;;  %1225 = vst [vmem:[#allocation3 + $0xa8] sm:$0xf] %v2771_v14  ;;  %v3160_v9 = vld [vmem:[#allocation3 + $0x4] ss:$16 sps:$4 sm:$0xff]   ;;  %v715_v13 = vadd.f32 %v3468_v5, %v684_v1  ;;  %v2777_v32 = vpack.c.bf16 %v714_v60, %v714_v60  ;;  %v686_v47 = vmul.f32 %v2870_v8, %v3451_v59 }
  0x3b   : > { %963 = vst [vmem:[#allocation3 + $0xc0] sm:$0xf] %v2771_v14  ;;  %1224 = vst [vmem:[#allocation3 + $0x98] sm:$0xf] %v2770_v16  ;;  %v2873_v14 = vunpack.c.l.bf16 %v2940_v48  ;;  %1928 = vmatprep.mubr.bf16.mxu0 %v3160_v9  ;;  %v2779_v40 = vpack.c.bf16 %v716_v10, %v716_v10  ;;  %v3168_v46 = vld [vmem:[#allocation3 + $0x20] ss:$16 sps:$4 sm:$0xff]  }
  0x3c   : > { %962 = vst [vmem:[#allocation3 + $0xb0] sm:$0xf] %v2770_v16  ;;  %1226 = vst [vmem:[#allocation3 + $0xb8] sm:$0xf] %v2772_v57  ;;  %v3163_v16 = vld [vmem:[#allocation3 + $0xc] ss:$16 sps:$4 sm:$0xff]   ;;  %1929 = vmatmul.mubr.bf16.vlgmr.msra.gmra.mxu0 %v3158_v4 }
  0x3d   : > { %964 = vst [vmem:[#allocation3 + $0xd0] sm:$0xf] %v2772_v57  ;;  %1351 = vst [vmem:[#allocation3 + $0x4c] sm:$0xf] %v2787_v24  ;;  %v2776_v57 = vpack.c.bf16 %v810_v11, %v810_v11  ;;  %v3164_v20 = vld [vmem:[#allocation3 + $0x24] ss:$16 sps:$4 sm:$0xff]   ;;  %2049 = vmatprep.mubr.bf16.mxu1 %v3163_v16 }
  0x3e   : > { %1089 = vst [vmem:[#allocation3 + $0x64] sm:$0xf] %v2787_v24  ;;  %1227 = vst [vmem:[#allocation3 + $0xc8] sm:$0xf] %v2773_v26  ;;  %v812_v24 = vsel %vm3580_vm9, %v715_v13, 0.0  ;;  %2050 = vmatmul.mubr.bf16.vlgmr.msra.gmra.mxu1 %v3161_v15  ;;  %1936 = vmatprep.mubr.bf16.mxu0 %v3164_v20  ;;  %vm744_vm11 = vcmp.lt.s32.totalorder %v487_v42, 12 }
  0x3f   : > { %965 = vst [vmem:[#allocation3 + $0xe0] sm:$0xf] %v2773_v26  ;;  %1352 = vst [vmem:[#allocation3 + $0x5c] sm:$0xf] %v2788_v34  ;;  %v687_v26 = vmul.f32 %v2873_v14, %v3451_v59  ;;  %v2778_v36 = vpack.c.bf16 %v812_v24, %v812_v24  ;;  %v3169_v48 = vld [vmem:[#allocation3 + $0x28] ss:$16 sps:$4 sm:$0xff]  }
  0x40   : > { %1090 = vst [vmem:[#allocation3 + $0x74] sm:$0xf] %v2788_v34  ;;  %833 = vst [vmem:[#allocation2 + $0x80] sm:$0xff] %v712_v38  ;;  %v3166_v34 = vld [vmem:[#allocation3 + $0x2c] ss:$16 sps:$4 sm:$0xff]   ;;  %v717_v38 = vadd.f32 %v3468_v5, %v686_v47  ;;  %vm2153_vm3 = vcmp.lt.s32.totalorder %v431_v49, 11 }
  0x41   : > { %832 = vst [vmem:[#allocation2 + $0x78] sm:$0xff] %v808_v50  ;;  %1229 = vst [vmem:[#allocation3 + $0xe8] sm:$0xf] %v2775_v53  ;;  %v718_v22 = vadd.f32 %v3468_v5, %v687_v26  ;;  %2057 = vmatprep.mubr.bf16.mxu1 %v3166_v34  ;;  %v3170_v63 = vld [vmem:[#allocation3 + $0x44] ss:$16 sps:$4 sm:$0xff]   ;;  %v1245_v3 = vld [vmem:[#allocation2 + $0x51] sm:$0xff] }
  0x42   : > { %967 = vst [vmem:[#allocation3 + $0x100] sm:$0xf] %v2775_v53  ;;  %1228 = vst [vmem:[#allocation3 + $0xd8] sm:$0xf] %v2774_v2  ;;  %v814_v12 = vsel %vm3598_vm10, %v717_v38, 0.0  ;;  %v719_v53 = vadd.f32 %v3468_v5, %v688_v44  ;;  %v2791_v1 = vpack.c.bf16 %v1245_v3, %v1245_v3  ;;  %v1247_v4 = vld [vmem:[#allocation2 + $0x61] sm:$0xff] }
  0x43   : > { %966 = vst [vmem:[#allocation3 + $0xf0] sm:$0xf] %v2774_v2  ;;  %835 = vst [vmem:[#allocation2 + $0x90] sm:$0xff] %v714_v60  ;;  %v2780_v50 = vpack.c.bf16 %v814_v12, %v814_v12  ;;  %v2781_v55 = vpack.c.bf16 %v718_v22, %v718_v22  ;;  %v1246_v60 = vld [vmem:[#allocation2 + $0x59] sm:$0xff]  ;;  %vm2155_vm4 = vcmp.lt.s32.totalorder %v445_v56, 11  ;;  %vm2157_vm5 = vcmp.lt.s32.totalorder %v459_v61, 11 }
  0x44   : > { %1353 = vst [vmem:[#allocation3 + $0x6c] sm:$0xf] %v2789_v6  ;;  %1354 = vst [vmem:[#allocation3 + $0x7c] sm:$0xf] %v2790_v51  ;;  %v816_v59 = vsel %vm744_vm11, %v719_v53, 0.0  ;;  %1937 = vmatmul.mubr.bf16.gmra.mxu0 %v3168_v46  ;;  %v2792_v5 = vpack.c.bf16 %v1246_v60, %v1246_v60  ;;  %vm2159_vm6 = vcmp.lt.s32.totalorder %v473_v58, 11 }
  0x45   : > { %1091 = vst [vmem:[#allocation3 + $0x84] sm:$0xf] %v2789_v6  ;;  %1092 = vst [vmem:[#allocation3 + $0x94] sm:$0xf] %v2790_v51  ;;  %v2782_v2 = vpack.c.bf16 %v816_v59, %v816_v59  ;;  %1944 = vmatprep.mubr.bf16.mxu0 %v3170_v63  ;;  %v1248_v6 = vld [vmem:[#allocation2 + $0x69] sm:$0xff]  ;;  %v2793_v51 = vpack.c.bf16 %v1247_v4, %v1247_v4 }
  0x46   : > { %834 = vst [vmem:[#allocation2 + $0x88] sm:$0xff] %v810_v11  ;;  %1231 = vst [vmem:[#allocation3 + $0x108] sm:$0xf] %v2777_v32  ;;  %v3172_v0 = vld [vmem:[#allocation3 + $0x4c] ss:$16 sps:$4 sm:$0xff]   ;;  %2058 = vmatmul.mubr.bf16.gmra.mxu1 %v3169_v48  ;;  %v2794_v9 = vpack.c.bf16 %v1248_v6, %v1248_v6 }
  0x47   : > { %969 = vst [vmem:[#allocation3 + $0x120] sm:$0xf] %v2777_v32  ;;  %1230 = vst [vmem:[#allocation3 + $0xf8] sm:$0xf] %v2776_v57  ;;  %2065 = vmatprep.mubr.bf16.mxu1 %v3172_v0  ;;  %v3175_v26 = vld [vmem:[#allocation3 + $0x48] ss:$16 sps:$4 sm:$0xff]  }
  0x48   : > { %968 = vst [vmem:[#allocation3 + $0x110] sm:$0xf] %v2776_v57  ;;  %836 = vst [vmem:[#allocation2 + $0x98] sm:$0xff] %v812_v24  ;;  %v1249_v7 = vld [vmem:[#allocation2 + $0x71] sm:$0xff]  ;;  %v1250_v8 = vld [vmem:[#allocation2 + $0x79] sm:$0xff] }
  0x49   : > { %837 = vst [vmem:[#allocation2 + $0xa0] sm:$0xff] %v716_v10  ;;  %1232 = vst [vmem:[#allocation3 + $0x118] sm:$0xf] %v2778_v36  ;;  %v2795_v11 = vpack.c.bf16 %v1249_v7, %v1249_v7  ;;  %v2796_v13 = vpack.c.bf16 %v1250_v8, %v1250_v8  ;;  %v3174_v24 = vld [vmem:[#allocation3 + $0x40] ss:$16 sps:$4 sm:$0xff]  }
  0x4a   : > { %970 = vst [vmem:[#allocation3 + $0x130] sm:$0xf] %v2778_v36  ;;  %1233 = vst [vmem:[#allocation3 + $0x128] sm:$0xf] %v2779_v40  ;;  %v3176_v36 = vld [vmem:[#allocation3 + $0x64] ss:$16 sps:$4 sm:$0xff]  }
  0x4b   : > { %971 = vst [vmem:[#allocation3 + $0x140] sm:$0xf] %v2779_v40  ;;  %838 = vst [vmem:[#allocation2 + $0xa8] sm:$0xff] %v814_v12  ;;  %v3180_v12 = vld [vmem:[#allocation3 + $0x60] ss:$16 sps:$4 sm:$0xff]  }
  0x4c   : > { %839 = vst [vmem:[#allocation2 + $0xb0] sm:$0xff] %v718_v22  ;;  %1234 = vst [vmem:[#allocation3 + $0x138] sm:$0xf] %v2780_v50  ;;  %v3178_v22 = vld [vmem:[#allocation3 + $0x6c] ss:$16 sps:$4 sm:$0xff]   ;;  %1945 = vmatmul.mubr.bf16.gmra.mxu0 %v3174_v24 }
  0x4d   : > { %972 = vst [vmem:[#allocation3 + $0x150] sm:$0xf] %v2780_v50  ;;  %1235 = vst [vmem:[#allocation3 + $0x148] sm:$0xf] %v2781_v55  ;;  %v1251_v32 = vld [vmem:[#allocation2 + $0x81] sm:$0xff]  ;;  %v1252_v14 = vld [vmem:[#allocation2 + $0x89] sm:$0xff]  ;;  %1952 = vmatprep.mubr.bf16.mxu0 %v3176_v36 }
  0x4e   : > { %840 = vst [vmem:[#allocation2 + $0xb8] sm:$0xff] %v816_v59  ;;  %1236 = vst [vmem:[#allocation3 + $0x158] sm:$0xf] %v2782_v2  ;;  %v2797_v16 = vpack.c.bf16 %v1251_v32, %v1251_v32  ;;  %v2798_v57 = vpack.c.bf16 %v1252_v14, %v1252_v14  ;;  %2066 = vmatmul.mubr.bf16.gmra.mxu1 %v3175_v26  ;;  %v3181_v46 = vld [vmem:[#allocation3 + $0x68] ss:$16 sps:$4 sm:$0xff]  }
  0x4f   : > { %1355 = vst [vmem:[#allocation3 + $0x8c] sm:$0xf] %v2791_v1  ;;  %1093 = vst [vmem:[#allocation3 + $0xa4] sm:$0xf] %v2791_v1  ;;  %v1253_v15 = vld [vmem:[#allocation2 + $0x91] sm:$0xff]  ;;  %2073 = vmatprep.mubr.bf16.mxu1 %v3178_v22 }
  0x50   : > { %1356 = vst [vmem:[#allocation3 + $0x9c] sm:$0xf] %v2792_v5  ;;  %1094 = vst [vmem:[#allocation3 + $0xb4] sm:$0xf] %v2792_v5  ;;  %v1254_v10 = vld [vmem:[#allocation2 + $0x99] sm:$0xff]  ;;  %v2799_v47 = vpack.c.bf16 %v1253_v15, %v1253_v15 }
  0x51   : > { %1357 = vst [vmem:[#allocation3 + $0xac] sm:$0xf] %v2793_v51  ;;  %1095 = vst [vmem:[#allocation3 + $0xc4] sm:$0xf] %v2793_v51  ;;  %v2800_v28 = vpack.c.bf16 %v1254_v10, %v1254_v10  ;;  %v3182_v50 = vld [vmem:[#allocation3 + $0x84] ss:$16 sps:$4 sm:$0xff]  }
  0x52   : > { %v1255_v18 = vld [vmem:[#allocation2 + $0xa1] sm:$0xff]  ;;  %1358 = vst [vmem:[#allocation3 + $0xbc] sm:$0xf] %v2794_v9  ;;  %1096 = vst [vmem:[#allocation3 + $0xd4] sm:$0xf] %v2794_v9 }
  0x53   : > { %v1256_v20 = vld [vmem:[#allocation2 + $0xa9] sm:$0xff]  ;;  %1359 = vst [vmem:[#allocation3 + $0xcc] sm:$0xf] %v2795_v11  ;;  %1360 = vst [vmem:[#allocation3 + $0xdc] sm:$0xf] %v2796_v13  ;;  %v2801_v30 = vpack.c.bf16 %v1255_v18, %v1255_v18 }
  0x54   : > { %1097 = vst [vmem:[#allocation3 + $0xe4] sm:$0xf] %v2795_v11  ;;  %1098 = vst [vmem:[#allocation3 + $0xf4] sm:$0xf] %v2796_v13  ;;  %v2802_v34 = vpack.c.bf16 %v1256_v20, %v1256_v20  ;;  %1953 = vmatmul.mubr.bf16.gmra.mxu0 %v3180_v12  ;;  %v3186_v55 = vld [vmem:[#allocation3 + $0x80] ss:$16 sps:$4 sm:$0xff]  }
  0x55   : > { %1361 = vst [vmem:[#allocation3 + $0xec] sm:$0xf] %v2797_v16  ;;  %1362 = vst [vmem:[#allocation3 + $0xfc] sm:$0xf] %v2798_v57  ;;  %v1257_v38 = vld [vmem:[#allocation2 + $0xb1] sm:$0xff]  ;;  %v1258_v40 = vld [vmem:[#allocation2 + $0xb9] sm:$0xff]  ;;  %1960 = vmatprep.mubr.bf16.mxu0 %v3182_v50 }
  0x56   : > { %1099 = vst [vmem:[#allocation3 + $0x104] sm:$0xf] %v2797_v16  ;;  %1100 = vst [vmem:[#allocation3 + $0x114] sm:$0xf] %v2798_v57  ;;  %v2803_v42 = vpack.c.bf16 %v1257_v38, %v1257_v38  ;;  %v2804_v44 = vpack.c.bf16 %v1258_v40, %v1258_v40  ;;  %2074 = vmatmul.mubr.bf16.gmra.mxu1 %v3181_v46  ;;  %v3187_v48 = vld [vmem:[#allocation3 + $0x88] ss:$16 sps:$4 sm:$0xff]  }
  0x57   : > { %1363 = vst [vmem:[#allocation3 + $0x10c] sm:$0xf] %v2799_v47  ;;  %1101 = vst [vmem:[#allocation3 + $0x124] sm:$0xf] %v2799_v47  ;;  %v3184_v53 = vld [vmem:[#allocation3 + $0x8c] ss:$16 sps:$4 sm:$0xff]  }
  0x58   : > { %1364 = vst [vmem:[#allocation3 + $0x11c] sm:$0xf] %v2800_v28  ;;  %1102 = vst [vmem:[#allocation3 + $0x134] sm:$0xf] %v2800_v28  ;;  %2081 = vmatprep.mubr.bf16.mxu1 %v3184_v53  ;;  %v3188_v63 = vld [vmem:[#allocation3 + $0xa4] ss:$16 sps:$4 sm:$0xff]  }
  0x59   : > { %1365 = vst [vmem:[#allocation3 + $0x12c] sm:$0xf] %v2801_v30  ;;  %1366 = vst [vmem:[#allocation3 + $0x13c] sm:$0xf] %v2802_v34  ;;  %v3190_v59 = vld [vmem:[#allocation3 + $0xac] ss:$16 sps:$4 sm:$0xff]  }
  0x5a   : > { %1103 = vst [vmem:[#allocation3 + $0x144] sm:$0xf] %v2801_v30  ;;  %1104 = vst [vmem:[#allocation3 + $0x154] sm:$0xf] %v2802_v34  ;;  %v3192_v0 = vld [vmem:[#allocation3 + $0xa0] ss:$16 sps:$4 sm:$0xff]  }
  0x5b   : > { %1367 = vst [vmem:[#allocation3 + $0x14c] sm:$0xf] %v2803_v42  ;;  %1368 = vst [vmem:[#allocation3 + $0x15c] sm:$0xf] %v2804_v44  ;;  %v3193_v2 = vld [vmem:[#allocation3 + $0xa8] ss:$16 sps:$4 sm:$0xff]  }
  0x5c   : > { %1961 = vmatmul.mubr.bf16.gmra.mxu0 %v3186_v55  ;;  %v3194_v3 = vld [vmem:[#allocation3 + $0xc4] ss:$16 sps:$4 sm:$0xff]   ;;  %v3196_v60 = vld [vmem:[#allocation3 + $0xcc] ss:$16 sps:$4 sm:$0xff]   ;;  %v3198_v1 = vld [vmem:[#allocation3 + $0xc0] ss:$16 sps:$4 sm:$0xff]  }
  0x5d   : > { %1968 = vmatprep.mubr.bf16.mxu0 %v3188_v63  ;;  %v3199_v4 = vld [vmem:[#allocation3 + $0xc8] ss:$16 sps:$4 sm:$0xff]   ;;  %v3200_v5 = vld [vmem:[#allocation3 + $0xe4] ss:$16 sps:$4 sm:$0xff]   ;;  %v3202_v6 = vld [vmem:[#allocation3 + $0xec] ss:$16 sps:$4 sm:$0xff]  }
  0x5e   : > { %2082 = vmatmul.mubr.bf16.gmra.mxu1 %v3187_v48  ;;  %v3204_v51 = vld [vmem:[#allocation3 + $0xe0] ss:$16 sps:$4 sm:$0xff]   ;;  %v3205_v7 = vld [vmem:[#allocation3 + $0xe8] ss:$16 sps:$4 sm:$0xff]   ;;  %v3206_v8 = vld [vmem:[#allocation3 + $0x104] ss:$16 sps:$4 sm:$0xff]  }
  0x5f   : > { %2089 = vmatprep.mubr.bf16.mxu1 %v3190_v59  ;;  %v3208_v9 = vld [vmem:[#allocation3 + $0x10c] ss:$16 sps:$4 sm:$0xff]   ;;  %v3210_v11 = vld [vmem:[#allocation3 + $0x100] ss:$16 sps:$4 sm:$0xff]   ;;  %v3211_v13 = vld [vmem:[#allocation3 + $0x108] ss:$16 sps:$4 sm:$0xff]  }
  0x60   : > { %v3212_v32 = vld [vmem:[#allocation3 + $0x124] ss:$16 sps:$4 sm:$0xff]   ;;  %v3214_v14 = vld [vmem:[#allocation3 + $0x12c] ss:$16 sps:$4 sm:$0xff]   ;;  %v3216_v15 = vld [vmem:[#allocation3 + $0x120] ss:$16 sps:$4 sm:$0xff]  }
  0x61   : > { %v3217_v16 = vld [vmem:[#allocation3 + $0x128] ss:$16 sps:$4 sm:$0xff]   ;;  %v3218_v57 = vld [vmem:[#allocation3 + $0x144] ss:$16 sps:$4 sm:$0xff]   ;;  %v3222_v47 = vld [vmem:[#allocation3 + $0x140] ss:$16 sps:$4 sm:$0xff]  }
  0x62   : > { %v3220_v10 = vld [vmem:[#allocation3 + $0x14c] ss:$16 sps:$4 sm:$0xff]   ;;  %v3223_v18 = vld [vmem:[#allocation3 + $0x148] ss:$16 sps:$4 sm:$0xff]  }
  0x63   : > { %v3615_v36 = vld [vmem:[%s3691_s2] ss:$0 sm:$0xff] }
  0x64   : > { %1969 = vmatmul.mubr.bf16.gmra.mxu0 %v3192_v0 }
  0x65   : > { %1976 = vmatprep.mubr.bf16.mxu0 %v3194_v3 }
  0x66   : > { %2090 = vmatmul.mubr.bf16.gmra.mxu1 %v3193_v2 }
  0x67   : > { %2097 = vmatprep.mubr.bf16.mxu1 %v3196_v60 }
  0x6c   : > { %1977 = vmatmul.mubr.bf16.gmra.mxu0 %v3198_v1 }
  0x6d   : > { %1984 = vmatprep.mubr.bf16.mxu0 %v3200_v5 }
  0x6e   : > { %2098 = vmatmul.mubr.bf16.gmra.mxu1 %v3199_v4 }
  0x6f   : > { %2105 = vmatprep.mubr.bf16.mxu1 %v3202_v6 }
  0x74   : > { %1985 = vmatmul.mubr.bf16.gmra.mxu0 %v3204_v51 }
  0x75   : > { %1992 = vmatprep.mubr.bf16.mxu0 %v3206_v8 }
  0x76   : > { %2106 = vmatmul.mubr.bf16.gmra.mxu1 %v3205_v7 }
  0x77   : > { %2113 = vmatprep.mubr.bf16.mxu1 %v3208_v9 }
  0x7c   : > { %1993 = vmatmul.mubr.bf16.gmra.mxu0 %v3210_v11 }
  0x7d   : > { %2000 = vmatprep.mubr.bf16.mxu0 %v3212_v32 }
  0x7e   : > { %2114 = vmatmul.mubr.bf16.gmra.mxu1 %v3211_v13 }
  0x7f   : > { %2121 = vmatprep.mubr.bf16.mxu1 %v3214_v14 }
  0x84   : > { %2001 = vmatmul.mubr.bf16.gmra.mxu0 %v3216_v15 }
  0x85   : > { %2008 = vmatprep.mubr.bf16.mxu0 %v3218_v57 }
  0x86   : > { %2122 = vmatmul.mubr.bf16.gmra.mxu1 %v3217_v16 }
  0x87   : > { %2129 = vmatprep.mubr.bf16.mxu1 %v3220_v10 }
  0x8c   : > { %2009 = vmatmul.mubr.bf16.gmra.mxu0 %v3222_v47 }
  0x8e   : > { %2130 = vmatmul.mubr.bf16.gmra.mxu1 %v3223_v18 }
  0xfc   : > { %v2967_v20 = vpop.f32.mrf.mxu0 }
  0xfe   : > { %v3049_v24 = vpop.f32.mrf.mxu1  ;;  %v2968_v26 = vpop.f32.mrf.mxu0 }
  0xff   : > { %v2969_v30 = vadd.f32 %v2968_v26, %v2967_v20 }
 0x100   : > { %v3050_v28 = vpop.f32.mrf.mxu1  ;;  %v2970_v34 = vpop.f32.mrf.mxu0 }
 0x101   : > { %v1931_v44 = vadd.f32 %v2969_v30, %v3615_v36  ;;  %v3051_v55 = vadd.f32 %v3050_v28, %v3049_v24 }
 0x102   : > { %v3052_v38 = vpop.f32.mrf.mxu1  ;;  %v2971_v40 = vpop.f32.mrf.mxu0 }
 0x103   : > { %v2972_v22 = vadd.f32 %v2971_v40, %v2970_v34  ;;  %v2052_v0 = vadd.f32 %v3051_v55, %v1931_v44 }
 0x104   : > { %v3053_v42 = vpop.f32.mrf.mxu1  ;;  %v2973_v12 = vpop.f32.mrf.mxu0 }
 0x105   : > { %v1934_v46 = vadd.f32 %v2972_v22, %v3615_v36  ;;  %v3054_v50 = vadd.f32 %v3053_v42, %v3052_v38 }
 0x106   : > { %v3055_v53 = vpop.f32.mrf.mxu1  ;;  %v2974_v48 = vpop.f32.mrf.mxu0 }
 0x107   : > { %v2055_v63 = vadd.f32 %v3054_v50, %v1934_v46  ;;  %v2975_v2 = vadd.f32 %v2974_v48, %v2973_v12 }
 0x108   : > { %v3056_v59 = vpop.f32.mrf.mxu1  ;;  %v2976_v3 = vpop.f32.mrf.mxu0 }
 0x109   : > { %v2205_v60 = vsel %vm2139_vm12, %v2055_v63, 0.0  ;;  %v1939_v17 = vadd.f32 %v2975_v2, %v3615_v36  ;;  %v3057_v11 = vadd.f32 %v3056_v59, %v3055_v53 }
 0x10a   : > { %v3058_v1 = vpop.f32.mrf.mxu1  ;;  %v2878_v4 = vpack.c.bf16 %v2205_v60, %v2052_v0  ;;  %v2977_v5 = vpop.f32.mrf.mxu0  ;;  %v2365_v2 = vmul.f32 %v2205_v60, %v2205_v60 }
 0x10b   : > { %v2978_v6 = vadd.f32 %v2977_v5, %v2976_v3  ;;  %v2060_v15 = vadd.f32 %v3057_v11, %v1939_v17  ;;  %v2364_v5 = vmul.f32 %v2052_v0, %v2052_v0 }
 0x10c   : > { %v3059_v51 = vpop.f32.mrf.mxu1  ;;  %2879 = vst [vmem:[%s3625_s18] sm:$0xff] %v2878_v4   ;;  %v2979_v25 = vpop.f32.mrf.mxu0 }
 0x10d   : > { %v1942_v7 = vadd.f32 %v2978_v6, %v3615_v36  ;;  %v3060_v8 = vadd.f32 %v3059_v51, %v3058_v1  ;;  %v2336_v6 = vadd.f32 %v2205_v60, %v2052_v0 }
 0x10e   : > { %v3061_v9 = vpop.f32.mrf.mxu1  ;;  %v2980_v13 = vpop.f32.mrf.mxu0 }
 0x10f   : > { %v2063_v32 = vadd.f32 %v3060_v8, %v1942_v7  ;;  %v2981_v16 = vadd.f32 %v2980_v13, %v2979_v25  ;;  %v2386_v8 = vadd.f32 %v2365_v2, %v2364_v5 }
 0x110   : > { %v3062_v14 = vpop.f32.mrf.mxu1  ;;  %v2982_v57 = vpop.f32.mrf.mxu0 }
 0x111   : > { %v2207_v10 = vsel %vm2141_vm13, %v2063_v32, 0.0  ;;  %v1947_v28 = vadd.f32 %v2981_v16, %v3615_v36  ;;  %v3063_v38 = vadd.f32 %v3062_v14, %v3061_v9  ;;  %v2366_v9 = vmul.f32 %v2060_v15, %v2060_v15 }
 0x112   : > { %v3064_v47 = vpop.f32.mrf.mxu1  ;;  %v2883_v18 = vpack.c.bf16 %v2207_v10, %v2060_v15  ;;  %v2983_v20 = vpop.f32.mrf.mxu0 }
 0x113   : > { %v2984_v24 = vadd.f32 %v2983_v20, %v2982_v57  ;;  %v2068_v44 = vadd.f32 %v3063_v38, %v1947_v28  ;;  %v2337_v57 = vadd.f32 %v2336_v6, %v2060_v15 }
 0x114   : > { %v3065_v26 = vpop.f32.mrf.mxu1  ;;  %2941 = vst [vmem:[%s3625_s18 + $0x8] sm:$0xff] %v2883_v18   ;;  %v2985_v30 = vpop.f32.mrf.mxu0 }
 0x115   : > { %v1950_v34 = vadd.f32 %v2984_v24, %v3615_v36  ;;  %v3066_v19 = vadd.f32 %v3065_v26, %v3064_v47  ;;  %v2367_v47 = vmul.f32 %v2207_v10, %v2207_v10  ;;  %v2387_v24 = vadd.f32 %v2386_v8, %v2366_v9 }
 0x116   : > { %v3067_v27 = vpop.f32.mrf.mxu1  ;;  %v2986_v40 = vpop.f32.mrf.mxu0  ;;  %v2338_v23 = vadd.f32 %v2337_v57, %v2207_v10 }
 0x117   : > { %v2071_v22 = vadd.f32 %v3066_v19, %v1950_v34  ;;  %v2987_v12 = vadd.f32 %v2986_v40, %v2985_v30  ;;  %v2388_v19 = vadd.f32 %v2387_v24, %v2367_v47 }
 0x118   : > { %v3068_v42 = vpop.f32.mrf.mxu1  ;;  %v2988_v46 = vpop.f32.mrf.mxu0 }
 0x119   : > { %v2209_v50 = vsel %vm2143_vm14, %v2071_v22, 0.0  ;;  %v1955_v3 = vadd.f32 %v2987_v12, %v3615_v36  ;;  %v3069_v51 = vadd.f32 %v3068_v42, %v3067_v27  ;;  %v2368_v27 = vmul.f32 %v2068_v44, %v2068_v44 }
 0x11a   : > { %v3070_v53 = vpop.f32.mrf.mxu1  ;;  %v2888_v55 = vpack.c.bf16 %v2209_v50, %v2068_v44  ;;  %v2989_v48 = vpop.f32.mrf.mxu0  ;;  %v2339_v42 = vadd.f32 %v2338_v23, %v2068_v44  ;;  %v2369_v10 = vmul.f32 %v2209_v50, %v2209_v50 }
 0x11b   : > { %v2990_v63 = vadd.f32 %v2989_v48, %v2988_v46  ;;  %v2076_v11 = vadd.f32 %v3069_v51, %v1955_v3 }
 0x11c   : > { %v3071_v59 = vpop.f32.mrf.mxu1  ;;  %2942 = vst [vmem:[%s3625_s18 + $0x10] sm:$0xff] %v2888_v55   ;;  %v2991_v1 = vpop.f32.mrf.mxu0 }
 0x11d   : > { %v1958_v21 = vadd.f32 %v2990_v63, %v3615_v36  ;;  %v3072_v29 = vadd.f32 %v3071_v59, %v3070_v53  ;;  %v2389_v63 = vadd.f32 %v2388_v19, %v2368_v27  ;;  %v2340_v59 = vadd.f32 %v2339_v42, %v2209_v50 }
 0x11e   : > { %v3073_v4 = vpop.f32.mrf.mxu1  ;;  %v2992_v17 = vpop.f32.mrf.mxu0  ;;  %v2370_v33 = vmul.f32 %v2076_v11, %v2076_v11 }
 0x11f   : > { %v2079_v25 = vadd.f32 %v3072_v29, %v1958_v21  ;;  %v2993_v13 = vadd.f32 %v2992_v17, %v2991_v1  ;;  %v2390_v29 = vadd.f32 %v2389_v63, %v2369_v10  ;;  %v2341_v51 = vadd.f32 %v2340_v59, %v2076_v11 }
 0x120   : > { %v3074_v7 = vpop.f32.mrf.mxu1  ;;  %v2994_v32 = vpop.f32.mrf.mxu0 }
 0x121   : > { %v2211_v14 = vsel %vm2145_vm15, %v2079_v25, 0.0  ;;  %v1963_v31 = vadd.f32 %v2993_v13, %v3615_v36  ;;  %v3075_v38 = vadd.f32 %v3074_v7, %v3073_v4  ;;  %v2391_v9 = vadd.f32 %v2390_v29, %v2370_v33 }
 0x122   : > { %v3076_v16 = vpop.f32.mrf.mxu1  ;;  %v2893_v18 = vpack.c.bf16 %v2211_v14, %v2076_v11  ;;  %v2995_v20 = vpop.f32.mrf.mxu0  ;;  %v2371_v17 = vmul.f32 %v2211_v14, %v2211_v14  ;;  %v2342_v13 = vadd.f32 %v2341_v51, %v2211_v14 }
 0x123   : > { %v2996_v0 = vadd.f32 %v2995_v20, %v2994_v32  ;;  %v2084_v12 = vadd.f32 %v3075_v38, %v1963_v31 }
 0x124   : > { %v3077_v60 = vpop.f32.mrf.mxu1  ;;  %2943 = vst [vmem:[%s3625_s18 + $0x18] sm:$0xff] %v2893_v18   ;;  %v2997_v26 = vpop.f32.mrf.mxu0  ;;  %v2392_v20 = vadd.f32 %v2391_v9, %v2371_v17 }
 0x125   : > { %v1966_v28 = vadd.f32 %v2996_v0, %v3615_v36  ;;  %v3078_v30 = vadd.f32 %v3077_v60, %v3076_v16  ;;  %v2372_v0 = vmul.f32 %v2084_v12, %v2084_v12  ;;  %v2343_v31 = vadd.f32 %v2342_v13, %v2084_v12 }
 0x126   : > { %v3079_v34 = vpop.f32.mrf.mxu1  ;;  %v2998_v15 = vpop.f32.mrf.mxu0 }
 0x127   : > { %v2087_v40 = vadd.f32 %v3078_v30, %v1966_v28  ;;  %v2999_v46 = vadd.f32 %v2998_v15, %v2997_v26 }
 0x128   : > { %v3080_v22 = vpop.f32.mrf.mxu1  ;;  %v3000_v53 = vpop.f32.mrf.mxu0 }
 0x129   : > { %v2213_v55 = vsel %vm2147_vm0, %v2087_v40, 0.0  ;;  %v1971_v41 = vadd.f32 %v2999_v46, %v3615_v36  ;;  %v3081_v25 = vadd.f32 %v3080_v22, %v3079_v34  ;;  %v2393_v34 = vadd.f32 %v2392_v20, %v2372_v0 }
 0x12a   : > { %v3082_v48 = vpop.f32.mrf.mxu1  ;;  %v2898_v2 = vpack.c.bf16 %v2213_v55, %v2084_v12  ;;  %v3001_v3 = vpop.f32.mrf.mxu0  ;;  %v2373_v35 = vmul.f32 %v2213_v55, %v2213_v55  ;;  %v2344_v19 = vadd.f32 %v2343_v31, %v2213_v55 }
 0x12b   : > { %v3002_v1 = vadd.f32 %v3001_v3, %v3000_v53  ;;  %v2092_v32 = vadd.f32 %v3081_v25, %v1971_v41 }
 0x12c   : > { %v3083_v21 = vpop.f32.mrf.mxu1  ;;  %2944 = vst [vmem:[%s3625_s18 + $0x20] sm:$0xff] %v2898_v2   ;;  %v3003_v4 = vpop.f32.mrf.mxu0  ;;  %v2394_v22 = vadd.f32 %v2393_v34, %v2373_v35 }
 0x12d   : > { %v1974_v44 = vadd.f32 %v3002_v1, %v3615_v36  ;;  %v3084_v5 = vadd.f32 %v3083_v21, %v3082_v48  ;;  %v2374_v42 = vmul.f32 %v2092_v32, %v2092_v32  ;;  %v2345_v63 = vadd.f32 %v2344_v19, %v2092_v32 }
 0x12e   : > { %v3085_v6 = vpop.f32.mrf.mxu1  ;;  %v3004_v50 = vpop.f32.mrf.mxu0 }
 0x12f   : > { %v2095_v7 = vadd.f32 %v3084_v5, %v1974_v44  ;;  %v3005_v16 = vadd.f32 %v3004_v50, %v3003_v4  ;;  %v2395_v21 = vadd.f32 %v2394_v22, %v2374_v42 }
 0x130   : > { %v3086_v8 = vpop.f32.mrf.mxu1  ;;  %v3006_v57 = vpop.f32.mrf.mxu0 }
 0x131   : > { %v2215_v47 = vsel %vm2149_vm1, %v2095_v7, 0.0  ;;  %v1979_v43 = vadd.f32 %v3005_v16, %v3615_v36  ;;  %v3087_v27 = vadd.f32 %v3086_v8, %v3085_v6 }
 0x132   : > { %v3088_v18 = vpop.f32.mrf.mxu1  ;;  %v2903_v60 = vpack.c.bf16 %v2215_v47, %v2092_v32  ;;  %v3007_v11 = vpop.f32.mrf.mxu0  ;;  %v2375_v59 = vmul.f32 %v2215_v47, %v2215_v47  ;;  %v2346_v37 = vadd.f32 %v2345_v63, %v2215_v47 }
 0x133   : > { %v3008_v24 = vadd.f32 %v3007_v11, %v3006_v57  ;;  %v2100_v10 = vadd.f32 %v3087_v27, %v1979_v43 }
 0x134   : > { %v3089_v23 = vpop.f32.mrf.mxu1  ;;  %2945 = vst [vmem:[%s3625_s18 + $0x28] sm:$0xff] %v2903_v60   ;;  %v3009_v26 = vpop.f32.mrf.mxu0  ;;  %v2396_v44 = vadd.f32 %v2395_v21, %v2375_v59 }
 0x135   : > { %v1982_v28 = vadd.f32 %v3008_v24, %v3615_v36  ;;  %v3090_v14 = vadd.f32 %v3089_v23, %v3088_v18  ;;  %v2376_v5 = vmul.f32 %v2100_v10, %v2100_v10  ;;  %v2347_v7 = vadd.f32 %v2346_v37, %v2100_v10 }
 0x136   : > { %v3091_v30 = vpop.f32.mrf.mxu1  ;;  %v3010_v38 = vpop.f32.mrf.mxu0 }
 0x137   : > { %v2103_v15 = vadd.f32 %v3090_v14, %v1982_v28  ;;  %v3011_v12 = vadd.f32 %v3010_v38, %v3009_v26  ;;  %v2397_v57 = vadd.f32 %v2396_v44, %v2376_v5 }
 0x138   : > { %v3092_v40 = vpop.f32.mrf.mxu1  ;;  %v3012_v46 = vpop.f32.mrf.mxu0 }
 0x139   : > { %v2217_v53 = vsel %vm2151_vm2, %v2103_v15, 0.0  ;;  %v1987_v45 = vadd.f32 %v3011_v12, %v3615_v36  ;;  %v3093_v6 = vadd.f32 %v3092_v40, %v3091_v30 }
 0x13a   : > { %v3094_v48 = vpop.f32.mrf.mxu1  ;;  %v2908_v2 = vpack.c.bf16 %v2217_v53, %v2100_v10  ;;  %v3013_v3 = vpop.f32.mrf.mxu0  ;;  %v2377_v8 = vmul.f32 %v2217_v53, %v2217_v53  ;;  %v2348_v47 = vadd.f32 %v2347_v7, %v2217_v53 }
 0x13b   : > { %v3014_v55 = vadd.f32 %v3013_v3, %v3012_v46  ;;  %v2108_v9 = vadd.f32 %v3093_v6, %v1987_v45 }
 0x13c   : > { %v3095_v1 = vpop.f32.mrf.mxu1  ;;  %2946 = vst [vmem:[%s3625_s18 + $0x30] sm:$0xff] %v2908_v2   ;;  %v3015_v29 = vpop.f32.mrf.mxu0  ;;  %v2398_v49 = vadd.f32 %v2397_v57, %v2377_v8 }
 0x13d   : > { %v1990_v33 = vadd.f32 %v3014_v55, %v3615_v36  ;;  %v3096_v41 = vadd.f32 %v3095_v1, %v3094_v48  ;;  %v2378_v11 = vmul.f32 %v2108_v9, %v2108_v9  ;;  %v2349_v26 = vadd.f32 %v2348_v47, %v2108_v9 }
 0x13e   : > { %v3097_v4 = vpop.f32.mrf.mxu1  ;;  %v3016_v51 = vpop.f32.mrf.mxu0 }
 0x13f   : > { %v2111_v17 = vadd.f32 %v3096_v41, %v1990_v33  ;;  %v3017_v25 = vadd.f32 %v3016_v51, %v3015_v29  ;;  %v2399_v38 = vadd.f32 %v2398_v49, %v2378_v11 }
 0x140   : > { %v3098_v50 = vpop.f32.mrf.mxu1  ;;  %v3018_v13 = vpop.f32.mrf.mxu0 }
 0x141   : > { %v2219_v32 = vsel %vm2153_vm3, %v2111_v17, 0.0  ;;  %v1995_v20 = vadd.f32 %v3017_v25, %v3615_v36  ;;  %v3099_v24 = vadd.f32 %v3098_v50, %v3097_v4 }
 0x142   : > { %v3100_v16 = vpop.f32.mrf.mxu1  ;;  %v2913_v18 = vpack.c.bf16 %v2219_v32, %v2108_v9  ;;  %v3019_v0 = vpop.f32.mrf.mxu0  ;;  %v2379_v28 = vmul.f32 %v2219_v32, %v2219_v32  ;;  %v2350_v15 = vadd.f32 %v2349_v26, %v2219_v32 }
 0x143   : > { %v3020_v60 = vadd.f32 %v3019_v0, %v3018_v13  ;;  %v2116_v14 = vadd.f32 %v3099_v24, %v1995_v20 }
 0x144   : > { %v3101_v39 = vpop.f32.mrf.mxu1  ;;  %2947 = vst [vmem:[%s3625_s18 + $0x38] sm:$0xff] %v2913_v18   ;;  %v3021_v23 = vpop.f32.mrf.mxu0  ;;  %v2400_v12 = vadd.f32 %v2399_v38, %v2379_v28 }
 0x145   : > { %v1998_v31 = vadd.f32 %v3020_v60, %v3615_v36  ;;  %v3102_v35 = vadd.f32 %v3101_v39, %v3100_v16  ;;  %v2380_v46 = vmul.f32 %v2116_v14, %v2116_v14  ;;  %v2351_v56 = vadd.f32 %v2350_v15, %v2116_v14 }
 0x146   : > { %v3103_v43 = vpop.f32.mrf.mxu1  ;;  %v3022_v30 = vpop.f32.mrf.mxu0 }
 0x147   : > { %v2119_v34 = vadd.f32 %v3102_v35, %v1998_v31  ;;  %v3023_v19 = vadd.f32 %v3022_v30, %v3021_v23  ;;  %v2401_v45 = vadd.f32 %v2400_v12, %v2380_v46 }
 0x148   : > { %v3104_v27 = vpop.f32.mrf.mxu1  ;;  %v3024_v40 = vpop.f32.mrf.mxu0 }
 0x149   : > { %v2221_v22 = vsel %vm2155_vm4, %v2119_v34, 0.0  ;;  %v2003_v42 = vadd.f32 %v3023_v19, %v3615_v36  ;;  %v3105_v48 = vadd.f32 %v3104_v27, %v3103_v43 }
 0x14a   : > { %v3106_v10 = vpop.f32.mrf.mxu1  ;;  %v2918_v53 = vpack.c.bf16 %v2221_v22, %v2116_v14  ;;  %v3025_v63 = vpop.f32.mrf.mxu0  ;;  %v2381_v2 = vmul.f32 %v2221_v22, %v2221_v22  ;;  %v2352_v29 = vadd.f32 %v2351_v56, %v2221_v22 }
 0x14b   : > { %v3026_v59 = vadd.f32 %v3025_v63, %v3024_v40  ;;  %v2124_v3 = vadd.f32 %v3105_v48, %v2003_v42 }
 0x14c   : > { %v3107_v52 = vpop.f32.mrf.mxu1  ;;  %2948 = vst [vmem:[%s3625_s18 + $0x40] sm:$0xff] %v2918_v53   ;;  %v3027_v55 = vpop.f32.mrf.mxu0  ;;  %v2402_v5 = vadd.f32 %v2401_v45, %v2381_v2 }
 0x14d   : > { %v2006_v1 = vadd.f32 %v3026_v59, %v3615_v36  ;;  %v3108_v21 = vadd.f32 %v3107_v52, %v3106_v10  ;;  %v2382_v6 = vmul.f32 %v2124_v3, %v2124_v3  ;;  %v2353_v8 = vadd.f32 %v2352_v29, %v2124_v3 }
 0x14e   : > { %v3109_v37 = vpop.f32.mrf.mxu1  ;;  %v3028_v33 = vpop.f32.mrf.mxu0 }
 0x14f   : > { %v2127_v41 = vadd.f32 %v3108_v21, %v2006_v1  ;;  %v3029_v4 = vadd.f32 %v3028_v33, %v3027_v55  ;;  %v2403_v57 = vadd.f32 %v2402_v5, %v2382_v6 }
 0x150   : > { %v3110_v44 = vpop.f32.mrf.mxu1  ;;  %v3030_v51 = vpop.f32.mrf.mxu0 }
 0x151   : > { %v2223_v17 = vsel %vm2157_vm5, %v2127_v41, 0.0  ;;  %v2011_v25 = vadd.f32 %v3029_v4, %v3615_v36  ;;  %v3111_v50 = vadd.f32 %v3110_v44, %v3109_v37 }
 0x152   : > { %v3112_v7 = vpop.f32.mrf.mxu1  ;;  %v2923_v9 = vpack.c.bf16 %v2223_v17, %v2124_v3  ;;  %v2383_v13 = vmul.f32 %v2223_v17, %v2223_v17  ;;  %v3031_v32 = vpop.f32.mrf.mxu0  ;;  %v2354_v47 = vadd.f32 %v2353_v8, %v2223_v17 }
 0x153   : > { %v2132_v16 = vadd.f32 %v3111_v50, %v2011_v25  ;;  %v3032_v54 = vadd.f32 %v3031_v32, %v3030_v51 }
 0x154   : > { %v3113_v61 = vpop.f32.mrf.mxu1  ;;  %2949 = vst [vmem:[%s3625_s18 + $0x48] sm:$0xff] %v2923_v9   ;;  %v2404_v0 = vadd.f32 %v2403_v57, %v2383_v13 }
 0x155   : > { %v2014_v18 = vadd.f32 %v3032_v54, %v3615_v36  ;;  %v3114_v20 = vadd.f32 %v3113_v61, %v3112_v7  ;;  %v2384_v60 = vmul.f32 %v2132_v16, %v2132_v16  ;;  %v2355_v49 = vadd.f32 %v2354_v47, %v2132_v16 }
 0x157   : > { %v2135_v39 = vadd.f32 %v3114_v20, %v2014_v18  ;;  %v2405_v24 = vadd.f32 %v2404_v0, %v2384_v60 }
 0x159   : > { %v2225_v11 = vsel %vm2159_vm6, %v2135_v39, 0.0 }
 0x15a   : > { %v2928_v23 = vpack.c.bf16 %v2225_v11, %v2132_v16  ;;  %v2356_v31 = vadd.f32 %v2355_v49, %v2225_v11  ;;  %v2385_v35 = vmul.f32 %v2225_v11, %v2225_v11 }
 0x15c   : > { %2950 = vst [vmem:[%s3625_s18 + $0x50] sm:$0xff] %v2928_v23   ;;  %v2357_v43 = vrot.slane %v2356_v31, 4  ;;  %v2406_v26 = vadd.f32 %v2405_v24, %v2385_v35 }
 0x15e   : > { %v2358_v28 = vadd.f32 %v2357_v43, %v2356_v31  ;;  %v2407_v36 = vrot.slane %v2406_v26, 4 }
 0x160   : > { %v2359_v14 = vrot.slane %v2358_v28, 2  ;;  %v2408_v30 = vadd.f32 %v2407_v36, %v2406_v26 }
 0x162   : > { %v2360_v34 = vadd.f32 %v2359_v14, %v2358_v28  ;;  %v2409_v19 = vrot.slane %v2408_v30, 2 }
 0x164   : > { %v2361_v62 = vrot.slane %v2360_v34, 1  ;;  %v2410_v58 = vadd.f32 %v2409_v19, %v2408_v30 }
 0x166   : > { %v2362_v27 = vadd.f32 %v2361_v62, %v2360_v34  ;;  %v2411_v38 = vrot.slane %v2410_v58, 1 }
 0x168   : > { %2363 = vst [vmem:[%s292_s21] sm:$0x1] %v2362_v27  ;;  %v2412_v15 = vadd.f32 %v2411_v38, %v2410_v58 }
 0x16a   : > { %2413 = vst [vmem:[%s295_s26] sm:$0x1] %v2412_v15 }
 0x16b PF: > { %s18_s24 = sadd.s32 1, %s3230_s24  }
 0x16c   : > { %p15_p4 = scmp.ge.s32.totalorder %s18_s24, 4  }
 0x16e   :  { %17 = sbr.rel (!%p15_p4) target bundleno = 1 (0x1), region = 94 }

// kernel: model_forward.5
= control target key start
LH: loop header
LB: loop body
LE: loop exit
PB: predicated region body
PF: predicated region fallthrough
CT: control target
= control target key end

     0   :  { %s6038_s24 = smov 0   ;;  %s6897_s0 = inlined_call_operand.vmem [shape: bf16[2,224,128], index: 0, kind: input, shape index: {}]   ;;  %s6898_s1 = inlined_call_operand.vmem [shape: bf16[1152,128], index: 1, kind: input, shape index: {}]   ;;  %s6899_s2 = inlined_call_operand.vmem [shape: f32[1,128], index: 2, kind: input, shape index: {}]   ;;  %s6900_s3 = inlined_call_operand.vmem [shape: f32[1,128], index: 3, kind: input, shape index: {}]   ;;  %s6901_s4 = inlined_call_operand.vmem [shape: f32[1,128], index: 4, kind: input, shape index: {}]   ;;  %s6902_s5 = inlined_call_operand.vmem [shape: bf16[2,192,128], index: 5, kind: output, shape index: {0}]   ;;  %s6903_s6 = inlined_call_operand.vmem [shape: f32[2,1,128], index: 6, kind: output, shape index: {1}]   ;;  %s6904_s7 = inlined_call_operand.vmem [shape: f32[2,1,128], index: 7, kind: output, shape index: {2}]  }
   0x1 LB: > { %s4530_s25 = sadd.s32 4294967295, %s5995_s24   ;;  %p4534_p0 = scmp.ge.s32.totalorder %s5995_s24, 1  ;;  %s5995_s24 = sphi %s6038_s24, %s18_s24  }
   0x2   : > { %p242_p1 = scmp.lt.s32.totalorder %s5995_s24, 3 }
   0x4   : > { %p243_p2 = pnand %p4534_p0, %p242_p1 }
   0x6   : > { %246 = sbr.rel (%p243_p2) target bundleno = 516 (0x204), region = 40 }
   0xb   : > { %v5781_v0 = vld [vmem:[%s6898_s1 + $0x78] sm:$0xff]   ;;  %v5785_v4 = vld [vmem:[%s6898_s1 + $0x70] sm:$0xff]   ;;  %v5789_v8 = vld [vmem:[%s6898_s1 + $0x68] sm:$0xff]   ;;  %v297_v13 = vlaneseq  ;;  %p280_p3 = scmp.lt.s32.totalorder %s4530_s25, 1 }
   0xc   : > { %v5782_v1 = vld [vmem:[%s6898_s1 + $0x38] sm:$0xff]   ;;  %5342 = vmatprep.subr.bf16.mxu0 %v5781_v0  ;;  %v5786_v5 = vld [vmem:[%s6898_s1 + $0x30] sm:$0xff]   ;;  %v5790_v9 = vld [vmem:[%s6898_s1 + $0x28] sm:$0xff]  }
   0xd   : > { %v5783_v2 = vld [vmem:[%s6898_s1 + $0xf8] sm:$0xff]   ;;  %5343 = vmatpush3.bf16.msra.mxu0 %v5782_v1  ;;  %v5787_v6 = vld [vmem:[%s6898_s1 + $0xf0] sm:$0xff]   ;;  %v5791_v10 = vld [vmem:[%s6898_s1 + $0xe8] sm:$0xff]   ;;  %v6099_v18 = vshrl.u32 %v297_v13, 7  ;;  %s7049_s25 = smov (!%p280_p3, %s4530_s25), 1 }
   0xe   : > { %v5784_v3 = vld [vmem:[%s6898_s1 + $0xb8] sm:$0xff]   ;;  %5430 = vmatprep.subr.bf16.mxu1 %v5783_v2  ;;  %5344 = vmatprep.subr.bf16.mxu0 %v5785_v4  ;;  %v5788_v7 = vld [vmem:[%s6898_s1 + $0xb0] sm:$0xff]   ;;  %v5792_v11 = vld [vmem:[%s6898_s1 + $0xa8] sm:$0xff]   ;;  %s5770_s28 = smul.u32 112, %s7049_s25  ;;  %s292_s23 = scalar_lea.vmem %s6903_s6, %s7049_s25 }
   0xf   : > { %5431 = vmatpush3.bf16.msra.mxu1 %v5784_v3  ;;  %v5793_v12 = vld [vmem:[%s6898_s1 + $0x60] sm:$0xff]   ;;  %v5797_v17 = vld [vmem:[%s6898_s1 + $0x58] sm:$0xff]   ;;  %v5801_v22 = vld [vmem:[%s6898_s1 + $0x50] sm:$0xff]   ;;  %v6118_v23 = vadd.s32 8, %v6099_v18  ;;  %v6128_v26 = vadd.s32 24, %v6099_v18  ;;  %v6134_v28 = vadd.s32 40, %v6099_v18  ;;  %s295_s30 = scalar_lea.vmem %s6904_s7, %s7049_s25 }
  0x10   : > { %5432 = vmatprep.subr.bf16.mxu1 %v5787_v6  ;;  %v5794_v14 = vld [vmem:[%s6898_s1 + $0x20] sm:$0xff]   ;;  %v5798_v19 = vld [vmem:[%s6898_s1 + $0x18] sm:$0xff]   ;;  %v5802_v24 = vld [vmem:[%s6898_s1 + $0x10] sm:$0xff]   ;;  %v6144_v32 = vadd.s32 56, %v6099_v18  ;;  %v6164_v39 = vadd.s32 72, %v6099_v18  ;;  %s6172_s26 = scalar_lea.vmem %s6897_s0, %s5770_s28  ;;  %v6179_v43 = vadd.s32 88, %v6099_v18 }
  0x11   : > { %5345 = vmatpush3.bf16.msra.mxu0 %v5786_v5  ;;  %v5795_v15 = vld [vmem:[%s6898_s1 + $0xe0] sm:$0xff]   ;;  %v5799_v20 = vld [vmem:[%s6898_s1 + $0xd8] sm:$0xff]   ;;  %v5803_v25 = vld [vmem:[%s6898_s1 + $0xd0] sm:$0xff]   ;;  %6926 = vst [vmem:[#allocation4_spill] sm:$0xff] %v6134_v28  ;;  %v6914_v30 = vand.u32 15, %v6118_v23  ;;  %v6916_v34 = vand.u32 15, %v6128_v26 }
  0x12   : > { %5346 = vmatprep.subr.bf16.mxu0 %v5789_v8  ;;  %v5796_v16 = vld [vmem:[%s6898_s1 + $0xa0] sm:$0xff]   ;;  %v5800_v21 = vld [vmem:[%s6898_s1 + $0x98] sm:$0xff]   ;;  %v5804_v27 = vld [vmem:[%s6898_s1 + $0x90] sm:$0xff]   ;;  %6927 = vst [vmem:[#allocation5_spill] sm:$0xff] %v6144_v32  ;;  %v6910_v36 = vand.u32 15, %v6134_v28  ;;  %v6912_v41 = vand.u32 15, %v6144_v32 }
  0x13   : > { %5433 = vmatpush3.bf16.msra.mxu1 %v5788_v7  ;;  %v5805_v29 = vld [vmem:[%s6898_s1 + $0x48] sm:$0xff]   ;;  %v5809_v37 = vld [vmem:[%s6898_s1 + $0x40] sm:$0xff]   ;;  %vm6159_vm0 = vcmp.lt.s32.totalorder %v6914_v30, 14  ;;  %6930 = vst [vmem:[#allocation6_spill] sm:$0xff] %v6164_v39  ;;  %6931 = vst [vmem:[#allocation7_spill] sm:$0xff] %v6179_v43  ;;  %vm6186_vm1 = vcmp.lt.s32.totalorder %v6916_v34, 14 }
  0x14   : > { %5434 = vmatprep.subr.bf16.mxu1 %v5791_v10  ;;  %v5806_v31 = vld [vmem:[%s6898_s1 + $0x8] sm:$0xff]   ;;  %v5810_v40 = vld [vmem:[%s6898_s1] sm:$0xff]   ;;  %vm6199_vm2 = vcmp.lt.s32.totalorder %v6910_v36, 14  ;;  %v6906_v50 = vand.u32 15, %v6164_v39  ;;  %v5819_v56 = vld [vmem:[%s6898_s1 + $0x178] sm:$0xff]   ;;  %vm6214_vm3 = vcmp.lt.s32.totalorder %v6912_v41, 14 }
  0x15   : > { %5347 = vmatpush3.bf16.msra.mxu0 %v5790_v9  ;;  %v5807_v33 = vld [vmem:[%s6898_s1 + $0xc8] sm:$0xff]   ;;  %v5811_v42 = vld [vmem:[%s6898_s1 + $0xc0] sm:$0xff]   ;;  %v6908_v58 = vand.u32 15, %v6179_v43  ;;  %v5319_v63 = vld [vmem:[%s6172_s26 + $0x10] sm:$0xff]   ;;  %v6225_v2 = vadd.s32 104, %v6099_v18  ;;  %v6228_v3 = vadd.s32 120, %v6099_v18 }
  0x16   : > { %5348 = vmatprep.subr.bf16.mxu0 %v5793_v12  ;;  %v5808_v35 = vld [vmem:[%s6898_s1 + $0x88] sm:$0xff]   ;;  %v5812_v44 = vld [vmem:[%s6898_s1 + $0x80] sm:$0xff]   ;;  %v5212_v0 = vunpack.c.l.bf16 %v5319_v63  ;;  %v5213_v1 = vunpack.c.h.bf16 %v5319_v63  ;;  %v5320_v8 = vld [vmem:[%s6172_s26 + $0x18] sm:$0xff]   ;;  %vm6253_vm4 = vcmp.lt.s32.totalorder %v6906_v50, 14  ;;  %s5771_s17 = smul.u32 96, %s7049_s25 }
  0x17   : > { %5435 = vmatpush3.bf16.msra.mxu1 %v5792_v11  ;;  %v5203_v46 = vld [vmem:[%s6172_s26] sm:$0xff]   ;;  %v5318_v47 = vld [vmem:[%s6172_s26 + $0x8] sm:$0xff]   ;;  %6938 = vst [vmem:[#allocation8_spill] sm:$0xff] %v6225_v2  ;;  %v5216_v11 = vunpack.c.l.bf16 %v5320_v8  ;;  %v5217_v12 = vunpack.c.h.bf16 %v5320_v8  ;;  %vm6265_vm5 = vcmp.lt.s32.totalorder %v6908_v58, 14 }
  0x18   : > { %5436 = vmatprep.subr.bf16.mxu1 %v5795_v15  ;;  %v6195_v48 = vld [vmem:[%s6900_s3] ss:$0 sm:$0xff]  ;;  %v5204_v51 = vunpack.c.l.bf16 %v5203_v46  ;;  %v5205_v52 = vunpack.c.h.bf16 %v5203_v46  ;;  %v5208_v53 = vunpack.c.l.bf16 %v5318_v47  ;;  %v5209_v55 = vunpack.c.h.bf16 %v5318_v47  ;;  %v5322_v38 = vld [vmem:[%s6172_s26 + $0x28] sm:$0xff]   ;;  %s6745_s20 = scalar_lea.vmem %s6902_s5, %s5771_s17 }
  0x19   : > { %5349 = vmatpush3.bf16.msra.mxu0 %v5794_v14  ;;  %v6207_v54 = vld [vmem:[%s6901_s4] ss:$0 sm:$0xff]  ;;  %v729_v9 = vmul.f32 %v5212_v0, %v6195_v48  ;;  %v730_v10 = vmul.f32 %v5213_v1, %v6195_v48  ;;  %v5224_v49 = vunpack.c.l.bf16 %v5322_v38  ;;  %v5323_v0 = vld [vmem:[%s6172_s26 + $0x30] sm:$0xff]  }
  0x1a   : > { %5350 = vmatprep.subr.bf16.mxu0 %v5797_v17  ;;  %v725_v59 = vmul.f32 %v5204_v51, %v6195_v48  ;;  %v726_v60 = vmul.f32 %v5205_v52, %v6195_v48  ;;  %v727_v61 = vmul.f32 %v5208_v53, %v6195_v48  ;;  %v728_v62 = vmul.f32 %v5209_v55, %v6195_v48  ;;  %v5321_v13 = vld [vmem:[%s6172_s26 + $0x20] sm:$0xff]  }
  0x1b   : > { %5437 = vmatpush3.bf16.msra.mxu1 %v5796_v16  ;;  %v5225_v51 = vunpack.c.h.bf16 %v5322_v38 }
  0x1c   : > { %5438 = vmatprep.subr.bf16.mxu1 %v5799_v20  ;;  %v760_v4 = vadd.f32 %v6207_v54, %v725_v59  ;;  %v761_v5 = vadd.f32 %v6207_v54, %v726_v60  ;;  %v762_v6 = vadd.f32 %v6207_v54, %v727_v61  ;;  %v763_v7 = vadd.f32 %v6207_v54, %v728_v62 }
  0x1d   : > { %5351 = vmatpush3.bf16.msra.mxu0 %v5798_v19  ;;  %v5838_v19 = vld [vmem:[%s6898_s1 + $0x1f8] sm:$0xff]   ;;  %v6915_v59 = vand.u32 15, %v6228_v3  ;;  %v735_v62 = vmul.f32 %v5224_v49, %v6195_v48  ;;  %v736_v63 = vmul.f32 %v5225_v51, %v6195_v48 }
  0x1e   : > { %5352 = vmatprep.subr.bf16.mxu0 %v5801_v22  ;;  %v874_v14 = vsel %vm6159_vm0, %v761_v5, 0.0  ;;  %901 = vst [vmem:[#allocation2] sm:$0xff] %v760_v4  ;;  %903 = vst [vmem:[#allocation2 + $0x10] sm:$0xff] %v762_v6  ;;  %v4962_v15 = vpack.c.bf16 %v760_v4, %v760_v4  ;;  %v876_v16 = vsel %vm6186_vm1, %v763_v7, 0.0  ;;  %v5034_v17 = vpack.c.bf16 %v762_v6, %v762_v6 }
  0x1f   : > { %5439 = vmatpush3.bf16.msra.mxu1 %v5800_v21  ;;  %902 = vst [vmem:[#allocation2 + $0x8] sm:$0xff] %v874_v14  ;;  %v4963_v20 = vpack.c.bf16 %v874_v14, %v874_v14  ;;  %904 = vst [vmem:[#allocation2 + $0x18] sm:$0xff] %v876_v16  ;;  %v5035_v21 = vpack.c.bf16 %v876_v16, %v876_v16  ;;  %v764_v22 = vadd.f32 %v6207_v54, %v729_v9 }
  0x20   : > { %5440 = vmatprep.subr.bf16.mxu1 %v5803_v25  ;;  %1049 = vst [vmem:[#allocation3] sm:$0xf] %v4962_v15  ;;  %1481 = vst [vmem:[#allocation3 + $0xc] sm:$0xf] %v5034_v17  ;;  %v731_v25 = vmul.f32 %v5216_v11, %v6195_v48  ;;  %v5228_v6 = vunpack.c.l.bf16 %v5323_v0  ;;  %v5229_v7 = vunpack.c.h.bf16 %v5323_v0  ;;  %vm6304_vm7 = vcmp.lt.s32.totalorder %v6915_v59, 14 }
  0x21   : > { %5353 = vmatpush3.bf16.msra.mxu0 %v5802_v24  ;;  %v765_v24 = vadd.f32 %v6207_v54, %v730_v10  ;;  %1051 = vst [vmem:[#allocation3 + $0x48] sm:$0xf] %v5034_v17  ;;  %1050 = vst [vmem:[#allocation3 + $0x24] sm:$0xf] %v4963_v20 }
  0x22   : > { %5354 = vmatprep.subr.bf16.mxu0 %v5805_v29  ;;  %v5220_v29 = vunpack.c.l.bf16 %v5321_v13  ;;  %1482 = vst [vmem:[#allocation3 + $0x30] sm:$0xf] %v5035_v21  ;;  %905 = vst [vmem:[#allocation2 + $0x20] sm:$0xff] %v764_v22 }
  0x23   : > { %5441 = vmatpush3.bf16.msra.mxu1 %v5804_v27  ;;  %v732_v27 = vmul.f32 %v5217_v12, %v6195_v48  ;;  %1052 = vst [vmem:[#allocation3 + $0x6c] sm:$0xf] %v5035_v21 }
  0x24   : > { %5442 = vmatprep.subr.bf16.mxu1 %v5807_v33  ;;  %v878_v33 = vsel %vm6199_vm2, %v765_v24, 0.0  ;;  %v733_v46 = vmul.f32 %v5220_v29, %v6195_v48  ;;  %v5324_v24 = vld [vmem:[%s6172_s26 + $0x38] sm:$0xff]  }
  0x25   : > { %5355 = vmatpush3.bf16.msra.mxu0 %v5806_v31  ;;  %v5221_v31 = vunpack.c.h.bf16 %v5321_v13  ;;  %906 = vst [vmem:[#allocation2 + $0x28] sm:$0xff] %v878_v33  ;;  %v767_v45 = vadd.f32 %v6207_v54, %v732_v27  ;;  %v5232_v51 = vunpack.c.l.bf16 %v5324_v24 }
  0x26   : > { %5356 = vmatprep.subr.bf16.mxu0 %v5809_v37  ;;  %v1073_v1 = vld [vmem:[#allocation2 + $0x1] sm:$0xff]  ;;  %v1074_v4 = vld [vmem:[#allocation2 + $0x9] sm:$0xff]  ;;  %v1075_v13 = vld [vmem:[#allocation2 + $0x11] sm:$0xff] }
  0x27   : > { %5443 = vmatpush3.bf16.msra.mxu1 %v5808_v35  ;;  %v5036_v35 = vpack.c.bf16 %v764_v22, %v764_v22  ;;  %v734_v47 = vmul.f32 %v5221_v31, %v6195_v48  ;;  %v880_v53 = vsel %vm6214_vm3, %v767_v45, 0.0  ;;  %v1217_v5 = vld [vmem:[#allocation2 + $0x2] sm:$0xff]  ;;  %v4986_v9 = vpack.c.bf16 %v1073_v1, %v1073_v1  ;;  %v1218_v11 = vld [vmem:[#allocation2 + $0xa] sm:$0xff]  ;;  %v1219_v14 = vld [vmem:[#allocation2 + $0x12] sm:$0xff] }
  0x28   : > { %5444 = vmatprep.subr.bf16.mxu1 %v5811_v42  ;;  %v5037_v42 = vpack.c.bf16 %v878_v33, %v878_v33  ;;  %908 = vst [vmem:[#allocation2 + $0x38] sm:$0xff] %v880_v53  ;;  %v5039_v60 = vpack.c.bf16 %v880_v53, %v880_v53  ;;  %v4987_v10 = vpack.c.bf16 %v1074_v4, %v1074_v4  ;;  %v5233_v53 = vunpack.c.h.bf16 %v5324_v24 }
  0x29   : > { %5357 = vmatpush3.bf16.msra.mxu0 %v5810_v40  ;;  %v6913_v40 = vand.u32 15, %v6225_v2  ;;  %1483 = vst [vmem:[#allocation3 + $0x54] sm:$0xf] %v5036_v35  ;;  %1053 = vst [vmem:[#allocation3 + $0x90] sm:$0xf] %v5036_v35  ;;  %v769_v61 = vadd.f32 %v6207_v54, %v734_v47  ;;  %v5010_v12 = vpack.c.bf16 %v1217_v5, %v1217_v5  ;;  %v1076_v17 = vld [vmem:[#allocation2 + $0x19] sm:$0xff] }
  0x2a   : > { %5518 = vmatprep.subr.bf16.mxu0 %v5819_v56  ;;  %1484 = vst [vmem:[#allocation3 + $0x78] sm:$0xf] %v5037_v42  ;;  %1054 = vst [vmem:[#allocation3 + $0xb4] sm:$0xf] %v5037_v42  ;;  %v768_v56 = vadd.f32 %v6207_v54, %v733_v46  ;;  %v5011_v16 = vpack.c.bf16 %v1218_v11, %v1218_v11  ;;  %v1220_v20 = vld [vmem:[#allocation2 + $0x1a] sm:$0xff]  ;;  %v5012_v21 = vpack.c.bf16 %v1219_v14, %v1219_v14 }
  0x2b   : > { %5445 = vmatpush3.bf16.msra.mxu1 %v5812_v44  ;;  %v766_v44 = vadd.f32 %v6207_v54, %v731_v25  ;;  %vm6279_vm6 = vcmp.lt.s32.totalorder %v6913_v40, 14  ;;  %1486 = vst [vmem:[#allocation3 + $0xc0] sm:$0xf] %v5039_v60  ;;  %1056 = vst [vmem:[#allocation3 + $0xfc] sm:$0xf] %v5039_v60  ;;  %v882_v15 = vsel %vm6253_vm4, %v769_v61, 0.0  ;;  %v4989_v25 = vpack.c.bf16 %v1076_v17, %v1076_v17 }
  0x2c   : > { %5606 = vmatprep.subr.bf16.mxu1 %v5838_v19  ;;  %909 = vst [vmem:[#allocation2 + $0x40] sm:$0xff] %v768_v56  ;;  %v5040_v57 = vpack.c.bf16 %v768_v56, %v768_v56  ;;  %v4988_v19 = vpack.c.bf16 %v1075_v13, %v1075_v13  ;;  %910 = vst [vmem:[#allocation2 + $0x48] sm:$0xff] %v882_v15  ;;  %v5041_v22 = vpack.c.bf16 %v882_v15, %v882_v15  ;;  %v1077_v29 = vld [vmem:[#allocation2 + $0x21] sm:$0xff]  ;;  %v5820_v11 = vld [vmem:[%s6898_s1 + $0x138] sm:$0xff]  }
  0x2d   : > { %907 = vst [vmem:[#allocation2 + $0x30] sm:$0xff] %v766_v44  ;;  %v5038_v55 = vpack.c.bf16 %v766_v44, %v766_v44  ;;  %1193 = vst [vmem:[#allocation3 + $0x4] sm:$0xf] %v4986_v9  ;;  %v5013_v27 = vpack.c.bf16 %v1220_v20, %v1220_v20  ;;  %v1221_v31 = vld [vmem:[#allocation2 + $0x22] sm:$0xff]  ;;  %v770_v33 = vadd.f32 %v6207_v54, %v735_v62 }
  0x2e   : > { %1487 = vst [vmem:[#allocation3 + $0xe4] sm:$0xf] %v5040_v57  ;;  %1057 = vst [vmem:[#allocation3 + $0x120] sm:$0xf] %v5040_v57  ;;  %v771_v35 = vadd.f32 %v6207_v54, %v736_v63  ;;  %v4990_v37 = vpack.c.bf16 %v1077_v29, %v1077_v29  ;;  %v5014_v38 = vpack.c.bf16 %v1221_v31, %v1221_v31  ;;  %v5813_v17 = vld [vmem:[#allocation3] ss:$36 sps:$4 sm:$0xff]  }
  0x2f   : > { %1485 = vst [vmem:[#allocation3 + $0x9c] sm:$0xf] %v5038_v55  ;;  %1055 = vst [vmem:[#allocation3 + $0xd8] sm:$0xf] %v5038_v55  ;;  %v737_v42 = vmul.f32 %v5228_v6, %v6195_v48  ;;  %v738_v44 = vmul.f32 %v5229_v7, %v6195_v48  ;;  %v5042_v49 = vpack.c.bf16 %v770_v33, %v770_v33  ;;  %v5826_v29 = vld [vmem:[%s6898_s1 + $0x170] sm:$0xff]  }
  0x30   : > { %1194 = vst [vmem:[#allocation3 + $0x28] sm:$0xf] %v4987_v10  ;;  %1337 = vst [vmem:[#allocation3 + $0x8] sm:$0xf] %v5010_v12  ;;  %v884_v47 = vsel %vm6265_vm5, %v771_v35, 0.0  ;;  %v739_v57 = vmul.f32 %v5232_v51, %v6195_v48  ;;  %v740_v10 = vmul.f32 %v5233_v53, %v6195_v48  ;;  %v5841_v35 = vld [vmem:[%s6898_s1 + $0x1b8] sm:$0xff]  }
  0x31   : > { %1338 = vst [vmem:[#allocation3 + $0x2c] sm:$0xf] %v5011_v16  ;;  %1195 = vst [vmem:[#allocation3 + $0x4c] sm:$0xf] %v4988_v19  ;;  %v5043_v62 = vpack.c.bf16 %v884_v47, %v884_v47  ;;  %v772_v63 = vadd.f32 %v6207_v54, %v737_v42  ;;  %v773_v52 = vadd.f32 %v6207_v54, %v738_v44  ;;  %v5848_v42 = vld [vmem:[%s6898_s1 + $0x1f0] sm:$0xff]   ;;  %v5840_v53 = vld [vmem:[%s6898_s1 + $0x128] sm:$0xff]  }
  0x32   : > { %1339 = vst [vmem:[#allocation3 + $0x50] sm:$0xf] %v5012_v21  ;;  %1488 = vst [vmem:[#allocation3 + $0x108] sm:$0xf] %v5041_v22  ;;  %v774_v15 = vadd.f32 %v6207_v54, %v739_v57  ;;  %v775_v8 = vadd.f32 %v6207_v54, %v740_v10  ;;  %v5849_v10 = vld [vmem:[%s6898_s1 + $0x120] sm:$0xff]  }
  0x33   : > { %1058 = vst [vmem:[#allocation3 + $0x144] sm:$0xf] %v5041_v22  ;;  %1196 = vst [vmem:[#allocation3 + $0x70] sm:$0xf] %v4989_v25  ;;  %v1080_v0 = vld [vmem:[#allocation2 + $0x39] sm:$0xff]  ;;  %v5044_v9 = vpack.c.bf16 %v772_v63, %v772_v63  ;;  %v1081_v12 = vld [vmem:[#allocation2 + $0x41] sm:$0xff] }
  0x34   : > { %1340 = vst [vmem:[#allocation3 + $0x74] sm:$0xf] %v5013_v27  ;;  %v1078_v45 = vld [vmem:[#allocation2 + $0x29] sm:$0xff]  ;;  %911 = vst [vmem:[#allocation2 + $0x50] sm:$0xff] %v770_v33  ;;  %v1079_v60 = vld [vmem:[#allocation2 + $0x31] sm:$0xff]  ;;  %v4993_v6 = vpack.c.bf16 %v1080_v0, %v1080_v0  ;;  %v886_v14 = vsel %vm6279_vm6, %v773_v52, 0.0  ;;  %v4994_v19 = vpack.c.bf16 %v1081_v12, %v1081_v12  ;;  %v5046_v24 = vpack.c.bf16 %v774_v15, %v774_v15 }
  0x35   : > { %v1222_v46 = vld [vmem:[#allocation2 + $0x2a] sm:$0xff]  ;;  %v4991_v55 = vpack.c.bf16 %v1078_v45, %v1078_v45  ;;  %1197 = vst [vmem:[#allocation3 + $0x94] sm:$0xf] %v4990_v37  ;;  %1341 = vst [vmem:[#allocation3 + $0x98] sm:$0xf] %v5014_v38  ;;  %v1223_v61 = vld [vmem:[#allocation2 + $0x32] sm:$0xff]  ;;  %v4992_v1 = vpack.c.bf16 %v1079_v60, %v1079_v60  ;;  %v5045_v21 = vpack.c.bf16 %v886_v14, %v886_v14 }
  0x36   : > { %v5015_v56 = vpack.c.bf16 %v1222_v46, %v1222_v46  ;;  %912 = vst [vmem:[#allocation2 + $0x58] sm:$0xff] %v884_v47  ;;  %v1224_v4 = vld [vmem:[#allocation2 + $0x3a] sm:$0xff]  ;;  %v5016_v5 = vpack.c.bf16 %v1223_v61, %v1223_v61  ;;  %1489 = vst [vmem:[#allocation3 + $0x12c] sm:$0xf] %v5042_v49  ;;  %v1225_v13 = vld [vmem:[#allocation2 + $0x42] sm:$0xff]  ;;  %v888_v31 = vsel %vm6304_vm7, %v775_v8, 0.0 }
  0x37   : > { %1059 = vst [vmem:[#allocation3 + $0x168] sm:$0xf] %v5042_v49  ;;  %1198 = vst [vmem:[#allocation3 + $0xb8] sm:$0xf] %v4991_v55  ;;  %v5017_v7 = vpack.c.bf16 %v1224_v4, %v1224_v4  ;;  %v5018_v20 = vpack.c.bf16 %v1225_v13, %v1225_v13  ;;  %v5815_v22 = vld [vmem:[#allocation3 + $0x4] ss:$36 sps:$4 sm:$0xff]   ;;  %v5047_v37 = vpack.c.bf16 %v888_v31, %v888_v31 }
  0x38   : > { %1342 = vst [vmem:[#allocation3 + $0xbc] sm:$0xf] %v5015_v56  ;;  %1490 = vst [vmem:[#allocation3 + $0x150] sm:$0xf] %v5043_v62  ;;  %v5816_v25 = vld [vmem:[#allocation3 + $0x8] ss:$36 sps:$4 sm:$0xff]   ;;  %3512 = vmatprep.mubr.bf16.mxu0 %v5815_v22 }
  0x39   : > { %913 = vst [vmem:[#allocation2 + $0x60] sm:$0xff] %v772_v63  ;;  %1060 = vst [vmem:[#allocation3 + $0x18c] sm:$0xf] %v5043_v62  ;;  %v5818_v27 = vld [vmem:[#allocation3 + $0xc] ss:$36 sps:$4 sm:$0xff]   ;;  %3513 = vmatmul.mubr.bf16.vlgmr.msra.gmra.mxu0 %v5813_v17  ;;  %v5837_v47 = vld [vmem:[%s6898_s1 + $0x168] sm:$0xff]  }
  0x3a   : > { %1199 = vst [vmem:[#allocation3 + $0xdc] sm:$0xf] %v4992_v1  ;;  %1343 = vst [vmem:[#allocation3 + $0xe0] sm:$0xf] %v5016_v5  ;;  %v5821_v33 = vld [vmem:[#allocation3 + $0x4c] ss:$36 sps:$4 sm:$0xff]   ;;  %3641 = vmatprep.mubr.bf16.mxu1 %v5818_v27  ;;  %5519 = vmatpush3.bf16.msra.mxu0 %v5820_v11 }
  0x3b   : > { %1200 = vst [vmem:[#allocation3 + $0x100] sm:$0xf] %v4993_v6  ;;  %1344 = vst [vmem:[#allocation3 + $0x104] sm:$0xf] %v5017_v7  ;;  %v5823_v38 = vld [vmem:[#allocation3 + $0x54] ss:$36 sps:$4 sm:$0xff]   ;;  %3642 = vmatmul.mubr.bf16.vlgmr.msra.gmra.mxu1 %v5816_v25  ;;  %3520 = vmatprep.mubr.bf16.mxu0 %v5821_v33 }
  0x3c   : > { %914 = vst [vmem:[#allocation2 + $0x68] sm:$0xff] %v886_v14  ;;  %1491 = vst [vmem:[#allocation3 + $0x174] sm:$0xf] %v5044_v9  ;;  %v2235_v44 = vld [vmem:[#allocation3 + $0x48] sm:$0xff]  ;;  %3649 = vmatprep.mubr.bf16.mxu1 %v5823_v38  ;;  %5520 = vmatprep.subr.bf16.mxu0 %v5826_v29  ;;  %v5861_v55 = vld [vmem:[%s6898_s1 + $0x1e8] sm:$0xff]   ;;  %v6339_v4 = vadd.s32 136, %v6099_v18 }
  0x3d   : > { %1061 = vst [vmem:[#allocation3 + $0x1b0] sm:$0xf] %v5044_v9  ;;  %915 = vst [vmem:[#allocation2 + $0x70] sm:$0xff] %v774_v15  ;;  %v2240_v45 = vld [vmem:[#allocation3 + $0x6c] sm:$0xff]  ;;  %5607 = vmatpush3.bf16.msra.mxu1 %v5841_v35  ;;  %v1082_v61 = vld [vmem:[#allocation2 + $0x49] sm:$0xff] }
  0x3e   : > { %1201 = vst [vmem:[#allocation3 + $0x124] sm:$0xf] %v4994_v19  ;;  %1345 = vst [vmem:[#allocation3 + $0x128] sm:$0xf] %v5018_v20  ;;  %v5827_v46 = vld [vmem:[%s6898_s1 + $0x130] sm:$0xff]   ;;  %v4765_v51 = vcombine.low %v2235_v44, %v2240_v45  ;;  %5608 = vmatprep.subr.bf16.mxu1 %v5848_v42  ;;  %v5847_v62 = vld [vmem:[%s6898_s1 + $0x160] sm:$0xff]   ;;  %v4995_v0 = vpack.c.bf16 %v1082_v61, %v1082_v61 }
  0x3f   : > { %1492 = vst [vmem:[#allocation3 + $0x198] sm:$0xf] %v5045_v21  ;;  %1062 = vst [vmem:[#allocation3 + $0x1d4] sm:$0xf] %v5045_v21  ;;  %v5850_v49 = vld [vmem:[%s6898_s1 + $0x1b0] sm:$0xff]   ;;  %5521 = vmatpush3.bf16.msra.mxu0 %v5827_v46  ;;  %v6341_v5 = vld [vmem:[#allocation3 + $0x90] sm:$0xff] }
  0x40   : > { %916 = vst [vmem:[#allocation2 + $0x78] sm:$0xff] %v888_v31  ;;  %1493 = vst [vmem:[#allocation3 + $0x1bc] sm:$0xf] %v5046_v24  ;;  %v5825_v56 = vld [vmem:[#allocation3 + $0x50] ss:$36 sps:$4 sm:$0xff]   ;;  %5522 = vmatprep.subr.bf16.mxu0 %v5837_v47  ;;  %v1226_v1 = vld [vmem:[#allocation2 + $0x4a] sm:$0xff] }
  0x41   : > { %1063 = vst [vmem:[#allocation3 + $0x1f8] sm:$0xf] %v5046_v24  ;;  %1494 = vst [vmem:[#allocation3 + $0x1e0] sm:$0xf] %v5047_v37  ;;  %v5828_v60 = vld [vmem:[#allocation3 + $0x94] ss:$36 sps:$4 sm:$0xff]   ;;  %v5019_v57 = vpack.c.bf16 %v1226_v1, %v1226_v1  ;;  %5609 = vmatpush3.bf16.msra.mxu1 %v5850_v49  ;;  %3521 = vmatmul.mubr.bf16.gmra.mxu0 %v4765_v51 }
  0x42   : > { %1064 = vst [vmem:[#allocation3 + $0x21c] sm:$0xf] %v5047_v37  ;;  %v5830_v63 = vld [vmem:[#allocation3 + $0x9c] ss:$36 sps:$4 sm:$0xff]   ;;  %6947 = vst [vmem:[#allocation9_spill] sm:$0xff] %v6339_v4  ;;  %v6343_v52 = vld [vmem:[#allocation3 + $0xb4] sm:$0xff]  ;;  %5610 = vmatprep.subr.bf16.mxu1 %v5861_v55  ;;  %3528 = vmatprep.mubr.bf16.mxu0 %v5828_v60 }
  0x43   : > { %v1083_v6 = vld [vmem:[#allocation2 + $0x51] sm:$0xff]  ;;  %v1084_v7 = vld [vmem:[#allocation2 + $0x59] sm:$0xff]  ;;  %1202 = vst [vmem:[#allocation3 + $0x148] sm:$0xf] %v4995_v0  ;;  %v1085_v15 = vld [vmem:[#allocation2 + $0x61] sm:$0xff]  ;;  %3650 = vmatmul.mubr.bf16.gmra.mxu1 %v5825_v56  ;;  %5523 = vmatpush3.bf16.msra.mxu0 %v5840_v53  ;;  %v6909_v33 = vand.u32 15, %v6339_v4  ;;  %v4774_v47 = vcombine.low %v6341_v5, %v6343_v52 }
  0x44   : > { %v1227_v9 = vld [vmem:[#allocation2 + $0x52] sm:$0xff]  ;;  %v4996_v11 = vpack.c.bf16 %v1083_v6, %v1083_v6  ;;  %v4997_v12 = vpack.c.bf16 %v1084_v7, %v1084_v7  ;;  %v1228_v13 = vld [vmem:[#allocation2 + $0x5a] sm:$0xff]  ;;  %v1086_v16 = vld [vmem:[#allocation2 + $0x69] sm:$0xff]  ;;  %1346 = vst [vmem:[#allocation3 + $0x14c] sm:$0xf] %v5019_v57  ;;  %v4998_v19 = vpack.c.bf16 %v1085_v15, %v1085_v15  ;;  %3657 = vmatprep.mubr.bf16.mxu1 %v5830_v63  ;;  %v6365_v53 = vadd.s32 152, %v6099_v18 }
  0x45   : > { %v5020_v14 = vpack.c.bf16 %v1227_v9, %v1227_v9  ;;  %v5021_v17 = vpack.c.bf16 %v1228_v13, %v1228_v13  ;;  %v4999_v20 = vpack.c.bf16 %v1086_v16, %v1086_v16  ;;  %v1229_v21 = vld [vmem:[#allocation2 + $0x62] sm:$0xff]  ;;  %v1230_v8 = vld [vmem:[#allocation2 + $0x6a] sm:$0xff]  ;;  %v5860_v22 = vld [vmem:[%s6898_s1 + $0x158] sm:$0xff]   ;;  %5524 = vmatprep.subr.bf16.mxu0 %v5847_v62  ;;  %vm6371_vm8 = vcmp.lt.s32.totalorder %v6909_v33, 14 }
  0x46   : > { %v5864_v24 = vld [vmem:[%s6898_s1 + $0x1a8] sm:$0xff]   ;;  %1203 = vst [vmem:[#allocation3 + $0x16c] sm:$0xf] %v4996_v11  ;;  %1204 = vst [vmem:[#allocation3 + $0x190] sm:$0xf] %v4997_v12  ;;  %v5022_v25 = vpack.c.bf16 %v1229_v21, %v1229_v21  ;;  %v5023_v27 = vpack.c.bf16 %v1230_v8, %v1230_v8  ;;  %v5325_v29 = vld [vmem:[%s6172_s26 + $0x40] sm:$0xff]  }
  0x47   : > { %1347 = vst [vmem:[#allocation3 + $0x170] sm:$0xf] %v5020_v14  ;;  %v1087_v31 = vld [vmem:[#allocation2 + $0x71] sm:$0xff]  ;;  %v5832_v37 = vld [vmem:[#allocation3 + $0x98] ss:$36 sps:$4 sm:$0xff]   ;;  %5611 = vmatpush3.bf16.msra.mxu1 %v5864_v24  ;;  %v5236_v42 = vunpack.c.l.bf16 %v5325_v29  ;;  %v5237_v45 = vunpack.c.h.bf16 %v5325_v29  ;;  %6948 = vst [vmem:[#allocation10_spill] sm:$0xff] %v6365_v53  ;;  %5525 = vmatpush3.bf16.msra.mxu0 %v5849_v10 }
  0x48   : > { %v1231_v35 = vld [vmem:[#allocation2 + $0x72] sm:$0xff]  ;;  %v5833_v38 = vld [vmem:[#allocation3 + $0xdc] ss:$36 sps:$4 sm:$0xff]   ;;  %1348 = vst [vmem:[#allocation3 + $0x194] sm:$0xf] %v5021_v17  ;;  %v5000_v44 = vpack.c.bf16 %v1087_v31, %v1087_v31  ;;  %5526 = vmatprep.subr.bf16.mxu0 %v5860_v22  ;;  %v6911_v57 = vand.u32 15, %v6365_v53 }
  0x49   : > { %1205 = vst [vmem:[#allocation3 + $0x1b4] sm:$0xf] %v4998_v19  ;;  %1206 = vst [vmem:[#allocation3 + $0x1d8] sm:$0xf] %v4999_v20  ;;  %v5024_v46 = vpack.c.bf16 %v1231_v35, %v1231_v35  ;;  %v5863_v49 = vld [vmem:[%s6898_s1 + $0x118] sm:$0xff]   ;;  %v5871_v51 = vld [vmem:[%s6898_s1 + $0x1e0] sm:$0xff]   ;;  %v741_v56 = vmul.f32 %v5236_v42, %v6195_v48  ;;  %v742_v60 = vmul.f32 %v5237_v45, %v6195_v48  ;;  %3529 = vmatmul.mubr.bf16.gmra.mxu0 %v4774_v47 }
  0x4a   : > { %1349 = vst [vmem:[#allocation3 + $0x1b8] sm:$0xf] %v5022_v25  ;;  %1350 = vst [vmem:[#allocation3 + $0x1dc] sm:$0xf] %v5023_v27  ;;  %v5835_v55 = vld [vmem:[#allocation3 + $0xe4] ss:$36 sps:$4 sm:$0xff]   ;;  %5612 = vmatprep.subr.bf16.mxu1 %v5871_v51  ;;  %3536 = vmatprep.mubr.bf16.mxu0 %v5833_v38 }
  0x4b   : > { %1207 = vst [vmem:[#allocation3 + $0x1fc] sm:$0xf] %v5000_v44  ;;  %1351 = vst [vmem:[#allocation3 + $0x200] sm:$0xf] %v5024_v46  ;;  %v5873_v62 = vld [vmem:[%s6898_s1 + $0x1a0] sm:$0xff]   ;;  %v776_v63 = vadd.f32 %v6207_v54, %v741_v56  ;;  %v777_v0 = vadd.f32 %v6207_v54, %v742_v60  ;;  %v5870_v1 = vld [vmem:[%s6898_s1 + $0x150] sm:$0xff]   ;;  %3658 = vmatmul.mubr.bf16.gmra.mxu1 %v5832_v37  ;;  %5527 = vmatpush3.bf16.msra.mxu0 %v5863_v49 }
  0x4c   : > { %v5326_v5 = vld [vmem:[%s6172_s26 + $0x48] sm:$0xff]   ;;  %5613 = vmatpush3.bf16.msra.mxu1 %v5873_v62  ;;  %v2255_v7 = vld [vmem:[#allocation3 + $0xd8] sm:$0xff]  ;;  %3665 = vmatprep.mubr.bf16.mxu1 %v5835_v55  ;;  %v5872_v13 = vld [vmem:[%s6898_s1 + $0x110] sm:$0xff]   ;;  %v6392_v15 = vadd.s32 168, %v6099_v18  ;;  %vm808_vm9 = vcmp.lt.s32.totalorder %v6911_v57, 14  ;;  %v6412_v49 = vadd.s32 184, %v6099_v18 }
  0x4d   : > { %v5240_v52 = vunpack.c.l.bf16 %v5326_v5  ;;  %v5241_v6 = vunpack.c.h.bf16 %v5326_v5  ;;  %v2260_v9 = vld [vmem:[#allocation3 + $0xfc] sm:$0xff]  ;;  %917 = vst [vmem:[#allocation2 + $0x80] sm:$0xff] %v776_v63  ;;  %v890_v10 = vsel %vm6371_vm8, %v777_v0, 0.0  ;;  %v5048_v11 = vpack.c.bf16 %v776_v63, %v776_v63  ;;  %5528 = vmatprep.subr.bf16.mxu0 %v5870_v1  ;;  %v5842_v21 = vld [vmem:[#allocation3 + $0x124] ss:$36 sps:$4 sm:$0xff]   ;;  %v5884_v47 = vld [vmem:[%s6898_s1 + $0x1d8] sm:$0xff]  }
  0x4e   : > { %918 = vst [vmem:[#allocation2 + $0x88] sm:$0xff] %v890_v10  ;;  %v5049_v12 = vpack.c.bf16 %v890_v10, %v890_v10  ;;  %6951 = vst [vmem:[#allocation11_spill] sm:$0xff] %v6392_v15  ;;  %v4783_v17 = vcombine.low %v2255_v7, %v2260_v9  ;;  %v5839_v20 = vld [vmem:[#allocation3 + $0xe0] ss:$36 sps:$4 sm:$0xff]   ;;  %v5844_v8 = vld [vmem:[#allocation3 + $0x12c] ss:$36 sps:$4 sm:$0xff]   ;;  %5614 = vmatprep.subr.bf16.mxu1 %v5884_v47 }
  0x4f   : > { %v743_v14 = vmul.f32 %v5240_v52, %v6195_v48  ;;  %1495 = vst [vmem:[#allocation3 + $0x204] sm:$0xf] %v5048_v11  ;;  %1065 = vst [vmem:[#allocation3 + $0x240] sm:$0xf] %v5048_v11  ;;  %v744_v16 = vmul.f32 %v5241_v6, %v6195_v48  ;;  %5529 = vmatpush3.bf16.msra.mxu0 %v5872_v13  ;;  %v5327_v25 = vld [vmem:[%s6172_s26 + $0x50] sm:$0xff]   ;;  %v6905_v27 = vand.u32 15, %v6392_v15 }
  0x50   : > { %1496 = vst [vmem:[#allocation3 + $0x228] sm:$0xf] %v5049_v12  ;;  %1066 = vst [vmem:[#allocation3 + $0x264] sm:$0xf] %v5049_v12  ;;  %v6401_v29 = vld [vmem:[#allocation3 + $0x120] sm:$0xff]  ;;  %v5244_v37 = vunpack.c.l.bf16 %v5327_v25  ;;  %v5245_v38 = vunpack.c.h.bf16 %v5327_v25  ;;  %v5887_v9 = vld [vmem:[%s6898_s1 + $0x198] sm:$0xff]  }
  0x51   : > { %v778_v19 = vadd.f32 %v6207_v54, %v743_v14  ;;  %v779_v22 = vadd.f32 %v6207_v54, %v744_v16  ;;  %v6403_v31 = vld [vmem:[#allocation3 + $0x144] sm:$0xff]  ;;  %3537 = vmatmul.mubr.bf16.gmra.mxu0 %v4783_v17  ;;  %6952 = vst [vmem:[#allocation12_spill] sm:$0xff] %v6412_v49  ;;  %v5851_v52 = vld [vmem:[#allocation3 + $0x16c] ss:$36 sps:$4 sm:$0xff]   ;;  %vm6422_vm10 = vcmp.lt.s32.totalorder %v6905_v27, 14  ;;  %v6907_v14 = vand.u32 15, %v6412_v49  ;;  %5615 = vmatpush3.bf16.msra.mxu1 %v5887_v9 }
  0x52   : > { %v5883_v42 = vld [vmem:[%s6898_s1 + $0x148] sm:$0xff]   ;;  %3544 = vmatprep.mubr.bf16.mxu0 %v5842_v21  ;;  %v745_v61 = vmul.f32 %v5244_v37, %v6195_v48  ;;  %v746_v0 = vmul.f32 %v5245_v38, %v6195_v48  ;;  %v5846_v5 = vld [vmem:[#allocation3 + $0x128] ss:$36 sps:$4 sm:$0xff]   ;;  %v4792_v10 = vcombine.low %v6401_v29, %v6403_v31  ;;  %v5853_v11 = vld [vmem:[#allocation3 + $0x174] ss:$36 sps:$4 sm:$0xff]  }
  0x53   : > { %919 = vst [vmem:[#allocation2 + $0x90] sm:$0xff] %v778_v19  ;;  %v5050_v24 = vpack.c.bf16 %v778_v19, %v778_v19  ;;  %v892_v35 = vsel %vm808_vm9, %v779_v22, 0.0  ;;  %3666 = vmatmul.mubr.bf16.gmra.mxu1 %v5839_v20  ;;  %5530 = vmatprep.subr.bf16.mxu0 %v5883_v42  ;;  %v5886_v1 = vld [vmem:[%s6898_s1 + $0x108] sm:$0xff]   ;;  %v5328_v13 = vld [vmem:[%s6172_s26 + $0x58] sm:$0xff]   ;;  %v6438_v22 = vadd.s32 200, %v6099_v18  ;;  %v5894_v37 = vld [vmem:[%s6898_s1 + $0x1d0] sm:$0xff]  }
  0x54   : > { %v1088_v44 = vld [vmem:[#allocation2 + $0x79] sm:$0xff]  ;;  %920 = vst [vmem:[#allocation2 + $0x98] sm:$0xff] %v892_v35  ;;  %v5051_v46 = vpack.c.bf16 %v892_v35, %v892_v35  ;;  %3673 = vmatprep.mubr.bf16.mxu1 %v5844_v8  ;;  %v780_v6 = vadd.f32 %v6207_v54, %v745_v61  ;;  %v781_v12 = vadd.f32 %v6207_v54, %v746_v0  ;;  %v5248_v20 = vunpack.c.l.bf16 %v5328_v13  ;;  %v5896_v61 = vld [vmem:[%s6898_s1 + $0x190] sm:$0xff]   ;;  %v5858_v9 = vld [vmem:[#allocation3 + $0x1bc] ss:$36 sps:$4 sm:$0xff]  }
  0x55   : > { %v1232_v45 = vld [vmem:[#allocation2 + $0x7a] sm:$0xff]  ;;  %1497 = vst [vmem:[#allocation3 + $0x24c] sm:$0xf] %v5050_v24  ;;  %1067 = vst [vmem:[#allocation3 + $0x288] sm:$0xf] %v5050_v24  ;;  %v5001_v51 = vpack.c.bf16 %v1088_v44, %v1088_v44  ;;  %v1233_v60 = vld [vmem:[#allocation2 + $0x82] sm:$0xff]  ;;  %5531 = vmatpush3.bf16.msra.mxu0 %v5886_v1  ;;  %v5249_v21 = vunpack.c.h.bf16 %v5328_v13  ;;  %5616 = vmatprep.subr.bf16.mxu1 %v5894_v37 }
  0x56   : > { %v5025_v55 = vpack.c.bf16 %v1232_v45, %v1232_v45  ;;  %v1089_v56 = vld [vmem:[#allocation2 + $0x81] sm:$0xff]  ;;  %v5026_v63 = vpack.c.bf16 %v1233_v60, %v1233_v60  ;;  %1498 = vst [vmem:[#allocation3 + $0x270] sm:$0xf] %v5051_v46  ;;  %1068 = vst [vmem:[#allocation3 + $0x2ac] sm:$0xf] %v5051_v46  ;;  %v5052_v19 = vpack.c.bf16 %v780_v6, %v780_v6  ;;  %v6440_v24 = vld [vmem:[#allocation3 + $0x168] sm:$0xff]  ;;  %5617 = vmatpush3.bf16.msra.mxu1 %v5896_v61 }
  0x57   : > { %v5002_v62 = vpack.c.bf16 %v1089_v56, %v1089_v56  ;;  %1208 = vst [vmem:[#allocation3 + $0x220] sm:$0xf] %v5001_v51  ;;  %921 = vst [vmem:[#allocation2 + $0xa0] sm:$0xff] %v780_v6  ;;  %v5893_v8 = vld [vmem:[%s6898_s1 + $0x140] sm:$0xff]   ;;  %v6442_v25 = vld [vmem:[#allocation3 + $0x18c] sm:$0xff]  ;;  %v894_v35 = vsel %vm6422_vm10, %v781_v12, 0.0  ;;  %v747_v45 = vmul.f32 %v5248_v20, %v6195_v48  ;;  %v748_v46 = vmul.f32 %v5249_v21, %v6195_v48 }
  0x58   : > { %1352 = vst [vmem:[#allocation3 + $0x224] sm:$0xf] %v5025_v55  ;;  %1353 = vst [vmem:[#allocation3 + $0x248] sm:$0xf] %v5026_v63  ;;  %v5053_v44 = vpack.c.bf16 %v894_v35, %v894_v35  ;;  %5532 = vmatprep.subr.bf16.mxu0 %v5893_v8  ;;  %vm6453_vm11 = vcmp.lt.s32.totalorder %v6907_v14, 14  ;;  %v5895_v56 = vld [vmem:[%s6898_s1 + $0x100] sm:$0xff]  }
  0x59   : > { %1209 = vst [vmem:[#allocation3 + $0x244] sm:$0xf] %v5002_v62  ;;  %2069 = vst [vmem:[#allocation3 + $0x1cc] sm:$0xf] %v5002_v62  ;;  %3545 = vmatmul.mubr.bf16.gmra.mxu0 %v4792_v10  ;;  %v782_v48 = vadd.f32 %v6207_v54, %v747_v45  ;;  %v783_v60 = vadd.f32 %v6207_v54, %v748_v46  ;;  %v5329_v62 = vld [vmem:[%s6172_s26 + $0x60] sm:$0xff]   ;;  %v4801_v54 = vcombine.low %v6440_v24, %v6442_v25  ;;  %v5902_v8 = vld [vmem:[%s6898_s1 + $0x1c8] sm:$0xff]  }
  0x5a   : > { %1783 = vst [vmem:[#allocation3 + $0x20c] sm:$0xf] %v5026_v63  ;;  %v1090_v16 = vld [vmem:[#allocation2 + $0x89] sm:$0xff]  ;;  %922 = vst [vmem:[#allocation2 + $0xa8] sm:$0xff] %v894_v35  ;;  %3552 = vmatprep.mubr.bf16.mxu0 %v5851_v52  ;;  %v505_v63 = vand.u32 15, %v6438_v22  ;;  %5533 = vmatpush3.bf16.msra.mxu0 %v5895_v56  ;;  %v5252_v0 = vunpack.c.l.bf16 %v5329_v62  ;;  %v5253_v1 = vunpack.c.h.bf16 %v5329_v62  ;;  %v5997_v22 = vmov 0.0  }
  0x5b   : > { %v1234_v17 = vld [vmem:[#allocation2 + $0x8a] sm:$0xff]  ;;  %v5003_v29 = vpack.c.bf16 %v1090_v16, %v1090_v16  ;;  %v1235_v42 = vld [vmem:[#allocation2 + $0x92] sm:$0xff]  ;;  %1499 = vst [vmem:[#allocation3 + $0x294] sm:$0xf] %v5052_v19  ;;  %1069 = vst [vmem:[#allocation3 + $0x2d0] sm:$0xf] %v5052_v19  ;;  %3674 = vmatmul.mubr.bf16.gmra.mxu1 %v5846_v5  ;;  %v5054_v7 = vpack.c.bf16 %v782_v48, %v782_v48  ;;  %5618 = vmatprep.subr.bf16.mxu1 %v5902_v8 }
  0x5c   : > { %v5027_v31 = vpack.c.bf16 %v1234_v17, %v1234_v17  ;;  %v1091_v38 = vld [vmem:[#allocation2 + $0x91] sm:$0xff]  ;;  %v5028_v51 = vpack.c.bf16 %v1235_v42, %v1235_v42  ;;  %1500 = vst [vmem:[#allocation3 + $0x2b8] sm:$0xf] %v5053_v44  ;;  %1070 = vst [vmem:[#allocation3 + $0x2f4] sm:$0xf] %v5053_v44  ;;  %3681 = vmatprep.mubr.bf16.mxu1 %v5853_v11  ;;  %v896_v6 = vsel %vm6453_vm11, %v783_v60, 0.0 }
  0x5d   : > { %1210 = vst [vmem:[#allocation3 + $0x268] sm:$0xf] %v5003_v29  ;;  %v5004_v47 = vpack.c.bf16 %v1091_v38, %v1091_v38  ;;  %2070 = vst [vmem:[#allocation3 + $0x1f0] sm:$0xf] %v5003_v29  ;;  %v5855_v5 = vld [vmem:[#allocation3 + $0x170] ss:$36 sps:$4 sm:$0xff]   ;;  %v5055_v12 = vpack.c.bf16 %v896_v6, %v896_v6 }
  0x5e   : > { %1354 = vst [vmem:[#allocation3 + $0x26c] sm:$0xf] %v5027_v31  ;;  %1784 = vst [vmem:[#allocation3 + $0x230] sm:$0xf] %v5027_v31  ;;  %v5856_v52 = vld [vmem:[#allocation3 + $0x1b4] ss:$36 sps:$4 sm:$0xff]  }
  0x5f   : > { %1930 = vst [vmem:[#allocation3 + $0x27c] sm:$0xf] %v5053_v44  ;;  %1211 = vst [vmem:[#allocation3 + $0x28c] sm:$0xf] %v5004_v47  ;;  %v1092_v10 = vld [vmem:[#allocation2 + $0x99] sm:$0xff]  ;;  %vm6478_vm12 = vcmp.lt.s32.totalorder %v505_v63, 14 }
  0x60   : > { %1355 = vst [vmem:[#allocation3 + $0x290] sm:$0xf] %v5028_v51  ;;  %2071 = vst [vmem:[#allocation3 + $0x214] sm:$0xf] %v5004_v47  ;;  %v1236_v11 = vld [vmem:[#allocation2 + $0x9a] sm:$0xff]  ;;  %v5005_v19 = vpack.c.bf16 %v1092_v10, %v1092_v10  ;;  %v5903_v46 = vld [vmem:[%s6898_s1 + $0x188] sm:$0xff]  }
  0x61   : > { %1641 = vst [vmem:[#allocation3 + $0x250] sm:$0xf] %v5004_v47  ;;  %1785 = vst [vmem:[#allocation3 + $0x254] sm:$0xf] %v5028_v51  ;;  %v6474_v13 = vld [vmem:[%s6900_s3] ss:$0 sm:$0xff]  ;;  %v5029_v20 = vpack.c.bf16 %v1236_v11, %v1236_v11  ;;  %3553 = vmatmul.mubr.bf16.gmra.mxu0 %v4801_v54  ;;  %5619 = vmatpush3.bf16.msra.mxu1 %v5903_v46 }
  0x62   : > { %923 = vst [vmem:[#allocation2 + $0xb0] sm:$0xff] %v782_v48  ;;  %924 = vst [vmem:[#allocation2 + $0xb8] sm:$0xff] %v896_v6  ;;  %v749_v16 = vmul.f32 %v6474_v13, %v5252_v0  ;;  %v750_v17 = vmul.f32 %v6474_v13, %v5253_v1  ;;  %v1093_v24 = vld [vmem:[#allocation2 + $0xa1] sm:$0xff]  ;;  %v6488_v29 = vld [vmem:[%s6901_s4] ss:$0 sm:$0xff]  ;;  %3560 = vmatprep.mubr.bf16.mxu0 %v5856_v52 }
  0x63   : > { %1501 = vst [vmem:[#allocation3 + $0x2dc] sm:$0xf] %v5054_v7  ;;  %1071 = vst [vmem:[#allocation3 + $0x318] sm:$0xf] %v5054_v7  ;;  %v1237_v25 = vld [vmem:[#allocation2 + $0xa2] sm:$0xff]  ;;  %v5006_v37 = vpack.c.bf16 %v1093_v24, %v1093_v24  ;;  %v2285_v42 = vld [vmem:[#allocation3 + $0x1b0] sm:$0xff]  ;;  %3682 = vmatmul.mubr.bf16.gmra.mxu1 %v5855_v5 }
  0x64   : > { %1931 = vst [vmem:[#allocation3 + $0x2a0] sm:$0xf] %v5054_v7  ;;  %788 = vst [vmem:[#allocation2 + $0xe0] sm:$0xff] %v5997_v22  ;;  %v784_v31 = vadd.f32 %v6488_v29, %v749_v16  ;;  %v785_v35 = vadd.f32 %v6488_v29, %v750_v17  ;;  %v5030_v38 = vpack.c.bf16 %v1237_v25, %v1237_v25  ;;  %v2290_v47 = vld [vmem:[#allocation3 + $0x1d4] sm:$0xff]  ;;  %3689 = vmatprep.mubr.bf16.mxu1 %v5858_v9  ;;  %v5865_v60 = vld [vmem:[#allocation3 + $0x1fc] ss:$36 sps:$4 sm:$0xff]  }
  0x65   : > { %1502 = vst [vmem:[#allocation3 + $0x300] sm:$0xf] %v5055_v12  ;;  %1072 = vst [vmem:[#allocation3 + $0x33c] sm:$0xf] %v5055_v12  ;;  %v5862_v48 = vld [vmem:[#allocation3 + $0x1b8] ss:$36 sps:$4 sm:$0xff]   ;;  %v4810_v1 = vcombine.low %v2285_v42, %v2290_v47 }
  0x66   : > { %1932 = vst [vmem:[#allocation3 + $0x2c4] sm:$0xf] %v5055_v12  ;;  %1212 = vst [vmem:[#allocation3 + $0x2b0] sm:$0xf] %v5005_v19  ;;  %v898_v44 = vsel %vm6478_vm12, %v785_v35, 0.0  ;;  %v5056_v45 = vpack.c.bf16 %v784_v31, %v784_v31  ;;  %v5904_v52 = vld [vmem:[%s6898_s1 + $0x1c0] sm:$0xff]  }
  0x67   : > { %1356 = vst [vmem:[#allocation3 + $0x2b4] sm:$0xf] %v5029_v20  ;;  %2072 = vst [vmem:[#allocation3 + $0x238] sm:$0xf] %v5005_v19  ;;  %v5057_v51 = vpack.c.bf16 %v898_v44, %v898_v44  ;;  %v5905_v6 = vld [vmem:[%s6898_s1 + $0x180] sm:$0xff]   ;;  %v1505_v7 = vld [vmem:[#allocation2 + $0x11] sm:$0xff]  ;;  %5620 = vmatprep.subr.bf16.mxu1 %v5904_v52 }
  0x68   : > { %1642 = vst [vmem:[#allocation3 + $0x274] sm:$0xf] %v5005_v19  ;;  %1786 = vst [vmem:[#allocation3 + $0x278] sm:$0xf] %v5029_v20  ;;  %v1506_v9 = vld [vmem:[#allocation2 + $0x19] sm:$0xff]  ;;  %v5058_v11 = vpack.c.bf16 %v1505_v7, %v1505_v7  ;;  %5621 = vmatpush3.bf16.msra.mxu1 %v5905_v6  ;;  %v2300_v19 = vld [vmem:[#allocation3 + $0x21c] sm:$0xff] }
  0x69   : > { %925 = vst [vmem:[#allocation2 + $0xc0] sm:$0xff] %v784_v31  ;;  %1213 = vst [vmem:[#allocation3 + $0x2d4] sm:$0xf] %v5006_v37  ;;  %v1094_v55 = vld [vmem:[#allocation2 + $0xa9] sm:$0xff]  ;;  %v1095_v63 = vld [vmem:[#allocation2 + $0xb1] sm:$0xff]  ;;  %v5059_v12 = vpack.c.bf16 %v1506_v9, %v1506_v9  ;;  %3561 = vmatmul.mubr.bf16.gmra.mxu0 %v4810_v1 }
  0x6a   : > { %1357 = vst [vmem:[#allocation3 + $0x2d8] sm:$0xf] %v5030_v38  ;;  %926 = vst [vmem:[#allocation2 + $0xc8] sm:$0xff] %v898_v44  ;;  %v1238_v56 = vld [vmem:[#allocation2 + $0xaa] sm:$0xff]  ;;  %v5007_v61 = vpack.c.bf16 %v1094_v55, %v1094_v55  ;;  %v1239_v0 = vld [vmem:[#allocation2 + $0xb2] sm:$0xff]  ;;  %v5008_v54 = vpack.c.bf16 %v1095_v63, %v1095_v63  ;;  %3568 = vmatprep.mubr.bf16.mxu0 %v5865_v60 }
  0x6b   : > { %2073 = vst [vmem:[#allocation3 + $0x25c] sm:$0xf] %v5006_v37  ;;  %1643 = vst [vmem:[#allocation3 + $0x298] sm:$0xf] %v5006_v37  ;;  %v5031_v62 = vpack.c.bf16 %v1238_v56, %v1238_v56  ;;  %v5032_v5 = vpack.c.bf16 %v1239_v0, %v1239_v0  ;;  %v5867_v10 = vld [vmem:[#allocation3 + $0x204] ss:$36 sps:$4 sm:$0xff]   ;;  %3690 = vmatmul.mubr.bf16.gmra.mxu1 %v5862_v48 }
  0x6c   : > { %1787 = vst [vmem:[#allocation3 + $0x29c] sm:$0xf] %v5030_v38  ;;  %1503 = vst [vmem:[#allocation3 + $0x324] sm:$0xf] %v5056_v45  ;;  %v2295_v16 = vld [vmem:[#allocation3 + $0x1f8] sm:$0xff]  ;;  %v1649_v22 = vld [vmem:[#allocation2 + $0x12] sm:$0xff]  ;;  %3697 = vmatprep.mubr.bf16.mxu1 %v5867_v10 }
  0x6d   : > { %1933 = vst [vmem:[#allocation3 + $0x2e8] sm:$0xf] %v5056_v45  ;;  %1504 = vst [vmem:[#allocation3 + $0x348] sm:$0xf] %v5057_v51  ;;  %v1650_v24 = vld [vmem:[#allocation2 + $0x1a] sm:$0xff]  ;;  %v5082_v31 = vpack.c.bf16 %v1649_v22, %v1649_v22  ;;  %v1794_v37 = vld [vmem:[#allocation2 + $0x28] sm:$0xff]  ;;  %v4819_v55 = vcombine.low %v2295_v16, %v2300_v19 }
  0x6e   : > { %1934 = vst [vmem:[#allocation3 + $0x30c] sm:$0xf] %v5057_v51  ;;  %1214 = vst [vmem:[#allocation3 + $0x2f8] sm:$0xf] %v5007_v61  ;;  %v1793_v25 = vld [vmem:[#allocation2 + $0x20] sm:$0xff]  ;;  %v5083_v35 = vpack.c.bf16 %v1650_v24, %v1650_v24  ;;  %v1938_v44 = vld [vmem:[#allocation2 + $0x29] sm:$0xff]  ;;  %v5107_v45 = vpack.c.bf16 %v1794_v37, %v1794_v37 }
  0x6f   : > { %1358 = vst [vmem:[#allocation3 + $0x2fc] sm:$0xf] %v5031_v62  ;;  %2074 = vst [vmem:[#allocation3 + $0x280] sm:$0xf] %v5007_v61  ;;  %v5106_v38 = vpack.c.bf16 %v1793_v25, %v1793_v25  ;;  %v1937_v42 = vld [vmem:[#allocation2 + $0x21] sm:$0xff]  ;;  %v5131_v47 = vpack.c.bf16 %v1938_v44, %v1938_v44  ;;  %v6506_v51 = vld [vmem:[%s6898_s1 + $0x238] sm:$0xff]  }
  0x70   : > { %1644 = vst [vmem:[#allocation3 + $0x2bc] sm:$0xf] %v5007_v61  ;;  %1788 = vst [vmem:[#allocation3 + $0x2c0] sm:$0xf] %v5031_v62  ;;  %v1096_v17 = vld [vmem:[#allocation2 + $0xb9] sm:$0xff]  ;;  %v5130_v46 = vpack.c.bf16 %v1937_v42, %v1937_v42  ;;  %5714 = vmatprep.subr.bf16.mxu0 %v6506_v51  ;;  %5754 = vmatprep.subr.bf16.mxu1 %v6506_v51  ;;  %v1651_v61 = vld [vmem:[#allocation2 + $0x22] sm:$0xff] }
  0x71   : > { %1215 = vst [vmem:[#allocation3 + $0x31c] sm:$0xf] %v5008_v54  ;;  %1359 = vst [vmem:[#allocation3 + $0x320] sm:$0xf] %v5032_v5  ;;  %v5009_v20 = vpack.c.bf16 %v1096_v17, %v1096_v17  ;;  %v1240_v21 = vld [vmem:[#allocation2 + $0xba] sm:$0xff]  ;;  %v1652_v62 = vld [vmem:[#allocation2 + $0x2a] sm:$0xff]  ;;  %v5084_v63 = vpack.c.bf16 %v1651_v61, %v1651_v61  ;;  %3569 = vmatmul.mubr.bf16.gmra.mxu0 %v4819_v55 }
  0x72   : > { %2075 = vst [vmem:[#allocation3 + $0x2a4] sm:$0xf] %v5008_v54  ;;  %1645 = vst [vmem:[#allocation3 + $0x2e0] sm:$0xf] %v5008_v54  ;;  %v5033_v8 = vpack.c.bf16 %v1240_v21, %v1240_v21  ;;  %v5869_v56 = vld [vmem:[#allocation3 + $0x200] ss:$36 sps:$4 sm:$0xff]   ;;  %v5085_v0 = vpack.c.bf16 %v1652_v62, %v1652_v62 }
  0x73   : > { %1789 = vst [vmem:[#allocation3 + $0x2e4] sm:$0xf] %v5032_v5  ;;  %1625 = vst [vmem:[#allocation3 + $0x10] sm:$0xf] %v5058_v11  ;;  %v5874_v48 = vld [vmem:[#allocation3 + $0x244] ss:$36 sps:$4 sm:$0xff]   ;;  %3698 = vmatmul.mubr.bf16.gmra.mxu1 %v5869_v56 }
  0x74   : > { %1626 = vst [vmem:[#allocation3 + $0x34] sm:$0xf] %v5059_v12  ;;  %1216 = vst [vmem:[#allocation3 + $0x340] sm:$0xf] %v5009_v20  ;;  %v5876_v60 = vld [vmem:[#allocation3 + $0x24c] ss:$36 sps:$4 sm:$0xff]   ;;  %3576 = vmatprep.mubr.bf16.mxu0 %v5874_v48 }
  0x75   : > { %2076 = vst [vmem:[#allocation3 + $0x2c8] sm:$0xf] %v5009_v20  ;;  %1646 = vst [vmem:[#allocation3 + $0x304] sm:$0xf] %v5009_v20  ;;  %v1795_v1 = vld [vmem:[#allocation2 + $0x30] sm:$0xff]  ;;  %v1796_v54 = vld [vmem:[#allocation2 + $0x38] sm:$0xff]  ;;  %3705 = vmatprep.mubr.bf16.mxu1 %v5876_v60 }
  0x76   : > { %1360 = vst [vmem:[#allocation3 + $0x344] sm:$0xf] %v5033_v8  ;;  %1790 = vst [vmem:[#allocation3 + $0x308] sm:$0xf] %v5033_v8  ;;  %v1939_v5 = vld [vmem:[#allocation2 + $0x31] sm:$0xff]  ;;  %v5108_v52 = vpack.c.bf16 %v1795_v1, %v1795_v1  ;;  %v5109_v6 = vpack.c.bf16 %v1796_v54, %v1796_v54  ;;  %v1940_v7 = vld [vmem:[#allocation2 + $0x39] sm:$0xff] }
  0x77   : > { %1769 = vst [vmem:[#allocation3 + $0x14] sm:$0xf] %v5082_v31  ;;  %1770 = vst [vmem:[#allocation3 + $0x38] sm:$0xf] %v5083_v35  ;;  %v5132_v9 = vpack.c.bf16 %v1939_v5, %v1939_v5  ;;  %v2305_v10 = vld [vmem:[#allocation3 + $0x240] sm:$0xff]  ;;  %v5133_v12 = vpack.c.bf16 %v1940_v7, %v1940_v7  ;;  %v1653_v21 = vld [vmem:[#allocation2 + $0x32] sm:$0xff] }
  0x78   : > { %1913 = vst [vmem:[#allocation3 + $0x18] sm:$0xf] %v5106_v38  ;;  %1914 = vst [vmem:[#allocation3 + $0x3c] sm:$0xf] %v5107_v45  ;;  %v2310_v11 = vld [vmem:[#allocation3 + $0x264] sm:$0xff]  ;;  %v1654_v8 = vld [vmem:[#allocation2 + $0x3a] sm:$0xff]  ;;  %v5086_v22 = vpack.c.bf16 %v1653_v21, %v1653_v21 }
  0x79   : > { %2057 = vst [vmem:[#allocation3 + $0x1c] sm:$0xf] %v5130_v46  ;;  %2058 = vst [vmem:[#allocation3 + $0x40] sm:$0xf] %v5131_v47  ;;  %v4828_v16 = vcombine.low %v2305_v10, %v2310_v11  ;;  %v5878_v17 = vld [vmem:[#allocation3 + $0x248] ss:$36 sps:$4 sm:$0xff]   ;;  %v5087_v31 = vpack.c.bf16 %v1654_v8, %v1654_v8 }
  0x7a   : > { %1627 = vst [vmem:[#allocation3 + $0x58] sm:$0xf] %v5130_v46  ;;  %1628 = vst [vmem:[#allocation3 + $0x7c] sm:$0xf] %v5131_v47  ;;  %v5879_v19 = vld [vmem:[#allocation3 + $0x28c] ss:$36 sps:$4 sm:$0xff]  }
  0x7b   : > { %1771 = vst [vmem:[#allocation3 + $0x5c] sm:$0xf] %v5084_v63  ;;  %1772 = vst [vmem:[#allocation3 + $0x80] sm:$0xf] %v5085_v0  ;;  %v5881_v20 = vld [vmem:[#allocation3 + $0x294] ss:$36 sps:$4 sm:$0xff]   ;;  %3577 = vmatmul.mubr.bf16.gmra.mxu0 %v4828_v16  ;;  %3706 = vmatmul.mubr.bf16.gmra.mxu1 %v5878_v17 }
  0x7c   : > { %2201 = vst [vmem:[#allocation3 + $0x20] sm:$0xf] %v5084_v63  ;;  %2202 = vst [vmem:[#allocation3 + $0x44] sm:$0xf] %v5085_v0  ;;  %v1797_v24 = vld [vmem:[#allocation2 + $0x40] sm:$0xff]  ;;  %v1798_v25 = vld [vmem:[#allocation2 + $0x48] sm:$0xff]  ;;  %3584 = vmatprep.mubr.bf16.mxu0 %v5879_v19  ;;  %3713 = vmatprep.mubr.bf16.mxu1 %v5881_v20 }
  0x7d   : > { %1915 = vst [vmem:[#allocation3 + $0x60] sm:$0xf] %v5108_v52  ;;  %1916 = vst [vmem:[#allocation3 + $0x84] sm:$0xf] %v5109_v6  ;;  %v5110_v35 = vpack.c.bf16 %v1797_v24, %v1797_v24  ;;  %v5111_v37 = vpack.c.bf16 %v1798_v25, %v1798_v25  ;;  %v1941_v38 = vld [vmem:[#allocation2 + $0x41] sm:$0xff]  ;;  %v1942_v42 = vld [vmem:[#allocation2 + $0x49] sm:$0xff] }
  0x7e   : > { %2059 = vst [vmem:[#allocation3 + $0x64] sm:$0xf] %v5132_v9  ;;  %1629 = vst [vmem:[#allocation3 + $0xa0] sm:$0xf] %v5132_v9  ;;  %v1655_v44 = vld [vmem:[#allocation2 + $0x42] sm:$0xff]  ;;  %v2315_v45 = vld [vmem:[#allocation3 + $0x288] sm:$0xff]  ;;  %v5134_v47 = vpack.c.bf16 %v1941_v38, %v1941_v38  ;;  %v5135_v55 = vpack.c.bf16 %v1942_v42, %v1942_v42 }
  0x7f   : > { %2060 = vst [vmem:[#allocation3 + $0x88] sm:$0xf] %v5133_v12  ;;  %1630 = vst [vmem:[#allocation3 + $0xc4] sm:$0xf] %v5133_v12  ;;  %v2320_v46 = vld [vmem:[#allocation3 + $0x2ac] sm:$0xff]  ;;  %v5088_v56 = vpack.c.bf16 %v1655_v44, %v1655_v44  ;;  %v1656_v48 = vld [vmem:[#allocation2 + $0x4a] sm:$0xff] }
  0x80   : > { %1773 = vst [vmem:[#allocation3 + $0xa4] sm:$0xf] %v5086_v22  ;;  %2203 = vst [vmem:[#allocation3 + $0x68] sm:$0xf] %v5086_v22  ;;  %v1799_v60 = vld [vmem:[#allocation2 + $0x50] sm:$0xff]  ;;  %v5089_v61 = vpack.c.bf16 %v1656_v48, %v1656_v48  ;;  %v1800_v1 = vld [vmem:[#allocation2 + $0x58] sm:$0xff]  ;;  %v4837_v52 = vcombine.low %v2315_v45, %v2320_v46 }
  0x81   : > { %1774 = vst [vmem:[#allocation3 + $0xc8] sm:$0xf] %v5087_v31  ;;  %1917 = vst [vmem:[#allocation3 + $0xa8] sm:$0xf] %v5110_v35  ;;  %v5112_v62 = vpack.c.bf16 %v1799_v60, %v1799_v60  ;;  %v5885_v63 = vld [vmem:[#allocation3 + $0x290] ss:$36 sps:$4 sm:$0xff]   ;;  %v5113_v7 = vpack.c.bf16 %v1800_v1, %v1800_v1 }
  0x82   : > { %1918 = vst [vmem:[#allocation3 + $0xcc] sm:$0xf] %v5111_v37  ;;  %2204 = vst [vmem:[#allocation3 + $0x8c] sm:$0xf] %v5087_v31  ;;  %v5888_v0 = vld [vmem:[#allocation3 + $0x2d4] ss:$36 sps:$4 sm:$0xff]  }
  0x83   : > { %2061 = vst [vmem:[#allocation3 + $0xac] sm:$0xf] %v5134_v47  ;;  %2062 = vst [vmem:[#allocation3 + $0xd0] sm:$0xf] %v5135_v55  ;;  %v1943_v54 = vld [vmem:[#allocation2 + $0x51] sm:$0xff]  ;;  %v1944_v5 = vld [vmem:[#allocation2 + $0x59] sm:$0xff]  ;;  %3585 = vmatmul.mubr.bf16.gmra.mxu0 %v4837_v52  ;;  %3714 = vmatmul.mubr.bf16.gmra.mxu1 %v5885_v63 }
  0x84   : > { %1631 = vst [vmem:[#allocation3 + $0xe8] sm:$0xf] %v5134_v47  ;;  %1632 = vst [vmem:[#allocation3 + $0x10c] sm:$0xf] %v5135_v55  ;;  %v5890_v6 = vld [vmem:[#allocation3 + $0x2dc] ss:$36 sps:$4 sm:$0xff]   ;;  %v5136_v9 = vpack.c.bf16 %v1943_v54, %v1943_v54  ;;  %v5137_v10 = vpack.c.bf16 %v1944_v5, %v1944_v5  ;;  %3592 = vmatprep.mubr.bf16.mxu0 %v5888_v0 }
  0x85   : > { %1775 = vst [vmem:[#allocation3 + $0xec] sm:$0xf] %v5088_v56  ;;  %2205 = vst [vmem:[#allocation3 + $0xb0] sm:$0xf] %v5088_v56  ;;  %v1657_v11 = vld [vmem:[#allocation2 + $0x52] sm:$0xff]  ;;  %v1658_v12 = vld [vmem:[#allocation2 + $0x5a] sm:$0xff]  ;;  %3721 = vmatprep.mubr.bf16.mxu1 %v5890_v6 }
  0x86   : > { %1776 = vst [vmem:[#allocation3 + $0x110] sm:$0xf] %v5089_v61  ;;  %1919 = vst [vmem:[#allocation3 + $0xf0] sm:$0xf] %v5112_v62  ;;  %v1801_v16 = vld [vmem:[#allocation2 + $0x60] sm:$0xff]  ;;  %v5090_v17 = vpack.c.bf16 %v1657_v11, %v1657_v11  ;;  %v5091_v19 = vpack.c.bf16 %v1658_v12, %v1658_v12  ;;  %v1802_v20 = vld [vmem:[#allocation2 + $0x68] sm:$0xff] }
  0x87   : > { %2206 = vst [vmem:[#allocation3 + $0xd4] sm:$0xf] %v5089_v61  ;;  %1920 = vst [vmem:[#allocation3 + $0x114] sm:$0xf] %v5113_v7  ;;  %v5114_v21 = vpack.c.bf16 %v1801_v16, %v1801_v16  ;;  %v1945_v8 = vld [vmem:[#allocation2 + $0x61] sm:$0xff]  ;;  %v1946_v22 = vld [vmem:[#allocation2 + $0x69] sm:$0xff]  ;;  %v5115_v24 = vpack.c.bf16 %v1802_v20, %v1802_v20 }
  0x88   : > { %2063 = vst [vmem:[#allocation3 + $0xf4] sm:$0xf] %v5136_v9  ;;  %2064 = vst [vmem:[#allocation3 + $0x118] sm:$0xf] %v5137_v10  ;;  %v5138_v25 = vpack.c.bf16 %v1945_v8, %v1945_v8  ;;  %v5139_v31 = vpack.c.bf16 %v1946_v22, %v1946_v22  ;;  %v2325_v35 = vld [vmem:[#allocation3 + $0x2d0] sm:$0xff]  ;;  %v1659_v38 = vld [vmem:[#allocation2 + $0x62] sm:$0xff] }
  0x89   : > { %1633 = vst [vmem:[#allocation3 + $0x130] sm:$0xf] %v5136_v9  ;;  %1634 = vst [vmem:[#allocation3 + $0x154] sm:$0xf] %v5137_v10  ;;  %v2330_v37 = vld [vmem:[#allocation3 + $0x2f4] sm:$0xff]  ;;  %v1660_v44 = vld [vmem:[#allocation2 + $0x6a] sm:$0xff]  ;;  %v5092_v45 = vpack.c.bf16 %v1659_v38, %v1659_v38 }
  0x8a   : > { %1777 = vst [vmem:[#allocation3 + $0x134] sm:$0xf] %v5090_v17  ;;  %1778 = vst [vmem:[#allocation3 + $0x158] sm:$0xf] %v5091_v19  ;;  %v5892_v42 = vld [vmem:[#allocation3 + $0x2d8] ss:$36 sps:$4 sm:$0xff]   ;;  %v4846_v46 = vcombine.low %v2325_v35, %v2330_v37  ;;  %v5093_v47 = vpack.c.bf16 %v1660_v44, %v1660_v44 }
  0x8b   : > { %1921 = vst [vmem:[#allocation3 + $0x138] sm:$0xf] %v5114_v21  ;;  %2207 = vst [vmem:[#allocation3 + $0xf8] sm:$0xf] %v5090_v17  ;;  %v1803_v55 = vld [vmem:[#allocation2 + $0x70] sm:$0xff]  ;;  %v1804_v56 = vld [vmem:[#allocation2 + $0x78] sm:$0xff]  ;;  %3722 = vmatmul.mubr.bf16.gmra.mxu1 %v5892_v42 }
  0x8c   : > { %2208 = vst [vmem:[#allocation3 + $0x11c] sm:$0xf] %v5091_v19  ;;  %1922 = vst [vmem:[#allocation3 + $0x15c] sm:$0xf] %v5115_v24  ;;  %v1947_v48 = vld [vmem:[#allocation2 + $0x71] sm:$0xff]  ;;  %v5116_v61 = vpack.c.bf16 %v1803_v55, %v1803_v55  ;;  %v5117_v62 = vpack.c.bf16 %v1804_v56, %v1804_v56  ;;  %v1948_v1 = vld [vmem:[#allocation2 + $0x79] sm:$0xff]  ;;  %3593 = vmatmul.mubr.bf16.gmra.mxu0 %v4846_v46 }
  0x8d   : > { %2065 = vst [vmem:[#allocation3 + $0x13c] sm:$0xf] %v5138_v25  ;;  %2066 = vst [vmem:[#allocation3 + $0x160] sm:$0xf] %v5139_v31  ;;  %v5897_v60 = vld [vmem:[#allocation3 + $0x31c] ss:$36 sps:$4 sm:$0xff]   ;;  %v5140_v63 = vpack.c.bf16 %v1947_v48, %v1947_v48  ;;  %v5141_v5 = vpack.c.bf16 %v1948_v1, %v1948_v1 }
  0x8e   : > { %1635 = vst [vmem:[#allocation3 + $0x178] sm:$0xf] %v5138_v25  ;;  %1636 = vst [vmem:[#allocation3 + $0x19c] sm:$0xf] %v5139_v31  ;;  %v5899_v0 = vld [vmem:[#allocation3 + $0x324] ss:$36 sps:$4 sm:$0xff]   ;;  %3600 = vmatprep.mubr.bf16.mxu0 %v5897_v60 }
  0x8f   : > { %1779 = vst [vmem:[#allocation3 + $0x17c] sm:$0xf] %v5092_v45  ;;  %2209 = vst [vmem:[#allocation3 + $0x140] sm:$0xf] %v5092_v45  ;;  %v1661_v54 = vld [vmem:[#allocation2 + $0x72] sm:$0xff]  ;;  %v2335_v6 = vld [vmem:[#allocation3 + $0x318] sm:$0xff]  ;;  %3729 = vmatprep.mubr.bf16.mxu1 %v5899_v0 }
  0x90   : > { %1780 = vst [vmem:[#allocation3 + $0x1a0] sm:$0xf] %v5093_v47  ;;  %2210 = vst [vmem:[#allocation3 + $0x164] sm:$0xf] %v5093_v47  ;;  %v5094_v52 = vpack.c.bf16 %v1661_v54, %v1661_v54  ;;  %v2340_v7 = vld [vmem:[#allocation3 + $0x33c] sm:$0xff]  ;;  %v1662_v9 = vld [vmem:[#allocation2 + $0x7a] sm:$0xff] }
  0x91   : > { %1923 = vst [vmem:[#allocation3 + $0x180] sm:$0xf] %v5116_v61  ;;  %1924 = vst [vmem:[#allocation3 + $0x1a4] sm:$0xf] %v5117_v62  ;;  %v1805_v10 = vld [vmem:[#allocation2 + $0x80] sm:$0xff]  ;;  %v5095_v11 = vpack.c.bf16 %v1662_v9, %v1662_v9  ;;  %v1806_v12 = vld [vmem:[#allocation2 + $0x88] sm:$0xff]  ;;  %v4855_v21 = vcombine.low %v2335_v6, %v2340_v7 }
  0x92   : > { %2067 = vst [vmem:[#allocation3 + $0x184] sm:$0xf] %v5140_v63  ;;  %1637 = vst [vmem:[#allocation3 + $0x1c0] sm:$0xf] %v5140_v63  ;;  %v5118_v16 = vpack.c.bf16 %v1805_v10, %v1805_v10  ;;  %v5119_v17 = vpack.c.bf16 %v1806_v12, %v1806_v12  ;;  %v1519_v19 = vld [vmem:[#allocation2 + $0x81] sm:$0xff]  ;;  %v1520_v20 = vld [vmem:[#allocation2 + $0x89] sm:$0xff] }
  0x93   : > { %2068 = vst [vmem:[#allocation3 + $0x1a8] sm:$0xf] %v5141_v5  ;;  %1638 = vst [vmem:[#allocation3 + $0x1e4] sm:$0xf] %v5141_v5  ;;  %v5072_v8 = vpack.c.bf16 %v1519_v19, %v1519_v19  ;;  %v5073_v22 = vpack.c.bf16 %v1520_v20, %v1520_v20  ;;  %v1807_v24 = vld [vmem:[#allocation2 + $0x90] sm:$0xff]  ;;  %v1808_v25 = vld [vmem:[#allocation2 + $0x98] sm:$0xff] }
  0x94   : > { %1781 = vst [vmem:[#allocation3 + $0x1c4] sm:$0xf] %v5094_v52  ;;  %2211 = vst [vmem:[#allocation3 + $0x188] sm:$0xf] %v5094_v52  ;;  %v5901_v31 = vld [vmem:[#allocation3 + $0x320] ss:$36 sps:$4 sm:$0xff]   ;;  %v5120_v37 = vpack.c.bf16 %v1807_v24, %v1807_v24  ;;  %v5121_v38 = vpack.c.bf16 %v1808_v25, %v1808_v25  ;;  %3601 = vmatmul.mubr.bf16.gmra.mxu0 %v4855_v21 }
  0x95   : > { %1782 = vst [vmem:[#allocation3 + $0x1e8] sm:$0xf] %v5095_v11  ;;  %1925 = vst [vmem:[#allocation3 + $0x1c8] sm:$0xf] %v5118_v16  ;;  %v5908_v35 = vld [vmem:[#allocation3 + $0x14] ss:$36 sps:$4 sm:$0xff]   ;;  %3730 = vmatmul.mubr.bf16.gmra.mxu1 %v5901_v31 }
  0x96   : > { %2212 = vst [vmem:[#allocation3 + $0x1ac] sm:$0xf] %v5095_v11  ;;  %1926 = vst [vmem:[#allocation3 + $0x1ec] sm:$0xf] %v5119_v17  ;;  %v5911_v42 = vld [vmem:[#allocation3 + $0x1c] ss:$36 sps:$4 sm:$0xff]   ;;  %3770 = vmatprep.mubr.bf16.mxu0 %v5908_v35 }
  0x97   : > { %1639 = vst [vmem:[#allocation3 + $0x208] sm:$0xf] %v5072_v8  ;;  %1640 = vst [vmem:[#allocation3 + $0x22c] sm:$0xf] %v5073_v22  ;;  %v1809_v44 = vld [vmem:[#allocation2 + $0xa0] sm:$0xff]  ;;  %3899 = vmatprep.mubr.bf16.mxu1 %v5911_v42  ;;  %v325_v48 = vadd.s32 216, %v6099_v18 }
  0x98   : > { %1927 = vst [vmem:[#allocation3 + $0x210] sm:$0xf] %v5120_v37  ;;  %1928 = vst [vmem:[#allocation3 + $0x234] sm:$0xf] %v5121_v38  ;;  %v5122_v45 = vpack.c.bf16 %v1809_v44, %v1809_v44  ;;  %v5906_v46 = vld [vmem:[#allocation3 + $0x10] ss:$36 sps:$4 sm:$0xff]  }
  0x99   : > { %v5909_v47 = vld [vmem:[#allocation3 + $0x18] ss:$36 sps:$4 sm:$0xff]   ;;  %v5915_v56 = vld [vmem:[#allocation3 + $0x64] ss:$36 sps:$4 sm:$0xff]   ;;  %v519_v1 = vand.u32 15, %v325_v48  ;;  %v5945_v48 = vld [vmem:[%s6898_s1 + $0x218] sm:$0xff]  }
  0x9a   : > { %1929 = vst [vmem:[#allocation3 + $0x258] sm:$0xf] %v5122_v45  ;;  %v5913_v55 = vld [vmem:[#allocation3 + $0x5c] ss:$36 sps:$4 sm:$0xff]   ;;  %v5918_v60 = vld [vmem:[%s6898_s1 + $0x230] sm:$0xff]   ;;  %v2096_v35 = vld [vmem:[#allocation2 + $0x9a] sm:$0xff] }
  0x9b   : > { %v2237_v61 = vld [vmem:[#allocation3 + $0x58] sm:$0xff]  ;;  %v5928_v63 = vld [vmem:[%s6898_s1 + $0x228] sm:$0xff]   ;;  %v5921_v17 = vld [vmem:[#allocation3 + $0xac] ss:$36 sps:$4 sm:$0xff]   ;;  %vm6527_vm13 = vcmp.lt.s32.totalorder %v519_v1, 14  ;;  %v5169_v44 = vpack.c.bf16 %v2096_v35, %v2096_v35 }
  0x9c   : > { %3771 = vmatmul.mubr.bf16.vlgmr.msra.gmra.mxu0 %v5906_v46  ;;  %v2242_v62 = vld [vmem:[#allocation3 + $0x7c] sm:$0xff]  ;;  %v5919_v18 = vld [vmem:[#allocation3 + $0xa4] ss:$36 sps:$4 sm:$0xff]   ;;  %v5924_v1 = vld [vmem:[#allocation3 + $0xec] ss:$36 sps:$4 sm:$0xff]  }
  0x9d   : > { %3900 = vmatmul.mubr.bf16.vlgmr.msra.gmra.mxu1 %v5909_v47  ;;  %5715 = vmatpush3.bf16.msra.mxu0 %v6506_v51  ;;  %v5330_v0 = vld [vmem:[%s6172_s26 + $0x68] sm:$0xff]   ;;  %v4769_v6 = vcombine.low %v2237_v61, %v2242_v62  ;;  %v6523_v9 = vld [vmem:[%s6898_s1 + $0x220] sm:$0xff]   ;;  %v2095_v31 = vld [vmem:[#allocation2 + $0x92] sm:$0xff]  ;;  %2216 = vst [vmem:[#allocation3 + $0x23c] sm:$0xf] %v5169_v44 }
  0x9e   : > { %3778 = vmatprep.mubr.bf16.mxu0 %v5913_v55  ;;  %3907 = vmatprep.mubr.bf16.mxu1 %v5915_v56  ;;  %v5917_v54 = vld [vmem:[#allocation3 + $0x60] ss:$36 sps:$4 sm:$0xff]   ;;  %v5256_v5 = vunpack.c.l.bf16 %v5330_v0  ;;  %v5257_v52 = vunpack.c.h.bf16 %v5330_v0  ;;  %v5923_v56 = vld [vmem:[#allocation3 + $0xa8] ss:$36 sps:$4 sm:$0xff]   ;;  %v2100_v0 = vld [vmem:[#allocation2 + $0xba] sm:$0xff] }
  0x9f   : > { %5716 = vmatprep.subr.bf16.mxu0 %v5918_v60  ;;  %5762 = vmatpush3.bf16.msra.mxu1 %v6506_v51  ;;  %v1957_v7 = vld [vmem:[#allocation2 + $0xc1] sm:$0xff]  ;;  %v2094_v22 = vld [vmem:[#allocation2 + $0x8a] sm:$0xff]  ;;  %v2099_v62 = vld [vmem:[#allocation2 + $0xb2] sm:$0xff] }
  0xa0   : > { %5755 = vmatprep.subr.bf16.mxu1 %v5918_v60  ;;  %v751_v10 = vmul.f32 %v6474_v13, %v5256_v5  ;;  %v5150_v11 = vpack.c.bf16 %v1957_v7, %v1957_v7  ;;  %v1671_v12 = vld [vmem:[#allocation2 + $0xc2] sm:$0xff]  ;;  %v752_v16 = vmul.f32 %v6474_v13, %v5257_v52  ;;  %v5167_v13 = vpack.c.bf16 %v2094_v22, %v2094_v22  ;;  %v2252_v37 = vld [vmem:[#allocation3 + $0xc4] sm:$0xff] }
  0xa1   : > { %5717 = vmatpush3.bf16.msra.mxu0 %v5918_v60  ;;  %v5104_v51 = vpack.c.bf16 %v1671_v12, %v1671_v12  ;;  %v2093_v20 = vld [vmem:[#allocation2 + $0x82] sm:$0xff]  ;;  %v2098_v47 = vld [vmem:[#allocation2 + $0xaa] sm:$0xff] }
  0xa2   : > { %5718 = vmatprep.subr.bf16.mxu0 %v5928_v63  ;;  %v786_v21 = vadd.f32 %v6488_v29, %v751_v10  ;;  %2077 = vst [vmem:[#allocation3 + $0x2ec] sm:$0xf] %v5150_v11  ;;  %1647 = vst [vmem:[#allocation3 + $0x328] sm:$0xf] %v5150_v11  ;;  %v787_v8 = vadd.f32 %v6488_v29, %v752_v16  ;;  %v5166_v24 = vpack.c.bf16 %v2093_v20, %v2093_v20  ;;  %v2247_v25 = vld [vmem:[#allocation3 + $0xa0] sm:$0xff]  ;;  %v2257_v52 = vld [vmem:[#allocation3 + $0xe8] sm:$0xff] }
  0xa3   : > { %5763 = vmatpush3.bf16.msra.mxu1 %v5918_v60  ;;  %1791 = vst [vmem:[#allocation3 + $0x32c] sm:$0xf] %v5104_v51  ;;  %2221 = vst [vmem:[#allocation3 + $0x2f0] sm:$0xf] %v5104_v51  ;;  %v5168_v29 = vpack.c.bf16 %v2095_v31, %v2095_v31  ;;  %v2097_v45 = vld [vmem:[#allocation2 + $0xa2] sm:$0xff]  ;;  %v5171_v60 = vpack.c.bf16 %v2098_v47, %v2098_v47  ;;  %v4778_v61 = vcombine.low %v2247_v25, %v2252_v37  ;;  %v2267_v37 = vld [vmem:[#allocation3 + $0x130] sm:$0xff] }
  0xa4   : > { %3779 = vmatmul.mubr.bf16.gmra.mxu0 %v4769_v6  ;;  %5756 = vmatprep.subr.bf16.mxu1 %v5928_v63  ;;  %927 = vst [vmem:[#allocation2 + $0xd0] sm:$0xff] %v786_v21  ;;  %v900_v38 = vsel %vm6527_vm13, %v787_v8, 0.0  ;;  %v5128_v42 = vpack.c.bf16 %v786_v21, %v786_v21  ;;  %2213 = vst [vmem:[#allocation3 + $0x1d0] sm:$0xf] %v5166_v24  ;;  %v5170_v55 = vpack.c.bf16 %v2097_v45, %v2097_v45  ;;  %v5926_v5 = vld [vmem:[#allocation3 + $0xf4] ss:$36 sps:$4 sm:$0xff]  }
  0xa5   : > { %3908 = vmatmul.mubr.bf16.gmra.mxu1 %v5917_v54  ;;  %3786 = vmatprep.mubr.bf16.mxu0 %v5919_v18  ;;  %928 = vst [vmem:[#allocation2 + $0xd8] sm:$0xff] %v900_v38  ;;  %v5129_v46 = vpack.c.bf16 %v900_v38, %v900_v38  ;;  %2214 = vst [vmem:[#allocation3 + $0x1f4] sm:$0xf] %v5167_v13  ;;  %v5172_v54 = vpack.c.bf16 %v2099_v62, %v2099_v62  ;;  %v5952_v6 = vld [vmem:[%s6898_s1 + $0x210] sm:$0xff]   ;;  %v5929_v24 = vld [vmem:[#allocation3 + $0xf0] ss:$36 sps:$4 sm:$0xff]  }
  0xa6   : > { %3915 = vmatprep.mubr.bf16.mxu1 %v5921_v17  ;;  %5719 = vmatpush3.bf16.msra.mxu0 %v5928_v63  ;;  %1935 = vst [vmem:[#allocation3 + $0x330] sm:$0xf] %v5128_v42  ;;  %2215 = vst [vmem:[#allocation3 + $0x218] sm:$0xf] %v5168_v29  ;;  %v5173_v18 = vpack.c.bf16 %v2100_v0, %v2100_v0  ;;  %v5930_v25 = vld [vmem:[#allocation3 + $0x134] ss:$36 sps:$4 sm:$0xff]  }
  0xa7   : > { %5720 = vmatprep.subr.bf16.mxu0 %v6523_v9  ;;  %5764 = vmatpush3.bf16.msra.mxu1 %v5928_v63  ;;  %1936 = vst [vmem:[#allocation3 + $0x354] sm:$0xf] %v5129_v46  ;;  %2217 = vst [vmem:[#allocation3 + $0x260] sm:$0xf] %v5170_v55  ;;  %v2262_v63 = vld [vmem:[#allocation3 + $0x10c] sm:$0xff]  ;;  %v5969_v35 = vld [vmem:[%s6898_s1 + $0x200] sm:$0xff]  }
  0xa8   : > { %5757 = vmatprep.subr.bf16.mxu1 %v6523_v9  ;;  %2218 = vst [vmem:[#allocation3 + $0x284] sm:$0xf] %v5171_v60  ;;  %2219 = vst [vmem:[#allocation3 + $0x2a8] sm:$0xf] %v5172_v54  ;;  %v4787_v21 = vcombine.low %v2257_v52, %v2262_v63  ;;  %v5932_v31 = vld [vmem:[#allocation3 + $0x13c] ss:$36 sps:$4 sm:$0xff]  }
  0xa9   : > { %2220 = vst [vmem:[#allocation3 + $0x2cc] sm:$0xf] %v5173_v18  ;;  %v2272_v38 = vld [vmem:[#allocation3 + $0x154] sm:$0xff]  ;;  %v5936_v44 = vld [vmem:[#allocation3 + $0x17c] ss:$36 sps:$4 sm:$0xff]   ;;  %v2292_v62 = vld [vmem:[#allocation3 + $0x1e4] sm:$0xff] }
  0xaa   : > { %5721 = vmatpush3.bf16.msra.mxu0 %v6523_v9  ;;  %v4796_v42 = vcombine.low %v2267_v37, %v2272_v38  ;;  %v5934_v29 = vld [vmem:[#allocation3 + $0x138] ss:$36 sps:$4 sm:$0xff]   ;;  %v5938_v45 = vld [vmem:[#allocation3 + $0x184] ss:$36 sps:$4 sm:$0xff]   ;;  %v5943_v60 = vld [vmem:[#allocation3 + $0x1cc] ss:$36 sps:$4 sm:$0xff]  }
  0xab   : > { %5722 = vmatprep.subr.bf16.mxu0 %v5945_v48  ;;  %5765 = vmatpush3.bf16.msra.mxu1 %v6523_v9  ;;  %v1958_v7 = vld [vmem:[#allocation2 + $0xc9] sm:$0xff]  ;;  %v2277_v46 = vld [vmem:[#allocation3 + $0x178] sm:$0xff]  ;;  %v5947_v54 = vld [vmem:[#allocation3 + $0x20c] ss:$36 sps:$4 sm:$0xff]  }
  0xac   : > { %3787 = vmatmul.mubr.bf16.gmra.mxu0 %v4778_v61  ;;  %5758 = vmatprep.subr.bf16.mxu1 %v5945_v48  ;;  %v1672_v10 = vld [vmem:[#allocation2 + $0xca] sm:$0xff]  ;;  %v5151_v11 = vpack.c.bf16 %v1958_v7, %v1958_v7  ;;  %v1960_v17 = vld [vmem:[#allocation2 + $0xd9] sm:$0xff] }
  0xad   : > { %3916 = vmatmul.mubr.bf16.gmra.mxu1 %v5923_v56  ;;  %3794 = vmatprep.mubr.bf16.mxu0 %v5924_v1  ;;  %v5105_v12 = vpack.c.bf16 %v1672_v10, %v1672_v10  ;;  %v1959_v16 = vld [vmem:[#allocation2 + $0xd1] sm:$0xff]  ;;  %v5153_v19 = vpack.c.bf16 %v1960_v17, %v1960_v17  ;;  %v5962_v9 = vld [vmem:[%s6898_s1 + $0x208] sm:$0xff]   ;;  %v2104_v8 = vld [vmem:[#allocation2 + $0xda] sm:$0xff] }
  0xae   : > { %3923 = vmatprep.mubr.bf16.mxu1 %v5926_v5  ;;  %5723 = vmatpush3.bf16.msra.mxu0 %v5945_v48  ;;  %v5152_v51 = vpack.c.bf16 %v1959_v16, %v1959_v16  ;;  %2078 = vst [vmem:[#allocation3 + $0x310] sm:$0xf] %v5151_v11  ;;  %1648 = vst [vmem:[#allocation3 + $0x34c] sm:$0xf] %v5151_v11  ;;  %v2103_v20 = vld [vmem:[#allocation2 + $0xd2] sm:$0xff]  ;;  %v5177_v13 = vpack.c.bf16 %v2104_v8, %v2104_v8  ;;  %v2282_v47 = vld [vmem:[#allocation3 + $0x19c] sm:$0xff] }
  0xaf   : > { %5724 = vmatprep.subr.bf16.mxu0 %v5952_v6  ;;  %5766 = vmatpush3.bf16.msra.mxu1 %v5945_v48  ;;  %1792 = vst [vmem:[#allocation3 + $0x350] sm:$0xf] %v5105_v12  ;;  %2222 = vst [vmem:[#allocation3 + $0x314] sm:$0xf] %v5105_v12  ;;  %v5176_v22 = vpack.c.bf16 %v2103_v20, %v2103_v20  ;;  %v4805_v55 = vcombine.low %v2277_v46, %v2282_v47  ;;  %v5940_v56 = vld [vmem:[#allocation3 + $0x180] ss:$36 sps:$4 sm:$0xff]  }
  0xb0   : > { %5759 = vmatprep.subr.bf16.mxu1 %v5952_v6  ;;  %2079 = vst [vmem:[#allocation3 + $0x334] sm:$0xf] %v5152_v51  ;;  %2080 = vst [vmem:[#allocation3 + $0x358] sm:$0xf] %v5153_v19  ;;  %v5941_v48 = vld [vmem:[#allocation3 + $0x1c4] ss:$36 sps:$4 sm:$0xff]  }
  0xb1   : > { %2223 = vst [vmem:[#allocation3 + $0x338] sm:$0xf] %v5176_v22  ;;  %2224 = vst [vmem:[#allocation3 + $0x35c] sm:$0xf] %v5177_v13  ;;  %v2287_v61 = vld [vmem:[#allocation3 + $0x1c0] sm:$0xff]  ;;  %v2297_v5 = vld [vmem:[#allocation3 + $0x208] sm:$0xff] }
  0xb2   : > { %5725 = vmatpush3.bf16.msra.mxu0 %v5952_v6  ;;  %v4814_v0 = vcombine.low %v2287_v61, %v2292_v62  ;;  %v5946_v1 = vld [vmem:[#allocation3 + $0x1c8] ss:$36 sps:$4 sm:$0xff]   ;;  %v5949_v18 = vld [vmem:[#allocation3 + $0x214] ss:$36 sps:$4 sm:$0xff]   ;;  %v5955_v10 = vld [vmem:[#allocation3 + $0x25c] ss:$36 sps:$4 sm:$0xff]  }
  0xb3   : > { %5726 = vmatprep.subr.bf16.mxu0 %v5962_v9  ;;  %5767 = vmatpush3.bf16.msra.mxu1 %v5952_v6  ;;  %v2302_v52 = vld [vmem:[#allocation3 + $0x22c] sm:$0xff]  ;;  %v5953_v7 = vld [vmem:[#allocation3 + $0x254] ss:$36 sps:$4 sm:$0xff]   ;;  %v5958_v51 = vld [vmem:[#allocation3 + $0x29c] ss:$36 sps:$4 sm:$0xff]  }
  0xb4   : > { %3795 = vmatmul.mubr.bf16.gmra.mxu0 %v4787_v21  ;;  %5760 = vmatprep.subr.bf16.mxu1 %v5962_v9  ;;  %v4823_v63 = vcombine.low %v2297_v5, %v2302_v52  ;;  %v5951_v6 = vld [vmem:[#allocation3 + $0x210] ss:$36 sps:$4 sm:$0xff]   ;;  %v5957_v17 = vld [vmem:[#allocation3 + $0x258] ss:$36 sps:$4 sm:$0xff]   ;;  %v5960_v19 = vld [vmem:[#allocation3 + $0x2a4] ss:$36 sps:$4 sm:$0xff]  }
  0xb5   : > { %3924 = vmatmul.mubr.bf16.gmra.mxu1 %v5929_v24  ;;  %3802 = vmatprep.mubr.bf16.mxu0 %v5930_v25  ;;  %v2307_v11 = vld [vmem:[#allocation3 + $0x250] sm:$0xff]  ;;  %v2322_v20 = vld [vmem:[#allocation3 + $0x2bc] sm:$0xff]  ;;  %v5964_v22 = vld [vmem:[#allocation3 + $0x2e4] ss:$36 sps:$4 sm:$0xff]  }
  0xb6   : > { %3931 = vmatprep.mubr.bf16.mxu1 %v5932_v31  ;;  %5727 = vmatpush3.bf16.msra.mxu0 %v5962_v9  ;;  %v2312_v12 = vld [vmem:[#allocation3 + $0x274] sm:$0xff]  ;;  %v5963_v8 = vld [vmem:[#allocation3 + $0x2a0] ss:$36 sps:$4 sm:$0xff]   ;;  %v5966_v24 = vld [vmem:[#allocation3 + $0x2ec] ss:$36 sps:$4 sm:$0xff]  }
  0xb7   : > { %5728 = vmatprep.subr.bf16.mxu0 %v5969_v35  ;;  %5768 = vmatpush3.bf16.msra.mxu1 %v5962_v9  ;;  %v4832_v16 = vcombine.low %v2307_v11, %v2312_v12  ;;  %v2317_v9 = vld [vmem:[#allocation3 + $0x298] sm:$0xff]  ;;  %v2327_v25 = vld [vmem:[#allocation3 + $0x2e0] sm:$0xff]  ;;  %v5970_v37 = vld [vmem:[#allocation3 + $0x32c] ss:$36 sps:$4 sm:$0xff]  }
  0xb8   : > { %5761 = vmatprep.subr.bf16.mxu1 %v5969_v35  ;;  %v4841_v21 = vcombine.low %v2317_v9, %v2322_v20  ;;  %v2332_v13 = vld [vmem:[#allocation3 + $0x304] sm:$0xff]  ;;  %v5972_v38 = vld [vmem:[#allocation3 + $0x334] ss:$36 sps:$4 sm:$0xff]  }
  0xb9   : > { %v4850_v31 = vcombine.low %v2327_v25, %v2332_v13  ;;  %v5975_v46 = vld [vmem:[#allocation3 + $0x20] ss:$36 sps:$4 sm:$0xff]   ;;  %v5976_v47 = vld [vmem:[#allocation3 + $0x1d0] ss:$36 sps:$4 sm:$0xff]  }
  0xba   : > { %5729 = vmatpush3.bf16.msra.mxu0 %v5969_v35  ;;  %v5983_v11 = vld [vmem:[#allocation3 + $0x140] ss:$36 sps:$4 sm:$0xff]  }
  0xbb   : > { %5769 = vmatpush3.bf16.msra.mxu1 %v5969_v35  ;;  %v5968_v35 = vld [vmem:[#allocation3 + $0x2e8] ss:$36 sps:$4 sm:$0xff]  }
  0xbc   : > { %3803 = vmatmul.mubr.bf16.gmra.mxu0 %v4796_v42  ;;  %v2337_v42 = vld [vmem:[#allocation3 + $0x328] sm:$0xff] }
  0xbd   : > { %3932 = vmatmul.mubr.bf16.gmra.mxu1 %v5934_v29  ;;  %3810 = vmatprep.mubr.bf16.mxu0 %v5936_v44  ;;  %v2342_v29 = vld [vmem:[#allocation3 + $0x34c] sm:$0xff] }
  0xbe   : > { %3939 = vmatprep.mubr.bf16.mxu1 %v5938_v45  ;;  %v4859_v44 = vcombine.low %v2337_v42, %v2342_v29  ;;  %v5974_v45 = vld [vmem:[#allocation3 + $0x330] ss:$36 sps:$4 sm:$0xff]   ;;  %v5986_v29 = vld [vmem:[#allocation3 + $0x338] ss:$36 sps:$4 sm:$0xff]  }
  0xc4   : > { %3811 = vmatmul.mubr.bf16.gmra.mxu0 %v4805_v55  ;;  %v5977_v55 = vld [vmem:[#allocation3 + $0x68] ss:$36 sps:$4 sm:$0xff]  }
  0xc5   : > { %3940 = vmatmul.mubr.bf16.gmra.mxu1 %v5940_v56  ;;  %3818 = vmatprep.mubr.bf16.mxu0 %v5941_v48  ;;  %v5978_v56 = vld [vmem:[#allocation3 + $0x218] ss:$36 sps:$4 sm:$0xff]   ;;  %v5979_v48 = vld [vmem:[#allocation3 + $0xb0] ss:$36 sps:$4 sm:$0xff]  }
  0xc6   : > { %3947 = vmatprep.mubr.bf16.mxu1 %v5943_v60  ;;  %v5980_v60 = vld [vmem:[#allocation3 + $0x260] ss:$36 sps:$4 sm:$0xff]  }
  0xcc   : > { %3819 = vmatmul.mubr.bf16.gmra.mxu0 %v4814_v0  ;;  %v6554_v0 = vld [vmem:[%s6899_s2] ss:$0 sm:$0xff] }
  0xcd   : > { %3948 = vmatmul.mubr.bf16.gmra.mxu1 %v5946_v1  ;;  %3826 = vmatprep.mubr.bf16.mxu0 %v5947_v54 }
  0xce   : > { %3955 = vmatprep.mubr.bf16.mxu1 %v5949_v18 }
  0xd4   : > { %3827 = vmatmul.mubr.bf16.gmra.mxu0 %v4823_v63  ;;  %v5981_v63 = vld [vmem:[#allocation3 + $0xf8] ss:$36 sps:$4 sm:$0xff]  }
  0xd5   : > { %3956 = vmatmul.mubr.bf16.gmra.mxu1 %v5951_v6  ;;  %3834 = vmatprep.mubr.bf16.mxu0 %v5953_v7 }
  0xd6   : > { %3963 = vmatprep.mubr.bf16.mxu1 %v5955_v10  ;;  %v5982_v10 = vld [vmem:[#allocation3 + $0x2a8] ss:$36 sps:$4 sm:$0xff]  }
  0xdc   : > { %3835 = vmatmul.mubr.bf16.gmra.mxu0 %v4832_v16  ;;  %v5984_v16 = vld [vmem:[#allocation3 + $0x2f0] ss:$36 sps:$4 sm:$0xff]  }
  0xdd   : > { %3964 = vmatmul.mubr.bf16.gmra.mxu1 %v5957_v17  ;;  %3842 = vmatprep.mubr.bf16.mxu0 %v5958_v51 }
  0xde   : > { %3971 = vmatprep.mubr.bf16.mxu1 %v5960_v19 }
  0xe4   : > { %3843 = vmatmul.mubr.bf16.gmra.mxu0 %v4841_v21 }
  0xe5   : > { %3972 = vmatmul.mubr.bf16.gmra.mxu1 %v5963_v8  ;;  %3850 = vmatprep.mubr.bf16.mxu0 %v5964_v22 }
  0xe6   : > { %3979 = vmatprep.mubr.bf16.mxu1 %v5966_v24 }
  0xec   : > { %3851 = vmatmul.mubr.bf16.gmra.mxu0 %v4850_v31 }
  0xed   : > { %3980 = vmatmul.mubr.bf16.gmra.mxu1 %v5968_v35  ;;  %3858 = vmatprep.mubr.bf16.mxu0 %v5970_v37  ;;  %v5985_v37 = vld [vmem:[#allocation3 + $0x188] ss:$36 sps:$4 sm:$0xff]  }
  0xee   : > { %3987 = vmatprep.mubr.bf16.mxu1 %v5972_v38 }
  0xf4   : > { %3859 = vmatmul.mubr.bf16.gmra.mxu0 %v4859_v44 }
  0xf5   : > { %3988 = vmatmul.mubr.bf16.gmra.mxu1 %v5974_v45  ;;  %5730 = vmatprep.mubr.bf16.mxu0 %v5975_v46 }
  0xf6   : > { %5742 = vmatprep.mubr.bf16.mxu1 %v5976_v47 }
  0xf9   : > { %v5358_v61 = vpop.f32.mrf.mxu0 }
  0xfb   : > { %v5446_v62 = vpop.f32.mrf.mxu1  ;;  %v5359_v1 = vpop.f32.mrf.mxu0 }
  0xfc   : > { %5731 = vmatmul.mubr.bf16.vlgmr.msra.gmra.mxu0 %v5977_v55  ;;  %v5360_v54 = vadd.f32 %v5359_v1, %v5358_v61 }
  0xfd   : > { %5743 = vmatmul.mubr.bf16.vlgmr.msra.gmra.mxu1 %v5978_v56  ;;  %5734 = vmatprep.mubr.bf16.mxu0 %v5979_v48  ;;  %v5447_v18 = vpop.f32.mrf.mxu1  ;;  %v5361_v52 = vpop.f32.mrf.mxu0 }
  0xfe   : > { %5746 = vmatprep.mubr.bf16.mxu1 %v5980_v60  ;;  %v5448_v5 = vadd.f32 %v5447_v18, %v5446_v62  ;;  %v3515_v6 = vadd.f32 %v5360_v54, %v6554_v0 }
  0xff   : > { %v5449_v7 = vpop.f32.mrf.mxu1  ;;  %v5362_v12 = vpop.f32.mrf.mxu0 }
 0x100   : > { %v6557_v17 = vadd.f32 %v5448_v5, %v3515_v6  ;;  %v5363_v51 = vadd.f32 %v5362_v12, %v5361_v52 }
 0x101   : > { %v5450_v19 = vpop.f32.mrf.mxu1  ;;  %v5364_v20 = vpop.f32.mrf.mxu0 }
 0x102   : > { %v5451_v9 = vadd.f32 %v5450_v19, %v5449_v7  ;;  %v3518_v21 = vadd.f32 %v5363_v51, %v6554_v0 }
 0x103   : > { %v5452_v8 = vpop.f32.mrf.mxu1  ;;  %v5365_v22 = vpop.f32.mrf.mxu0 }
 0x104   : > { %5735 = vmatmul.mubr.bf16.gmra.mxu0 %v5981_v63  ;;  %v6560_v24 = vadd.f32 %v5451_v9, %v3518_v21  ;;  %v5366_v25 = vadd.f32 %v5365_v22, %v5364_v20 }
 0x105   : > { %5747 = vmatmul.mubr.bf16.gmra.mxu1 %v5982_v10  ;;  %5738 = vmatprep.mubr.bf16.mxu0 %v5983_v11  ;;  %v5453_v13 = vpop.f32.mrf.mxu1  ;;  %v5367_v35 = vpop.f32.mrf.mxu0 }
 0x106   : > { %5750 = vmatprep.mubr.bf16.mxu1 %v5984_v16  ;;  %v5454_v31 = vadd.f32 %v5453_v13, %v5452_v8  ;;  %v3523_v38 = vadd.f32 %v5366_v25, %v6554_v0 }
 0x107   : > { %v5455_v42 = vpop.f32.mrf.mxu1  ;;  %v5368_v44 = vpop.f32.mrf.mxu0 }
 0x108   : > { %v6563_v45 = vadd.f32 %v5454_v31, %v3523_v38  ;;  %v5369_v46 = vadd.f32 %v5368_v44, %v5367_v35 }
 0x109   : > { %v5456_v47 = vpop.f32.mrf.mxu1  ;;  %v5370_v56 = vpop.f32.mrf.mxu0 }
 0x10a   : > { %v5457_v55 = vadd.f32 %v5456_v47, %v5455_v42  ;;  %v3526_v48 = vadd.f32 %v5369_v46, %v6554_v0 }
 0x10b   : > { %v5458_v60 = vpop.f32.mrf.mxu1  ;;  %v5371_v61 = vpop.f32.mrf.mxu0 }
 0x10c   : > { %5739 = vmatmul.mubr.bf16.gmra.mxu0 %v5985_v37  ;;  %v6566_v62 = vadd.f32 %v5457_v55, %v3526_v48  ;;  %v5372_v1 = vadd.f32 %v5371_v61, %v5370_v56 }
 0x10d   : > { %5751 = vmatmul.mubr.bf16.gmra.mxu1 %v5986_v29  ;;  %v5459_v54 = vpop.f32.mrf.mxu1  ;;  %v5373_v5 = vpop.f32.mrf.mxu0 }
 0x10e   : > { %v5460_v18 = vadd.f32 %v5459_v54, %v5458_v60  ;;  %v3531_v52 = vadd.f32 %v5372_v1, %v6554_v0 }
 0x10f   : > { %v5461_v63 = vpop.f32.mrf.mxu1  ;;  %v5374_v6 = vpop.f32.mrf.mxu0 }
 0x110   : > { %v6569_v7 = vadd.f32 %v5460_v18, %v3531_v52  ;;  %v5375_v10 = vadd.f32 %v5374_v6, %v5373_v5 }
 0x111   : > { %v5462_v11 = vpop.f32.mrf.mxu1  ;;  %v5376_v16 = vpop.f32.mrf.mxu0 }
 0x112   : > { %v5463_v12 = vadd.f32 %v5462_v11, %v5461_v63  ;;  %v3534_v51 = vadd.f32 %v5375_v10, %v6554_v0 }
 0x113   : > { %v5464_v19 = vpop.f32.mrf.mxu1  ;;  %v5377_v9 = vpop.f32.mrf.mxu0 }
 0x114   : > { %v6572_v20 = vadd.f32 %v5463_v12, %v3534_v51  ;;  %v5378_v21 = vadd.f32 %v5377_v9, %v5376_v16 }
 0x115   : > { %v5465_v8 = vpop.f32.mrf.mxu1  ;;  %v5379_v25 = vpop.f32.mrf.mxu0 }
 0x116   : > { %v5466_v22 = vadd.f32 %v5465_v8, %v5464_v19  ;;  %v3539_v13 = vadd.f32 %v5378_v21, %v6554_v0 }
 0x117   : > { %v5467_v31 = vpop.f32.mrf.mxu1  ;;  %v5380_v35 = vpop.f32.mrf.mxu0 }
 0x118   : > { %v6575_v37 = vadd.f32 %v5466_v22, %v3539_v13  ;;  %v5381_v38 = vadd.f32 %v5380_v35, %v5379_v25 }
 0x119   : > { %v5468_v42 = vpop.f32.mrf.mxu1  ;;  %v5382_v44 = vpop.f32.mrf.mxu0 }
 0x11a   : > { %v5469_v29 = vadd.f32 %v5468_v42, %v5467_v31  ;;  %v3542_v46 = vadd.f32 %v5381_v38, %v6554_v0 }
 0x11b   : > { %v5470_v47 = vpop.f32.mrf.mxu1  ;;  %v5383_v55 = vpop.f32.mrf.mxu0 }
 0x11c   : > { %v6578_v56 = vadd.f32 %v5469_v29, %v3542_v46  ;;  %v5384_v48 = vadd.f32 %v5383_v55, %v5382_v44 }
 0x11d   : > { %v5471_v60 = vpop.f32.mrf.mxu1  ;;  %v5385_v1 = vpop.f32.mrf.mxu0 }
 0x11e   : > { %v5472_v61 = vadd.f32 %v5471_v60, %v5470_v47  ;;  %v3547_v54 = vadd.f32 %v5384_v48, %v6554_v0 }
 0x11f   : > { %v5473_v18 = vpop.f32.mrf.mxu1  ;;  %v5386_v5 = vpop.f32.mrf.mxu0 }
 0x120   : > { %v6581_v52 = vadd.f32 %v5472_v61, %v3547_v54  ;;  %v5387_v63 = vadd.f32 %v5386_v5, %v5385_v1 }
 0x121   : > { %v5474_v6 = vpop.f32.mrf.mxu1  ;;  %v5388_v11 = vpop.f32.mrf.mxu0 }
 0x122   : > { %v5475_v10 = vadd.f32 %v5474_v6, %v5473_v18  ;;  %v3550_v12 = vadd.f32 %v5387_v63, %v6554_v0 }
 0x123   : > { %v5476_v16 = vpop.f32.mrf.mxu1  ;;  %v5389_v51 = vpop.f32.mrf.mxu0 }
 0x124   : > { %v6584_v19 = vadd.f32 %v5475_v10, %v3550_v12  ;;  %v5390_v9 = vadd.f32 %v5389_v51, %v5388_v11 }
 0x125   : > { %v5477_v21 = vpop.f32.mrf.mxu1  ;;  %v5391_v22 = vpop.f32.mrf.mxu0 }
 0x126   : > { %v5478_v8 = vadd.f32 %v5477_v21, %v5476_v16  ;;  %v3555_v25 = vadd.f32 %v5390_v9, %v6554_v0 }
 0x127   : > { %v5479_v13 = vpop.f32.mrf.mxu1  ;;  %v5392_v31 = vpop.f32.mrf.mxu0 }
 0x128   : > { %v6587_v35 = vadd.f32 %v5478_v8, %v3555_v25  ;;  %v5393_v38 = vadd.f32 %v5392_v31, %v5391_v22 }
 0x129   : > { %v5480_v42 = vpop.f32.mrf.mxu1  ;;  %v5394_v44 = vpop.f32.mrf.mxu0 }
 0x12a   : > { %v5481_v29 = vadd.f32 %v5480_v42, %v5479_v13  ;;  %v3558_v46 = vadd.f32 %v5393_v38, %v6554_v0 }
 0x12b   : > { %v5482_v47 = vpop.f32.mrf.mxu1  ;;  %v5395_v55 = vpop.f32.mrf.mxu0 }
 0x12c   : > { %v6590_v48 = vadd.f32 %v5481_v29, %v3558_v46  ;;  %v5396_v60 = vadd.f32 %v5395_v55, %v5394_v44 }
 0x12d   : > { %v5483_v61 = vpop.f32.mrf.mxu1  ;;  %v5397_v54 = vpop.f32.mrf.mxu0 }
 0x12e   : > { %v5484_v1 = vadd.f32 %v5483_v61, %v5482_v47  ;;  %v3563_v18 = vadd.f32 %v5396_v60, %v6554_v0 }
 0x12f   : > { %v5485_v5 = vpop.f32.mrf.mxu1  ;;  %v5398_v63 = vpop.f32.mrf.mxu0 }
 0x130   : > { %v6593_v6 = vadd.f32 %v5484_v1, %v3563_v18  ;;  %v5399_v10 = vadd.f32 %v5398_v63, %v5397_v54 }
 0x131   : > { %v5486_v11 = vpop.f32.mrf.mxu1  ;;  %v5400_v16 = vpop.f32.mrf.mxu0 }
 0x132   : > { %v5487_v12 = vadd.f32 %v5486_v11, %v5485_v5  ;;  %v3566_v51 = vadd.f32 %v5399_v10, %v6554_v0 }
 0x133   : > { %v5488_v9 = vpop.f32.mrf.mxu1  ;;  %v5401_v21 = vpop.f32.mrf.mxu0 }
 0x134   : > { %v6596_v8 = vadd.f32 %v5487_v12, %v3566_v51  ;;  %v5402_v22 = vadd.f32 %v5401_v21, %v5400_v16 }
 0x135   : > { %v5489_v25 = vpop.f32.mrf.mxu1  ;;  %v5403_v31 = vpop.f32.mrf.mxu0 }
 0x136   : > { %v5490_v13 = vadd.f32 %v5489_v25, %v5488_v9  ;;  %v3571_v38 = vadd.f32 %v5402_v22, %v6554_v0 }
 0x137   : > { %v5491_v42 = vpop.f32.mrf.mxu1  ;;  %v5404_v29 = vpop.f32.mrf.mxu0 }
 0x138   : > { %v6599_v44 = vadd.f32 %v5490_v13, %v3571_v38  ;;  %v5405_v46 = vadd.f32 %v5404_v29, %v5403_v31 }
 0x139   : > { %v5492_v47 = vpop.f32.mrf.mxu1 }
 0x13a   : > { %v5493_v55 = vadd.f32 %v5492_v47, %v5491_v42  ;;  %v3574_v61 = vadd.f32 %v5405_v46, %v6554_v0 }
 0x13b   : > { %v5406_v60 = vpop.f32.mrf.mxu0  ;;  %v5494_v1 = vpop.f32.mrf.mxu1 }
 0x13c   : > { %v6602_v18 = vadd.f32 %v5493_v55, %v3574_v61 }
 0x13d   : > { %v5407_v54 = vpop.f32.mrf.mxu0  ;;  %v5495_v63 = vpop.f32.mrf.mxu1 }
 0x13e   : > { %v5408_v5 = vadd.f32 %v5407_v54, %v5406_v60  ;;  %v5496_v10 = vadd.f32 %v5495_v63, %v5494_v1 }
 0x13f   : > { %v5409_v11 = vpop.f32.mrf.mxu0  ;;  %v5497_v16 = vpop.f32.mrf.mxu1 }
 0x140   : > { %v3579_v12 = vadd.f32 %v5408_v5, %v6554_v0 }
 0x141   : > { %v5410_v51 = vpop.f32.mrf.mxu0  ;;  %v5498_v22 = vpop.f32.mrf.mxu1 }
 0x142   : > { %v6605_v9 = vadd.f32 %v5496_v10, %v3579_v12  ;;  %v5411_v21 = vadd.f32 %v5410_v51, %v5409_v11  ;;  %v5499_v25 = vadd.f32 %v5498_v22, %v5497_v16 }
 0x143   : > { %v5412_v13 = vpop.f32.mrf.mxu0  ;;  %v5500_v38 = vpop.f32.mrf.mxu1 }
 0x144   : > { %v3582_v31 = vadd.f32 %v5411_v21, %v6554_v0 }
 0x145   : > { %v5413_v42 = vpop.f32.mrf.mxu0  ;;  %v5501_v47 = vpop.f32.mrf.mxu1 }
 0x146   : > { %v6608_v29 = vadd.f32 %v5499_v25, %v3582_v31  ;;  %v5414_v46 = vadd.f32 %v5413_v42, %v5412_v13  ;;  %v5502_v55 = vadd.f32 %v5501_v47, %v5500_v38 }
 0x147   : > { %v5415_v60 = vpop.f32.mrf.mxu0  ;;  %v5503_v1 = vpop.f32.mrf.mxu1 }
 0x148   : > { %v3587_v61 = vadd.f32 %v5414_v46, %v6554_v0 }
 0x149   : > { %v5416_v54 = vpop.f32.mrf.mxu0  ;;  %v5504_v10 = vpop.f32.mrf.mxu1 }
 0x14a   : > { %v6611_v5 = vadd.f32 %v5502_v55, %v3587_v61  ;;  %v5417_v63 = vadd.f32 %v5416_v54, %v5415_v60  ;;  %v5505_v11 = vadd.f32 %v5504_v10, %v5503_v1 }
 0x14b   : > { %v5506_v51 = vpop.f32.mrf.mxu1 }
 0x14c   : > { %v5418_v12 = vpop.f32.mrf.mxu0  ;;  %v3590_v16 = vadd.f32 %v5417_v63, %v6554_v0 }
 0x14d   : > { %v5507_v13 = vpop.f32.mrf.mxu1 }
 0x14e   : > { %v5419_v21 = vpop.f32.mrf.mxu0  ;;  %v6614_v22 = vadd.f32 %v5505_v11, %v3590_v16  ;;  %v5508_v31 = vadd.f32 %v5507_v13, %v5506_v51 }
 0x14f   : > { %v5420_v25 = vadd.f32 %v5419_v21, %v5418_v12  ;;  %v5509_v46 = vpop.f32.mrf.mxu1 }
 0x150   : > { %v5421_v38 = vpop.f32.mrf.mxu0 }
 0x151   : > { %v3595_v42 = vadd.f32 %v5420_v25, %v6554_v0  ;;  %v5510_v61 = vpop.f32.mrf.mxu1 }
 0x152   : > { %v5422_v47 = vpop.f32.mrf.mxu0  ;;  %v5511_v1 = vadd.f32 %v5510_v61, %v5509_v46 }
 0x153   : > { %v6617_v55 = vadd.f32 %v5508_v31, %v3595_v42  ;;  %v5423_v60 = vadd.f32 %v5422_v47, %v5421_v38 }
 0x154   : > { %v5424_v54 = vpop.f32.mrf.mxu0 }
 0x155   : > { %6961 = vst [vmem:[#allocation13_spill] sm:$0xff] %v6617_v55  ;;  %v3598_v63 = vadd.f32 %v5423_v60, %v6554_v0  ;;  %v5512_v10 = vpop.f32.mrf.mxu1 }
 0x156   : > { %v5425_v27 = vpop.f32.mrf.mxu0 }
 0x157   : > { %v6620_v11 = vadd.f32 %v5511_v1, %v3598_v63  ;;  %v5426_v12 = vadd.f32 %v5425_v27, %v5424_v54  ;;  %v5513_v16 = vpop.f32.mrf.mxu1 }
 0x158   : > { %v5514_v51 = vadd.f32 %v5513_v16, %v5512_v10  ;;  %v5427_v21 = vpop.f32.mrf.mxu0 }
 0x159   : > { %6962 = vst [vmem:[#allocation14_spill] sm:$0xff] %v6620_v11  ;;  %v3603_v25 = vadd.f32 %v5426_v12, %v6554_v0  ;;  %v5515_v13 = vpop.f32.mrf.mxu1 }
 0x15a   : > { %v5428_v50 = vpop.f32.mrf.mxu0 }
 0x15b   : > { %v6623_v31 = vadd.f32 %v5514_v51, %v3603_v25  ;;  %v5429_v38 = vadd.f32 %v5428_v50, %v5427_v21  ;;  %v5516_v42 = vpop.f32.mrf.mxu1 }
 0x15c   : > { %v5517_v46 = vadd.f32 %v5516_v42, %v5515_v13  ;;  %v5534_v47 = vpop.f32.mrf.mxu0 }
 0x15d   : > { %6963 = vst [vmem:[#allocation15_spill] sm:$0xff] %v6623_v31  ;;  %v3606_v60 = vadd.f32 %v5429_v38, %v6554_v0  ;;  %v5622_v61 = vpop.f32.mrf.mxu1 }
 0x15e   : > { %v5535_v14 = vpop.f32.mrf.mxu0 }
 0x15f   : > { %v6626_v1 = vadd.f32 %v5517_v46, %v3606_v60  ;;  %v5536_v27 = vadd.f32 %v5535_v14, %v5534_v47  ;;  %v5623_v54 = vpop.f32.mrf.mxu1 }
 0x160   : > { %v5624_v63 = vadd.f32 %v5623_v54, %v5622_v61  ;;  %v5537_v10 = vpop.f32.mrf.mxu0 }
 0x161   : > { %6964 = vst [vmem:[#allocation16_spill] sm:$0xff] %v6626_v1  ;;  %v3773_v12 = vadd.f32 %v5536_v27, %v6557_v17  ;;  %v5625_v16 = vpop.f32.mrf.mxu1 }
 0x162   : > { %v5538_v58 = vpop.f32.mrf.mxu0 }
 0x163   : > { %v5539_v51 = vadd.f32 %v5538_v58, %v5537_v10  ;;  %v5626_v25 = vpop.f32.mrf.mxu1  ;;  %v6629_v50 = vadd.f32 %v5624_v63, %v3773_v12 }
 0x164   : > { %v5627_v21 = vadd.f32 %v5626_v25, %v5625_v16  ;;  %v5540_v13 = vpop.f32.mrf.mxu0 }
 0x165   : > { %6965 = vst [vmem:[#allocation17_spill] sm:$0xff] %v6629_v50  ;;  %v3776_v0 = vadd.f32 %v5539_v51, %v6560_v24  ;;  %v5628_v38 = vpop.f32.mrf.mxu1 }
 0x166   : > { %v5541_v42 = vpop.f32.mrf.mxu0 }
 0x167   : > { %v5542_v46 = vadd.f32 %v5541_v42, %v5540_v13  ;;  %v5629_v60 = vpop.f32.mrf.mxu1  ;;  %v6632_v14 = vadd.f32 %v5627_v21, %v3776_v0 }
 0x168   : > { %v5630_v47 = vadd.f32 %v5629_v60, %v5628_v38  ;;  %v5543_v61 = vpop.f32.mrf.mxu0 }
 0x169   : > { %6966 = vst [vmem:[#allocation18_spill] sm:$0xff] %v6632_v14  ;;  %v3781_v17 = vadd.f32 %v5542_v46, %v6563_v45  ;;  %v5631_v27 = vpop.f32.mrf.mxu1 }
 0x16a   : > { %v5544_v54 = vpop.f32.mrf.mxu0 }
 0x16b   : > { %v5545_v58 = vadd.f32 %v5544_v54, %v5543_v61  ;;  %v5632_v10 = vpop.f32.mrf.mxu1  ;;  %v6635_v63 = vadd.f32 %v5630_v47, %v3781_v17 }
 0x16c   : > { %v5633_v12 = vadd.f32 %v5632_v10, %v5631_v27  ;;  %v5546_v16 = vpop.f32.mrf.mxu0 }
 0x16d   : > { %6967 = vst [vmem:[#allocation19_spill] sm:$0xff] %v6635_v63  ;;  %v3784_v24 = vadd.f32 %v5545_v58, %v6566_v62  ;;  %v5634_v51 = vpop.f32.mrf.mxu1 }
 0x16e   : > { %v5547_v25 = vpop.f32.mrf.mxu0 }
 0x16f   : > { %v5548_v13 = vadd.f32 %v5547_v25, %v5546_v16  ;;  %v5635_v42 = vpop.f32.mrf.mxu1  ;;  %v6638_v21 = vadd.f32 %v5633_v12, %v3784_v24 }
 0x170   : > { %v5636_v0 = vadd.f32 %v5635_v42, %v5634_v51  ;;  %v5549_v38 = vpop.f32.mrf.mxu0 }
 0x171   : > { %6968 = vst [vmem:[#allocation20_spill] sm:$0xff] %v6638_v21  ;;  %v3789_v45 = vadd.f32 %v5548_v13, %v6569_v7  ;;  %v5637_v46 = vpop.f32.mrf.mxu1 }
 0x172   : > { %v5550_v60 = vpop.f32.mrf.mxu0 }
 0x173   : > { %v5551_v61 = vadd.f32 %v5550_v60, %v5549_v38  ;;  %v5638_v54 = vpop.f32.mrf.mxu1  ;;  %v6641_v47 = vadd.f32 %v5636_v0, %v3789_v45 }
 0x174   : > { %v5639_v17 = vadd.f32 %v5638_v54, %v5637_v46  ;;  %v5552_v27 = vpop.f32.mrf.mxu0 }
 0x175   : > { %6969 = vst [vmem:[#allocation21_spill] sm:$0xff] %v6641_v47  ;;  %v3792_v62 = vadd.f32 %v5551_v61, %v6572_v20  ;;  %v5640_v58 = vpop.f32.mrf.mxu1 }
 0x176   : > { %v5553_v10 = vpop.f32.mrf.mxu0 }
 0x177   : > { %v5554_v16 = vadd.f32 %v5553_v10, %v5552_v27  ;;  %v5641_v25 = vpop.f32.mrf.mxu1  ;;  %v6644_v12 = vadd.f32 %v5639_v17, %v3792_v62 }
 0x178   : > { %v5642_v24 = vadd.f32 %v5641_v25, %v5640_v58  ;;  %v5555_v51 = vpop.f32.mrf.mxu0 }
 0x179   : > { %6970 = vst [vmem:[#allocation22_spill] sm:$0xff] %v6644_v12  ;;  %v3797_v7 = vadd.f32 %v5554_v16, %v6575_v37  ;;  %v5643_v13 = vpop.f32.mrf.mxu1 }
 0x17a   : > { %v5556_v42 = vpop.f32.mrf.mxu0 }
 0x17b   : > { %v5557_v38 = vadd.f32 %v5556_v42, %v5555_v51  ;;  %v5644_v60 = vpop.f32.mrf.mxu1  ;;  %v6647_v0 = vadd.f32 %v5642_v24, %v3797_v7 }
 0x17c   : > { %v5645_v45 = vadd.f32 %v5644_v60, %v5643_v13  ;;  %v5558_v46 = vpop.f32.mrf.mxu0 }
 0x17d   : > { %6971 = vst [vmem:[#allocation23_spill] sm:$0xff] %v6647_v0  ;;  %v3800_v20 = vadd.f32 %v5557_v38, %v6578_v56  ;;  %v5646_v61 = vpop.f32.mrf.mxu1 }
 0x17e   : > { %v5559_v54 = vpop.f32.mrf.mxu0 }
 0x17f   : > { %v5560_v27 = vadd.f32 %v5559_v54, %v5558_v46  ;;  %v5647_v10 = vpop.f32.mrf.mxu1  ;;  %v6650_v17 = vadd.f32 %v5645_v45, %v3800_v20 }
 0x180   : > { %v5648_v62 = vadd.f32 %v5647_v10, %v5646_v61  ;;  %v5561_v58 = vpop.f32.mrf.mxu0 }
 0x181   : > { %6972 = vst [vmem:[#allocation24_spill] sm:$0xff] %v6650_v17  ;;  %v3805_v37 = vadd.f32 %v5560_v27, %v6581_v52  ;;  %v5649_v16 = vpop.f32.mrf.mxu1 }
 0x182   : > { %v5562_v25 = vpop.f32.mrf.mxu0 }
 0x183   : > { %v5563_v51 = vadd.f32 %v5562_v25, %v5561_v58  ;;  %v5650_v42 = vpop.f32.mrf.mxu1  ;;  %v6653_v24 = vadd.f32 %v5648_v62, %v3805_v37 }
 0x184   : > { %v5651_v7 = vadd.f32 %v5650_v42, %v5649_v16  ;;  %v5564_v13 = vpop.f32.mrf.mxu0 }
 0x185   : > { %6973 = vst [vmem:[#allocation25_spill] sm:$0xff] %v6653_v24  ;;  %v3808_v56 = vadd.f32 %v5563_v51, %v6584_v19  ;;  %v5652_v38 = vpop.f32.mrf.mxu1 }
 0x186   : > { %v5565_v60 = vpop.f32.mrf.mxu0 }
 0x187   : > { %v5566_v46 = vadd.f32 %v5565_v60, %v5564_v13  ;;  %v5653_v54 = vpop.f32.mrf.mxu1  ;;  %v6656_v45 = vadd.f32 %v5651_v7, %v3808_v56 }
 0x188   : > { %v5654_v20 = vadd.f32 %v5653_v54, %v5652_v38  ;;  %v5567_v61 = vpop.f32.mrf.mxu0 }
 0x189   : > { %6974 = vst [vmem:[#allocation26_spill] sm:$0xff] %v6656_v45  ;;  %v3813_v52 = vadd.f32 %v5566_v46, %v6587_v35  ;;  %v5655_v27 = vpop.f32.mrf.mxu1 }
 0x18a   : > { %v5568_v10 = vpop.f32.mrf.mxu0 }
 0x18b   : > { %v5569_v58 = vadd.f32 %v5568_v10, %v5567_v61  ;;  %v5656_v25 = vpop.f32.mrf.mxu1  ;;  %v6659_v62 = vadd.f32 %v5654_v20, %v3813_v52 }
 0x18c   : > { %v5657_v37 = vadd.f32 %v5656_v25, %v5655_v27  ;;  %v5570_v16 = vpop.f32.mrf.mxu0 }
 0x18d   : > { %6975 = vst [vmem:[#allocation27_spill] sm:$0xff] %v6659_v62  ;;  %v3816_v19 = vadd.f32 %v5569_v58, %v6590_v48  ;;  %v5658_v51 = vpop.f32.mrf.mxu1 }
 0x18e   : > { %v5571_v42 = vpop.f32.mrf.mxu0 }
 0x18f   : > { %v5659_v13 = vpop.f32.mrf.mxu1  ;;  %v6662_v60 = vadd.f32 %v5657_v37, %v3816_v19  ;;  %v5572_v47 = vadd.f32 %v5571_v42, %v5570_v16 }
 0x190   : > { %v5573_v7 = vpop.f32.mrf.mxu0 }
 0x191   : > { %6976 = vst [vmem:[#allocation28_spill] sm:$0xff] %v6662_v60  ;;  %v5661_v56 = vpop.f32.mrf.mxu1 }
 0x192   : > { %v5574_v38 = vpop.f32.mrf.mxu0 }
 0x193   : > { %v5662_v54 = vpop.f32.mrf.mxu1  ;;  %v5575_v55 = vadd.f32 %v5574_v38, %v5573_v7 }
 0x194   : > { %v5576_v35 = vpop.f32.mrf.mxu0  ;;  %v5663_v2 = vadd.f32 %v5662_v54, %v5661_v56 }
 0x195   : > { %v5664_v46 = vpop.f32.mrf.mxu1 }
 0x196   : > { %v5577_v33 = vpop.f32.mrf.mxu0 }
 0x197   : > { %v5665_v61 = vpop.f32.mrf.mxu1  ;;  %v5578_v14 = vadd.f32 %v5577_v33, %v5576_v35 }
 0x198   : > { %v5579_v10 = vpop.f32.mrf.mxu0  ;;  %v5666_v33 = vadd.f32 %v5665_v61, %v5664_v46  ;;  %v7001_v61 = vld [vmem:[#allocation19_spill] sm:$0xff] }
 0x199   : > { %v5667_v20 = vpop.f32.mrf.mxu1  ;;  %v3829_v42 = vadd.f32 %v5578_v14, %v6599_v44 }
 0x19a   : > { %v5580_v52 = vpop.f32.mrf.mxu0 }
 0x19b   : > { %v5668_v27 = vpop.f32.mrf.mxu1  ;;  %v5581_v28 = vadd.f32 %v5580_v52, %v5579_v10 }
 0x19c   : > { %v5582_v25 = vpop.f32.mrf.mxu0  ;;  %v5669_v38 = vadd.f32 %v5668_v27, %v5667_v20 }
 0x19d   : > { %v5670_v36 = vpop.f32.mrf.mxu1  ;;  %v3832_v7 = vadd.f32 %v5581_v28, %v6602_v18  ;;  %v6982_v28 = vand.u32 15, %v6128_v26 }
 0x19e   : > { %v5583_v48 = vpop.f32.mrf.mxu0 }
 0x19f   : > { %v5671_v58 = vpop.f32.mrf.mxu1  ;;  %v5584_v63 = vadd.f32 %v5583_v48, %v5582_v25  ;;  %vm6690_vm14 = vcmp.lt.s32.totalorder %v6982_v28, 12  ;;  %v7002_v25 = vld [vmem:[#allocation10_spill] sm:$0xff] }
 0x1a0   : > { %v5585_v57 = vpop.f32.mrf.mxu0  ;;  %v7003_v48 = vand.u32 15, %v7002_v25  ;;  %v7027_v25 = vld [vmem:[#allocation12_spill] sm:$0xff] }
 0x1a1   : > { %v5673_v41 = vpop.f32.mrf.mxu1 }
 0x1a2   : > { %v5586_v37 = vpop.f32.mrf.mxu0  ;;  %vm6730_vm3 = vcmp.lt.s32.totalorder %v7003_v48, 12  ;;  %v7028_v48 = vand.u32 15, %v7027_v25 }
 0x1a3   : > { %v5674_v19 = vpop.f32.mrf.mxu1  ;;  %v5587_v21 = vadd.f32 %v5586_v37, %v5585_v57 }
 0x1a4   : > { %v5588_v40 = vpop.f32.mrf.mxu0  ;;  %vm6797_vm7 = vcmp.lt.s32.totalorder %v7028_v48, 12  ;;  %v7045_v48 = vld [vmem:[#allocation28_spill] sm:$0xff] }
 0x1a5   : > { %v5676_v30 = vpop.f32.mrf.mxu1  ;;  %v3840_v57 = vadd.f32 %v5587_v21, %v6608_v29 }
 0x1a6   : > { %v5589_v59 = vpop.f32.mrf.mxu0 }
 0x1a7   : > { %v5677_v34 = vpop.f32.mrf.mxu1  ;;  %v5590_v32 = vadd.f32 %v5589_v59, %v5588_v40  ;;  %v3837_v40 = vadd.f32 %v5584_v63, %v6605_v9  ;;  %v5672_v59 = vadd.f32 %v5671_v58, %v5670_v36  ;;  %v6985_v36 = vand.u32 15, %v6228_v3 }
 0x1a8   : > { %v5591_v45 = vpop.f32.mrf.mxu0  ;;  %v3958_v3 = vadd.f32 %v5666_v33, %v3829_v42  ;;  %v3961_v63 = vadd.f32 %v5669_v38, %v3832_v7  ;;  %v7010_v42 = vld [vmem:[#allocation18_spill] sm:$0xff] }
 0x1a9   : > { %v5679_v62 = vpop.f32.mrf.mxu1  ;;  %vm6696_vm15 = vcmp.lt.s32.totalorder %v6985_v36, 12  ;;  %v6713_v21 = vadd.f32 %v5672_v59, %v3837_v40  ;;  %v7015_v36 = vld [vmem:[#allocation13_spill] sm:$0xff] }
 0x1aa   : > { %v5592_v60 = vpop.f32.mrf.mxu0 }
 0x1ab   : > { %v5680_v24 = vpop.f32.mrf.mxu1 }
 0x1ac   : > { %v5594_v11 = vpop.f32.mrf.mxu0  ;;  %v5681_v14 = vadd.f32 %v5680_v24, %v5679_v62 }
 0x1ad   : > { %v5682_v15 = vpop.f32.mrf.mxu1 }
 0x1ae   : > { %v5595_v39 = vpop.f32.mrf.mxu0 }
 0x1af   : > { %v5683_v12 = vpop.f32.mrf.mxu1 }
 0x1b0   : > { %v6664_v0 = vpop.f32.mrf.mxu0  ;;  %v6725_v46 = vadd.f32 %v5683_v12, %v5682_v15 }
 0x1b1   : > { %6977 = vst [vmem:[#allocation29_spill] sm:$0xff] %v6664_v0  ;;  %v6666_v49 = vpop.f32.mrf.mxu1  ;;  %v5660_v0 = vadd.f32 %v5659_v13, %v5658_v51  ;;  %v7000_v13 = vld [vmem:[#allocation20_spill] sm:$0xff] }
 0x1b2   : > { %6978 = vst [vmem:[#allocation30_spill] sm:$0xff] %v6666_v49  ;;  %v6668_v17 = vpop.f32.mrf.mxu0 }
 0x1b3   : > { %6979 = vst [vmem:[#allocation31_spill] sm:$0xff] %v6668_v17  ;;  %v6670_v1 = vpop.f32.mrf.mxu1  ;;  %v3821_v17 = vadd.f32 %v5572_v47, %v6593_v6  ;;  %v5675_v6 = vadd.f32 %v5674_v19, %v5673_v41 }
 0x1b4   : > { %6980 = vst [vmem:[#allocation32_spill] sm:$0xff] %v6670_v1  ;;  %v5600_v31 = vpop.f32.mrf.mxu0  ;;  %v3824_v1 = vadd.f32 %v5575_v55, %v6596_v8  ;;  %v3845_v8 = vadd.f32 %v5590_v32, %v6611_v5  ;;  %v5678_v55 = vadd.f32 %v5677_v34, %v5676_v30  ;;  %v6988_v30 = vand.u32 15, %v6118_v23 }
 0x1b5   : > { %v6672_v43 = vpop.f32.mrf.mxu1  ;;  %v3950_v41 = vadd.f32 %v5660_v0, %v3821_v17  ;;  %v6995_v0 = vld [vmem:[#allocation5_spill] sm:$0xff]  ;;  %v6721_v24 = vadd.f32 %v5675_v6, %v3840_v57 }
 0x1b6   : > { %6981 = vst [vmem:[#allocation33_spill] sm:$0xff] %v6672_v43  ;;  %v5601_v4 = vpop.f32.mrf.mxu0  ;;  %v5593_v43 = vadd.f32 %v5592_v60, %v5591_v45  ;;  %vm6703_vm0 = vcmp.lt.s32.totalorder %v6988_v30, 12  ;;  %v3953_v26 = vadd.f32 %v5663_v2, %v3824_v1  ;;  %v6996_v17 = vand.u32 15, %v6995_v0  ;;  %v6999_v1 = vld [vmem:[#allocation17_spill] sm:$0xff] }
 0x1b7   : > { %v6674_v53 = vpop.f32.mrf.mxu1  ;;  %v5596_v2 = vadd.f32 %v5595_v39, %v5594_v11  ;;  %v3974_v54 = vadd.f32 %v5678_v55, %v3845_v8  ;;  %v7006_v39 = vld [vmem:[#allocation4_spill] sm:$0xff]  ;;  %v5602_v19 = vadd.f32 %v5601_v4, %v5600_v31  ;;  %v7011_v57 = vld [vmem:[#allocation9_spill] sm:$0xff] }
 0x1b8   : > { %v5603_v50 = vpop.f32.mrf.mxu0  ;;  %v3848_v44 = vadd.f32 %v5593_v43, %v6614_v22  ;;  %v6991_v43 = vld [vmem:[#allocation8_spill] sm:$0xff]  ;;  %vm6717_vm2 = vcmp.lt.s32.totalorder %v6996_v17, 12  ;;  %v7007_v11 = vand.u32 15, %v7006_v39  ;;  %v7012_v6 = vand.u32 15, %v7011_v57 }
 0x1b9   : > { %v6676_v49 = vpop.f32.mrf.mxu1  ;;  %v6992_v29 = vand.u32 15, %v6991_v43  ;;  %v6772_v9 = vadd.f32 %v5596_v2, %v7015_v36  ;;  %v7020_v2 = vld [vmem:[#allocation7_spill] sm:$0xff] }
 0x1ba   : > { %v5604_v16 = vpop.f32.mrf.mxu0  ;;  %v3977_v27 = vadd.f32 %v5681_v14, %v3848_v44  ;;  %vm6736_vm4 = vcmp.lt.s32.totalorder %v7007_v11, 12  ;;  %vm6756_vm5 = vcmp.lt.s32.totalorder %v7012_v6, 12 }
 0x1bb   : > { %v6682_v35 = vpop.f32.mrf.mxu1  ;;  %vm6709_vm1 = vcmp.lt.s32.totalorder %v6992_v29, 12  ;;  %v5605_v38 = vadd.f32 %v5604_v16, %v5603_v50 }
 0x1bc   : > { %v5732_v47 = vpop.f32.mrf.mxu0 }
 0x1bd   : > { %v5744_v45 = vpop.f32.mrf.mxu1  ;;  %v4039_v10 = vadd.f32 %v5732_v47, %v7001_v61  ;;  %v7018_v34 = vld [vmem:[#allocation33_spill] sm:$0xff]  ;;  %v5693_v61 = vadd.f32 %v6682_v35, %v6676_v49 }
 0x1be   : > { %v4030_v51 = vpop.f32.mrf.mxu0  ;;  %v6740_v15 = vadd.f32 %v5744_v45, %v3958_v3 }
 0x1bf   : > { %v4078_v32 = vpop.f32.mrf.mxu1  ;;  %v4031_v62 = vadd.f32 %v4030_v51, %v6999_v1  ;;  %v4373_v3 = vmul.f32 %v4039_v10, %v4039_v10  ;;  %v7021_v1 = vand.u32 15, %v7020_v2 }
 0x1c0   : > { %v5733_v22 = vpop.f32.mrf.mxu0  ;;  %v6760_v55 = vadd.f32 %v4078_v32, %v3950_v41  ;;  %v7016_v41 = vld [vmem:[#allocation29_spill] sm:$0xff]  ;;  %v7017_v32 = vld [vmem:[#allocation31_spill] sm:$0xff] }
 0x1c1   : > { %v4042_v60 = vadd.f32 %v5733_v22, %v7000_v13  ;;  %v5745_v56 = vpop.f32.mrf.mxu1  ;;  %v4371_v8 = vmul.f32 %v4031_v62, %v4031_v62  ;;  %v5599_v30 = vadd.f32 %v7017_v32, %v7016_v41  ;;  %vm6785_vm6 = vcmp.lt.s32.totalorder %v7021_v1, 12  ;;  %v7024_v13 = vld [vmem:[#allocation15_spill] sm:$0xff] }
 0x1c2   : > { %v4090_v20 = vadd.f32 %v5745_v56, %v3961_v63  ;;  %v4033_v52 = vpop.f32.mrf.mxu0  ;;  %v7019_v63 = vld [vmem:[#allocation21_spill] sm:$0xff]  ;;  %v7039_v32 = vld [vmem:[#allocation11_spill] sm:$0xff] }
 0x1c3   : > { %v4200_v12 = vsel %vm6690_vm14, %v4042_v60, 0.0  ;;  %v4034_v33 = vadd.f32 %v4033_v52, %v7010_v42  ;;  %v4081_v7 = vpop.f32.mrf.mxu1  ;;  %v7025_v60 = vld [vmem:[#allocation16_spill] sm:$0xff] }
 0x1c4   : > { %v5266_v40 = vpack.c.bf16 %v4200_v12, %v4039_v10  ;;  %v6752_v59 = vsel %vm6696_vm15, %v4090_v20, 0.0  ;;  %v4082_v4 = vadd.f32 %v4081_v7, %v3953_v26  ;;  %v5736_v31 = vpop.f32.mrf.mxu0  ;;  %v5690_v26 = vadd.f32 %v6674_v53, %v7018_v34  ;;  %v7026_v20 = vld [vmem:[#allocation24_spill] sm:$0xff] }
 0x1c5   : > { %v5296_v50 = vpack.c.bf16 %v6752_v59, %v6740_v15  ;;  %v4198_v16 = vsel %vm6703_vm0, %v4034_v33, 0.0  ;;  %v5748_v45 = vpop.f32.mrf.mxu1  ;;  %v3861_v53 = vadd.f32 %v5602_v19, %v7024_v13  ;;  %v3864_v56 = vadd.f32 %v5605_v38, %v7025_v60  ;;  %v7031_v33 = vld [vmem:[#allocation23_spill] sm:$0xff] }
 0x1c6   : > { %5331 = vst [vmem:[%s6745_s20 + $0x8] sm:$0xff] %v5266_v40   ;;  %v5261_v44 = vpack.c.bf16 %v4198_v16, %v4031_v62  ;;  %v4341_v14 = vadd.f32 %v4198_v16, %v4031_v62  ;;  %v4372_v51 = vmul.f32 %v4198_v16, %v4198_v16  ;;  %v6769_v28 = vsel %vm6709_vm1, %v4082_v4, 0.0  ;;  %v4046_v18 = vpop.f32.mrf.mxu0  ;;  %v7032_v4 = vld [vmem:[#allocation22_spill] sm:$0xff] }
 0x1c7   : > { %5337 = vst [vmem:[%s6745_s20 + $0x38] sm:$0xff] %v5296_v50   ;;  %v5291_v43 = vpack.c.bf16 %v6769_v28, %v6760_v55  ;;  %v4094_v29 = vpop.f32.mrf.mxu1  ;;  %v4047_v0 = vadd.f32 %v4046_v18, %v7019_v63  ;;  %v4374_v11 = vmul.f32 %v4200_v12, %v4200_v12  ;;  %v4055_v7 = vadd.f32 %v5736_v31, %v7031_v33  ;;  %v7043_v63 = vld [vmem:[#allocation14_spill] sm:$0xff]  ;;  %v7046_v33 = vld [vmem:[#allocation27_spill] sm:$0xff] }
 0x1c8   : > { %5262 = vst [vmem:[%s6745_s20] sm:$0xff] %v5261_v44   ;;  %v4342_v5 = vadd.f32 %v4341_v14, %v4039_v10  ;;  %v4395_v22 = vadd.f32 %v4372_v51, %v4371_v8  ;;  %v5737_v17 = vpop.f32.mrf.mxu0  ;;  %v6802_v38 = vadd.f32 %v5748_v45, %v3974_v54  ;;  %v7033_v8 = vld [vmem:[#allocation6_spill] sm:$0xff]  ;;  %v7038_v51 = vld [vmem:[#allocation32_spill] sm:$0xff]  ;;  %v7040_v34 = vand.u32 15, %v7039_v32 }
 0x1c9   : > { %5336 = vst [vmem:[%s6745_s20 + $0x30] sm:$0xff] %v5291_v43   ;;  %v4058_v10 = vadd.f32 %v5737_v17, %v7026_v20  ;;  %v5749_v52 = vpop.f32.mrf.mxu1  ;;  %v7034_v50 = vand.u32 15, %v7033_v8  ;;  %v4375_v31 = vmul.f32 %v4047_v0, %v4047_v0  ;;  %v7037_v45 = vld [vmem:[#allocation30_spill] sm:$0xff]  ;;  %v4377_v60 = vmul.f32 %v4055_v7, %v4055_v7 }
 0x1ca   : > { %v4396_v42 = vadd.f32 %v4395_v22, %v4373_v3  ;;  %v4343_v19 = vadd.f32 %v4342_v5, %v4200_v12  ;;  %v4049_v40 = vpop.f32.mrf.mxu0  ;;  %v4106_v35 = vadd.f32 %v5749_v52, %v3977_v27  ;;  %v5687_v23 = vadd.f32 %v7038_v51, %v7037_v45  ;;  %v7047_v8 = vld [vmem:[#allocation26_spill] sm:$0xff] }
 0x1cb   : > { %v4204_v49 = vsel %vm6717_vm2, %v4058_v10, 0.0  ;;  %v4050_v57 = vadd.f32 %v4049_v40, %v7032_v4  ;;  %v4097_v6 = vpop.f32.mrf.mxu1  ;;  %vm6809_vm8 = vcmp.lt.s32.totalorder %v7034_v50, 12  ;;  %vm6824_vm9 = vcmp.lt.s32.totalorder %v7040_v34, 12 }
 0x1cc   : > { %v4344_v44 = vadd.f32 %v4343_v19, %v4047_v0  ;;  %v4397_v12 = vadd.f32 %v4396_v42, %v4374_v11  ;;  %v5276_v14 = vpack.c.bf16 %v4204_v49, %v4055_v7  ;;  %v5740_v54 = vpop.f32.mrf.mxu0  ;;  %v6817_v27 = vsel %vm6730_vm3, %v4106_v35, 0.0 }
 0x1cd   : > { %v4202_v18 = vsel %vm6736_vm4, %v4050_v57, 0.0  ;;  %v4098_v36 = vadd.f32 %v4097_v6, %v6721_v24  ;;  %v5752_v41 = vpop.f32.mrf.mxu1  ;;  %v6829_v5 = vadd.f32 %v4094_v29, %v6713_v21  ;;  %v5306_v58 = vpack.c.bf16 %v6817_v27, %v6802_v38 }
 0x1ce   : > { %v4398_v3 = vadd.f32 %v4397_v12, %v4375_v31  ;;  %5333 = vst [vmem:[%s6745_s20 + $0x18] sm:$0xff] %v5276_v14   ;;  %v5271_v37 = vpack.c.bf16 %v4202_v18, %v4047_v0  ;;  %v4062_v22 = vpop.f32.mrf.mxu0  ;;  %v3856_v24 = vadd.f32 %v5599_v30, %v7043_v63  ;;  %v4345_v17 = vadd.f32 %v4344_v44, %v4202_v18  ;;  %v7044_v30 = vld [vmem:[#allocation25_spill] sm:$0xff] }
 0x1cf   : > { %v4376_v2 = vmul.f32 %v4202_v18, %v4202_v18  ;;  %v6837_v1 = vsel %vm6756_vm5, %v4098_v36, 0.0  ;;  %v4110_v13 = vpop.f32.mrf.mxu1  ;;  %5339 = vst [vmem:[%s6745_s20 + $0x48] sm:$0xff] %v5306_v58   ;;  %v3990_v29 = vadd.f32 %v5690_v26, %v3861_v53  ;;  %v3993_v0 = vadd.f32 %v5693_v61, %v3864_v56 }
 0x1d0   : > { %5332 = vst [vmem:[%s6745_s20 + $0x10] sm:$0xff] %v5271_v37   ;;  %v5301_v21 = vpack.c.bf16 %v6837_v1, %v6829_v5  ;;  %v5741_v20 = vpop.f32.mrf.mxu0  ;;  %v4346_v10 = vadd.f32 %v4345_v17, %v4055_v7  ;;  %v4063_v25 = vadd.f32 %v4062_v22, %v7044_v30  ;;  %v4378_v42 = vmul.f32 %v4204_v49, %v4204_v49 }
 0x1d1   : > { %v4399_v52 = vadd.f32 %v4398_v3, %v4376_v2  ;;  %v4074_v11 = vadd.f32 %v5741_v20, %v7045_v48  ;;  %v5753_v47 = vpop.f32.mrf.mxu1  ;;  %v4071_v19 = vadd.f32 %v5740_v54, %v7046_v33  ;;  %v3982_v40 = vadd.f32 %v6725_v46, %v6772_v9 }
 0x1d2   : > { %5338 = vst [vmem:[%s6745_s20 + $0x40] sm:$0xff] %v5301_v21   ;;  %v4122_v35 = vadd.f32 %v5753_v47, %v3993_v0  ;;  %v4065_v4 = vpop.f32.mrf.mxu0  ;;  %v4119_v53 = vadd.f32 %v5752_v41, %v3990_v29  ;;  %v4347_v56 = vadd.f32 %v4346_v10, %v4204_v49  ;;  %v3985_v44 = vadd.f32 %v5687_v23, %v3856_v24 }
 0x1d3   : > { %v4400_v26 = vadd.f32 %v4399_v52, %v4377_v60  ;;  %v4208_v61 = vsel %vm6785_vm6, %v4074_v11, 0.0  ;;  %v4113_v7 = vpop.f32.mrf.mxu1  ;;  %v4066_v50 = vadd.f32 %v4065_v4, %v7047_v8  ;;  %v4379_v9 = vmul.f32 %v4063_v25, %v4063_v25 }
 0x1d4   : > { %v5286_v57 = vpack.c.bf16 %v4208_v61, %v4071_v19  ;;  %v4220_v6 = vsel %vm6797_vm7, %v4122_v35, 0.0  ;;  %v4348_v46 = vadd.f32 %v4347_v56, %v4063_v25  ;;  %v4111_v14 = vadd.f32 %v4110_v13, %v3982_v40 }
 0x1d5   : > { %v4401_v31 = vadd.f32 %v4400_v26, %v4378_v42  ;;  %v5316_v12 = vpack.c.bf16 %v4220_v6, %v4119_v53  ;;  %v4206_v62 = vsel %vm6809_vm8, %v4066_v50, 0.0  ;;  %v4114_v49 = vadd.f32 %v4113_v7, %v3985_v44 }
 0x1d6   : > { %5335 = vst [vmem:[%s6745_s20 + $0x28] sm:$0xff] %v5286_v57   ;;  %v5281_v45 = vpack.c.bf16 %v4206_v62, %v4063_v25  ;;  %v4349_v39 = vadd.f32 %v4348_v46, %v4206_v62  ;;  %v4380_v51 = vmul.f32 %v4206_v62, %v4206_v62  ;;  %v4381_v18 = vmul.f32 %v4071_v19, %v4071_v19 }
 0x1d7   : > { %v4402_v54 = vadd.f32 %v4401_v31, %v4379_v9  ;;  %5341 = vst [vmem:[%s6745_s20 + $0x58] sm:$0xff] %v5316_v12   ;;  %v4218_v23 = vsel %vm6824_vm9, %v4114_v49, 0.0  ;;  %v4382_v34 = vmul.f32 %v4208_v61, %v4208_v61  ;;  %v4383_v16 = vmul.f32 %v6760_v55, %v6760_v55 }
 0x1d8   : > { %5334 = vst [vmem:[%s6745_s20 + $0x20] sm:$0xff] %v5281_v45   ;;  %v4350_v36 = vadd.f32 %v4349_v39, %v4071_v19  ;;  %v5311_v32 = vpack.c.bf16 %v4218_v23, %v4111_v14  ;;  %v4384_v63 = vmul.f32 %v6769_v28, %v6769_v28  ;;  %v4385_v17 = vmul.f32 %v6740_v15, %v6740_v15 }
 0x1d9   : > { %v4403_v41 = vadd.f32 %v4402_v54, %v4380_v51  ;;  %v4386_v60 = vmul.f32 %v6752_v59, %v6752_v59  ;;  %v4392_v19 = vmul.f32 %v4218_v23, %v4218_v23  ;;  %v4394_v26 = vmul.f32 %v4220_v6, %v4220_v6 }
 0x1da   : > { %v4351_v3 = vadd.f32 %v4350_v36, %v4208_v61  ;;  %5340 = vst [vmem:[%s6745_s20 + $0x50] sm:$0xff] %v5311_v32  }
 0x1db   : > { %v4404_v58 = vadd.f32 %v4403_v41, %v4381_v18 }
 0x1dc   : > { %v4352_v37 = vadd.f32 %v4351_v3, %v6760_v55  ;;  %v4387_v55 = vmul.f32 %v6829_v5, %v6829_v5 }
 0x1dd   : > { %v4405_v22 = vadd.f32 %v4404_v58, %v4382_v34 }
 0x1de   : > { %v4353_v43 = vadd.f32 %v4352_v37, %v6769_v28  ;;  %v4388_v28 = vmul.f32 %v6837_v1, %v6837_v1 }
 0x1df   : > { %v4406_v24 = vadd.f32 %v4405_v22, %v4383_v16 }
 0x1e0   : > { %v4354_v2 = vadd.f32 %v4353_v43, %v6740_v15  ;;  %v4389_v15 = vmul.f32 %v6802_v38, %v6802_v38 }
 0x1e1   : > { %v4407_v13 = vadd.f32 %v4406_v24, %v4384_v63 }
 0x1e2   : > { %v4355_v29 = vadd.f32 %v4354_v2, %v6752_v59  ;;  %v4390_v59 = vmul.f32 %v6817_v27, %v6817_v27 }
 0x1e3   : > { %v4408_v21 = vadd.f32 %v4407_v13, %v4385_v17 }
 0x1e4   : > { %v4356_v20 = vadd.f32 %v4355_v29, %v6829_v5  ;;  %v4391_v5 = vmul.f32 %v4111_v14, %v4111_v14 }
 0x1e5   : > { %v4409_v0 = vadd.f32 %v4408_v21, %v4386_v60 }
 0x1e6   : > { %v4357_v10 = vadd.f32 %v4356_v20, %v6837_v1  ;;  %v4393_v1 = vmul.f32 %v4119_v53, %v4119_v53 }
 0x1e7   : > { %v4410_v52 = vadd.f32 %v4409_v0, %v4387_v55 }
 0x1e8   : > { %v4358_v30 = vadd.f32 %v4357_v10, %v6802_v38 }
 0x1e9   : > { %v4411_v25 = vadd.f32 %v4410_v52, %v4388_v28 }
 0x1ea   : > { %v4359_v48 = vadd.f32 %v4358_v30, %v6817_v27 }
 0x1eb   : > { %v4412_v11 = vadd.f32 %v4411_v25, %v4389_v15 }
 0x1ec   : > { %v4360_v47 = vadd.f32 %v4359_v48, %v4111_v14 }
 0x1ed   : > { %v4413_v42 = vadd.f32 %v4412_v11, %v4390_v59 }
 0x1ee   : > { %v4361_v33 = vadd.f32 %v4360_v47, %v4218_v23 }
 0x1ef   : > { %v4414_v40 = vadd.f32 %v4413_v42, %v4391_v5 }
 0x1f0   : > { %v4362_v35 = vadd.f32 %v4361_v33, %v4119_v53 }
 0x1f1   : > { %v4415_v4 = vadd.f32 %v4414_v40, %v4392_v19 }
 0x1f2   : > { %v4363_v38 = vadd.f32 %v4362_v35, %v4220_v6 }
 0x1f3   : > { %v4416_v56 = vadd.f32 %v4415_v4, %v4393_v1 }
 0x1f4   : > { %v4364_v61 = vrot.slane %v4363_v38, 4 }
 0x1f5   : > { %v4417_v7 = vadd.f32 %v4416_v56, %v4394_v26 }
 0x1f6   : > { %v4365_v57 = vadd.f32 %v4364_v61, %v4363_v38 }
 0x1f7   : > { %v4418_v8 = vrot.slane %v4417_v7, 4 }
 0x1f8   : > { %v4366_v27 = vrot.slane %v4365_v57, 2 }
 0x1f9   : > { %v4419_v50 = vadd.f32 %v4418_v8, %v4417_v7 }
 0x1fa   : > { %v4367_v44 = vadd.f32 %v4366_v27, %v4365_v57 }
 0x1fb   : > { %v4420_v46 = vrot.slane %v4419_v50, 2 }
 0x1fc   : > { %v4368_v9 = vrot.slane %v4367_v44, 1 }
 0x1fd   : > { %v4421_v31 = vadd.f32 %v4420_v46, %v4419_v50 }
 0x1fe   : > { %v4369_v53 = vadd.f32 %v4368_v9, %v4367_v44 }
 0x1ff   : > { %v4422_v12 = vrot.slane %v4421_v31, 1 }
 0x200   : > { %4370 = vst [vmem:[%s292_s23] sm:$0x1] %v4369_v53 }
 0x201   : > { %v4423_v6 = vadd.f32 %v4422_v12, %v4421_v31 }
 0x203   : > { %4424 = vst [vmem:[%s295_s30] sm:$0x1] %v4423_v6 }
 0x204 PF: > { %s18_s24 = sadd.s32 1, %s5995_s24  }
 0x205   : > { %p15_p4 = scmp.ge.s32.totalorder %s18_s24, 4  }
 0x207   :  { %17 = sbr.rel (!%p15_p4) target bundleno = 1 (0x1), region = 94 }

// kernel: model_forward.7
= control target key start
LH: loop header
LB: loop body
LE: loop exit
PB: predicated region body
PF: predicated region fallthrough
CT: control target
= control target key end

     0   :  { %s5258_s21 = smov 0   ;;  %s5879_s0 = inlined_call_operand.vmem [shape: bf16[2,176,128], index: 0, kind: input, shape index: {}]   ;;  %s5880_s1 = inlined_call_operand.vmem [shape: bf16[1152,128], index: 1, kind: input, shape index: {}]   ;;  %s5881_s2 = inlined_call_operand.vmem [shape: f32[1,128], index: 2, kind: input, shape index: {}]   ;;  %s5882_s3 = inlined_call_operand.vmem [shape: f32[1,128], index: 3, kind: input, shape index: {}]   ;;  %s5883_s4 = inlined_call_operand.vmem [shape: f32[1,128], index: 4, kind: input, shape index: {}]   ;;  %s5884_s5 = inlined_call_operand.vmem [shape: f32[2,1,128], index: 5, kind: output, shape index: {0}]   ;;  %s5885_s6 = inlined_call_operand.vmem [shape: f32[2,1,128], index: 6, kind: output, shape index: {1}]  }
   0x1 LB: > { %s3927_s22 = sadd.s32 4294967295, %s5218_s21   ;;  %p3931_p0 = scmp.ge.s32.totalorder %s5218_s21, 1  ;;  %s5218_s21 = sphi %s5258_s21, %s17_s21  }
   0x2   : > { %p215_p1 = scmp.lt.s32.totalorder %s5218_s21, 3 }
   0x4   : > { %p216_p2 = pnand %p3931_p0, %p215_p1 }
   0x5   : > { %p5272_p3 = scmp.lt.s32.totalorder (!%p216_p2), %s3927_s22, 1 }
   0x6   : > { %219 = sbr.rel (%p216_p2) target bundleno = 482 (0x1e2), region = 40 }
   0xb   : > { %v4993_v0 = vld [vmem:[%s5880_s1 + $0x78] sm:$0xff]   ;;  %v5220_v2 = vmov 0.0   ;;  %v4995_v3 = vld [vmem:[%s5880_s1 + $0x70] sm:$0xff]   ;;  %v5221_v5 = vmov 0.0|0.0   ;;  %v258_v6 = vlaneseq  ;;  %v4997_v7 = vld [vmem:[%s5880_s1 + $0x68] sm:$0xff]   ;;  %s5910_s22 = smov (!%p5272_p3, %s3927_s22), 1 }
   0xc   : > { %v4994_v1 = vld [vmem:[%s5880_s1 + $0x38] sm:$0xff]   ;;  %647 = vst [vmem:[#allocation2] sm:$0xff] %v5220_v2  ;;  %648 = vst [vmem:[#allocation2 + $0x8] sm:$0xff] %v5220_v2  ;;  %4559 = vmatprep.subr.bf16.mxu0 %v4993_v0  ;;  %4966 = vmatprep.subr.bf16.mxu1 %v4993_v0  ;;  %v4996_v4 = vld [vmem:[%s5880_s1 + $0x30] sm:$0xff]   ;;  %s4982_s14 = smul.u32 88, %s5910_s22  ;;  %vm5222_vm11 = vmmov 0   ;;  %s253_s11 = scalar_lea.vmem %s5884_s5, %s5910_s22 }
   0xd   : > { %649 = vst [vmem:[#allocation2 + $0x10] sm:$0xff] %v5220_v2  ;;  %650 = vst [vmem:[#allocation2 + $0xc8] sm:$0xff] %v5220_v2  ;;  %4560 = vmatpush3.bf16.msra.mxu0 %v4994_v1  ;;  %4974 = vmatpush3.bf16.msra.mxu1 %v4994_v1  ;;  %v4998_v8 = vld [vmem:[%s5880_s1 + $0x28] sm:$0xff]   ;;  %v5292_v9 = vshrl.u32 %v258_v6, 7  ;;  %v4999_v10 = vld [vmem:[%s5880_s1 + $0x60] sm:$0xff]  }
   0xe   : > { %651 = vst [vmem:[#allocation2 + $0xd0] sm:$0xff] %v5220_v2  ;;  %652 = vst [vmem:[#allocation2 + $0xd8] sm:$0xff] %v5220_v2  ;;  %4561 = vmatprep.subr.bf16.mxu0 %v4995_v3  ;;  %4967 = vmatprep.subr.bf16.mxu1 %v4995_v3  ;;  %v5000_v11 = vld [vmem:[%s5880_s1 + $0x20] sm:$0xff]   ;;  %v5001_v13 = vld [vmem:[%s5880_s1 + $0x58] sm:$0xff]   ;;  %s5309_s23 = scalar_lea.vmem %s5879_s0, %s4982_s14  ;;  %s256_s14 = scalar_lea.vmem %s5885_s6, %s5910_s22 }
   0xf   : > { %1005 = vst [vmem:[#allocation3 + $0x4] sm:$0xf] %v5221_v5  ;;  %1006 = vst [vmem:[#allocation3 + $0x28] sm:$0xf] %v5221_v5  ;;  %v268_v12 = vadd.s32 72, %v5292_v9  ;;  %v270_v14 = vadd.s32 88, %v5292_v9 }
  0x10   : > { %v5002_v15 = vld [vmem:[%s5880_s1 + $0x18] sm:$0xff]   ;;  %v5003_v16 = vld [vmem:[%s5880_s1 + $0x50] sm:$0xff]   ;;  %v4552_v21 = vld [vmem:[%s5309_s23 + $0x20] sm:$0xff]   ;;  %v260_v22 = vadd.s32 8, %v5292_v9  ;;  %v272_v23 = vadd.s32 104, %v5292_v9 }
  0x11   : > { %4562 = vmatpush3.bf16.msra.mxu0 %v4996_v4  ;;  %4975 = vmatpush3.bf16.msra.mxu1 %v4996_v4  ;;  %v348_v17 = vand.u32 15, %v268_v12  ;;  %v362_v20 = vand.u32 15, %v270_v14  ;;  %v4523_v26 = vunpack.c.l.bf16 %v4552_v21  ;;  %v4524_v27 = vunpack.c.h.bf16 %v4552_v21  ;;  %v4553_v28 = vld [vmem:[%s5309_s23 + $0x28] sm:$0xff]   ;;  %v5324_v29 = vld [vmem:[%s5882_s3] ss:$0 sm:$0xff]  ;;  %v5004_v33 = vld [vmem:[%s5880_s1 + $0x10] sm:$0xff]  }
  0x12   : > { %4563 = vmatprep.subr.bf16.mxu0 %v4997_v7  ;;  %4968 = vmatprep.subr.bf16.mxu1 %v4997_v7  ;;  %v4527_v30 = vunpack.c.l.bf16 %v4553_v28  ;;  %v4528_v31 = vunpack.c.h.bf16 %v4553_v28  ;;  %v5329_v32 = vld [vmem:[%s5883_s4] ss:$0 sm:$0xff]  ;;  %v5005_v37 = vld [vmem:[%s5880_s1 + $0x48] sm:$0xff]   ;;  %v292_v42 = vand.u32 15, %v260_v22  ;;  %v376_v43 = vand.u32 15, %v272_v23  ;;  %v4554_v58 = vld [vmem:[%s5309_s23 + $0x30] sm:$0xff]  }
  0x13   : > { %v763_v18 = vld [vmem:[#allocation2 + $0x7] sm:$0xff]  ;;  %v605_v34 = vmul.f32 %v4524_v27, %v5324_v29  ;;  %vm5335_vm0 = vcmp.lt.s32.totalorder %v348_v17, 11  ;;  %v604_v36 = vmul.f32 %v4523_v26, %v5324_v29  ;;  %vm5345_vm1 = vcmp.lt.s32.totalorder %v362_v20, 11  ;;  %v5015_v3 = vld [vmem:[%s5880_s1 + $0x178] sm:$0xff]   ;;  %v5019_v22 = vld [vmem:[%s5880_s1 + $0x170] sm:$0xff]  }
  0x14   : > { %v764_v19 = vld [vmem:[#allocation2 + $0xf] sm:$0xff]  ;;  %v4307_v24 = vpack.c.bf16 %v763_v18, %v763_v18  ;;  %v606_v38 = vmul.f32 %v4527_v30, %v5324_v29  ;;  %v607_v39 = vmul.f32 %v4528_v31, %v5324_v29  ;;  %v4506_v49 = vld [vmem:[%s5309_s23] sm:$0xff]   ;;  %vm5364_vm2 = vcmp.lt.s32.totalorder %v292_v42, 11  ;;  %v5017_v5 = vld [vmem:[%s5880_s1 + $0xf8] sm:$0xff]  }
  0x15   : > { %4564 = vmatpush3.bf16.msra.mxu0 %v4998_v8  ;;  %4976 = vmatpush3.bf16.msra.mxu1 %v4998_v8  ;;  %v4308_v25 = vpack.c.bf16 %v764_v19, %v764_v19  ;;  %v634_v41 = vadd.f32 %v5329_v32, %v605_v34  ;;  %v633_v44 = vadd.f32 %v5329_v32, %v604_v36  ;;  %v5006_v45 = vld [vmem:[%s5880_s1 + $0x8] sm:$0xff]   ;;  %v5007_v51 = vld [vmem:[%s5880_s1 + $0x40] sm:$0xff]   ;;  %v4507_v54 = vunpack.c.l.bf16 %v4506_v49 }
  0x16   : > { %4565 = vmatprep.subr.bf16.mxu0 %v4999_v10  ;;  %4969 = vmatprep.subr.bf16.mxu1 %v4999_v10  ;;  %873 = vst [vmem:[#allocation3] sm:$0xf] %v4307_v24  ;;  %v635_v46 = vadd.f32 %v5329_v32, %v606_v38  ;;  %v636_v47 = vadd.f32 %v5329_v32, %v607_v39  ;;  %v4508_v55 = vunpack.c.h.bf16 %v4506_v49  ;;  %vm5369_vm3 = vcmp.lt.s32.totalorder %v376_v43, 11  ;;  %v5008_v61 = vld [vmem:[%s5880_s1] sm:$0xff]   ;;  %v5023_v39 = vld [vmem:[%s5880_s1 + $0x130] sm:$0xff]  }
  0x17   : > { %874 = vst [vmem:[#allocation3 + $0x24] sm:$0xf] %v4308_v25  ;;  %v728_v48 = vsel %vm5335_vm0, %v634_v41, 0.0  ;;  %749 = vst [vmem:[#allocation2 + $0x58] sm:$0xff] %v633_v44  ;;  %v4339_v50 = vpack.c.bf16 %v633_v44, %v633_v44  ;;  %v596_v62 = vmul.f32 %v4507_v54, %v5324_v29  ;;  %v4531_v0 = vunpack.c.l.bf16 %v4554_v58  ;;  %v5011_v2 = vld [vmem:[#allocation3 + $0x4] ss:$36 sps:$4 sm:$0xff]  }
  0x18   : > { %v730_v52 = vsel %vm5345_vm1, %v636_v47, 0.0  ;;  %750 = vst [vmem:[#allocation2 + $0x60] sm:$0xff] %v728_v48  ;;  %751 = vst [vmem:[#allocation2 + $0x68] sm:$0xff] %v635_v46  ;;  %v4341_v53 = vpack.c.bf16 %v635_v46, %v635_v46  ;;  %v4340_v60 = vpack.c.bf16 %v728_v48, %v728_v48  ;;  %v597_v63 = vmul.f32 %v4508_v55, %v5324_v29  ;;  %v4549_v25 = vld [vmem:[%s5309_s23 + $0x8] sm:$0xff]  }
  0x19   : > { %4566 = vmatpush3.bf16.msra.mxu0 %v5000_v11  ;;  %4977 = vmatpush3.bf16.msra.mxu1 %v5000_v11  ;;  %752 = vst [vmem:[#allocation2 + $0x70] sm:$0xff] %v730_v52  ;;  %v4342_v56 = vpack.c.bf16 %v730_v52, %v730_v52  ;;  %1015 = vst [vmem:[#allocation3 + $0x16c] sm:$0xf] %v4339_v50  ;;  %v4532_v1 = vunpack.c.h.bf16 %v4554_v58  ;;  %v262_v4 = vadd.s32 24, %v5292_v9  ;;  %v274_v10 = vadd.s32 120, %v5292_v9  ;;  %v5030_v44 = vld [vmem:[%s5880_s1 + $0x168] sm:$0xff]  }
  0x1a   : > { %4567 = vmatprep.subr.bf16.mxu0 %v5001_v13  ;;  %4970 = vmatprep.subr.bf16.mxu1 %v5001_v13  ;;  %1409 = vst [vmem:[#allocation3 + $0x130] sm:$0xf] %v4339_v50  ;;  %1017 = vst [vmem:[#allocation3 + $0x1b4] sm:$0xf] %v4341_v53  ;;  %v625_v6 = vadd.f32 %v5329_v32, %v596_v62  ;;  %v626_v7 = vadd.f32 %v5329_v32, %v597_v63  ;;  %v5016_v13 = vld [vmem:[%s5880_s1 + $0x138] sm:$0xff]   ;;  %v4511_v30 = vunpack.c.l.bf16 %v4549_v25  ;;  %v5032_v54 = vld [vmem:[%s5880_s1 + $0x128] sm:$0xff]  }
  0x1b   : > { %1018 = vst [vmem:[#allocation3 + $0x1d8] sm:$0xf] %v4342_v56  ;;  %1016 = vst [vmem:[#allocation3 + $0x190] sm:$0xf] %v4340_v60  ;;  %v608_v8 = vmul.f32 %v4531_v0, %v5324_v29  ;;  %3182 = vmatprep.mubr.bf16.mxu0 %v5011_v2  ;;  %v609_v12 = vmul.f32 %v4532_v1, %v5324_v29  ;;  %v306_v24 = vand.u32 15, %v262_v4  ;;  %v390_v26 = vand.u32 15, %v274_v10 }
  0x1c   : > { %v720_v14 = vsel %vm5364_vm2, %v626_v7, 0.0  ;;  %741 = vst [vmem:[#allocation2 + $0x18] sm:$0xff] %v625_v6  ;;  %v4512_v31 = vunpack.c.h.bf16 %v4549_v25  ;;  %v5405_v38 = vadd.s32 40, %v5292_v9  ;;  %v598_v41 = vmul.f32 %v4511_v30, %v5324_v29  ;;  %v4550_v0 = vld [vmem:[%s5309_s23 + $0x10] sm:$0xff]   ;;  %v5018_v2 = vld [vmem:[%s5880_s1 + $0xb8] sm:$0xff]   ;;  %v5041_v7 = vld [vmem:[%s5880_s1 + $0x160] sm:$0xff]  }
  0x1d   : > { %4568 = vmatpush3.bf16.msra.mxu0 %v5002_v15  ;;  %4978 = vmatpush3.bf16.msra.mxu1 %v5002_v15  ;;  %v4331_v15 = vpack.c.bf16 %v625_v6, %v625_v6  ;;  %742 = vst [vmem:[#allocation2 + $0x20] sm:$0xff] %v720_v14  ;;  %v4332_v18 = vpack.c.bf16 %v720_v14, %v720_v14  ;;  %v5413_v43 = vadd.s32 136, %v5292_v9  ;;  %vm5418_vm4 = vcmp.lt.s32.totalorder %v306_v24, 11  ;;  %v5022_v10 = vld [vmem:[%s5880_s1 + $0xf0] sm:$0xff]  }
  0x1e   : > { %4569 = vmatprep.subr.bf16.mxu0 %v5003_v16  ;;  %4971 = vmatprep.subr.bf16.mxu1 %v5003_v16  ;;  %v5009_v11 = vld [vmem:[#allocation3] ss:$36 sps:$4 sm:$0xff]   ;;  %v637_v16 = vadd.f32 %v5329_v32, %v608_v8  ;;  %v638_v19 = vadd.f32 %v5329_v32, %v609_v12  ;;  %v599_v42 = vmul.f32 %v4512_v31, %v5324_v29  ;;  %vm5426_vm5 = vcmp.lt.s32.totalorder %v390_v26, 11  ;;  %v5027_v24 = vld [vmem:[%s5880_s1 + $0xb0] sm:$0xff]  }
  0x1f   : > { %v775_v17 = vld [vmem:[#allocation2 + $0x67] sm:$0xff]  ;;  %1007 = vst [vmem:[#allocation3 + $0x4c] sm:$0xf] %v4331_v15  ;;  %1401 = vst [vmem:[#allocation3 + $0x10] sm:$0xf] %v4331_v15  ;;  %v627_v49 = vadd.f32 %v5329_v32, %v598_v41  ;;  %v320_v58 = vand.u32 15, %v5405_v38  ;;  %v4516_v14 = vunpack.c.h.bf16 %v4550_v0 }
  0x20   : > { %v776_v20 = vld [vmem:[#allocation2 + $0x6f] sm:$0xff]  ;;  %v4319_v21 = vpack.c.bf16 %v775_v17, %v775_v17  ;;  %753 = vst [vmem:[#allocation2 + $0x78] sm:$0xff] %v637_v16  ;;  %v4343_v23 = vpack.c.bf16 %v637_v16, %v637_v16  ;;  %1008 = vst [vmem:[#allocation3 + $0x70] sm:$0xf] %v4332_v18  ;;  %v732_v28 = vsel %vm5369_vm3, %v638_v19, 0.0  ;;  %v628_v50 = vadd.f32 %v5329_v32, %v599_v42  ;;  %v4556_v8 = vld [vmem:[%s5309_s23 + $0x40] sm:$0xff]  }
  0x21   : > { %4570 = vmatpush3.bf16.msra.mxu0 %v5004_v33  ;;  %4979 = vmatpush3.bf16.msra.mxu1 %v5004_v33  ;;  %v4320_v27 = vpack.c.bf16 %v776_v20, %v776_v20  ;;  %v4555_v33 = vld [vmem:[%s5309_s23 + $0x38] sm:$0xff]   ;;  %1402 = vst [vmem:[#allocation3 + $0x34] sm:$0xf] %v4332_v18  ;;  %754 = vst [vmem:[#allocation2 + $0x80] sm:$0xff] %v732_v28  ;;  %v4344_v34 = vpack.c.bf16 %v732_v28, %v732_v28  ;;  %v404_v1 = vand.u32 15, %v5413_v43  ;;  %v5042_v20 = vld [vmem:[%s5880_s1 + $0x120] sm:$0xff]  }
  0x22   : > { %4571 = vmatprep.subr.bf16.mxu0 %v5005_v37  ;;  %4972 = vmatprep.subr.bf16.mxu1 %v5005_v37  ;;  %885 = vst [vmem:[#allocation3 + $0x1b0] sm:$0xf] %v4319_v21  ;;  %1019 = vst [vmem:[#allocation3 + $0x1fc] sm:$0xf] %v4343_v23  ;;  %v4535_v36 = vunpack.c.l.bf16 %v4555_v33  ;;  %v4536_v37 = vunpack.c.h.bf16 %v4555_v33  ;;  %v722_v62 = vsel %vm5418_vm4, %v628_v50, 0.0  ;;  %v4333_v63 = vpack.c.bf16 %v627_v49, %v627_v49  ;;  %v5029_v28 = vld [vmem:[%s5880_s1 + $0xe8] sm:$0xff]  }
  0x23   : > { %886 = vst [vmem:[#allocation3 + $0x1d4] sm:$0xf] %v4320_v27  ;;  %1020 = vst [vmem:[#allocation3 + $0x220] sm:$0xf] %v4344_v34  ;;  %v765_v48 = vld [vmem:[#allocation2 + $0x17] sm:$0xff]  ;;  %v4334_v4 = vpack.c.bf16 %v722_v62, %v722_v62  ;;  %v4539_v15 = vunpack.c.l.bf16 %v4556_v8  ;;  %v4540_v19 = vunpack.c.h.bf16 %v4556_v8  ;;  %vm5461_vm6 = vcmp.lt.s32.totalorder %v320_v58, 11 }
  0x24   : > { %v610_v46 = vmul.f32 %v4535_v36, %v5324_v29  ;;  %v611_v47 = vmul.f32 %v4536_v37, %v5324_v29  ;;  %v766_v52 = vld [vmem:[#allocation2 + $0x1f] sm:$0xff]  ;;  %v4309_v53 = vpack.c.bf16 %v765_v48, %v765_v48  ;;  %743 = vst [vmem:[#allocation2 + $0x28] sm:$0xff] %v627_v49  ;;  %744 = vst [vmem:[#allocation2 + $0x30] sm:$0xff] %v722_v62  ;;  %v5014_v17 = vld [vmem:[#allocation3 + $0x1b4] ss:$36 sps:$4 sm:$0xff]   ;;  %vm5475_vm7 = vcmp.lt.s32.totalorder %v404_v1, 11 }
  0x25   : > { %4572 = vmatpush3.bf16.msra.mxu0 %v5006_v45  ;;  %4980 = vmatpush3.bf16.msra.mxu1 %v5006_v45  ;;  %v4310_v60 = vpack.c.bf16 %v766_v52, %v766_v52  ;;  %1009 = vst [vmem:[#allocation3 + $0x94] sm:$0xf] %v4333_v63  ;;  %1403 = vst [vmem:[#allocation3 + $0x58] sm:$0xf] %v4333_v63  ;;  %v612_v23 = vmul.f32 %v4539_v15, %v5324_v29  ;;  %v5050_v27 = vld [vmem:[%s5880_s1 + $0x158] sm:$0xff]   ;;  %v5485_v41 = vadd.s32 152, %v5292_v9 }
  0x26   : > { %4573 = vmatprep.subr.bf16.mxu0 %v5007_v51  ;;  %4973 = vmatprep.subr.bf16.mxu1 %v5007_v51  ;;  %v639_v55 = vadd.f32 %v5329_v32, %v610_v46  ;;  %v640_v56 = vadd.f32 %v5329_v32, %v611_v47  ;;  %875 = vst [vmem:[#allocation3 + $0x48] sm:$0xf] %v4309_v53  ;;  %1269 = vst [vmem:[#allocation3 + $0xc] sm:$0xf] %v4309_v53  ;;  %v5052_v38 = vld [vmem:[%s5880_s1 + $0x118] sm:$0xff]   ;;  %v5039_v62 = vld [vmem:[%s5880_s1 + $0xe0] sm:$0xff]  }
  0x27   : > { %876 = vst [vmem:[#allocation3 + $0x6c] sm:$0xf] %v4310_v60  ;;  %1270 = vst [vmem:[#allocation3 + $0x30] sm:$0xf] %v4310_v60  ;;  %3230 = vmatprep.mubr.bf16.mxu1 %v5014_v17  ;;  %v613_v26 = vmul.f32 %v4540_v19, %v5324_v29  ;;  %v641_v33 = vadd.f32 %v5329_v32, %v612_v23  ;;  %v5020_v49 = vld [vmem:[#allocation3 + $0x4c] ss:$36 sps:$4 sm:$0xff]  }
  0x28   : > { %755 = vst [vmem:[#allocation2 + $0x88] sm:$0xff] %v639_v55  ;;  %v4345_v6 = vpack.c.bf16 %v639_v55, %v639_v55  ;;  %1010 = vst [vmem:[#allocation3 + $0xb8] sm:$0xf] %v4334_v4  ;;  %v5055_v63 = vld [vmem:[%s5880_s1 + $0x150] sm:$0xff]   ;;  %v4551_v1 = vld [vmem:[%s5309_s23 + $0x18] sm:$0xff]  }
  0x29   : > { %4574 = vmatpush3.bf16.msra.mxu0 %v5008_v61  ;;  %4981 = vmatpush3.bf16.msra.mxu1 %v5008_v61  ;;  %v777_v61 = vld [vmem:[#allocation2 + $0x77] sm:$0xff]  ;;  %1404 = vst [vmem:[#allocation3 + $0x7c] sm:$0xf] %v4334_v4  ;;  %v642_v37 = vadd.f32 %v5329_v32, %v613_v26  ;;  %757 = vst [vmem:[#allocation2 + $0x98] sm:$0xff] %v641_v33  ;;  %v4347_v48 = vpack.c.bf16 %v641_v33, %v641_v33  ;;  %v4519_v4 = vunpack.c.l.bf16 %v4551_v1 }
  0x2a   : > { %4723 = vmatprep.subr.bf16.mxu0 %v5015_v3  ;;  %4641 = vmatprep.subr.bf16.mxu1 %v5017_v5  ;;  %v4321_v3 = vpack.c.bf16 %v777_v61, %v777_v61  ;;  %v734_v5 = vsel %vm5426_vm5, %v640_v56, 0.0  ;;  %v5012_v16 = vld [vmem:[#allocation3 + $0x1b0] ss:$36 sps:$4 sm:$0xff]   ;;  %1021 = vst [vmem:[#allocation3 + $0x244] sm:$0xf] %v4345_v6  ;;  %v5031_v56 = vld [vmem:[%s5880_s1 + $0xa8] sm:$0xff]  }
  0x2b   : > { %756 = vst [vmem:[#allocation2 + $0x90] sm:$0xff] %v734_v5  ;;  %v4346_v12 = vpack.c.bf16 %v734_v5, %v734_v5  ;;  %v767_v36 = vld [vmem:[#allocation2 + $0x27] sm:$0xff]  ;;  %v768_v42 = vld [vmem:[#allocation2 + $0x2f] sm:$0xff]  ;;  %v736_v55 = vsel %vm5475_vm7, %v642_v37, 0.0  ;;  %1023 = vst [vmem:[#allocation3 + $0x28c] sm:$0xf] %v4347_v48  ;;  %v4520_v5 = vunpack.c.h.bf16 %v4551_v1  ;;  %v602_v8 = vmul.f32 %v4519_v4, %v5324_v29 }
  0x2c   : > { %3183 = vmatmul.mubr.bf16.vlgmr.msra.gmra.mxu0 %v5009_v11  ;;  %v778_v11 = vld [vmem:[#allocation2 + $0x7f] sm:$0xff]  ;;  %887 = vst [vmem:[#allocation3 + $0x1f8] sm:$0xf] %v4321_v3  ;;  %3231 = vmatmul.mubr.bf16.vlgmr.msra.gmra.mxu1 %v5012_v16  ;;  %v4311_v43 = vpack.c.bf16 %v767_v36, %v767_v36  ;;  %v4312_v52 = vpack.c.bf16 %v768_v42, %v768_v42  ;;  %758 = vst [vmem:[#allocation2 + $0xa0] sm:$0xff] %v736_v55  ;;  %v5058_v6 = vld [vmem:[%s5880_s1 + $0x110] sm:$0xff]  }
  0x2d   : > { %4724 = vmatpush3.bf16.msra.mxu0 %v5016_v13  ;;  %v4515_v13 = vunpack.c.l.bf16 %v4550_v0  ;;  %v4322_v18 = vpack.c.bf16 %v778_v11, %v778_v11  ;;  %1022 = vst [vmem:[#allocation3 + $0x268] sm:$0xf] %v4346_v12  ;;  %4642 = vmatpush3.bf16.msra.mxu1 %v5018_v2  ;;  %v4348_v60 = vpack.c.bf16 %v736_v55, %v736_v55  ;;  %v5025_v2 = vld [vmem:[#allocation3 + $0x1fc] ss:$36 sps:$4 sm:$0xff]   ;;  %v4557_v11 = vld [vmem:[%s5309_s23 + $0x48] sm:$0xff]  }
  0x2e   : > { %4725 = vmatprep.subr.bf16.mxu0 %v5019_v22  ;;  %v601_v22 = vmul.f32 %v4516_v14, %v5324_v29  ;;  %4643 = vmatprep.subr.bf16.mxu1 %v5022_v10  ;;  %v5024_v50 = vld [vmem:[#allocation3 + $0x48] ss:$36 sps:$4 sm:$0xff]   ;;  %877 = vst [vmem:[#allocation3 + $0x90] sm:$0xf] %v4311_v43  ;;  %1271 = vst [vmem:[#allocation3 + $0x54] sm:$0xf] %v4311_v43  ;;  %v603_v10 = vmul.f32 %v4520_v5, %v5324_v29  ;;  %v4543_v16 = vunpack.c.l.bf16 %v4557_v11 }
  0x2f   : > { %v600_v21 = vmul.f32 %v4515_v13, %v5324_v29  ;;  %888 = vst [vmem:[#allocation3 + $0x21c] sm:$0xf] %v4322_v18  ;;  %3190 = vmatprep.mubr.bf16.mxu0 %v5020_v49  ;;  %878 = vst [vmem:[#allocation3 + $0xb4] sm:$0xf] %v4312_v52  ;;  %3238 = vmatprep.mubr.bf16.mxu1 %v5025_v2  ;;  %v5040_v12 = vld [vmem:[%s5880_s1 + $0xa0] sm:$0xff]   ;;  %v4544_v17 = vunpack.c.h.bf16 %v4557_v11  ;;  %v5043_v23 = vld [vmem:[%s5880_s1 + $0xd8] sm:$0xff]  }
  0x30   : > { %v630_v31 = vadd.f32 %v5329_v32, %v601_v22  ;;  %1272 = vst [vmem:[#allocation3 + $0x78] sm:$0xf] %v4312_v52  ;;  %1024 = vst [vmem:[#allocation3 + $0x2b0] sm:$0xf] %v4348_v60  ;;  %v632_v22 = vadd.f32 %v5329_v32, %v603_v10  ;;  %v5046_v36 = vld [vmem:[%s5880_s1 + $0x98] sm:$0xff]   ;;  %v5054_v49 = vld [vmem:[%s5880_s1 + $0x90] sm:$0xff]  }
  0x31   : > { %4726 = vmatpush3.bf16.msra.mxu0 %v5023_v39  ;;  %v629_v30 = vadd.f32 %v5329_v32, %v600_v21  ;;  %v266_v39 = vadd.s32 56, %v5292_v9  ;;  %4644 = vmatpush3.bf16.msra.mxu1 %v5027_v24  ;;  %v631_v21 = vadd.f32 %v5329_v32, %v602_v8  ;;  %v5067_v52 = vld [vmem:[%s5880_s1 + $0x108] sm:$0xff]  }
  0x32   : > { %4727 = vmatprep.subr.bf16.mxu0 %v5030_v44  ;;  %v779_v44 = vld [vmem:[#allocation2 + $0x87] sm:$0xff]  ;;  %v724_v46 = vsel %vm5461_vm6, %v630_v31, 0.0  ;;  %v780_v58 = vld [vmem:[#allocation2 + $0x8f] sm:$0xff]  ;;  %4645 = vmatprep.subr.bf16.mxu1 %v5029_v28  ;;  %v781_v14 = vld [vmem:[#allocation2 + $0x97] sm:$0xff]  ;;  %v615_v28 = vmul.f32 %v4544_v17, %v5324_v29 }
  0x33   : > { %745 = vst [vmem:[#allocation2 + $0x38] sm:$0xff] %v629_v30  ;;  %v4335_v47 = vpack.c.bf16 %v629_v30, %v629_v30  ;;  %v4323_v53 = vpack.c.bf16 %v779_v44, %v779_v44  ;;  %746 = vst [vmem:[#allocation2 + $0x40] sm:$0xff] %v724_v46  ;;  %v4324_v61 = vpack.c.bf16 %v780_v58, %v780_v58  ;;  %v334_v0 = vand.u32 15, %v266_v39  ;;  %v782_v26 = vld [vmem:[#allocation2 + $0x9f] sm:$0xff]  ;;  %v5033_v31 = vld [vmem:[#allocation3 + $0x94] ss:$36 sps:$4 sm:$0xff]  }
  0x34   : > { %3191 = vmatmul.mubr.bf16.gmra.mxu0 %v5024_v50  ;;  %v4326_v37 = vpack.c.bf16 %v782_v26, %v782_v26  ;;  %747 = vst [vmem:[#allocation2 + $0x48] sm:$0xff] %v631_v21  ;;  %v4337_v39 = vpack.c.bf16 %v631_v21, %v631_v21  ;;  %v644_v43 = vadd.f32 %v5329_v32, %v615_v28  ;;  %v5036_v44 = vld [vmem:[#allocation3 + $0x244] ss:$36 sps:$4 sm:$0xff]  }
  0x35   : > { %4728 = vmatpush3.bf16.msra.mxu0 %v5032_v54  ;;  %v4336_v54 = vpack.c.bf16 %v724_v46, %v724_v46  ;;  %1011 = vst [vmem:[#allocation3 + $0xdc] sm:$0xf] %v4335_v47  ;;  %1405 = vst [vmem:[#allocation3 + $0xa0] sm:$0xf] %v4335_v47  ;;  %vm5511_vm8 = vcmp.lt.s32.totalorder %v334_v0, 11  ;;  %4646 = vmatpush3.bf16.msra.mxu1 %v5031_v56  ;;  %v1027_v55 = vld [vmem:[#allocation2 + $0x9] sm:$0xff] }
  0x36   : > { %4729 = vmatprep.subr.bf16.mxu0 %v5041_v7  ;;  %889 = vst [vmem:[#allocation3 + $0x240] sm:$0xf] %v4323_v53  ;;  %v5028_v3 = vld [vmem:[#allocation3 + $0x1f8] ss:$36 sps:$4 sm:$0xff]   ;;  %890 = vst [vmem:[#allocation3 + $0x264] sm:$0xf] %v4324_v61  ;;  %4647 = vmatprep.subr.bf16.mxu1 %v5039_v62  ;;  %v4351_v60 = vpack.c.bf16 %v1027_v55, %v1027_v55 }
  0x37   : > { %1012 = vst [vmem:[#allocation3 + $0x100] sm:$0xf] %v4336_v54  ;;  %1406 = vst [vmem:[#allocation3 + $0xc4] sm:$0xf] %v4336_v54  ;;  %v418_v7 = vand.u32 15, %v5485_v41  ;;  %3239 = vmatmul.mubr.bf16.gmra.mxu1 %v5028_v3  ;;  %3198 = vmatprep.mubr.bf16.mxu0 %v5033_v31  ;;  %v5062_v53 = vld [vmem:[%s5880_s1 + $0xc8] sm:$0xff]  }
  0x38   : > { %v5035_v33 = vld [vmem:[#allocation3 + $0x90] ss:$36 sps:$4 sm:$0xff]   ;;  %892 = vst [vmem:[#allocation3 + $0x2ac] sm:$0xf] %v4326_v37  ;;  %1013 = vst [vmem:[#allocation3 + $0x124] sm:$0xf] %v4337_v39  ;;  %3246 = vmatprep.mubr.bf16.mxu1 %v5036_v44 }
  0x39   : > { %4730 = vmatpush3.bf16.msra.mxu0 %v5042_v20  ;;  %v4325_v20 = vpack.c.bf16 %v781_v14, %v781_v14  ;;  %vm5522_vm9 = vcmp.lt.s32.totalorder %v418_v7, 11  ;;  %4648 = vmatpush3.bf16.msra.mxu1 %v5040_v12  ;;  %1407 = vst [vmem:[#allocation3 + $0xe8] sm:$0xf] %v4337_v39  ;;  %v774_v54 = vld [vmem:[#allocation2 + $0x5f] sm:$0xff]  ;;  %v5064_v0 = vld [vmem:[%s5880_s1 + $0x88] sm:$0xff]   ;;  %v1028_v12 = vld [vmem:[#allocation2 + $0x11] sm:$0xff] }
  0x3a   : > { %4731 = vmatprep.subr.bf16.mxu0 %v5050_v27  ;;  %v769_v13 = vld [vmem:[#allocation2 + $0x37] sm:$0xff]  ;;  %v770_v18 = vld [vmem:[#allocation2 + $0x3f] sm:$0xff]  ;;  %v614_v27 = vmul.f32 %v4543_v16, %v5324_v29  ;;  %4649 = vmatprep.subr.bf16.mxu1 %v5043_v23  ;;  %v738_v47 = vsel %vm5522_vm9, %v644_v43, 0.0  ;;  %v4318_v58 = vpack.c.bf16 %v774_v54, %v774_v54  ;;  %v5048_v1 = vld [vmem:[#allocation3 + $0x28c] ss:$36 sps:$4 sm:$0xff]   ;;  %v4352_v14 = vpack.c.bf16 %v1028_v12, %v1028_v12 }
  0x3b   : > { %v4313_v19 = vpack.c.bf16 %v769_v13, %v769_v13  ;;  %v4314_v24 = vpack.c.bf16 %v770_v18, %v770_v18  ;;  %891 = vst [vmem:[#allocation3 + $0x288] sm:$0xf] %v4325_v20  ;;  %v5053_v29 = vld [vmem:[%s5880_s1 + $0xd0] sm:$0xff]   ;;  %760 = vst [vmem:[#allocation2 + $0xb0] sm:$0xff] %v738_v47  ;;  %v4350_v50 = vpack.c.bf16 %v738_v47, %v738_v47  ;;  %v771_v56 = vld [vmem:[#allocation2 + $0x47] sm:$0xff] }
  0x3c   : > { %v643_v42 = vadd.f32 %v5329_v32, %v614_v27  ;;  %3199 = vmatmul.mubr.bf16.gmra.mxu0 %v5035_v33  ;;  %v5065_v32 = vld [vmem:[%s5880_s1 + $0x148] sm:$0xff]   ;;  %v5066_v3 = vld [vmem:[%s5880_s1 + $0xc0] sm:$0xff]   ;;  %884 = vst [vmem:[#allocation3 + $0x18c] sm:$0xf] %v4318_v58  ;;  %1137 = vst [vmem:[#allocation3 + $0x8] sm:$0xf] %v4351_v60 }
  0x3d   : > { %4732 = vmatpush3.bf16.msra.mxu0 %v5052_v38  ;;  %879 = vst [vmem:[#allocation3 + $0xd8] sm:$0xf] %v4313_v19  ;;  %v726_v38 = vsel %vm5511_vm8, %v632_v22, 0.0  ;;  %1273 = vst [vmem:[#allocation3 + $0x9c] sm:$0xf] %v4313_v19  ;;  %4650 = vmatpush3.bf16.msra.mxu1 %v5046_v36  ;;  %v5075_v16 = vld [vmem:[%s5880_s1 + $0x140] sm:$0xff]  }
  0x3e   : > { %4733 = vmatprep.subr.bf16.mxu0 %v5055_v63  ;;  %880 = vst [vmem:[#allocation3 + $0xfc] sm:$0xf] %v4314_v24  ;;  %748 = vst [vmem:[#allocation2 + $0x50] sm:$0xff] %v726_v38  ;;  %v4338_v41 = vpack.c.bf16 %v726_v38, %v726_v38  ;;  %v5038_v46 = vld [vmem:[#allocation3 + $0x240] ss:$36 sps:$4 sm:$0xff]   ;;  %v4349_v48 = vpack.c.bf16 %v643_v42, %v643_v42  ;;  %4651 = vmatprep.subr.bf16.mxu1 %v5053_v29  ;;  %v5076_v19 = vld [vmem:[%s5880_s1 + $0x1f8] sm:$0xff]  }
  0x3f   : > { %1274 = vst [vmem:[#allocation3 + $0xc0] sm:$0xf] %v4314_v24  ;;  %759 = vst [vmem:[#allocation2 + $0xa8] sm:$0xff] %v643_v42  ;;  %3247 = vmatmul.mubr.bf16.gmra.mxu1 %v5038_v46  ;;  %v5044_v61 = vld [vmem:[#allocation3 + $0xdc] ss:$36 sps:$4 sm:$0xff]   ;;  %v4315_v63 = vpack.c.bf16 %v771_v56, %v771_v56  ;;  %v1425_v37 = vld [vmem:[#allocation2 + $0x29] sm:$0xff] }
  0x40   : > { %1014 = vst [vmem:[#allocation3 + $0x148] sm:$0xf] %v4338_v41  ;;  %1408 = vst [vmem:[#allocation3 + $0x10c] sm:$0xf] %v4338_v41  ;;  %3206 = vmatprep.mubr.bf16.mxu0 %v5044_v61  ;;  %3254 = vmatprep.mubr.bf16.mxu1 %v5048_v1  ;;  %v5068_v17 = vld [vmem:[%s5880_s1 + $0x80] sm:$0xff]   ;;  %v1426_v38 = vld [vmem:[#allocation2 + $0x31] sm:$0xff]  ;;  %v4419_v39 = vpack.c.bf16 %v1425_v37, %v1425_v37 }
  0x41   : > { %4734 = vmatpush3.bf16.msra.mxu0 %v5058_v6  ;;  %1025 = vst [vmem:[#allocation3 + $0x2d4] sm:$0xf] %v4349_v48  ;;  %1419 = vst [vmem:[#allocation3 + $0x298] sm:$0xf] %v4349_v48  ;;  %4652 = vmatpush3.bf16.msra.mxu1 %v5054_v49  ;;  %v5077_v18 = vld [vmem:[%s5880_s1 + $0x100] sm:$0xff]   ;;  %v4420_v41 = vpack.c.bf16 %v1426_v38, %v1426_v38  ;;  %v5078_v43 = vld [vmem:[%s5880_s1 + $0x1b8] sm:$0xff]  }
  0x42   : > { %4735 = vmatprep.subr.bf16.mxu0 %v5065_v32  ;;  %1026 = vst [vmem:[#allocation3 + $0x2f8] sm:$0xf] %v4350_v50  ;;  %1420 = vst [vmem:[#allocation3 + $0x2bc] sm:$0xf] %v4350_v50  ;;  %v5051_v2 = vld [vmem:[#allocation3 + $0x288] ss:$36 sps:$4 sm:$0xff]   ;;  %4653 = vmatprep.subr.bf16.mxu1 %v5062_v53 }
  0x43   : > { %1278 = vst [vmem:[#allocation3 + $0x150] sm:$0xf] %v4318_v58  ;;  %881 = vst [vmem:[#allocation3 + $0x120] sm:$0xf] %v4315_v63  ;;  %v1423_v20 = vld [vmem:[#allocation2 + $0x19] sm:$0xff]  ;;  %v1424_v21 = vld [vmem:[#allocation2 + $0x21] sm:$0xff] }
  0x44   : > { %1275 = vst [vmem:[#allocation3 + $0xe4] sm:$0xf] %v4315_v63  ;;  %1138 = vst [vmem:[#allocation3 + $0x2c] sm:$0xf] %v4352_v14  ;;  %v4417_v22 = vpack.c.bf16 %v1423_v20, %v1423_v20  ;;  %v4418_v23 = vpack.c.bf16 %v1424_v21, %v1424_v21  ;;  %v5568_v24 = vld [vmem:[#allocation2] sm:$0xff]  ;;  %v5086_v32 = vld [vmem:[%s5880_s1 + $0x1f0] sm:$0xff]  }
  0x45   : > { %4736 = vmatpush3.bf16.msra.mxu0 %v5067_v52  ;;  %v5047_v62 = vld [vmem:[#allocation3 + $0xd8] ss:$36 sps:$4 sm:$0xff]   ;;  %v772_v4 = vld [vmem:[#allocation2 + $0x4f] sm:$0xff]  ;;  %4654 = vmatpush3.bf16.msra.mxu1 %v5064_v0  ;;  %1535 = vst [vmem:[#allocation3 + $0x5c] sm:$0xf] %v4419_v39  ;;  %v1428_v48 = vld [vmem:[#allocation2 + $0x41] sm:$0xff] }
  0x46   : > { %v783_v5 = vld [vmem:[#allocation2 + $0xa7] sm:$0xff]  ;;  %v773_v6 = vld [vmem:[#allocation2 + $0x57] sm:$0xff]  ;;  %3207 = vmatmul.mubr.bf16.gmra.mxu0 %v5047_v62  ;;  %v4316_v7 = vpack.c.bf16 %v772_v4, %v772_v4  ;;  %v784_v8 = vld [vmem:[#allocation2 + $0xaf] sm:$0xff]  ;;  %4737 = vmatprep.subr.bf16.mxu0 %v5075_v16  ;;  %1533 = vst [vmem:[#allocation3 + $0x14] sm:$0xf] %v4417_v22  ;;  %v4422_v50 = vpack.c.bf16 %v1428_v48, %v1428_v48 }
  0x47   : > { %v4327_v10 = vpack.c.bf16 %v783_v5, %v783_v5  ;;  %v4317_v11 = vpack.c.bf16 %v773_v6, %v773_v6  ;;  %v4328_v13 = vpack.c.bf16 %v784_v8, %v784_v8  ;;  %3255 = vmatmul.mubr.bf16.gmra.mxu1 %v5051_v2  ;;  %4655 = vmatprep.subr.bf16.mxu1 %v5066_v3  ;;  %v5056_v26 = vld [vmem:[#allocation3 + $0x124] ss:$36 sps:$4 sm:$0xff]   ;;  %v5069_v33 = vld [vmem:[#allocation3 + $0x16c] ss:$36 sps:$4 sm:$0xff]   ;;  %v5082_v46 = vld [vmem:[#allocation3 + $0x54] ss:$36 sps:$4 sm:$0xff]  }
  0x48   : > { %882 = vst [vmem:[#allocation3 + $0x144] sm:$0xf] %v4316_v7  ;;  %1276 = vst [vmem:[#allocation3 + $0x108] sm:$0xf] %v4316_v7  ;;  %3214 = vmatprep.mubr.bf16.mxu0 %v5056_v26  ;;  %v5074_v36 = vld [vmem:[#allocation3 + $0xc] ss:$36 sps:$4 sm:$0xff]  }
  0x49   : > { %893 = vst [vmem:[#allocation3 + $0x2d0] sm:$0xf] %v4327_v10  ;;  %883 = vst [vmem:[#allocation3 + $0x168] sm:$0xf] %v4317_v11  ;;  %4738 = vmatpush3.bf16.msra.mxu0 %v5077_v18  ;;  %4656 = vmatpush3.bf16.msra.mxu1 %v5068_v17  ;;  %v5060_v28 = vld [vmem:[#allocation3 + $0x2d4] ss:$36 sps:$4 sm:$0xff]  }
  0x4a   : > { %1277 = vst [vmem:[#allocation3 + $0x12c] sm:$0xf] %v4317_v11  ;;  %1287 = vst [vmem:[#allocation3 + $0x294] sm:$0xf] %v4327_v10  ;;  %4906 = vmatprep.subr.bf16.mxu0 %v5568_v24  ;;  %4805 = vmatprep.subr.bf16.mxu1 %v5076_v19  ;;  %v1427_v47 = vld [vmem:[#allocation2 + $0x39] sm:$0xff]  ;;  %v1429_v52 = vld [vmem:[#allocation2 + $0x49] sm:$0xff] }
  0x4b   : > { %894 = vst [vmem:[#allocation3 + $0x2f4] sm:$0xf] %v4328_v13  ;;  %1288 = vst [vmem:[#allocation3 + $0x2b8] sm:$0xf] %v4328_v13  ;;  %3262 = vmatprep.mubr.bf16.mxu1 %v5060_v28  ;;  %v5072_v42 = vld [vmem:[#allocation3 + $0x8] ss:$36 sps:$4 sm:$0xff]   ;;  %v4421_v49 = vpack.c.bf16 %v1427_v47, %v1427_v47  ;;  %v4423_v54 = vpack.c.bf16 %v1429_v52, %v1429_v52 }
  0x4c   : > { %1139 = vst [vmem:[#allocation3 + $0x50] sm:$0xf] %v4417_v22  ;;  %1534 = vst [vmem:[#allocation3 + $0x38] sm:$0xf] %v4418_v23  ;;  %v1430_v53 = vld [vmem:[#allocation2 + $0x51] sm:$0xff]  ;;  %v5100_v60 = vld [vmem:[%s5880_s1 + $0x1e8] sm:$0xff]  }
  0x4d   : > { %1140 = vst [vmem:[#allocation3 + $0x74] sm:$0xf] %v4418_v23  ;;  %1141 = vst [vmem:[#allocation3 + $0x98] sm:$0xf] %v4419_v39  ;;  %v5087_v55 = vld [vmem:[%s5880_s1 + $0x1b0] sm:$0xff]   ;;  %v4424_v56 = vpack.c.bf16 %v1430_v53, %v1430_v53  ;;  %v5085_v58 = vld [vmem:[%s5880_s1 + $0x238] sm:$0xff]  }
  0x4e   : > { %1929 = vst [vmem:[#allocation3 + $0x20] sm:$0xf] %v4419_v39  ;;  %1536 = vst [vmem:[#allocation3 + $0x80] sm:$0xf] %v4420_v41  ;;  %v5079_v61 = vld [vmem:[#allocation3 + $0x10] ss:$36 sps:$4 sm:$0xff]  }
  0x4f   : > { %v5059_v27 = vld [vmem:[#allocation3 + $0x120] ss:$36 sps:$4 sm:$0xff]   ;;  %1142 = vst [vmem:[#allocation3 + $0xbc] sm:$0xf] %v4420_v41  ;;  %1930 = vst [vmem:[#allocation3 + $0x44] sm:$0xf] %v4420_v41 }
  0x50   : > { %3215 = vmatmul.mubr.bf16.gmra.mxu0 %v5059_v27  ;;  %v5071_v29 = vld [vmem:[#allocation3 + $0x168] ss:$36 sps:$4 sm:$0xff]   ;;  %1537 = vst [vmem:[#allocation3 + $0xa4] sm:$0xf] %v4421_v49  ;;  %1538 = vst [vmem:[#allocation3 + $0xc8] sm:$0xf] %v4422_v50 }
  0x51   : > { %3222 = vmatprep.mubr.bf16.mxu0 %v5069_v33  ;;  %1143 = vst [vmem:[#allocation3 + $0xe0] sm:$0xf] %v4421_v49  ;;  %1144 = vst [vmem:[#allocation3 + $0x104] sm:$0xf] %v4422_v50  ;;  %v5102_v0 = vld [vmem:[%s5880_s1 + $0x1a8] sm:$0xff]   ;;  %v1300_v2 = vld [vmem:[#allocation2 + $0x60] sm:$0xff] }
  0x52   : > { %v5063_v31 = vld [vmem:[#allocation3 + $0x2d0] ss:$36 sps:$4 sm:$0xff]   ;;  %1931 = vst [vmem:[#allocation3 + $0x68] sm:$0xf] %v4421_v49  ;;  %1932 = vst [vmem:[#allocation3 + $0x8c] sm:$0xf] %v4422_v50  ;;  %v4404_v6 = vpack.c.bf16 %v1300_v2, %v1300_v2 }
  0x53   : > { %3263 = vmatmul.mubr.bf16.gmra.mxu1 %v5063_v31  ;;  %v5081_v44 = vld [vmem:[#allocation3 + $0x14] ss:$36 sps:$4 sm:$0xff]   ;;  %1539 = vst [vmem:[#allocation3 + $0xec] sm:$0xf] %v4423_v54  ;;  %1145 = vst [vmem:[#allocation3 + $0x128] sm:$0xf] %v4423_v54 }
  0x54   : > { %3303 = vmatprep.mubr.bf16.mxu1 %v5074_v36  ;;  %1933 = vst [vmem:[#allocation3 + $0xb0] sm:$0xf] %v4423_v54  ;;  %1540 = vst [vmem:[#allocation3 + $0x110] sm:$0xf] %v4424_v56  ;;  %v5084_v62 = vld [vmem:[#allocation3 + $0x50] ss:$36 sps:$4 sm:$0xff]  }
  0x55   : > { %1146 = vst [vmem:[#allocation3 + $0x14c] sm:$0xf] %v4424_v56  ;;  %1934 = vst [vmem:[#allocation3 + $0xd4] sm:$0xf] %v4424_v56  ;;  %v5088_v63 = vld [vmem:[#allocation3 + $0x5c] ss:$36 sps:$4 sm:$0xff]  }
  0x56   : > { %v5090_v1 = vld [vmem:[#allocation3 + $0x9c] ss:$36 sps:$4 sm:$0xff]   ;;  %v5094_v10 = vld [vmem:[%s5880_s1 + $0x230] sm:$0xff]   ;;  %1410 = vst [vmem:[#allocation3 + $0x154] sm:$0xf] %v4404_v6  ;;  %v5105_v14 = vld [vmem:[%s5880_s1 + $0x228] sm:$0xff]  }
  0x57   : > { %v1431_v3 = vld [vmem:[#allocation2 + $0x59] sm:$0xff]  ;;  %v1432_v4 = vld [vmem:[#allocation2 + $0x61] sm:$0xff]  ;;  %1804 = vst [vmem:[#allocation3 + $0x118] sm:$0xf] %v4404_v6  ;;  %v1170_v18 = vld [vmem:[#allocation2 + $0x6f] sm:$0xff] }
  0x58   : > { %3223 = vmatmul.mubr.bf16.gmra.mxu0 %v5071_v29  ;;  %v5110_v5 = vld [vmem:[%s5880_s1 + $0x1e0] sm:$0xff]   ;;  %v4425_v7 = vpack.c.bf16 %v1431_v3, %v1431_v3  ;;  %v4426_v8 = vpack.c.bf16 %v1432_v4, %v1432_v4  ;;  %v5092_v12 = vld [vmem:[#allocation3 + $0x58] ss:$36 sps:$4 sm:$0xff]   ;;  %v4384_v21 = vpack.c.bf16 %v1170_v18, %v1170_v18  ;;  %v1301_v23 = vld [vmem:[#allocation2 + $0x68] sm:$0xff] }
  0x59   : > { %3424 = vmatprep.mubr.bf16.mxu0 %v5081_v44  ;;  %v5111_v11 = vld [vmem:[%s5880_s1 + $0x1a0] sm:$0xff]   ;;  %v5093_v13 = vld [vmem:[#allocation3 + $0x98] ss:$36 sps:$4 sm:$0xff]   ;;  %v1302_v26 = vld [vmem:[#allocation2 + $0x70] sm:$0xff]  ;;  %v4405_v28 = vpack.c.bf16 %v1301_v23, %v1301_v23 }
  0x5a   : > { %1541 = vst [vmem:[#allocation3 + $0x134] sm:$0xf] %v4425_v7  ;;  %1542 = vst [vmem:[#allocation3 + $0x158] sm:$0xf] %v4426_v8  ;;  %v5095_v16 = vld [vmem:[#allocation3 + $0xa4] ss:$36 sps:$4 sm:$0xff]   ;;  %v4406_v31 = vpack.c.bf16 %v1302_v26, %v1302_v26 }
  0x5b   : > { %3304 = vmatmul.mubr.bf16.vlgmr.msra.gmra.mxu1 %v5072_v42  ;;  %1147 = vst [vmem:[#allocation3 + $0x170] sm:$0xf] %v4425_v7  ;;  %1148 = vst [vmem:[#allocation3 + $0x194] sm:$0xf] %v4426_v8  ;;  %v1169_v17 = vld [vmem:[#allocation2 + $0x67] sm:$0xff]  ;;  %v5119_v22 = vld [vmem:[%s5880_s1 + $0x1d8] sm:$0xff]  }
  0x5c   : > { %4806 = vmatpush3.bf16.msra.mxu1 %v5078_v43  ;;  %3311 = vmatprep.mubr.bf16.mxu1 %v5082_v46  ;;  %1935 = vst [vmem:[#allocation3 + $0xf8] sm:$0xf] %v4425_v7  ;;  %1936 = vst [vmem:[#allocation3 + $0x11c] sm:$0xf] %v4426_v8  ;;  %v5097_v19 = vld [vmem:[#allocation3 + $0xe4] ss:$36 sps:$4 sm:$0xff]   ;;  %v4383_v20 = vpack.c.bf16 %v1169_v17, %v1169_v17 }
  0x5d   : > { %4807 = vmatprep.subr.bf16.mxu1 %v5086_v32  ;;  %1280 = vst [vmem:[#allocation3 + $0x198] sm:$0xf] %v4384_v21  ;;  %v1433_v27 = vld [vmem:[#allocation2 + $0x69] sm:$0xff]  ;;  %1674 = vst [vmem:[#allocation3 + $0x15c] sm:$0xf] %v4384_v21  ;;  %v5118_v37 = vld [vmem:[%s5880_s1 + $0x220] sm:$0xff]  }
  0x5e   : > { %1279 = vst [vmem:[#allocation3 + $0x174] sm:$0xf] %v4383_v20  ;;  %1673 = vst [vmem:[#allocation3 + $0x138] sm:$0xf] %v4383_v20  ;;  %v4427_v33 = vpack.c.bf16 %v1433_v27, %v1433_v27  ;;  %v5099_v36 = vld [vmem:[#allocation3 + $0xa0] ss:$36 sps:$4 sm:$0xff]  }
  0x5f   : > { %v1434_v38 = vld [vmem:[#allocation2 + $0x71] sm:$0xff]  ;;  %v5101_v39 = vld [vmem:[#allocation3 + $0xe0] ss:$36 sps:$4 sm:$0xff]   ;;  %1411 = vst [vmem:[#allocation3 + $0x178] sm:$0xf] %v4405_v28  ;;  %v1305_v3 = vld [vmem:[#allocation2 + $0x88] sm:$0xff] }
  0x60   : > { %4808 = vmatpush3.bf16.msra.mxu1 %v5087_v55  ;;  %3425 = vmatmul.mubr.bf16.vlgmr.msra.gmra.mxu0 %v5079_v61  ;;  %v5103_v29 = vld [vmem:[#allocation3 + $0xec] ss:$36 sps:$4 sm:$0xff]   ;;  %1412 = vst [vmem:[#allocation3 + $0x19c] sm:$0xf] %v4406_v31  ;;  %v4428_v41 = vpack.c.bf16 %v1434_v38, %v1434_v38  ;;  %1543 = vst [vmem:[#allocation3 + $0x17c] sm:$0xf] %v4427_v33  ;;  %v4409_v8 = vpack.c.bf16 %v1305_v3, %v1305_v3 }
  0x61   : > { %4809 = vmatprep.subr.bf16.mxu1 %v5100_v60  ;;  %4907 = vmatpush3.bf16.msra.mxu0 %v5085_v58  ;;  %v5122_v42 = vld [vmem:[%s5880_s1 + $0x198] sm:$0xff]   ;;  %1149 = vst [vmem:[#allocation3 + $0x1b8] sm:$0xf] %v4427_v33  ;;  %1805 = vst [vmem:[#allocation3 + $0x13c] sm:$0xf] %v4405_v28  ;;  %v1304_v50 = vld [vmem:[#allocation2 + $0x80] sm:$0xff] }
  0x62   : > { %3432 = vmatprep.mubr.bf16.mxu0 %v5088_v63  ;;  %4908 = vmatprep.subr.bf16.mxu0 %v5568_v24  ;;  %v1171_v43 = vld [vmem:[#allocation2 + $0x77] sm:$0xff]  ;;  %1806 = vst [vmem:[#allocation3 + $0x160] sm:$0xf] %v4406_v31  ;;  %1937 = vst [vmem:[#allocation3 + $0x140] sm:$0xf] %v4427_v33  ;;  %v1172_v46 = vld [vmem:[#allocation2 + $0x7f] sm:$0xff]  ;;  %v4408_v53 = vpack.c.bf16 %v1304_v50, %v1304_v50 }
  0x63   : > { %3312 = vmatmul.mubr.bf16.gmra.mxu1 %v5084_v62  ;;  %v5106_v44 = vld [vmem:[#allocation3 + $0x12c] ss:$36 sps:$4 sm:$0xff]   ;;  %v4385_v47 = vpack.c.bf16 %v1171_v43, %v1171_v43  ;;  %1544 = vst [vmem:[#allocation3 + $0x1a0] sm:$0xf] %v4428_v41  ;;  %1150 = vst [vmem:[#allocation3 + $0x1dc] sm:$0xf] %v4428_v41  ;;  %v4386_v48 = vpack.c.bf16 %v1172_v46, %v1172_v46 }
  0x64   : > { %3319 = vmatprep.mubr.bf16.mxu1 %v5090_v1  ;;  %4810 = vmatpush3.bf16.msra.mxu1 %v5102_v0  ;;  %v5127_v32 = vld [vmem:[%s5880_s1 + $0x218] sm:$0xff]   ;;  %1938 = vst [vmem:[#allocation3 + $0x164] sm:$0xf] %v4428_v41  ;;  %v1436_v55 = vld [vmem:[#allocation2 + $0x81] sm:$0xff]  ;;  %1414 = vst [vmem:[#allocation3 + $0x1e4] sm:$0xf] %v4408_v53 }
  0x65   : > { %4811 = vmatprep.subr.bf16.mxu1 %v5110_v5  ;;  %4909 = vmatpush3.bf16.msra.mxu0 %v5094_v10  ;;  %v1303_v49 = vld [vmem:[#allocation2 + $0x78] sm:$0xff]  ;;  %1281 = vst [vmem:[#allocation3 + $0x1bc] sm:$0xf] %v4385_v47  ;;  %v1173_v56 = vld [vmem:[#allocation2 + $0x87] sm:$0xff]  ;;  %1675 = vst [vmem:[#allocation3 + $0x180] sm:$0xf] %v4385_v47  ;;  %v4430_v60 = vpack.c.bf16 %v1436_v55, %v1436_v55 }
  0x66   : > { %4910 = vmatprep.subr.bf16.mxu0 %v5568_v24  ;;  %v4407_v52 = vpack.c.bf16 %v1303_v49, %v1303_v49  ;;  %v1435_v54 = vld [vmem:[#allocation2 + $0x79] sm:$0xff]  ;;  %1282 = vst [vmem:[#allocation3 + $0x1e0] sm:$0xf] %v4386_v48  ;;  %v4387_v61 = vpack.c.bf16 %v1173_v56, %v1173_v56  ;;  %1676 = vst [vmem:[#allocation3 + $0x1a4] sm:$0xf] %v4386_v48  ;;  %v1174_v62 = vld [vmem:[#allocation2 + $0x8f] sm:$0xff] }
  0x67   : > { %v4429_v58 = vpack.c.bf16 %v1435_v54, %v1435_v54  ;;  %1808 = vst [vmem:[#allocation3 + $0x1a8] sm:$0xf] %v4408_v53  ;;  %1546 = vst [vmem:[#allocation3 + $0x1e8] sm:$0xf] %v4430_v60  ;;  %v4388_v63 = vpack.c.bf16 %v1174_v62, %v1174_v62  ;;  %v5134_v0 = vld [vmem:[%s5880_s1 + $0x1d0] sm:$0xff]   ;;  %v5143_v27 = vld [vmem:[%s5880_s1 + $0x1c8] sm:$0xff]  }
  0x68   : > { %4812 = vmatpush3.bf16.msra.mxu1 %v5111_v11  ;;  %3433 = vmatmul.mubr.bf16.gmra.mxu0 %v5092_v12  ;;  %1413 = vst [vmem:[#allocation3 + $0x1c0] sm:$0xf] %v4407_v52  ;;  %1807 = vst [vmem:[#allocation3 + $0x184] sm:$0xf] %v4407_v52  ;;  %v5108_v1 = vld [vmem:[#allocation3 + $0xe8] ss:$36 sps:$4 sm:$0xff]  }
  0x69   : > { %3440 = vmatprep.mubr.bf16.mxu0 %v5095_v16  ;;  %4911 = vmatpush3.bf16.msra.mxu0 %v5105_v14  ;;  %1545 = vst [vmem:[#allocation3 + $0x1c4] sm:$0xf] %v4429_v58  ;;  %1151 = vst [vmem:[#allocation3 + $0x200] sm:$0xf] %v4429_v58  ;;  %v5135_v2 = vld [vmem:[%s5880_s1 + $0x190] sm:$0xff]   ;;  %v4481_v14 = vpack.c.bf16 %v5568_v24, %v5568_v24  ;;  %v5144_v31 = vld [vmem:[%s5880_s1 + $0x188] sm:$0xff]  }
  0x6a   : > { %4912 = vmatprep.subr.bf16.mxu0 %v5568_v24  ;;  %4813 = vmatprep.subr.bf16.mxu1 %v5119_v22  ;;  %1152 = vst [vmem:[#allocation3 + $0x224] sm:$0xf] %v4430_v60  ;;  %1283 = vst [vmem:[#allocation3 + $0x204] sm:$0xf] %v4387_v61  ;;  %v1306_v4 = vld [vmem:[#allocation2 + $0x90] sm:$0xff]  ;;  %v1307_v33 = vld [vmem:[#allocation2 + $0x98] sm:$0xff] }
  0x6b   : > { %3320 = vmatmul.mubr.bf16.gmra.mxu1 %v5093_v13  ;;  %1677 = vst [vmem:[#allocation3 + $0x1c8] sm:$0xf] %v4387_v61  ;;  %1939 = vst [vmem:[#allocation3 + $0x188] sm:$0xf] %v4429_v58  ;;  %v1437_v5 = vld [vmem:[#allocation2 + $0x89] sm:$0xff]  ;;  %v4410_v10 = vpack.c.bf16 %v1306_v4, %v1306_v4  ;;  %v1438_v12 = vld [vmem:[#allocation2 + $0x91] sm:$0xff] }
  0x6c   : > { %3327 = vmatprep.mubr.bf16.mxu1 %v5097_v19  ;;  %4814 = vmatpush3.bf16.msra.mxu1 %v5122_v42  ;;  %1940 = vst [vmem:[#allocation3 + $0x1ac] sm:$0xf] %v4430_v60  ;;  %1284 = vst [vmem:[#allocation3 + $0x228] sm:$0xf] %v4388_v63  ;;  %v5109_v6 = vld [vmem:[#allocation3 + $0x128] ss:$36 sps:$4 sm:$0xff]   ;;  %v4431_v11 = vpack.c.bf16 %v1437_v5, %v1437_v5  ;;  %v4432_v17 = vpack.c.bf16 %v1438_v12, %v1438_v12 }
  0x6d   : > { %4913 = vmatpush3.bf16.msra.mxu0 %v5118_v37  ;;  %4815 = vmatprep.subr.bf16.mxu1 %v5134_v0  ;;  %1678 = vst [vmem:[#allocation3 + $0x1ec] sm:$0xf] %v4388_v63  ;;  %v5112_v7 = vld [vmem:[#allocation3 + $0x134] ss:$36 sps:$4 sm:$0xff]   ;;  %1415 = vst [vmem:[#allocation3 + $0x208] sm:$0xf] %v4409_v8  ;;  %v4411_v37 = vpack.c.bf16 %v1307_v33, %v1307_v33 }
  0x6e   : > { %4914 = vmatprep.subr.bf16.mxu0 %v5568_v24  ;;  %v1175_v13 = vld [vmem:[#allocation2 + $0x97] sm:$0xff]  ;;  %1416 = vst [vmem:[#allocation3 + $0x22c] sm:$0xf] %v4410_v10  ;;  %1547 = vst [vmem:[#allocation3 + $0x20c] sm:$0xf] %v4431_v11  ;;  %v1176_v19 = vld [vmem:[#allocation2 + $0x9f] sm:$0xff] }
  0x6f   : > { %v5114_v16 = vld [vmem:[#allocation3 + $0x174] ss:$36 sps:$4 sm:$0xff]   ;;  %1153 = vst [vmem:[#allocation3 + $0x248] sm:$0xf] %v4431_v11  ;;  %v4389_v18 = vpack.c.bf16 %v1175_v13, %v1175_v13  ;;  %1809 = vst [vmem:[#allocation3 + $0x1cc] sm:$0xf] %v4409_v8  ;;  %v4390_v20 = vpack.c.bf16 %v1176_v19, %v1176_v19 }
  0x70   : > { %3441 = vmatmul.mubr.bf16.gmra.mxu0 %v5099_v36  ;;  %4816 = vmatpush3.bf16.msra.mxu1 %v5135_v2  ;;  %1810 = vst [vmem:[#allocation3 + $0x1f0] sm:$0xf] %v4410_v10  ;;  %1941 = vst [vmem:[#allocation3 + $0x1d0] sm:$0xf] %v4431_v11  ;;  %v5141_v21 = vld [vmem:[%s5880_s1 + $0x210] sm:$0xff]   ;;  %v1308_v36 = vld [vmem:[#allocation2 + $0xa0] sm:$0xff] }
  0x71   : > { %3448 = vmatprep.mubr.bf16.mxu0 %v5103_v29  ;;  %4915 = vmatpush3.bf16.msra.mxu0 %v5127_v32  ;;  %1817 = vst [vmem:[#allocation3 + $0x2ec] sm:$0xf] %v4481_v14  ;;  %1818 = vst [vmem:[#allocation3 + $0x310] sm:$0xf] %v4481_v14  ;;  %v5116_v22 = vld [vmem:[#allocation3 + $0x130] ss:$36 sps:$4 sm:$0xff]   ;;  %v4412_v38 = vpack.c.bf16 %v1308_v36, %v1308_v36 }
  0x72   : > { %4916 = vmatprep.subr.bf16.mxu0 %v5568_v24  ;;  %1548 = vst [vmem:[#allocation3 + $0x230] sm:$0xf] %v4432_v17  ;;  %1154 = vst [vmem:[#allocation3 + $0x26c] sm:$0xf] %v4432_v17  ;;  %v5117_v23 = vld [vmem:[#allocation3 + $0x170] ss:$36 sps:$4 sm:$0xff]   ;;  %4817 = vmatprep.subr.bf16.mxu1 %v5143_v27 }
  0x73   : > { %3328 = vmatmul.mubr.bf16.gmra.mxu1 %v5101_v39  ;;  %1285 = vst [vmem:[#allocation3 + $0x24c] sm:$0xf] %v4389_v18  ;;  %1679 = vst [vmem:[#allocation3 + $0x210] sm:$0xf] %v4389_v18  ;;  %v5120_v26 = vld [vmem:[#allocation3 + $0x17c] ss:$36 sps:$4 sm:$0xff]  }
  0x74   : > { %3335 = vmatprep.mubr.bf16.mxu1 %v5106_v44  ;;  %1942 = vst [vmem:[#allocation3 + $0x1f4] sm:$0xf] %v4432_v17  ;;  %1286 = vst [vmem:[#allocation3 + $0x270] sm:$0xf] %v4390_v20  ;;  %v5123_v28 = vld [vmem:[#allocation3 + $0x1bc] ss:$36 sps:$4 sm:$0xff]   ;;  %4818 = vmatpush3.bf16.msra.mxu1 %v5144_v31 }
  0x75   : > { %1680 = vst [vmem:[#allocation3 + $0x234] sm:$0xf] %v4390_v20  ;;  %4917 = vmatpush3.bf16.msra.mxu0 %v5141_v21  ;;  %v1439_v39 = vld [vmem:[#allocation2 + $0x99] sm:$0xff]  ;;  %v1440_v29 = vld [vmem:[#allocation2 + $0xa1] sm:$0xff]  ;;  %v280_v41 = vadd.s32 168, %v5292_v9  ;;  %v4558_v46 = vld [vmem:[%s5309_s23 + $0x50] sm:$0xff]  }
  0x76   : > { %4918 = vmatprep.subr.bf16.mxu0 %v5568_v24  ;;  %v4433_v42 = vpack.c.bf16 %v1439_v39, %v1439_v39  ;;  %v4434_v43 = vpack.c.bf16 %v1440_v29, %v1440_v29  ;;  %1417 = vst [vmem:[#allocation3 + $0x250] sm:$0xf] %v4411_v37  ;;  %1418 = vst [vmem:[#allocation3 + $0x274] sm:$0xf] %v4412_v38  ;;  %v5151_v44 = vld [vmem:[%s5880_s1 + $0x208] sm:$0xff]   ;;  %v4547_v50 = vunpack.c.l.bf16 %v4558_v46  ;;  %v5154_v53 = vld [vmem:[%s5880_s1 + $0x1c0] sm:$0xff]   ;;  %v4548_v54 = vunpack.c.h.bf16 %v4558_v46 }
  0x77   : > { %1811 = vst [vmem:[#allocation3 + $0x214] sm:$0xf] %v4411_v37  ;;  %1812 = vst [vmem:[#allocation3 + $0x238] sm:$0xf] %v4412_v38  ;;  %v5125_v9 = vld [vmem:[#allocation3 + $0x178] ss:$36 sps:$4 sm:$0xff]   ;;  %4819 = vmatprep.subr.bf16.mxu1 %v5154_v53 }
  0x78   : > { %3449 = vmatmul.mubr.bf16.gmra.mxu0 %v5108_v1  ;;  %1549 = vst [vmem:[#allocation3 + $0x254] sm:$0xf] %v4433_v42  ;;  %1550 = vst [vmem:[#allocation3 + $0x278] sm:$0xf] %v4434_v43  ;;  %v1441_v47 = vld [vmem:[#allocation2 + $0xa9] sm:$0xff]  ;;  %v432_v48 = vand.u32 15, %v280_v41 }
  0x79   : > { %3456 = vmatprep.mubr.bf16.mxu0 %v5112_v7  ;;  %1155 = vst [vmem:[#allocation3 + $0x290] sm:$0xf] %v4433_v42  ;;  %1156 = vst [vmem:[#allocation3 + $0x2b4] sm:$0xf] %v4434_v43  ;;  %4919 = vmatpush3.bf16.msra.mxu0 %v5151_v44  ;;  %v5126_v32 = vld [vmem:[#allocation3 + $0x1b8] ss:$36 sps:$4 sm:$0xff]   ;;  %v4435_v52 = vpack.c.bf16 %v1441_v47, %v1441_v47 }
  0x7a   : > { %1943 = vst [vmem:[#allocation3 + $0x218] sm:$0xf] %v4433_v42  ;;  %1944 = vst [vmem:[#allocation3 + $0x23c] sm:$0xf] %v4434_v43  ;;  %v5128_v49 = vld [vmem:[#allocation3 + $0x1c4] ss:$36 sps:$4 sm:$0xff]   ;;  %4920 = vmatprep.subr.bf16.mxu0 %v5568_v24 }
  0x7b   : > { %3336 = vmatmul.mubr.bf16.gmra.mxu1 %v5109_v6  ;;  %v5130_v55 = vld [vmem:[#allocation3 + $0x204] ss:$36 sps:$4 sm:$0xff]   ;;  %v5209_v58 = vld [vmem:[%s5882_s3] ss:$0 sm:$0xff]  ;;  %1551 = vst [vmem:[#allocation3 + $0x29c] sm:$0xf] %v4435_v52 }
  0x7c   : > { %3343 = vmatprep.mubr.bf16.mxu1 %v5114_v16  ;;  %v5158_v56 = vld [vmem:[%s5880_s1 + $0x180] sm:$0xff]   ;;  %v616_v60 = vmul.f32 %v5209_v58, %v4547_v50  ;;  %v617_v61 = vmul.f32 %v5209_v58, %v4548_v54  ;;  %1157 = vst [vmem:[#allocation3 + $0x2d8] sm:$0xf] %v4435_v52  ;;  %1945 = vst [vmem:[#allocation3 + $0x260] sm:$0xf] %v4435_v52  ;;  %vm5654_vm10 = vcmp.lt.s32.totalorder %v432_v48, 11 }
  0x7d   : > { %v5160_v62 = vld [vmem:[%s5880_s1 + $0x200] sm:$0xff]   ;;  %4820 = vmatpush3.bf16.msra.mxu1 %v5158_v56  ;;  %v1556_v0 = vld [vmem:[#allocation2 + $0x2f] sm:$0xff]  ;;  %v1557_v10 = vld [vmem:[#allocation2 + $0x37] sm:$0xff] }
  0x7e   : > { %v1555_v63 = vld [vmem:[#allocation2 + $0x27] sm:$0xff]  ;;  %v1688_v3 = vld [vmem:[#allocation2 + $0x30] sm:$0xff]  ;;  %v5210_v4 = vld [vmem:[%s5883_s4] ss:$0 sm:$0xff]  ;;  %4921 = vmatpush3.bf16.msra.mxu0 %v5160_v62  ;;  %v4440_v7 = vpack.c.bf16 %v1556_v0, %v1556_v0  ;;  %v4441_v14 = vpack.c.bf16 %v1557_v10, %v1557_v10 }
  0x7f   : > { %v4439_v1 = vpack.c.bf16 %v1555_v63, %v1555_v63  ;;  %v1687_v2 = vld [vmem:[#allocation2 + $0x28] sm:$0xff]  ;;  %v645_v5 = vadd.f32 %v5210_v4, %v616_v60  ;;  %v646_v6 = vadd.f32 %v5210_v4, %v617_v61  ;;  %v1558_v11 = vld [vmem:[#allocation2 + $0x3f] sm:$0xff]  ;;  %v4462_v13 = vpack.c.bf16 %v1688_v3, %v1688_v3  ;;  %v1692_v38 = vld [vmem:[#allocation2 + $0x50] sm:$0xff] }
  0x80   : > { %3457 = vmatmul.mubr.bf16.gmra.mxu0 %v5116_v22  ;;  %v4461_v8 = vpack.c.bf16 %v1687_v2, %v1687_v2  ;;  %v1689_v12 = vld [vmem:[#allocation2 + $0x38] sm:$0xff]  ;;  %v4442_v16 = vpack.c.bf16 %v1558_v11, %v1558_v11  ;;  %1666 = vst [vmem:[#allocation3 + $0x3c] sm:$0xf] %v4440_v7  ;;  %v5132_v20 = vld [vmem:[#allocation3 + $0x1c0] ss:$36 sps:$4 sm:$0xff]   ;;  %v1560_v31 = vld [vmem:[#allocation2 + $0x4f] sm:$0xff]  ;;  %v4466_v41 = vpack.c.bf16 %v1692_v38, %v1692_v38 }
  0x81   : > { %3464 = vmatprep.mubr.bf16.mxu0 %v5120_v26  ;;  %1665 = vst [vmem:[#allocation3 + $0x18] sm:$0xf] %v4439_v1  ;;  %v4463_v17 = vpack.c.bf16 %v1689_v12, %v1689_v12  ;;  %761 = vst [vmem:[#allocation2 + $0xb8] sm:$0xff] %v645_v5  ;;  %v740_v18 = vsel %vm5654_vm10, %v646_v6, 0.0  ;;  %v4415_v19 = vpack.c.bf16 %v645_v5, %v645_v5  ;;  %v1690_v22 = vld [vmem:[#allocation2 + $0x40] sm:$0xff]  ;;  %v1691_v37 = vld [vmem:[#allocation2 + $0x48] sm:$0xff] }
  0x82   : > { %1797 = vst [vmem:[#allocation3 + $0x1c] sm:$0xf] %v4461_v8  ;;  %762 = vst [vmem:[#allocation2 + $0xc0] sm:$0xff] %v740_v18  ;;  %v4416_v21 = vpack.c.bf16 %v740_v18, %v740_v18  ;;  %v5136_v26 = vld [vmem:[#allocation3 + $0x20c] ss:$36 sps:$4 sm:$0xff]   ;;  %v4464_v27 = vpack.c.bf16 %v1690_v22, %v1690_v22  ;;  %v4444_v36 = vpack.c.bf16 %v1560_v31, %v1560_v31  ;;  %v1561_v42 = vld [vmem:[#allocation2 + $0x57] sm:$0xff] }
  0x83   : > { %3344 = vmatmul.mubr.bf16.gmra.mxu1 %v5117_v23  ;;  %1798 = vst [vmem:[#allocation3 + $0x40] sm:$0xf] %v4462_v13  ;;  %1667 = vst [vmem:[#allocation3 + $0x60] sm:$0xf] %v4441_v14  ;;  %v5133_v23 = vld [vmem:[#allocation3 + $0x200] ss:$36 sps:$4 sm:$0xff]   ;;  %v4465_v29 = vpack.c.bf16 %v1691_v37, %v1691_v37  ;;  %v4445_v44 = vpack.c.bf16 %v1561_v42, %v1561_v42 }
  0x84   : > { %3351 = vmatprep.mubr.bf16.mxu1 %v5123_v28  ;;  %1668 = vst [vmem:[#allocation3 + $0x84] sm:$0xf] %v4442_v16  ;;  %1799 = vst [vmem:[#allocation3 + $0x64] sm:$0xf] %v4463_v17  ;;  %v1559_v28 = vld [vmem:[#allocation2 + $0x47] sm:$0xff]  ;;  %v1562_v43 = vld [vmem:[#allocation2 + $0x5f] sm:$0xff] }
  0x85   : > { %1421 = vst [vmem:[#allocation3 + $0x2e0] sm:$0xf] %v4415_v19  ;;  %1815 = vst [vmem:[#allocation3 + $0x2a4] sm:$0xf] %v4415_v19  ;;  %v4443_v33 = vpack.c.bf16 %v1559_v28, %v1559_v28  ;;  %v5138_v39 = vld [vmem:[#allocation3 + $0x24c] ss:$36 sps:$4 sm:$0xff]   ;;  %v4446_v48 = vpack.c.bf16 %v1562_v43, %v1562_v43 }
  0x86   : > { %1422 = vst [vmem:[#allocation3 + $0x304] sm:$0xf] %v4416_v21  ;;  %1816 = vst [vmem:[#allocation3 + $0x2c8] sm:$0xf] %v4416_v21  ;;  %v5140_v60 = vld [vmem:[#allocation3 + $0x208] ss:$36 sps:$4 sm:$0xff]  }
  0x87   : > { %1800 = vst [vmem:[#allocation3 + $0x88] sm:$0xf] %v4464_v27  ;;  %1669 = vst [vmem:[#allocation3 + $0xa8] sm:$0xf] %v4443_v33  ;;  %v5142_v61 = vld [vmem:[#allocation3 + $0x248] ss:$36 sps:$4 sm:$0xff]  }
  0x88   : > { %3465 = vmatmul.mubr.bf16.gmra.mxu0 %v5125_v9  ;;  %1670 = vst [vmem:[#allocation3 + $0xcc] sm:$0xf] %v4444_v36  ;;  %v1693_v9 = vld [vmem:[#allocation2 + $0x58] sm:$0xff]  ;;  %1801 = vst [vmem:[#allocation3 + $0xac] sm:$0xf] %v4465_v29  ;;  %v1571_v7 = vld [vmem:[#allocation2 + $0xa7] sm:$0xff] }
  0x89   : > { %3472 = vmatprep.mubr.bf16.mxu0 %v5128_v49  ;;  %v1442_v46 = vld [vmem:[#allocation2 + $0xb1] sm:$0xff]  ;;  %1802 = vst [vmem:[#allocation3 + $0xd0] sm:$0xf] %v4466_v41  ;;  %v1180_v50 = vld [vmem:[#allocation2 + $0xbf] sm:$0xff]  ;;  %1671 = vst [vmem:[#allocation3 + $0xf0] sm:$0xf] %v4445_v44  ;;  %v4455_v10 = vpack.c.bf16 %v1571_v7, %v1571_v7 }
  0x8a   : > { %v1179_v47 = vld [vmem:[#allocation2 + $0xb7] sm:$0xff]  ;;  %v4436_v49 = vpack.c.bf16 %v1442_v46, %v1442_v46  ;;  %v1444_v54 = vld [vmem:[#allocation2 + $0xc1] sm:$0xff]  ;;  %1672 = vst [vmem:[#allocation3 + $0x114] sm:$0xf] %v4446_v48  ;;  %v1572_v8 = vld [vmem:[#allocation2 + $0xaf] sm:$0xff] }
  0x8b   : > { %3352 = vmatmul.mubr.bf16.gmra.mxu1 %v5126_v32  ;;  %v4467_v32 = vpack.c.bf16 %v1693_v9, %v1693_v9  ;;  %v4393_v52 = vpack.c.bf16 %v1179_v47, %v1179_v47  ;;  %v1443_v53 = vld [vmem:[#allocation2 + $0xb9] sm:$0xff]  ;;  %v4438_v58 = vpack.c.bf16 %v1444_v54, %v1444_v54  ;;  %v5149_v0 = vld [vmem:[#allocation3 + $0x250] ss:$36 sps:$4 sm:$0xff]   ;;  %v1703_v11 = vld [vmem:[#allocation2 + $0xa8] sm:$0xff]  ;;  %v4456_v14 = vpack.c.bf16 %v1572_v8, %v1572_v8 }
  0x8c   : > { %3359 = vmatprep.mubr.bf16.mxu1 %v5130_v55  ;;  %v4394_v55 = vpack.c.bf16 %v1180_v50, %v1180_v50  ;;  %v4437_v56 = vpack.c.bf16 %v1443_v53, %v1443_v53  ;;  %1552 = vst [vmem:[#allocation3 + $0x2c0] sm:$0xf] %v4436_v49  ;;  %1158 = vst [vmem:[#allocation3 + $0x2fc] sm:$0xf] %v4436_v49  ;;  %v5145_v62 = vld [vmem:[#allocation3 + $0x254] ss:$36 sps:$4 sm:$0xff]   ;;  %v4477_v16 = vpack.c.bf16 %v1703_v11, %v1703_v11 }
  0x8d   : > { %1803 = vst [vmem:[#allocation3 + $0xf4] sm:$0xf] %v4467_v32  ;;  %1289 = vst [vmem:[#allocation3 + $0x2dc] sm:$0xf] %v4393_v52  ;;  %v5147_v63 = vld [vmem:[#allocation3 + $0x294] ss:$36 sps:$4 sm:$0xff]  }
  0x8e   : > { %1683 = vst [vmem:[#allocation3 + $0x2a0] sm:$0xf] %v4393_v52  ;;  %1946 = vst [vmem:[#allocation3 + $0x284] sm:$0xf] %v4436_v49  ;;  %v5150_v1 = vld [vmem:[#allocation3 + $0x290] ss:$36 sps:$4 sm:$0xff]  }
  0x8f   : > { %1290 = vst [vmem:[#allocation3 + $0x300] sm:$0xf] %v4394_v55  ;;  %1553 = vst [vmem:[#allocation3 + $0x2e4] sm:$0xf] %v4437_v56  ;;  %v5157_v4 = vld [vmem:[#allocation3 + $0x298] ss:$36 sps:$4 sm:$0xff]  }
  0x90   : > { %3473 = vmatmul.mubr.bf16.gmra.mxu0 %v5132_v20  ;;  %1554 = vst [vmem:[#allocation3 + $0x308] sm:$0xf] %v4438_v58  ;;  %1684 = vst [vmem:[#allocation3 + $0x2c4] sm:$0xf] %v4394_v55  ;;  %v1704_v12 = vld [vmem:[#allocation2 + $0xb0] sm:$0xff]  ;;  %v1575_v18 = vld [vmem:[#allocation2 + $0xc7] sm:$0xff] }
  0x91   : > { %3480 = vmatprep.mubr.bf16.mxu0 %v5136_v26  ;;  %1947 = vst [vmem:[#allocation3 + $0x2a8] sm:$0xf] %v4437_v56  ;;  %1948 = vst [vmem:[#allocation3 + $0x2cc] sm:$0xf] %v4438_v58  ;;  %v5166_v13 = vld [vmem:[#allocation3 + $0x1c] ss:$36 sps:$4 sm:$0xff]   ;;  %v4478_v17 = vpack.c.bf16 %v1704_v12, %v1704_v12  ;;  %v4459_v20 = vpack.c.bf16 %v1575_v18, %v1575_v18 }
  0x92   : > { %1681 = vst [vmem:[#allocation3 + $0x258] sm:$0xf] %v4455_v10  ;;  %1682 = vst [vmem:[#allocation3 + $0x27c] sm:$0xf] %v4456_v14  ;;  %v1576_v19 = vld [vmem:[#allocation2 + $0xcf] sm:$0xff]  ;;  %v5663_v36 = vld [vmem:[#allocation2] sm:$0xff] }
  0x93   : > { %3360 = vmatmul.mubr.bf16.gmra.mxu1 %v5133_v23  ;;  %v5152_v2 = vld [vmem:[#allocation3 + $0x29c] ss:$36 sps:$4 sm:$0xff]   ;;  %1813 = vst [vmem:[#allocation3 + $0x25c] sm:$0xf] %v4477_v16  ;;  %1814 = vst [vmem:[#allocation3 + $0x280] sm:$0xf] %v4478_v17  ;;  %v4460_v21 = vpack.c.bf16 %v1576_v19, %v1576_v19 }
  0x94   : > { %3367 = vmatprep.mubr.bf16.mxu1 %v5138_v39  ;;  %v5159_v5 = vld [vmem:[#allocation3 + $0x2d8] ss:$36 sps:$4 sm:$0xff]   ;;  %v1839_v22 = vld [vmem:[#allocation2 + $0xc9] sm:$0xff]  ;;  %v5163_v26 = vld [vmem:[#allocation3 + $0x2e0] ss:$36 sps:$4 sm:$0xff]  }
  0x95   : > { %v1840_v23 = vld [vmem:[#allocation2 + $0xd1] sm:$0xff]  ;;  %1685 = vst [vmem:[#allocation3 + $0x2e8] sm:$0xf] %v4459_v20  ;;  %v4503_v27 = vpack.c.bf16 %v1839_v22, %v1839_v22  ;;  %1686 = vst [vmem:[#allocation3 + $0x30c] sm:$0xf] %v4460_v21 }
  0x96   : > { %v5155_v3 = vld [vmem:[#allocation3 + $0x2dc] ss:$36 sps:$4 sm:$0xff]   ;;  %v4504_v28 = vpack.c.bf16 %v1840_v23, %v1840_v23  ;;  %v5167_v33 = vld [vmem:[#allocation3 + $0x64] ss:$36 sps:$4 sm:$0xff]   ;;  %v5171_v39 = vld [vmem:[#allocation3 + $0xac] ss:$36 sps:$4 sm:$0xff]  }
  0x97   : > { %v5161_v6 = vld [vmem:[#allocation3 + $0x2e4] ss:$36 sps:$4 sm:$0xff]   ;;  %v5164_v31 = vld [vmem:[#allocation3 + $0x18] ss:$36 sps:$4 sm:$0xff]   ;;  %1949 = vst [vmem:[#allocation3 + $0x2f0] sm:$0xf] %v4503_v27 }
  0x98   : > { %3481 = vmatmul.mubr.bf16.gmra.mxu0 %v5140_v60  ;;  %1950 = vst [vmem:[#allocation3 + $0x314] sm:$0xf] %v4504_v28  ;;  %v5169_v37 = vld [vmem:[#allocation3 + $0x20] ss:$36 sps:$4 sm:$0xff]   ;;  %v5173_v29 = vld [vmem:[#allocation3 + $0x68] ss:$36 sps:$4 sm:$0xff]  }
  0x99   : > { %3488 = vmatprep.mubr.bf16.mxu0 %v5145_v62  ;;  %v5170_v38 = vld [vmem:[#allocation3 + $0x60] ss:$36 sps:$4 sm:$0xff]   ;;  %v5174_v41 = vld [vmem:[#allocation3 + $0xa8] ss:$36 sps:$4 sm:$0xff]   ;;  %v5175_v42 = vld [vmem:[#allocation3 + $0xf4] ss:$36 sps:$4 sm:$0xff]  }
  0x9a   : > { %v5177_v43 = vld [vmem:[#allocation3 + $0xb0] ss:$36 sps:$4 sm:$0xff]   ;;  %v5179_v9 = vld [vmem:[#allocation3 + $0x13c] ss:$36 sps:$4 sm:$0xff]   ;;  %v5183_v48 = vld [vmem:[#allocation3 + $0x184] ss:$36 sps:$4 sm:$0xff]  }
  0x9b   : > { %3368 = vmatmul.mubr.bf16.gmra.mxu1 %v5142_v61  ;;  %v5178_v44 = vld [vmem:[#allocation3 + $0xf0] ss:$36 sps:$4 sm:$0xff]   ;;  %v5181_v46 = vld [vmem:[#allocation3 + $0xf8] ss:$36 sps:$4 sm:$0xff]   ;;  %v5185_v32 = vld [vmem:[#allocation3 + $0x140] ss:$36 sps:$4 sm:$0xff]  }
  0x9c   : > { %3375 = vmatprep.mubr.bf16.mxu1 %v5147_v63  ;;  %v5182_v47 = vld [vmem:[#allocation3 + $0x138] ss:$36 sps:$4 sm:$0xff]   ;;  %v5186_v49 = vld [vmem:[#allocation3 + $0x180] ss:$36 sps:$4 sm:$0xff]   ;;  %v5187_v50 = vld [vmem:[#allocation3 + $0x1cc] ss:$36 sps:$4 sm:$0xff]  }
  0x9d   : > { %v5189_v52 = vld [vmem:[#allocation3 + $0x188] ss:$36 sps:$4 sm:$0xff]   ;;  %v5191_v54 = vld [vmem:[#allocation3 + $0x214] ss:$36 sps:$4 sm:$0xff]   ;;  %v5195_v62 = vld [vmem:[#allocation3 + $0x25c] ss:$36 sps:$4 sm:$0xff]  }
  0x9e   : > { %v5190_v53 = vld [vmem:[#allocation3 + $0x1c8] ss:$36 sps:$4 sm:$0xff]   ;;  %v5193_v56 = vld [vmem:[#allocation3 + $0x1d0] ss:$36 sps:$4 sm:$0xff]   ;;  %v5202_v14 = vld [vmem:[#allocation3 + $0x2a0] ss:$36 sps:$4 sm:$0xff]  }
  0x9f   : > { %v5194_v60 = vld [vmem:[#allocation3 + $0x210] ss:$36 sps:$4 sm:$0xff]  }
  0xa0   : > { %3489 = vmatmul.mubr.bf16.gmra.mxu0 %v5149_v0  ;;  %v5203_v19 = vld [vmem:[#allocation3 + $0x2ec] ss:$36 sps:$4 sm:$0xff]  }
  0xa1   : > { %3496 = vmatprep.mubr.bf16.mxu0 %v5152_v2  ;;  %v5197_v2 = vld [vmem:[#allocation3 + $0x218] ss:$36 sps:$4 sm:$0xff]  }
  0xa3   : > { %3376 = vmatmul.mubr.bf16.gmra.mxu1 %v5150_v1 }
  0xa4   : > { %3383 = vmatprep.mubr.bf16.mxu1 %v5155_v3 }
  0xa8   : > { %3497 = vmatmul.mubr.bf16.gmra.mxu0 %v5157_v4  ;;  %v5198_v4 = vld [vmem:[#allocation3 + $0x258] ss:$36 sps:$4 sm:$0xff]  }
  0xa9   : > { %3504 = vmatprep.mubr.bf16.mxu0 %v5161_v6 }
  0xab   : > { %3384 = vmatmul.mubr.bf16.gmra.mxu1 %v5159_v5  ;;  %v5199_v5 = vld [vmem:[#allocation3 + $0x2a4] ss:$36 sps:$4 sm:$0xff]  }
  0xac   : > { %3545 = vmatprep.mubr.bf16.mxu1 %v5166_v13  ;;  %v5201_v13 = vld [vmem:[#allocation3 + $0x260] ss:$36 sps:$4 sm:$0xff]  }
  0xb0   : > { %3505 = vmatmul.mubr.bf16.gmra.mxu0 %v5163_v26 }
  0xb1   : > { %4922 = vmatprep.mubr.msk.bf16.mxu0 %vm5222_vm11, %v5663_v36 }
  0xb3   : > { %3546 = vmatmul.mubr.bf16.vlgmr.msra.gmra.mxu1 %v5164_v31 }
  0xb4   : > { %3553 = vmatprep.mubr.bf16.mxu1 %v5167_v33  ;;  %v5205_v33 = vld [vmem:[#allocation3 + $0x2a8] ss:$36 sps:$4 sm:$0xff]  }
  0xb8   : > { %4923 = vmatmul.mubr.bf16.vlgmr.msra.gmra.mxu0 %v5169_v37 }
  0xb9   : > { %4926 = vmatprep.mubr.msk.bf16.mxu0 %vm5222_vm11, %v5663_v36 }
  0xbb   : > { %3554 = vmatmul.mubr.bf16.gmra.mxu1 %v5170_v38  ;;  %v5206_v38 = vld [vmem:[#allocation3 + $0x2e8] ss:$36 sps:$4 sm:$0xff]  }
  0xbc   : > { %3561 = vmatprep.mubr.bf16.mxu1 %v5171_v39 }
  0xc0   : > { %4927 = vmatmul.mubr.bf16.gmra.mxu0 %v5173_v29 }
  0xc1   : > { %4930 = vmatprep.mubr.msk.bf16.mxu0 %vm5222_vm11, %v5663_v36 }
  0xc3   : > { %3562 = vmatmul.mubr.bf16.gmra.mxu1 %v5174_v41 }
  0xc4   : > { %3569 = vmatprep.mubr.bf16.mxu1 %v5175_v42 }
  0xc8   : > { %4931 = vmatmul.mubr.bf16.gmra.mxu0 %v5177_v43 }
  0xc9   : > { %4934 = vmatprep.mubr.msk.bf16.mxu0 %vm5222_vm11, %v5663_v36 }
  0xcb   : > { %3570 = vmatmul.mubr.bf16.gmra.mxu1 %v5178_v44 }
  0xcc   : > { %3577 = vmatprep.mubr.bf16.mxu1 %v5179_v9 }
  0xd0   : > { %4935 = vmatmul.mubr.bf16.gmra.mxu0 %v5181_v46 }
  0xd1   : > { %4938 = vmatprep.mubr.msk.bf16.mxu0 %vm5222_vm11, %v5663_v36 }
  0xd3   : > { %3578 = vmatmul.mubr.bf16.gmra.mxu1 %v5182_v47 }
  0xd4   : > { %3585 = vmatprep.mubr.bf16.mxu1 %v5183_v48 }
  0xd8   : > { %4939 = vmatmul.mubr.bf16.gmra.mxu0 %v5185_v32 }
  0xd9   : > { %4942 = vmatprep.mubr.msk.bf16.mxu0 %vm5222_vm11, %v5663_v36 }
  0xdb   : > { %3586 = vmatmul.mubr.bf16.gmra.mxu1 %v5186_v49  ;;  %v5207_v49 = vld [vmem:[#allocation3 + $0x2f0] ss:$36 sps:$4 sm:$0xff]  }
  0xdc   : > { %3593 = vmatprep.mubr.bf16.mxu1 %v5187_v50 }
  0xe0   : > { %4943 = vmatmul.mubr.bf16.gmra.mxu0 %v5189_v52 }
  0xe1   : > { %4946 = vmatprep.mubr.msk.bf16.mxu0 %vm5222_vm11, %v5663_v36 }
  0xe3   : > { %3594 = vmatmul.mubr.bf16.gmra.mxu1 %v5190_v53 }
  0xe4   : > { %3601 = vmatprep.mubr.bf16.mxu1 %v5191_v54 }
  0xe8   : > { %4947 = vmatmul.mubr.bf16.gmra.mxu0 %v5193_v56 }
  0xe9   : > { %4950 = vmatprep.mubr.msk.bf16.mxu0 %vm5222_vm11, %v5663_v36 }
  0xeb   : > { %3602 = vmatmul.mubr.bf16.gmra.mxu1 %v5194_v60 }
  0xec   : > { %v4575_v55 = vpop.f32.mrf.mxu0  ;;  %3609 = vmatprep.mubr.bf16.mxu1 %v5195_v62  ;;  %v4611_v3 = vpop.f32.mrf.mxu1 }
  0xee   : > { %v4576_v58 = vpop.f32.mrf.mxu0  ;;  %v4612_v6 = vpop.f32.mrf.mxu1 }
  0xef   : > { %v5679_v61 = vadd.f32 %v4576_v58, %v4575_v55  ;;  %v5685_v7 = vadd.f32 %v4612_v6, %v4611_v3 }
  0xf0   : > { %v4578_v63 = vpop.f32.mrf.mxu0  ;;  %4951 = vmatmul.mubr.bf16.gmra.mxu0 %v5197_v2  ;;  %v4614_v8 = vpop.f32.mrf.mxu1 }
  0xf1   : > { %4954 = vmatprep.mubr.msk.bf16.mxu0 %vm5222_vm11, %v5663_v36 }
  0xf2   : > { %v4579_v0 = vpop.f32.mrf.mxu0  ;;  %v4615_v10 = vpop.f32.mrf.mxu1 }
  0xf3   : > { %v5683_v1 = vadd.f32 %v4579_v0, %v4578_v63  ;;  %3610 = vmatmul.mubr.bf16.gmra.mxu1 %v5198_v4  ;;  %v5689_v12 = vadd.f32 %v4615_v10, %v4614_v8 }
  0xf4   : > { %3617 = vmatprep.mubr.bf16.mxu1 %v5199_v5  ;;  %v4581_v11 = vpop.f32.mrf.mxu0 }
  0xf6   : > { %v4582_v16 = vpop.f32.mrf.mxu0 }
  0xf7   : > { %v4617_v17 = vpop.f32.mrf.mxu1  ;;  %v5691_v18 = vadd.f32 %v4582_v16, %v4581_v11 }
  0xf8   : > { %v4584_v20 = vpop.f32.mrf.mxu0  ;;  %4955 = vmatmul.mubr.bf16.gmra.mxu0 %v5201_v13 }
  0xf9   : > { %v4618_v21 = vpop.f32.mrf.mxu1  ;;  %4958 = vmatprep.mubr.msk.bf16.mxu0 %vm5222_vm11, %v5663_v36 }
  0xfa   : > { %v5693_v22 = vadd.f32 %v4618_v21, %v4617_v17  ;;  %v4585_v23 = vpop.f32.mrf.mxu0 }
  0xfb   : > { %3618 = vmatmul.mubr.bf16.gmra.mxu1 %v5202_v14  ;;  %v4620_v26 = vpop.f32.mrf.mxu1  ;;  %v5697_v27 = vadd.f32 %v4585_v23, %v4584_v20  ;;  %v5730_v20 = vld [vmem:[%s5881_s2] ss:$0 sm:$0xff] }
  0xfc   : > { %3625 = vmatprep.mubr.bf16.mxu1 %v5203_v19  ;;  %v4587_v31 = vpop.f32.mrf.mxu0 }
  0xfd   : > { %v4621_v28 = vpop.f32.mrf.mxu1 }
  0xfe   : > { %v5699_v37 = vadd.f32 %v4621_v28, %v4620_v26  ;;  %v4588_v29 = vpop.f32.mrf.mxu0 }
  0xff   : > { %v4623_v39 = vpop.f32.mrf.mxu1  ;;  %v5701_v41 = vadd.f32 %v4588_v29, %v4587_v31  ;;  %v3185_v31 = vadd.f32 %v5679_v61, %v5730_v20  ;;  %v3193_v61 = vadd.f32 %v5691_v18, %v5730_v20 }
 0x100   : > { %4959 = vmatmul.mubr.bf16.gmra.mxu0 %v5205_v33  ;;  %v4590_v43 = vpop.f32.mrf.mxu0 }
 0x101   : > { %v4624_v42 = vpop.f32.mrf.mxu1  ;;  %4962 = vmatprep.mubr.msk.bf16.mxu0 %vm5222_vm11, %v5663_v36 }
 0x102   : > { %v5703_v44 = vadd.f32 %v4624_v42, %v4623_v39  ;;  %v4591_v46 = vpop.f32.mrf.mxu0 }
 0x103   : > { %3626 = vmatmul.mubr.bf16.gmra.mxu1 %v5206_v38  ;;  %v4626_v9 = vpop.f32.mrf.mxu1  ;;  %v5707_v47 = vadd.f32 %v4591_v46, %v4590_v43  ;;  %v3188_v46 = vadd.f32 %v5683_v1, %v5730_v20  ;;  %v3196_v1 = vadd.f32 %v5697_v27, %v5730_v20 }
 0x105   : > { %v4627_v48 = vpop.f32.mrf.mxu1 }
 0x106   : > { %v4593_v32 = vpop.f32.mrf.mxu0  ;;  %v5709_v50 = vadd.f32 %v4627_v48, %v4626_v9 }
 0x107   : > { %v4629_v52 = vpop.f32.mrf.mxu1 }
 0x108   : > { %v4594_v53 = vpop.f32.mrf.mxu0  ;;  %4963 = vmatmul.mubr.bf16.gmra.mxu0 %v5207_v49 }
 0x109   : > { %v5711_v54 = vadd.f32 %v4594_v53, %v4593_v32  ;;  %v4630_v55 = vpop.f32.mrf.mxu1 }
 0x10a   : > { %v4596_v56 = vpop.f32.mrf.mxu0  ;;  %v5713_v58 = vadd.f32 %v4630_v55, %v4629_v52 }
 0x10b   : > { %v4632_v60 = vpop.f32.mrf.mxu1 }
 0x10c   : > { %v4597_v36 = vpop.f32.mrf.mxu0 }
 0x10d   : > { %v5715_v62 = vadd.f32 %v4597_v36, %v4596_v56  ;;  %v4633_v63 = vpop.f32.mrf.mxu1 }
 0x10e   : > { %v5717_v0 = vadd.f32 %v4633_v63, %v4632_v60 }
 0x110   : > { %v4599_v2 = vpop.f32.mrf.mxu0 }
 0x112   : > { %v4600_v4 = vpop.f32.mrf.mxu0 }
 0x113   : > { %v4635_v3 = vpop.f32.mrf.mxu1  ;;  %v5719_v5 = vadd.f32 %v4600_v4, %v4599_v2 }
 0x114   : > { %v4602_v10 = vpop.f32.mrf.mxu0 }
 0x115   : > { %v4636_v6 = vpop.f32.mrf.mxu1 }
 0x116   : > { %v5721_v8 = vadd.f32 %v4636_v6, %v4635_v3  ;;  %v4603_v13 = vpop.f32.mrf.mxu0 }
 0x117   : > { %v4638_v11 = vpop.f32.mrf.mxu1  ;;  %v5723_v14 = vadd.f32 %v4603_v13, %v4602_v10 }
 0x118   : > { %v4605_v19 = vpop.f32.mrf.mxu0 }
 0x119   : > { %v4639_v16 = vpop.f32.mrf.mxu1 }
 0x11a   : > { %v5725_v17 = vadd.f32 %v4639_v16, %v4638_v11  ;;  %v4606_v23 = vpop.f32.mrf.mxu0 }
 0x11b   : > { %v4657_v21 = vpop.f32.mrf.mxu1  ;;  %v5732_v26 = vadd.f32 %v4606_v23, %v4605_v19 }
 0x11c   : > { %v4608_v38 = vpop.f32.mrf.mxu0 }
 0x11d   : > { %v4658_v28 = vpop.f32.mrf.mxu1 }
 0x11e   : > { %v4659_v33 = vadd.f32 %v4658_v28, %v4657_v21  ;;  %v4609_v42 = vpop.f32.mrf.mxu0 }
 0x11f   : > { %v4660_v39 = vpop.f32.mrf.mxu1  ;;  %v5736_v43 = vadd.f32 %v4609_v42, %v4608_v38 }
 0x120   : > { %v3306_v29 = vadd.f32 %v4659_v33, %v3185_v31  ;;  %v4739_v32 = vpop.f32.mrf.mxu0  ;;  %v3201_v31 = vadd.f32 %v5701_v41, %v5730_v20 }
 0x121   : > { %v4661_v9 = vpop.f32.mrf.mxu1 }
 0x122   : > { %v4662_v48 = vadd.f32 %v4661_v9, %v4660_v39  ;;  %v4740_v53 = vpop.f32.mrf.mxu0 }
 0x123   : > { %v4663_v49 = vpop.f32.mrf.mxu1  ;;  %v4741_v55 = vadd.f32 %v4740_v53, %v4739_v32 }
 0x124   : > { %v3309_v52 = vadd.f32 %v4662_v48, %v3188_v46  ;;  %v4742_v36 = vpop.f32.mrf.mxu0  ;;  %v3204_v48 = vadd.f32 %v5707_v47, %v5730_v20 }
 0x125   : > { %v4664_v56 = vpop.f32.mrf.mxu1  ;;  %v5742_v63 = vadd.f32 %v4741_v55, %v3306_v29 }
 0x126   : > { %v4665_v60 = vadd.f32 %v4664_v56, %v4663_v49  ;;  %v4743_v4 = vpop.f32.mrf.mxu0 }
 0x127   : > { %v4666_v2 = vpop.f32.mrf.mxu1  ;;  %v4744_v6 = vadd.f32 %v4743_v4, %v4742_v36 }
 0x128   : > { %v3314_v3 = vadd.f32 %v4665_v60, %v3193_v61  ;;  %v4745_v13 = vpop.f32.mrf.mxu0  ;;  %v3209_v60 = vadd.f32 %v5711_v54, %v5730_v20 }
 0x129   : > { %v4667_v10 = vpop.f32.mrf.mxu1  ;;  %v5746_v16 = vadd.f32 %v4744_v6, %v3309_v52 }
 0x12a   : > { %v4668_v11 = vadd.f32 %v4667_v10, %v4666_v2  ;;  %v4746_v23 = vpop.f32.mrf.mxu0 }
 0x12b   : > { %v4669_v19 = vpop.f32.mrf.mxu1  ;;  %v4747_v18 = vadd.f32 %v4746_v23, %v4745_v13 }
 0x12c   : > { %v3317_v21 = vadd.f32 %v4668_v11, %v3196_v1  ;;  %v4748_v38 = vpop.f32.mrf.mxu0  ;;  %v3212_v11 = vadd.f32 %v5715_v62, %v5730_v20 }
 0x12d   : > { %v4670_v28 = vpop.f32.mrf.mxu1  ;;  %v5750_v39 = vadd.f32 %v4747_v18, %v3314_v3 }
 0x12e   : > { %v4671_v33 = vadd.f32 %v4670_v28, %v4669_v19  ;;  %v4749_v9 = vpop.f32.mrf.mxu0 }
 0x12f   : > { %v4672_v29 = vpop.f32.mrf.mxu1  ;;  %v4750_v27 = vadd.f32 %v4749_v9, %v4748_v38 }
 0x130   : > { %v3322_v42 = vadd.f32 %v4671_v33, %v3201_v31  ;;  %v4751_v49 = vpop.f32.mrf.mxu0  ;;  %v3217_v33 = vadd.f32 %v5719_v5, %v5730_v20 }
 0x131   : > { %v4673_v46 = vpop.f32.mrf.mxu1  ;;  %v5754_v52 = vadd.f32 %v4750_v27, %v3317_v21 }
 0x132   : > { %v4674_v32 = vadd.f32 %v4673_v46, %v4672_v29  ;;  %v4752_v56 = vpop.f32.mrf.mxu0 }
 0x133   : > { %v4675_v53 = vpop.f32.mrf.mxu1  ;;  %v4753_v41 = vadd.f32 %v4752_v56, %v4751_v49 }
 0x134   : > { %v3325_v55 = vadd.f32 %v4674_v32, %v3204_v48  ;;  %v4754_v2 = vpop.f32.mrf.mxu0  ;;  %v3220_v32 = vadd.f32 %v5723_v14, %v5730_v20 }
 0x135   : > { %v4676_v61 = vpop.f32.mrf.mxu1  ;;  %v5758_v3 = vadd.f32 %v4753_v41, %v3322_v42 }
 0x136   : > { %v4677_v36 = vadd.f32 %v4676_v61, %v4675_v53  ;;  %v4755_v10 = vpop.f32.mrf.mxu0 }
 0x137   : > { %v4678_v4 = vpop.f32.mrf.mxu1  ;;  %v4756_v47 = vadd.f32 %v4755_v10, %v4754_v2 }
 0x138   : > { %v3330_v6 = vadd.f32 %v4677_v36, %v3209_v60  ;;  %v4757_v19 = vpop.f32.mrf.mxu0  ;;  %v3225_v36 = vadd.f32 %v5732_v26, %v5730_v20 }
 0x139   : > { %v4679_v1 = vpop.f32.mrf.mxu1  ;;  %v5762_v21 = vadd.f32 %v4756_v47, %v3325_v55 }
 0x13a   : > { %v4680_v13 = vadd.f32 %v4679_v1, %v4678_v4  ;;  %v4758_v28 = vpop.f32.mrf.mxu0 }
 0x13b   : > { %v4681_v23 = vpop.f32.mrf.mxu1  ;;  %v4759_v54 = vadd.f32 %v4758_v28, %v4757_v19 }
 0x13c   : > { %v3333_v18 = vadd.f32 %v4680_v13, %v3212_v11  ;;  %v4760_v29 = vpop.f32.mrf.mxu0  ;;  %v3228_v13 = vadd.f32 %v5736_v43, %v5730_v20 }
 0x13d   : > { %v4682_v31 = vpop.f32.mrf.mxu1  ;;  %v5766_v42 = vadd.f32 %v4759_v54, %v3330_v6 }
 0x13e   : > { %v4683_v38 = vadd.f32 %v4682_v31, %v4681_v23  ;;  %v4761_v46 = vpop.f32.mrf.mxu0 }
 0x13f   : > { %v4684_v9 = vpop.f32.mrf.mxu1  ;;  %v4762_v62 = vadd.f32 %v4761_v46, %v4760_v29 }
 0x140   : > { %v3338_v27 = vadd.f32 %v4683_v38, %v3217_v33  ;;  %v4763_v53 = vpop.f32.mrf.mxu0  ;;  %v3233_v38 = vadd.f32 %v5685_v7, %v5730_v20 }
 0x141   : > { %v4685_v48 = vpop.f32.mrf.mxu1  ;;  %v5770_v55 = vadd.f32 %v4762_v62, %v3333_v18 }
 0x142   : > { %v4686_v49 = vadd.f32 %v4685_v48, %v4684_v9  ;;  %v4764_v61 = vpop.f32.mrf.mxu0 }
 0x143   : > { %v4687_v56 = vpop.f32.mrf.mxu1  ;;  %v4765_v5 = vadd.f32 %v4764_v61, %v4763_v53 }
 0x144   : > { %v3341_v41 = vadd.f32 %v4686_v49, %v3220_v32  ;;  %v4766_v4 = vpop.f32.mrf.mxu0  ;;  %v3236_v49 = vadd.f32 %v5689_v12, %v5730_v20 }
 0x145   : > { %v4688_v60 = vpop.f32.mrf.mxu1  ;;  %v5774_v6 = vadd.f32 %v4765_v5, %v3338_v27 }
 0x146   : > { %v4689_v2 = vadd.f32 %v4688_v60, %v4687_v56  ;;  %v4767_v1 = vpop.f32.mrf.mxu0 }
 0x147   : > { %v4690_v10 = vpop.f32.mrf.mxu1  ;;  %v4768_v14 = vadd.f32 %v4767_v1, %v4766_v4 }
 0x148   : > { %v3346_v47 = vadd.f32 %v4689_v2, %v3225_v36  ;;  %v4769_v23 = vpop.f32.mrf.mxu0  ;;  %v3241_v2 = vadd.f32 %v5693_v22, %v5730_v20 }
 0x149   : > { %v4691_v11 = vpop.f32.mrf.mxu1  ;;  %v5778_v18 = vadd.f32 %v4768_v14, %v3341_v41 }
 0x14a   : > { %v4692_v19 = vadd.f32 %v4691_v11, %v4690_v10  ;;  %v4770_v31 = vpop.f32.mrf.mxu0 }
 0x14b   : > { %v4693_v28 = vpop.f32.mrf.mxu1  ;;  %v4771_v26 = vadd.f32 %v4770_v31, %v4769_v23 }
 0x14c   : > { %v3349_v54 = vadd.f32 %v4692_v19, %v3228_v13  ;;  %v4772_v9 = vpop.f32.mrf.mxu0  ;;  %v3244_v19 = vadd.f32 %v5699_v37, %v5730_v20 }
 0x14d   : > { %v4694_v33 = vpop.f32.mrf.mxu1  ;;  %v5782_v27 = vadd.f32 %v4771_v26, %v3346_v47 }
 0x14e   : > { %v4695_v29 = vadd.f32 %v4694_v33, %v4693_v28  ;;  %v4773_v48 = vpop.f32.mrf.mxu0 }
 0x14f   : > { %v4696_v46 = vpop.f32.mrf.mxu1  ;;  %v4774_v43 = vadd.f32 %v4773_v48, %v4772_v9 }
 0x150   : > { %v3354_v62 = vadd.f32 %v4695_v29, %v3233_v38  ;;  %v4775_v56 = vpop.f32.mrf.mxu0  ;;  %v3249_v29 = vadd.f32 %v5703_v44, %v5730_v20 }
 0x151   : > { %v4697_v32 = vpop.f32.mrf.mxu1  ;;  %v5786_v41 = vadd.f32 %v4774_v43, %v3349_v54 }
 0x152   : > { %v4698_v53 = vadd.f32 %v4697_v32, %v4696_v46  ;;  %v4776_v60 = vpop.f32.mrf.mxu0 }
 0x153   : > { %v4699_v61 = vpop.f32.mrf.mxu1  ;;  %v4777_v7 = vadd.f32 %v4776_v60, %v4775_v56 }
 0x154   : > { %v3357_v5 = vadd.f32 %v4698_v53, %v3236_v49  ;;  %v4778_v10 = vpop.f32.mrf.mxu0  ;;  %v3252_v53 = vadd.f32 %v5709_v50, %v5730_v20 }
 0x155   : > { %v4700_v36 = vpop.f32.mrf.mxu1  ;;  %v5790_v47 = vadd.f32 %v4777_v7, %v3354_v62 }
 0x156   : > { %v4701_v4 = vadd.f32 %v4700_v36, %v4699_v61  ;;  %v4779_v11 = vpop.f32.mrf.mxu0 }
 0x157   : > { %v4702_v1 = vpop.f32.mrf.mxu1  ;;  %v4780_v12 = vadd.f32 %v4779_v11, %v4778_v10 }
 0x158   : > { %v3362_v14 = vadd.f32 %v4701_v4, %v3241_v2  ;;  %v4781_v28 = vpop.f32.mrf.mxu0  ;;  %v3257_v4 = vadd.f32 %v5713_v58, %v5730_v20 }
 0x159   : > { %v4703_v13 = vpop.f32.mrf.mxu1  ;;  %v5794_v54 = vadd.f32 %v4780_v12, %v3357_v5 }
 0x15a   : > { %v4704_v23 = vadd.f32 %v4703_v13, %v4702_v1  ;;  %v4782_v33 = vpop.f32.mrf.mxu0 }
 0x15b   : > { %v4705_v31 = vpop.f32.mrf.mxu1  ;;  %v4783_v22 = vadd.f32 %v4782_v33, %v4781_v28 }
 0x15c   : > { %v3365_v26 = vadd.f32 %v4704_v23, %v3244_v19  ;;  %v4784_v46 = vpop.f32.mrf.mxu0  ;;  %v3260_v23 = vadd.f32 %v5717_v0, %v5730_v20 }
 0x15d   : > { %v4706_v38 = vpop.f32.mrf.mxu1  ;;  %v5798_v62 = vadd.f32 %v4783_v22, %v3362_v14 }
 0x15e   : > { %v4707_v9 = vadd.f32 %v4706_v38, %v4705_v31  ;;  %v4785_v32 = vpop.f32.mrf.mxu0 }
 0x15f   : > { %v4708_v48 = vpop.f32.mrf.mxu1  ;;  %v4786_v37 = vadd.f32 %v4785_v32, %v4784_v46 }
 0x160   : > { %v3370_v43 = vadd.f32 %v4707_v9, %v3249_v29  ;;  %v4787_v61 = vpop.f32.mrf.mxu0  ;;  %v3265_v9 = vadd.f32 %v5721_v8, %v5730_v20 }
 0x161   : > { %v4709_v49 = vpop.f32.mrf.mxu1  ;;  %v5802_v5 = vadd.f32 %v4786_v37, %v3365_v26 }
 0x162   : > { %v4710_v56 = vadd.f32 %v4709_v49, %v4708_v48  ;;  %v4788_v36 = vpop.f32.mrf.mxu0 }
 0x163   : > { %v4711_v60 = vpop.f32.mrf.mxu1  ;;  %v4789_v44 = vadd.f32 %v4788_v36, %v4787_v61 }
 0x164   : > { %v3373_v7 = vadd.f32 %v4710_v56, %v3252_v53  ;;  %v4790_v1 = vpop.f32.mrf.mxu0  ;;  %v3268_v56 = vadd.f32 %v5725_v17, %v5730_v20 }
 0x165   : > { %v4712_v2 = vpop.f32.mrf.mxu1  ;;  %v5806_v14 = vadd.f32 %v4789_v44, %v3370_v43 }
 0x166   : > { %v4713_v10 = vadd.f32 %v4712_v2, %v4711_v60  ;;  %v4791_v13 = vpop.f32.mrf.mxu0 }
 0x167   : > { %v4714_v11 = vpop.f32.mrf.mxu1  ;;  %v4792_v50 = vadd.f32 %v4791_v13, %v4790_v1 }
 0x168   : > { %v3378_v12 = vadd.f32 %v4713_v10, %v3257_v4  ;;  %v4793_v31 = vpop.f32.mrf.mxu0 }
 0x169   : > { %v4715_v19 = vpop.f32.mrf.mxu1  ;;  %v5810_v26 = vadd.f32 %v4792_v50, %v3373_v7 }
 0x16a   : > { %v4716_v28 = vadd.f32 %v4715_v19, %v4714_v11  ;;  %v4794_v38 = vpop.f32.mrf.mxu0 }
 0x16b   : > { %v4717_v33 = vpop.f32.mrf.mxu1  ;;  %v4795_v58 = vadd.f32 %v4794_v38, %v4793_v31 }
 0x16c   : > { %v3381_v22 = vadd.f32 %v4716_v28, %v3260_v23  ;;  %v4796_v48 = vpop.f32.mrf.mxu0 }
 0x16d   : > { %v4718_v29 = vpop.f32.mrf.mxu1  ;;  %v5814_v43 = vadd.f32 %v4795_v58, %v3378_v12 }
 0x16e   : > { %v4719_v46 = vadd.f32 %v4718_v29, %v4717_v33  ;;  %v4797_v49 = vpop.f32.mrf.mxu0 }
 0x16f   : > { %v4720_v32 = vpop.f32.mrf.mxu1  ;;  %v4798_v0 = vadd.f32 %v4797_v49, %v4796_v48 }
 0x170   : > { %v3386_v37 = vadd.f32 %v4719_v46, %v3265_v9  ;;  %v4799_v60 = vpop.f32.mrf.mxu0 }
 0x171   : > { %v4721_v53 = vpop.f32.mrf.mxu1  ;;  %v5818_v7 = vadd.f32 %v4798_v0, %v3381_v22 }
 0x172   : > { %v4722_v61 = vadd.f32 %v4721_v53, %v4720_v32  ;;  %v4800_v2 = vpop.f32.mrf.mxu0 }
 0x173   : > { %v4821_v36 = vpop.f32.mrf.mxu1  ;;  %v4801_v8 = vadd.f32 %v4800_v2, %v4799_v60 }
 0x174   : > { %v3389_v44 = vadd.f32 %v4722_v61, %v3268_v56  ;;  %v4802_v1 = vpop.f32.mrf.mxu0 }
 0x175   : > { %v4822_v4 = vpop.f32.mrf.mxu1  ;;  %v5820_v11 = vadd.f32 %v4801_v8, %v3386_v37 }
 0x176   : > { %v4823_v10 = vadd.f32 %v4822_v4, %v4821_v36  ;;  %v4803_v13 = vpop.f32.mrf.mxu0 }
 0x177   : > { %v4824_v12 = vpop.f32.mrf.mxu1  ;;  %v4804_v50 = vadd.f32 %v4803_v13, %v4802_v1 }
 0x178   : > { %v3548_v17 = vadd.f32 %v4823_v10, %v5742_v63  ;;  %v3668_v20 = vpop.f32.mrf.mxu0 }
 0x179   : > { %v4825_v19 = vpop.f32.mrf.mxu1  ;;  %v5823_v28 = vadd.f32 %v4804_v50, %v3389_v44 }
 0x17a   : > { %v4826_v23 = vadd.f32 %v4825_v19, %v4824_v12  ;;  %v4924_v33 = vpop.f32.mrf.mxu0  ;;  %v3669_v58 = vadd.f32 %v3668_v20, %v3548_v17 }
 0x17b   : > { %v4827_v31 = vpop.f32.mrf.mxu1 }
 0x17c   : > { %v3551_v22 = vadd.f32 %v4826_v23, %v5746_v16  ;;  %v3671_v9 = vpop.f32.mrf.mxu0  ;;  %v3805_v0 = vmul.f32 %v3669_v58, %v3669_v58 }
 0x17d   : > { %v4828_v38 = vpop.f32.mrf.mxu1 }
 0x17e   : > { %v4829_v29 = vadd.f32 %v4828_v38, %v4827_v31  ;;  %v3672_v46 = vadd.f32 %v3671_v9, %v3551_v22  ;;  %v4925_v32 = vpop.f32.mrf.mxu0 }
 0x17f   : > { %v4830_v48 = vpop.f32.mrf.mxu1 }
 0x180   : > { %v3556_v37 = vadd.f32 %v4829_v29, %v5750_v39  ;;  %v3756_v49 = vsel %vm5364_vm2, %v3672_v46, 0.0  ;;  %v3676_v60 = vpop.f32.mrf.mxu0 }
 0x181   : > { %v4831_v63 = vpop.f32.mrf.mxu1  ;;  %v3777_v53 = vadd.f32 %v3756_v49, %v3669_v58  ;;  %v3806_v56 = vmul.f32 %v3756_v49, %v3756_v49 }
 0x182   : > { %v4832_v61 = vadd.f32 %v4831_v63, %v4830_v48  ;;  %v3677_v36 = vadd.f32 %v3676_v60, %v3556_v37  ;;  %v4928_v2 = vpop.f32.mrf.mxu0 }
 0x183   : > { %v4833_v16 = vpop.f32.mrf.mxu1  ;;  %v3827_v44 = vadd.f32 %v3806_v56, %v3805_v0 }
 0x184   : > { %v3559_v8 = vadd.f32 %v4832_v61, %v5754_v52  ;;  %v3778_v4 = vadd.f32 %v3777_v53, %v3677_v36  ;;  %v3807_v10 = vmul.f32 %v3677_v36, %v3677_v36  ;;  %v3679_v39 = vpop.f32.mrf.mxu0 }
 0x185   : > { %v4834_v1 = vpop.f32.mrf.mxu1 }
 0x186   : > { %v4835_v12 = vadd.f32 %v4834_v1, %v4833_v16  ;;  %v3828_v13 = vadd.f32 %v3827_v44, %v3807_v10  ;;  %v3680_v57 = vadd.f32 %v3679_v39, %v3559_v8  ;;  %v4929_v19 = vpop.f32.mrf.mxu0 }
 0x187   : > { %v4836_v50 = vpop.f32.mrf.mxu1 }
 0x188   : > { %v3564_v23 = vadd.f32 %v4835_v12, %v5758_v3  ;;  %v3758_v17 = vsel %vm5418_vm4, %v3680_v57, 0.0  ;;  %v3684_v38 = vpop.f32.mrf.mxu0 }
 0x189   : > { %v4837_v20 = vpop.f32.mrf.mxu1  ;;  %v3779_v31 = vadd.f32 %v3778_v4, %v3758_v17  ;;  %v3808_v33 = vmul.f32 %v3758_v17, %v3758_v17 }
 0x18a   : > { %v4838_v22 = vadd.f32 %v4837_v20, %v4836_v50  ;;  %v3685_v52 = vadd.f32 %v3684_v38, %v3564_v23  ;;  %v4932_v9 = vpop.f32.mrf.mxu0 }
 0x18b   : > { %v4839_v58 = vpop.f32.mrf.mxu1  ;;  %v3829_v29 = vadd.f32 %v3828_v13, %v3808_v33 }
 0x18c   : > { %v3567_v46 = vadd.f32 %v4838_v22, %v5762_v21  ;;  %v3780_v48 = vadd.f32 %v3779_v31, %v3685_v52  ;;  %v3809_v32 = vmul.f32 %v3685_v52, %v3685_v52  ;;  %v3687_v63 = vpop.f32.mrf.mxu0 }
 0x18d   : > { %v4840_v37 = vpop.f32.mrf.mxu1 }
 0x18e   : > { %v4841_v49 = vadd.f32 %v4840_v37, %v4839_v58  ;;  %v3830_v3 = vadd.f32 %v3829_v29, %v3809_v32  ;;  %v3688_v0 = vadd.f32 %v3687_v63, %v3567_v46  ;;  %v4933_v53 = vpop.f32.mrf.mxu0 }
 0x18f   : > { %v4842_v45 = vpop.f32.mrf.mxu1 }
 0x190   : > { %v3572_v56 = vadd.f32 %v4841_v49, %v5766_v42  ;;  %v3760_v61 = vsel %vm5461_vm6, %v3688_v0, 0.0  ;;  %v3692_v2 = vpop.f32.mrf.mxu0 }
 0x191   : > { %v4843_v60 = vpop.f32.mrf.mxu1  ;;  %v3781_v36 = vadd.f32 %v3780_v48, %v3760_v61  ;;  %v3810_v16 = vmul.f32 %v3760_v61, %v3760_v61 }
 0x192   : > { %v4844_v44 = vadd.f32 %v4843_v60, %v4842_v45  ;;  %v3693_v21 = vadd.f32 %v3692_v2, %v3572_v56  ;;  %v4936_v10 = vpop.f32.mrf.mxu0 }
 0x193   : > { %v4845_v8 = vpop.f32.mrf.mxu1  ;;  %v3831_v4 = vadd.f32 %v3830_v3, %v3810_v16 }
 0x194   : > { %v3575_v1 = vadd.f32 %v4844_v44, %v5770_v55  ;;  %v3782_v12 = vadd.f32 %v3781_v36, %v3693_v21  ;;  %v3811_v39 = vmul.f32 %v3693_v21, %v3693_v21  ;;  %v3695_v50 = vpop.f32.mrf.mxu0 }
 0x195   : > { %v4846_v13 = vpop.f32.mrf.mxu1 }
 0x196   : > { %v4847_v57 = vadd.f32 %v4846_v13, %v4845_v8  ;;  %v3832_v42 = vadd.f32 %v3831_v4, %v3811_v39  ;;  %v3696_v19 = vadd.f32 %v3695_v50, %v3575_v1  ;;  %v4937_v23 = vpop.f32.mrf.mxu0 }
 0x197   : > { %v4848_v25 = vpop.f32.mrf.mxu1 }
 0x198   : > { %v3580_v17 = vadd.f32 %v4847_v57, %v5774_v6  ;;  %v3762_v20 = vsel %vm5511_vm8, %v3696_v19, 0.0  ;;  %v3700_v52 = vpop.f32.mrf.mxu0 }
 0x199   : > { %v4849_v31 = vpop.f32.mrf.mxu1  ;;  %v3783_v33 = vadd.f32 %v3782_v12, %v3762_v20  ;;  %v3812_v22 = vmul.f32 %v3762_v20, %v3762_v20 }
 0x19a   : > { %v4850_v38 = vadd.f32 %v4849_v31, %v4848_v25  ;;  %v3701_v55 = vadd.f32 %v3700_v52, %v3580_v17  ;;  %v4940_v9 = vpop.f32.mrf.mxu0 }
 0x19b   : > { %v4851_v58 = vpop.f32.mrf.mxu1  ;;  %v3833_v29 = vadd.f32 %v3832_v42, %v3812_v22 }
 0x19c   : > { %v3583_v46 = vadd.f32 %v4850_v38, %v5778_v18  ;;  %v3784_v48 = vadd.f32 %v3783_v33, %v3701_v55  ;;  %v3813_v32 = vmul.f32 %v3701_v55, %v3701_v55  ;;  %v3703_v63 = vpop.f32.mrf.mxu0 }
 0x19d   : > { %v4852_v37 = vpop.f32.mrf.mxu1 }
 0x19e   : > { %v4853_v49 = vadd.f32 %v4852_v37, %v4851_v58  ;;  %v3834_v6 = vadd.f32 %v3833_v29, %v3813_v32  ;;  %v3704_v3 = vadd.f32 %v3703_v63, %v3583_v46  ;;  %v4941_v0 = vpop.f32.mrf.mxu0 }
 0x19f   : > { %v4854_v15 = vpop.f32.mrf.mxu1 }
 0x1a0   : > { %v3588_v45 = vadd.f32 %v4853_v49, %v5782_v27  ;;  %v3764_v53 = vsel %vm5335_vm0, %v3704_v3, 0.0  ;;  %v3708_v16 = vpop.f32.mrf.mxu0 }
 0x1a1   : > { %v4855_v56 = vpop.f32.mrf.mxu1  ;;  %v3785_v61 = vadd.f32 %v3784_v48, %v3764_v53  ;;  %v3814_v60 = vmul.f32 %v3764_v53, %v3764_v53 }
 0x1a2   : > { %v4856_v36 = vadd.f32 %v4855_v56, %v4854_v15  ;;  %v3709_v18 = vadd.f32 %v3708_v16, %v3588_v45  ;;  %v4944_v21 = vpop.f32.mrf.mxu0 }
 0x1a3   : > { %v4857_v44 = vpop.f32.mrf.mxu1  ;;  %v3835_v2 = vadd.f32 %v3834_v6, %v3814_v60 }
 0x1a4   : > { %v3591_v8 = vadd.f32 %v4856_v36, %v5786_v41  ;;  %v3786_v4 = vadd.f32 %v3785_v61, %v3709_v18  ;;  %v3815_v10 = vmul.f32 %v3709_v18, %v3709_v18  ;;  %v3711_v39 = vpop.f32.mrf.mxu0 }
 0x1a5   : > { %v4858_v1 = vpop.f32.mrf.mxu1 }
 0x1a6   : > { %v4859_v12 = vadd.f32 %v4858_v1, %v4857_v44  ;;  %v3836_v27 = vadd.f32 %v3835_v2, %v3815_v10  ;;  %v3712_v13 = vadd.f32 %v3711_v39, %v3591_v8  ;;  %v4945_v57 = vpop.f32.mrf.mxu0 }
 0x1a7   : > { %v4860_v35 = vpop.f32.mrf.mxu1 }
 0x1a8   : > { %v3596_v50 = vadd.f32 %v4859_v12, %v5790_v47  ;;  %v3766_v42 = vsel %vm5345_vm1, %v3712_v13, 0.0  ;;  %v3716_v20 = vpop.f32.mrf.mxu0 }
 0x1a9   : > { %v4861_v19 = vpop.f32.mrf.mxu1  ;;  %v3787_v25 = vadd.f32 %v3786_v4, %v3766_v42  ;;  %v3816_v23 = vmul.f32 %v3766_v42, %v3766_v42 }
 0x1aa   : > { %v4862_v17 = vadd.f32 %v4861_v19, %v4860_v35  ;;  %v3717_v41 = vadd.f32 %v3716_v20, %v3596_v50  ;;  %v4948_v22 = vpop.f32.mrf.mxu0 }
 0x1ab   : > { %v4863_v31 = vpop.f32.mrf.mxu1  ;;  %v3837_v33 = vadd.f32 %v3836_v27, %v3816_v23 }
 0x1ac   : > { %v3599_v38 = vadd.f32 %v4862_v17, %v5794_v54  ;;  %v3788_v52 = vadd.f32 %v3787_v25, %v3717_v41  ;;  %v3817_v55 = vmul.f32 %v3717_v41, %v3717_v41  ;;  %v3719_v9 = vpop.f32.mrf.mxu0 }
 0x1ad   : > { %v4864_v58 = vpop.f32.mrf.mxu1 }
 0x1ae   : > { %v4865_v29 = vadd.f32 %v4864_v58, %v4863_v31  ;;  %v3838_v47 = vadd.f32 %v3837_v33, %v3817_v55  ;;  %v3720_v46 = vadd.f32 %v3719_v9, %v3599_v38  ;;  %v4949_v48 = vpop.f32.mrf.mxu0 }
 0x1af   : > { %v4866_v40 = vpop.f32.mrf.mxu1 }
 0x1b0   : > { %v3604_v32 = vadd.f32 %v4865_v29, %v5798_v62  ;;  %v3768_v37 = vsel %vm5369_vm3, %v3720_v46, 0.0  ;;  %v3724_v15 = vpop.f32.mrf.mxu0 }
 0x1b1   : > { %v4867_v49 = vpop.f32.mrf.mxu1  ;;  %v3789_v63 = vadd.f32 %v3788_v52, %v3768_v37  ;;  %v3818_v6 = vmul.f32 %v3768_v37, %v3768_v37 }
 0x1b2   : > { %v4868_v3 = vadd.f32 %v4867_v49, %v4866_v40  ;;  %v3725_v54 = vadd.f32 %v3724_v15, %v3604_v32  ;;  %v4952_v53 = vpop.f32.mrf.mxu0 }
 0x1b3   : > { %v4869_v0 = vpop.f32.mrf.mxu1  ;;  %v3839_v45 = vadd.f32 %v3838_v47, %v3818_v6 }
 0x1b4   : > { %v3607_v56 = vadd.f32 %v4868_v3, %v5802_v5  ;;  %v3790_v61 = vadd.f32 %v3789_v63, %v3725_v54  ;;  %v3819_v60 = vmul.f32 %v3725_v54, %v3725_v54  ;;  %v3727_v18 = vpop.f32.mrf.mxu0 }
 0x1b5   : > { %v4870_v36 = vpop.f32.mrf.mxu1 }
 0x1b6   : > { %v4871_v16 = vadd.f32 %v4870_v36, %v4869_v0  ;;  %v3840_v62 = vadd.f32 %v3839_v45, %v3819_v60  ;;  %v3728_v44 = vadd.f32 %v3727_v18, %v3607_v56  ;;  %v4953_v2 = vpop.f32.mrf.mxu0 }
 0x1b7   : > { %v4872_v59 = vpop.f32.mrf.mxu1 }
 0x1b8   : > { %v3612_v21 = vadd.f32 %v4871_v16, %v5806_v14  ;;  %v3770_v8 = vsel %vm5426_vm5, %v3728_v44, 0.0  ;;  %v3732_v39 = vpop.f32.mrf.mxu0 }
 0x1b9   : > { %v4873_v4 = vpop.f32.mrf.mxu1  ;;  %v3791_v10 = vadd.f32 %v3790_v61, %v3770_v8  ;;  %v3820_v1 = vmul.f32 %v3770_v8, %v3770_v8 }
 0x1ba   : > { %v4874_v12 = vadd.f32 %v4873_v4, %v4872_v59  ;;  %v3733_v5 = vadd.f32 %v3732_v39, %v3612_v21  ;;  %v4956_v35 = vpop.f32.mrf.mxu0 }
 0x1bb   : > { %v4875_v27 = vpop.f32.mrf.mxu1  ;;  %v3841_v13 = vadd.f32 %v3840_v62, %v3820_v1 }
 0x1bc   : > { %v3615_v57 = vadd.f32 %v4874_v12, %v5810_v26  ;;  %v3792_v50 = vadd.f32 %v3791_v10, %v3733_v5  ;;  %v3821_v42 = vmul.f32 %v3733_v5, %v3733_v5  ;;  %v3735_v23 = vpop.f32.mrf.mxu0 }
 0x1bd   : > { %v4876_v19 = vpop.f32.mrf.mxu1 }
 0x1be   : > { %v4877_v25 = vadd.f32 %v4876_v19, %v4875_v27  ;;  %v3842_v14 = vadd.f32 %v3841_v13, %v3821_v42  ;;  %v3736_v17 = vadd.f32 %v3735_v23, %v3615_v57  ;;  %v4957_v20 = vpop.f32.mrf.mxu0 }
 0x1bf   : > { %v4878_v51 = vpop.f32.mrf.mxu1 }
 0x1c0   : > { %v3620_v41 = vadd.f32 %v4877_v25, %v5814_v43  ;;  %v3772_v31 = vsel %vm5475_vm7, %v3736_v17, 0.0  ;;  %v3740_v55 = vpop.f32.mrf.mxu0 }
 0x1c1   : > { %v4879_v33 = vpop.f32.mrf.mxu1  ;;  %v3793_v22 = vadd.f32 %v3792_v50, %v3772_v31  ;;  %v3822_v38 = vmul.f32 %v3772_v31, %v3772_v31 }
 0x1c2   : > { %v4880_v52 = vadd.f32 %v4879_v33, %v4878_v51  ;;  %v3741_v26 = vadd.f32 %v3740_v55, %v3620_v41  ;;  %v4960_v9 = vpop.f32.mrf.mxu0 }
 0x1c3   : > { %v4881_v58 = vpop.f32.mrf.mxu1  ;;  %v3843_v29 = vadd.f32 %v3842_v14, %v3822_v38 }
 0x1c4   : > { %v3623_v47 = vadd.f32 %v4880_v52, %v5818_v7  ;;  %v3794_v46 = vadd.f32 %v3793_v22, %v3741_v26  ;;  %v3823_v40 = vmul.f32 %v3741_v26, %v3741_v26  ;;  %v3743_v37 = vpop.f32.mrf.mxu0 }
 0x1c5   : > { %v4882_v48 = vpop.f32.mrf.mxu1 }
 0x1c6   : > { %v4883_v32 = vadd.f32 %v4882_v48, %v4881_v58  ;;  %v3844_v43 = vadd.f32 %v3843_v29, %v3823_v40  ;;  %v3744_v49 = vadd.f32 %v3743_v37, %v3623_v47  ;;  %v4961_v63 = vpop.f32.mrf.mxu0 }
 0x1c7   : > { %v4884_v34 = vpop.f32.mrf.mxu1 }
 0x1c8   : > { %v3628_v6 = vadd.f32 %v4883_v32, %v5820_v11  ;;  %v3774_v3 = vsel %vm5522_vm9, %v3744_v49, 0.0  ;;  %v3748_v53 = vpop.f32.mrf.mxu0 }
 0x1c9   : > { %v4885_v15 = vpop.f32.mrf.mxu1  ;;  %v3795_v54 = vadd.f32 %v3794_v46, %v3774_v3  ;;  %v3824_v0 = vmul.f32 %v3774_v3, %v3774_v3 }
 0x1ca   : > { %v4886_v45 = vadd.f32 %v4885_v15, %v4884_v34  ;;  %v3749_v7 = vadd.f32 %v3748_v53, %v3628_v6  ;;  %v4964_v61 = vpop.f32.mrf.mxu0 }
 0x1cb   : > { %v3845_v56 = vadd.f32 %v3844_v43, %v3824_v0 }
 0x1cc   : > { %v3631_v60 = vadd.f32 %v4886_v45, %v5823_v28  ;;  %v3796_v36 = vadd.f32 %v3795_v54, %v3749_v7  ;;  %v3825_v16 = vmul.f32 %v3749_v7, %v3749_v7  ;;  %v3751_v18 = vpop.f32.mrf.mxu0 }
 0x1ce   : > { %v3846_v62 = vadd.f32 %v3845_v56, %v3825_v16  ;;  %v3752_v44 = vadd.f32 %v3751_v18, %v3631_v60  ;;  %v4965_v11 = vpop.f32.mrf.mxu0 }
 0x1d0   : > { %v3776_v30 = vsel %vm5654_vm10, %v3752_v44, 0.0 }
 0x1d1   : > { %v3797_v59 = vadd.f32 %v3796_v36, %v3776_v30  ;;  %v3826_v2 = vmul.f32 %v3776_v30, %v3776_v30 }
 0x1d3   : > { %v3798_v21 = vrot.slane %v3797_v59, 4  ;;  %v3847_v8 = vadd.f32 %v3846_v62, %v3826_v2 }
 0x1d5   : > { %v3799_v4 = vadd.f32 %v3798_v21, %v3797_v59  ;;  %v3848_v10 = vrot.slane %v3847_v8, 4 }
 0x1d7   : > { %v3800_v1 = vrot.slane %v3799_v4, 2  ;;  %v3849_v12 = vadd.f32 %v3848_v10, %v3847_v8 }
 0x1d9   : > { %v3801_v28 = vadd.f32 %v3800_v1, %v3799_v4  ;;  %v3850_v39 = vrot.slane %v3849_v12, 2 }
 0x1db   : > { %v3802_v5 = vrot.slane %v3801_v28, 1  ;;  %v3851_v27 = vadd.f32 %v3850_v39, %v3849_v12 }
 0x1dd   : > { %v3803_v13 = vadd.f32 %v3802_v5, %v3801_v28  ;;  %v3852_v24 = vrot.slane %v3851_v27, 1 }
 0x1df   : > { %3804 = vst [vmem:[%s253_s11] sm:$0x1] %v3803_v13  ;;  %v3853_v35 = vadd.f32 %v3852_v24, %v3851_v27 }
 0x1e1   : > { %3854 = vst [vmem:[%s256_s14] sm:$0x1] %v3853_v35 }
 0x1e2 PF: > { %s17_s21 = sadd.s32 1, %s5218_s21  }
 0x1e3   : > { %p14_p4 = scmp.ge.s32.totalorder %s17_s21, 4  }
 0x1e5   :  { %16 = sbr.rel (!%p14_p4) target bundleno = 1 (0x1), region = 82 }

</bundles_post_ra>
